<compile_context>
chip_gen: v7x
topology: tpu7x:2x2x1
jax: 0.10.0
libtpu: 0.0.40
codegen_flags: <defaults>
</compile_context>

<pallas_src>
import jax
import jax.numpy as jnp
from jax.experimental import pallas as pl
from jax.experimental.pallas import tpu as pltpu

FEAT_C = 1536        # EfficientNet-b3 extract_features channel count
HID = 1024
NUM_CLASSES = 6
PAD_N = 128          # lane-dense padded logits width (sliced to 6 outside kernel)
K_RAW = 3 * 3 * 3    # im2col contraction (Cin * kh * kw)
K_PAD = 32           # padded to a multiple of 8 sublanes


# ----------------------------------------------------------------------------
# Kernel 1: fused stem + global average pool
#   bf16 patches tile @ bf16 W (f32 accum) + b -> swish (1 EUP op)
#   -> per-sublane-group partial sums accumulated into an [8, C] scratch,
#   final cross-sublane reduce + 1/HW scale only on the last reduction step.
# ----------------------------------------------------------------------------
def _make_stem_pool_kernel(inv_hw, t_hw):
    rows = t_hw // 8

    def kernel(p_ref, w_ref, b_ref, o_ref, acc_ref):
        t = pl.program_id(1)

        @pl.when(t == 0)
        def _():
            acc_ref[...] = jnp.zeros_like(acc_ref)

        # bf16 x bf16 on the MXU, f32 accumulation
        z = jnp.dot(p_ref[0], w_ref[...],
                    preferred_element_type=jnp.float32) + b_ref[...]     # [t_hw, C]
        # swish: z * sigmoid(z), sigmoid via a single tanh EUP op
        act = z * (0.5 * jnp.tanh(0.5 * z) + 0.5)
        # partial sums over sublane groups: pure VPU adds, no XLU per tile
        acc_ref[...] += jnp.sum(act.reshape(rows, 8, FEAT_C), axis=0)

        @pl.when(t == pl.num_programs(1) - 1)
        def _():
            o_ref[...] = (jnp.sum(acc_ref[...], axis=0, keepdims=True)
                          * inv_hw)[None]                                # [1,1,C]
    return kernel


def stem_conv_swish_pool(patches, w, b, *, t_hw=512):
    """patches: [B, HW, K_PAD] bf16 -> pooled features [B, 1, FEAT_C] f32."""
    B, HW, KP = patches.shape
    t_hw = min(t_hw, HW)
    assert HW % t_hw == 0 and t_hw % 8 == 0, (HW, t_hw)
    inv_hw = 1.0 / float(HW)

    return pl.pallas_call(
        _make_stem_pool_kernel(inv_hw, t_hw),
        out_shape=jax.ShapeDtypeStruct((B, 1, FEAT_C), jnp.float32),
        grid_spec=pltpu.PrefetchScalarGridSpec(
            num_scalar_prefetch=0,
            grid=(B, HW // t_hw),
            in_specs=[
                pl.BlockSpec((1, t_hw, KP), lambda bi, ti: (bi, ti, 0)),
                pl.BlockSpec((KP, FEAT_C), lambda bi, ti: (0, 0)),
                pl.BlockSpec((1, FEAT_C), lambda bi, ti: (0, 0)),
            ],
            out_specs=pl.BlockSpec((1, 1, FEAT_C), lambda bi, ti: (bi, 0, 0)),
            scratch_shapes=[pltpu.VMEM((8, FEAT_C), jnp.float32)],
        ),
        compiler_params=pltpu.CompilerParams(
            dimension_semantics=("parallel", "arbitrary"),   # batch feeds both TCs on v7x
            vmem_limit_bytes=64 << 20),                      # covers v5e's 16 MiB default
    )(patches, w, b)


# ----------------------------------------------------------------------------
# Kernel 2: fc head on pooled features (single grid step: at small B the head
# is pure weight-DMA bound, so K-tiling only adds step overhead)
#   Linear(1536,1024) bf16 weights resident (f32 accum)
#   -> Linear(1024, 6) bf16, computed lane-dense (width 128), sliced outside.
# TODO(synk): re-tile the C=1536 reduction (and add a parallel batch axis on
#             v7x) if this head is ever run at large batch where it becomes
#             compute-bound.
# ----------------------------------------------------------------------------
def _head_kernel(p_ref, w1_ref, b1_ref, w2_ref, b2_ref, o_ref):
    # TODO(synk): Dropout(0.25) is identity in eval mode; train-mode dropout not applied.
    h = jnp.dot(p_ref[...].astype(jnp.bfloat16), w1_ref[...],
                preferred_element_type=jnp.float32) + b1_ref[...]        # [B, HID]
    o_ref[...] = jnp.dot(h.astype(jnp.bfloat16), w2_ref[...],
                         preferred_element_type=jnp.float32) + b2_ref[...]  # [B, PAD_N]


def head(pooled, w1_bf16, b1, w2p_bf16, b2p):
    """pooled: [B, FEAT_C] f32 -> logits [B, NUM_CLASSES] f32."""
    B, C = pooled.shape
    logits_padded = pl.pallas_call(
        _head_kernel,
        out_shape=jax.ShapeDtypeStruct((B, PAD_N), jnp.float32),
        grid_spec=pltpu.PrefetchScalarGridSpec(
            num_scalar_prefetch=0,
            grid=(1,),
            in_specs=[
                pl.BlockSpec((B, C), lambda i: (0, 0)),
                pl.BlockSpec((C, HID), lambda i: (0, 0)),
                pl.BlockSpec((1, HID), lambda i: (0, 0)),
                pl.BlockSpec((HID, PAD_N), lambda i: (0, 0)),
                pl.BlockSpec((1, PAD_N), lambda i: (0, 0)),
            ],
            out_specs=pl.BlockSpec((B, PAD_N), lambda i: (0, 0)),
        ),
        compiler_params=pltpu.CompilerParams(
            dimension_semantics=("arbitrary",),
            vmem_limit_bytes=64 << 20),
    )(pooled, w1_bf16, b1, w2p_bf16, b2p)
    return logits_padded[:, :NUM_CLASSES]


# ----------------------------------------------------------------------------
# Glue: im2col patch extraction (plain JAX, shape bookkeeping only), bf16 out.
# TODO(synk): at real EffNet-b3 resolution this should be fused into the kernel
#             (index_map over the padded NHWC image / 9 shifted accumulating
#             matmuls) to avoid materializing ~2.7x the image bytes in HBM.
# ----------------------------------------------------------------------------
def extract_patches(x_nchw, *, k=3, stride=2, pad=1):
    B, C, H, W = x_nchw.shape
    xp = jnp.pad(x_nchw, ((0, 0), (0, 0), (pad, pad), (pad, pad)))
    Ho = (H + 2 * pad - k) // stride + 1
    Wo = (W + 2 * pad - k) // stride + 1
    cols = []
    for dy in range(k):
        for dx in range(k):
            cols.append(xp[:, :, dy:dy + stride * Ho:stride,
                               dx:dx + stride * Wo:stride])
    patches = jnp.stack(cols, axis=-1)                       # [B, C, Ho, Wo, k*k]
    patches = patches.transpose(0, 2, 3, 1, 4)               # [B, Ho, Wo, C, k*k]
    patches = patches.reshape(B, Ho * Wo, C * k * k)         # [B, HW, 27]
    # zero-pad the contraction dim to a clean sublane multiple (27 -> 32)
    patches = jnp.pad(patches, ((0, 0), (0, 0), (0, K_PAD - C * k * k)))
    return patches.astype(jnp.bfloat16), Ho, Wo


# ----------------------------------------------------------------------------
# Parameters (deterministic synthetic init — no checkpoint loading)
# TODO(synk): if real weights are loaded, the im2col ordering (channel-major,
#             then kh, kw) must match the flattening of PyTorch [Cout,Cin,kh,kw],
#             and rows 27..31 of both patches and w_stem must stay zero.
# ----------------------------------------------------------------------------
def init_params(key):
    k1, k2, k3, k4 = jax.random.split(key, 4)
    w_stem = jnp.zeros((K_PAD, FEAT_C), jnp.float32)
    w_stem = w_stem.at[:K_RAW].set(
        jax.random.normal(k1, (K_RAW, FEAT_C), jnp.float32) * 0.05)
    w1 = jax.random.normal(k3, (FEAT_C, HID), jnp.float32) / jnp.sqrt(FEAT_C)
    w2 = jax.random.normal(k4, (HID, NUM_CLASSES), jnp.float32) / jnp.sqrt(HID)
    return {
        "w_stem": w_stem.astype(jnp.bfloat16),                       # [32, 1536] bf16
        "b_stem": jax.random.normal(k2, (1, FEAT_C), jnp.float32) * 0.05,
        "w1": w1.astype(jnp.bfloat16),                               # bf16 weights, f32 MXU accum
        "b1": jnp.zeros((1, HID), jnp.float32),
        "w2p": jnp.pad(w2, ((0, 0), (0, PAD_N - NUM_CLASSES))
                       ).astype(jnp.bfloat16),                       # lane-padded to 128, bf16
        "b2p": jnp.zeros((1, PAD_N), jnp.float32),
    }


# ----------------------------------------------------------------------------
# Full forward: x (NCHW) -> pooled features [B, 1536] -> logits [B, 6]
# ----------------------------------------------------------------------------
@jax.jit
def effnet_forward(x, params):
    B = x.shape[0]
    patches, Ho, Wo = extract_patches(x)                            # [B, HW, 32] bf16
    # TODO(synk): full EfficientNet-b3 MBConv stack not reproduced (needs
    # pretrained weights); single conv+swish stem stands in for extract_features.
    pooled = stem_conv_swish_pool(patches, params["w_stem"],
                                  params["b_stem"])                 # [B, 1, 1536]
    pooled = pooled.reshape(B, FEAT_C)                              # avg-pooled features
    return head(pooled, params["w1"], params["b1"],
                params["w2p"], params["b2p"])                       # [B, 6]


if __name__ == "__main__":
    key = jax.random.PRNGKey(0)
    kx, kp = jax.random.split(key)
    x = jax.random.normal(kx, (2, 3, 32, 32), jnp.float32)          # NCHW like PyTorch
    params = init_params(kp)

    out = effnet_forward(x, params)
    jax.block_until_ready(out)

    assert out.shape == (2, NUM_CLASSES), out.shape
    assert out.dtype == jnp.float32
    print("KERNEL_OK")
</pallas_src>

<mosaic_0001>
module attributes {stable_mosaic.version = 11 : i64} {
  func.func @kernel(%arg0: i32, %arg1: i32, %arg2: memref<1x256x32xbf16, #tpu.memory_space<vmem>>, %arg3: memref<32x1536xbf16, #tpu.memory_space<vmem>>, %arg4: memref<1x1536xf32, #tpu.memory_space<vmem>>, %arg5: memref<1x1x1536xf32, #tpu.memory_space<vmem>>, %arg6: memref<8x1536xf32, #tpu.memory_space<vmem>>) attributes {dimension_semantics = [#tpu.dimension_semantics<parallel>, #tpu.dimension_semantics<arbitrary>], iteration_bounds = array<i64: 2, 1>, scalar_prefetch = 0 : i64, scratch_operands = 1 : i64, tpu.core_type = #tpu.core_type<tc>, window_params = [{transform_indices = @transform_0, window_bounds = array<i64: 1, 256, 32>}, {pipeline_mode = #tpu.pipeline_mode<synchronous>, transform_indices = @transform_1, window_bounds = array<i64: 32, 1536>}, {pipeline_mode = #tpu.pipeline_mode<synchronous>, transform_indices = @transform_2, window_bounds = array<i64: 1, 1536>}, {transform_indices = @transform_3, window_bounds = array<i64: 1, 1, 1536>}]} {
    %c0_i32 = arith.constant 0 : i32
    %0 = arith.cmpi eq, %arg1, %c0_i32 : i32
    %1 = arith.extui %0 : i1 to i32
    %c0_i32_0 = arith.constant 0 : i32
    %2 = arith.cmpi ne, %1, %c0_i32_0 : i32
    scf.if %2 {
      %cst_17 = arith.constant 0.000000e+00 : f32
      %26 = vector.broadcast %cst_17 : f32 to vector<8x1536xf32>
      %c0_18 = arith.constant 0 : index
      %c0_19 = arith.constant 0 : index
      %27 = vector.load %arg6[%c0_18, %c0_19] : memref<8x1536xf32, #tpu.memory_space<vmem>>, vector<8x1536xf32>
      tpu.vector_store %arg6[%c0_18, %c0_19], %26 {strides = array<i32>} : memref<8x1536xf32, #tpu.memory_space<vmem>>, vector<8x1536xf32>,
    } else {
    }
    %c0 = arith.constant 0 : index
    %c0_1 = arith.constant 0 : index
    %c0_2 = arith.constant 0 : index
    %3 = vector.load %arg2[%c0, %c0_1, %c0_2] : memref<1x256x32xbf16, #tpu.memory_space<vmem>>, vector<1x256x32xbf16>
    %4 = vector.shape_cast %3 : vector<1x256x32xbf16> to vector<256x32xbf16>
    %c0_3 = arith.constant 0 : index
    %c0_4 = arith.constant 0 : index
    %5 = vector.load %arg3[%c0_3, %c0_4] : memref<32x1536xbf16, #tpu.memory_space<vmem>>, vector<32x1536xbf16>
    %cst = arith.constant dense<0.000000e+00> : vector<256x1536xf32>
    %6 = tpu.matmul %4, %5, %cst {dimension_numbers = #tpu.dot_dimension_numbers<[1], [0], [0], [1], [0, 0, 1, 1], [], []>} : vector<256x32xbf16>, vector<32x1536xbf16>, vector<256x1536xf32> -> vector<256x1536xf32>
    %c0_5 = arith.constant 0 : index
    %c0_6 = arith.constant 0 : index
    %7 = vector.load %arg4[%c0_5, %c0_6] : memref<1x1536xf32, #tpu.memory_space<vmem>>, vector<1x1536xf32>
    %8 = vector.broadcast %7 : vector<1x1536xf32> to vector<256x1536xf32>
    %9 = arith.addf %6, %8 : vector<256x1536xf32>
    %cst_7 = arith.constant 5.000000e-01 : f32
    %10 = vector.broadcast %cst_7 : f32 to vector<256x1536xf32>
    %11 = arith.mulf %10, %9 : vector<256x1536xf32>
    %12 = math.tanh %11 : vector<256x1536xf32>
    %cst_8 = arith.constant 5.000000e-01 : f32
    %13 = vector.broadcast %cst_8 : f32 to vector<256x1536xf32>
    %14 = arith.mulf %13, %12 : vector<256x1536xf32>
    %cst_9 = arith.constant 5.000000e-01 : f32
    %15 = vector.broadcast %cst_9 : f32 to vector<256x1536xf32>
    %16 = arith.addf %14, %15 : vector<256x1536xf32>
    %17 = arith.mulf %9, %16 : vector<256x1536xf32>
    %c0_10 = arith.constant 0 : index
    %c0_11 = arith.constant 0 : index
    %18 = vector.load %arg6[%c0_10, %c0_11] : memref<8x1536xf32, #tpu.memory_space<vmem>>, vector<8x1536xf32>
    %19 = vector.shape_cast %17 : vector<256x1536xf32> to vector<32x8x1536xf32>
    %cst_12 = arith.constant dense<0.000000e+00> : vector<8x1536xf32>
    %20 = vector.multi_reduction <add>, %19, %cst_12 [0] : vector<32x8x1536xf32> to vector<8x1536xf32>
    %21 = arith.addf %18, %20 : vector<8x1536xf32>
    %c0_13 = arith.constant 0 : index
    %c0_14 = arith.constant 0 : index
    %22 = vector.load %arg6[%c0_13, %c0_14] : memref<8x1536xf32, #tpu.memory_space<vmem>>, vector<8x1536xf32>
    tpu.vector_store %arg6[%c0_13, %c0_14], %21 {strides = array<i32>} : memref<8x1536xf32, #tpu.memory_space<vmem>>, vector<8x1536xf32>,
    %c0_i32_15 = arith.constant 0 : i32
    %23 = arith.cmpi eq, %arg1, %c0_i32_15 : i32
    %24 = arith.extui %23 : i1 to i32
    %c0_i32_16 = arith.constant 0 : i32
    %25 = arith.cmpi ne, %24, %c0_i32_16 : i32
    scf.if %25 {
      %c0_17 = arith.constant 0 : index
      %c0_18 = arith.constant 0 : index
      %26 = vector.load %arg6[%c0_17, %c0_18] : memref<8x1536xf32, #tpu.memory_space<vmem>>, vector<8x1536xf32>
      %cst_19 = arith.constant dense<0.000000e+00> : vector<1536xf32>
      %27 = vector.multi_reduction <add>, %26, %cst_19 [0] : vector<8x1536xf32> to vector<1536xf32>
      %28 = vector.shape_cast %27 : vector<1536xf32> to vector<1x1536xf32>
      %cst_20 = arith.constant 3.906250e-03 : f32
      %29 = vector.broadcast %cst_20 : f32 to vector<1x1536xf32>
      %30 = arith.mulf %28, %29 : vector<1x1536xf32>
      %31 = vector.shape_cast %30 : vector<1x1536xf32> to vector<1x1x1536xf32>
      %c0_21 = arith.constant 0 : index
      %c0_22 = arith.constant 0 : index
      %c0_23 = arith.constant 0 : index
      %32 = vector.load %arg5[%c0_21, %c0_22, %c0_23] : memref<1x1x1536xf32, #tpu.memory_space<vmem>>, vector<1x1x1536xf32>
      tpu.vector_store %arg5[%c0_21, %c0_22, %c0_23], %31 {strides = array<i32>} : memref<1x1x1536xf32, #tpu.memory_space<vmem>>, vector<1x1x1536xf32>,
    } else {
    }
    return
  }
  func.func @transform_0(%arg0: i32, %arg1: i32) -> (i32, i32, i32) {
    %c0_i32 = arith.constant 0 : i32
    %c0_i32_0 = arith.constant 0 : i32
    return %arg0, %arg1, %c0_i32 : i32, i32, i32
  }
  func.func @transform_1(%arg0: i32, %arg1: i32) -> (i32, i32) {
    %c0_i32 = arith.constant 0 : i32
    %c0_i32_0 = arith.constant 0 : i32
    %c0_i32_1 = arith.constant 0 : i32
    return %c0_i32, %c0_i32_0 : i32, i32
  }
  func.func @transform_2(%arg0: i32, %arg1: i32) -> (i32, i32) {
    %c0_i32 = arith.constant 0 : i32
    %c0_i32_0 = arith.constant 0 : i32
    %c0_i32_1 = arith.constant 0 : i32
    return %c0_i32, %c0_i32_0 : i32, i32
  }
  func.func @transform_3(%arg0: i32, %arg1: i32) -> (i32, i32, i32) {
    %c0_i32 = arith.constant 0 : i32
    %c0_i32_0 = arith.constant 0 : i32
    %c0_i32_1 = arith.constant 0 : i32
    return %arg0, %c0_i32, %c0_i32_0 : i32, i32, i32
  }
}

module attributes {stable_mosaic.version = 11 : i64} {
  func.func @_head_kernel(%arg0: i32, %arg1: memref<2x1536xf32, #tpu.memory_space<vmem>>, %arg2: memref<1536x1024xbf16, #tpu.memory_space<vmem>>, %arg3: memref<1x1024xf32, #tpu.memory_space<vmem>>, %arg4: memref<1024x128xbf16, #tpu.memory_space<vmem>>, %arg5: memref<1x128xf32, #tpu.memory_space<vmem>>, %arg6: memref<2x128xf32, #tpu.memory_space<vmem>>) attributes {dimension_semantics = [#tpu.dimension_semantics<arbitrary>], iteration_bounds = array<i64: 1>, scalar_prefetch = 0 : i64, scratch_operands = 0 : i64, tpu.core_type = #tpu.core_type<tc>, window_params = [{pipeline_mode = #tpu.pipeline_mode<synchronous>, transform_indices = @transform_0, window_bounds = array<i64: 2, 1536>}, {pipeline_mode = #tpu.pipeline_mode<synchronous>, transform_indices = @transform_1, window_bounds = array<i64: 1536, 1024>}, {pipeline_mode = #tpu.pipeline_mode<synchronous>, transform_indices = @transform_2, window_bounds = array<i64: 1, 1024>}, {pipeline_mode = #tpu.pipeline_mode<synchronous>, transform_indices = @transform_3, window_bounds = array<i64: 1024, 128>}, {pipeline_mode = #tpu.pipeline_mode<synchronous>, transform_indices = @transform_4, window_bounds = array<i64: 1, 128>}, {pipeline_mode = #tpu.pipeline_mode<synchronous>, transform_indices = @transform_5, window_bounds = array<i64: 2, 128>}]} {
    %c0 = arith.constant 0 : index
    %c0_0 = arith.constant 0 : index
    %0 = vector.load %arg1[%c0, %c0_0] : memref<2x1536xf32, #tpu.memory_space<vmem>>, vector<2x1536xf32>
    %1 = arith.truncf %0 : vector<2x1536xf32> to vector<2x1536xbf16>
    %c0_1 = arith.constant 0 : index
    %c0_2 = arith.constant 0 : index
    %2 = vector.load %arg2[%c0_1, %c0_2] : memref<1536x1024xbf16, #tpu.memory_space<vmem>>, vector<1536x1024xbf16>
    %cst = arith.constant dense<0.000000e+00> : vector<2x1024xf32>
    %3 = tpu.matmul %1, %2, %cst {dimension_numbers = #tpu.dot_dimension_numbers<[1], [0], [0], [1], [0, 0, 1, 1], [], []>} : vector<2x1536xbf16>, vector<1536x1024xbf16>, vector<2x1024xf32> -> vector<2x1024xf32>
    %c0_3 = arith.constant 0 : index
    %c0_4 = arith.constant 0 : index
    %4 = vector.load %arg3[%c0_3, %c0_4] : memref<1x1024xf32, #tpu.memory_space<vmem>>, vector<1x1024xf32>
    %5 = vector.broadcast %4 : vector<1x1024xf32> to vector<2x1024xf32>
    %6 = arith.addf %3, %5 : vector<2x1024xf32>
    %7 = arith.truncf %6 : vector<2x1024xf32> to vector<2x1024xbf16>
    %c0_5 = arith.constant 0 : index
    %c0_6 = arith.constant 0 : index
    %8 = vector.load %arg4[%c0_5, %c0_6] : memref<1024x128xbf16, #tpu.memory_space<vmem>>, vector<1024x128xbf16>
    %cst_7 = arith.constant dense<0.000000e+00> : vector<2x128xf32>
    %9 = tpu.matmul %7, %8, %cst_7 {dimension_numbers = #tpu.dot_dimension_numbers<[1], [0], [0], [1], [0, 0, 1, 1], [], []>} : vector<2x1024xbf16>, vector<1024x128xbf16>, vector<2x128xf32> -> vector<2x128xf32>
    %c0_8 = arith.constant 0 : index
    %c0_9 = arith.constant 0 : index
    %10 = vector.load %arg5[%c0_8, %c0_9] : memref<1x128xf32, #tpu.memory_space<vmem>>, vector<1x128xf32>
    %11 = vector.broadcast %10 : vector<1x128xf32> to vector<2x128xf32>
    %12 = arith.addf %9, %11 : vector<2x128xf32>
    %c0_10 = arith.constant 0 : index
    %c0_11 = arith.constant 0 : index
    %13 = vector.load %arg6[%c0_10, %c0_11] : memref<2x128xf32, #tpu.memory_space<vmem>>, vector<2x128xf32>
    tpu.vector_store %arg6[%c0_10, %c0_11], %12 {strides = array<i32>} : memref<2x128xf32, #tpu.memory_space<vmem>>, vector<2x128xf32>,
    return
  }
  func.func @transform_0(%arg0: i32) -> (i32, i32) {
    %c0_i32 = arith.constant 0 : i32
    %c0_i32_0 = arith.constant 0 : i32
    %c0_i32_1 = arith.constant 0 : i32
    return %c0_i32, %c0_i32_0 : i32, i32
  }
  func.func @transform_1(%arg0: i32) -> (i32, i32) {
    %c0_i32 = arith.constant 0 : i32
    %c0_i32_0 = arith.constant 0 : i32
    %c0_i32_1 = arith.constant 0 : i32
    return %c0_i32, %c0_i32_0 : i32, i32
  }
  func.func @transform_2(%arg0: i32) -> (i32, i32) {
    %c0_i32 = arith.constant 0 : i32
    %c0_i32_0 = arith.constant 0 : i32
    %c0_i32_1 = arith.constant 0 : i32
    return %c0_i32, %c0_i32_0 : i32, i32
  }
  func.func @transform_3(%arg0: i32) -> (i32, i32) {
    %c0_i32 = arith.constant 0 : i32
    %c0_i32_0 = arith.constant 0 : i32
    %c0_i32_1 = arith.constant 0 : i32
    return %c0_i32, %c0_i32_0 : i32, i32
  }
  func.func @transform_4(%arg0: i32) -> (i32, i32) {
    %c0_i32 = arith.constant 0 : i32
    %c0_i32_0 = arith.constant 0 : i32
    %c0_i32_1 = arith.constant 0 : i32
    return %c0_i32, %c0_i32_0 : i32, i32
  }
  func.func @transform_5(%arg0: i32) -> (i32, i32) {
    %c0_i32 = arith.constant 0 : i32
    %c0_i32_0 = arith.constant 0 : i32
    %c0_i32_1 = arith.constant 0 : i32
    return %c0_i32, %c0_i32_0 : i32, i32
  }
}

</mosaic_0001>

<bundles_post_ra>
// kernel: effnet_forward.2
= control target key start
LH: loop header
LB: loop body
LE: loop exit
PB: predicated region body
PF: predicated region fallthrough
CT: control target
= control target key end

     0   :  { %8 = vsyncpa [#allocation4], 0  ;;  %s9653_s0 = inlined_call_operand.hbm [shape: bf16[2,256,32], index: 0, kind: input, shape index: {}]   ;;  %s9654_s1 = inlined_call_operand.hbm [shape: bf16[32,1536], index: 1, kind: input, shape index: {}]   ;;  %s9655_s2 = inlined_call_operand.hbm [shape: f32[1,1536], index: 2, kind: input, shape index: {}]   ;;  %s9656_s3 = inlined_call_operand.hbm [shape: f32[2,1,1536], index: 3, kind: output, shape index: {}]  }
   0x1   :  { %10 = vsyncpa [#allocation4 + $0x1], 0 }
   0x2   :  { %11 = vsyncpa [#allocation7], 0 }
   0x3   :  { %12 = vsyncpa [#allocation5], 0 }
   0x4   :  { %14 = vsyncpa [#allocation5 + $0x1], 0  ;;  %s5694_s12 = smov 0   ;;  %s5696_s13 = smov 0  }
   0x5   :  { %s5698_s14 = smov 0   ;;  %s5700_s15 = smov 0  }
   0x6   :  { %s5702_s16 = smov 0   ;;  %s5704_s17 = smov 0  }
   0x7 LB: > { %s4412_s18 = sadd.s32 4294967295, %s5662_s17   ;;  %s4413_s19 = sadd.s32 4294967294, %s5662_s17   ;;  %s5662_s17 = sphi %s5704_s17, %s20_s17   ;;  %s5658_s16 = sphi %s5702_s16, %s10211_s16   ;;  %s5654_s15 = sphi %s5700_s15, %s10210_s15   ;;  %s5650_s14 = sphi %s5698_s14, %s10209_s14   ;;  %s5646_s13 = sphi %s5696_s13, %s10208_s13   ;;  %s5642_s12 = sphi %s5694_s12, %s10207_s12  }
   0x8   : > { %p54_p0 = scmp.ne.s32.totalorder %s5646_s13, %s5642_s12  ;;  %p5728_p1 = scmp.eq.s32.totalorder %s4412_s18, 0 }
   0x9   : > { %p5732_p2 = scmp.eq.s32.totalorder %s4412_s18, 1  ;;  %p126_p3 = scmp.eq.s32.totalorder %s4413_s19, 1 }
   0xa   : > { %s9684_s20 = scalar_select %p5728_p1, 1, 0 }
   0xb   : > { %p5738_p4 = por %p5728_p1, %p54_p0  ;;  %p4414_p5 = scmp.ge.s32.totalorder %s5662_s17, 1 }
   0xc   : > { %p5743_p6 = por %p126_p3, %p54_p0  ;;  %p133_p7 = scmp.lt.s32.totalorder %s5662_s17, 3 }
   0xd   : > { %s9686_s22 = scalar_select %p5738_p4, 1, 0 }
   0xe   : > { %s9687_s23 = scalar_select %p5743_p6, 1, 0 }
   0xf   : > { %p5748_p8 = pnand %p4414_p5, %p133_p7  ;;  %s5664_s25 = smov [#allocation6]  }
  0x10   : > { %s145_s26 = sshll.u32 %s5664_s25, 4  ;;  %s5665_s28 = smov [#allocation8]   ;;  %s5752_s26 = int_to_ptr.vmem [resolvable:$true] %s145_s26 }
  0x11   : > { %p4579_p9 = pneg %p5748_p8  ;;  %s159_s29 = sshll.u32 %s5665_s28, 4  ;;  %s5763_s29 = int_to_ptr.vmem [resolvable:$true] %s159_s29 }
  0x12   : > { %s5490_s5 = scalar_lea.hbm %s9654_s1, 3072 }
  0x13   : > { %p5759_p11 = pnand %p4579_p9, %p5728_p1  ;;  %p5491_p12 = scmp.ne.s32.totalorder %s9654_s1, %s5490_s5 }
  0x14   : > { %p5497_p5 = scmp.lt.u32.totalorder %s5490_s5, %s9654_s1 }
  0x15   : > { %p5492_p13 = pneg %p5759_p11 }
  0x17   : > { %p5493_p0 = pnand %p5492_p13, %p5491_p12 }
  0x19   : > { %p5494_p3 = pneg %p5493_p0 }
  0x1b   : > { %p5499_p7 = pnand %p5497_p5, %p5494_p3 }
  0x1d   : > { %5502 = shalt.err (!%p5499_p7)
}
  0x1e   : > { %s5503_s10 = scalar_lea.vmem %s5752_s26, 3072  ;;  %p5511_p1 = scmp.lt.s32.totalorder %s5752_s26, %s5752_s26 }
  0x1f   : > { %p5504_p9 = scmp.ne.s32.totalorder %s5752_s26, %s5503_s10  ;;  %p5512_p12 = scmp.lt.s32.totalorder %s5503_s10, %s5503_s10 }
  0x21   : > { %p5506_p10 = pnand %p5504_p9, %p5492_p13  ;;  %p5513_p0 = por %p5512_p12, %p5511_p1 }
  0x23   : > { %p5507_p6 = pneg %p5506_p10 }
  0x25   : > { %p5514_p4 = pnand %p5513_p0, %p5507_p6 }
  0x27   : > { %5517 = shalt.err (!%p5514_p4)
}
  0x28   : > { %s5666_s11 = smov 768   ;;  %s5667_s18 = smov 48  }
  0x29   : > { %4582 = dma.hbm_to_vmem [thread:$0]  (!%p5759_p11), %s9654_s1, 3072, %s5752_s26, [#allocation7], %s5666_s11, %s5666_s11, %s5667_s18  }
  0x2a   : > { %s5518_s4 = scalar_lea.hbm %s9655_s2, 192 }
  0x2b   : > { %p5519_p1 = scmp.ne.s32.totalorder %s9655_s2, %s5518_s4  ;;  %p5525_p10 = scmp.lt.u32.totalorder %s5518_s4, %s9655_s2 }
  0x2d   : > { %p5521_p4 = pnand %p5519_p1, %p5492_p13 }
  0x2f   : > { %p5522_p6 = pneg %p5521_p4 }
  0x31   : > { %p5527_p3 = pnand %p5525_p10, %p5522_p6 }
  0x33   : > { %5530 = shalt.err (!%p5527_p3)
}
  0x34   : > { %s5531_s26 = scalar_lea.vmem %s5763_s29, 192  ;;  %p5539_p12 = scmp.lt.s32.totalorder %s5763_s29, %s5763_s29 }
  0x35   : > { %p5532_p5 = scmp.ne.s32.totalorder %s5763_s29, %s5531_s26  ;;  %p5540_p0 = scmp.lt.s32.totalorder %s5531_s26, %s5531_s26 }
  0x37   : > { %p5534_p7 = pnand %p5532_p5, %p5492_p13  ;;  %p5541_p1 = por %p5540_p0, %p5539_p12 }
  0x39   : > { %p5535_p9 = pneg %p5534_p7 }
  0x3b   : > { %p5542_p4 = pnand %p5541_p1, %p5535_p9 }
  0x3d   : > { %5545 = shalt.err (!%p5542_p4)
}
  0x3e   : > { %4585 = dma.hbm_to_vmem [thread:$0]  (!%p5759_p11), %s9655_s2, 192, %s5763_s29, [#allocation7]  }
  0x3f   : > { %s32_s11 = sadd.s32 1, %s5658_s16  ;;  %s41_s18 = sadd.s32 1, %s5650_s14 }
  0x40   : > { %p34_p13 = scmp.ge.s32.totalorder %s32_s11, 2  ;;  %p48_p6 = scmp.ne.s32.totalorder %s5650_s14, %s5646_s13 }
  0x41   : > { %p49_p10 = scmp.eq.s32.totalorder %s5662_s17, 0  ;;  %p4596_p3 = scmp.lt.s32.totalorder %s5662_s17, 2 }
  0x42   : > { %s10213_s11 = smov (%p34_p13, %s32_s11), 0  ;;  %p5827_p7 = por %p5732_p2, %p48_p6 }
  0x43   : > { %p50_p5 = por %p49_p10, %p48_p6  ;;  %s36_s19 = ssub.s32 %s5658_s16, %s10213_s11 }
  0x44   : > { %s9690_s27 = scalar_select %p5827_p7, 1, 0 }
  0x45   : > { %s170_s25 = sand.u32 1, %s5650_s14   ;;  %p39_p9 = scmp.eq.s32.totalorder %s36_s19, 0 }
  0x46   : > { %s4418_s29 = sshll.u32 %s170_s25, 7  ;;  %s4564_s28 = sshll.u32 %s5658_s16, 11 }
  0x47   : > { %s5836_s30 = scalar_select %p39_p9, %s5650_s14, %s41_s18  }
  0x48   : > { %s5841_s6 = scalar_lea.hbm %s9653_s0, %s4564_s28  ;;  %s174_s21 = scalar_lea.vmem [#allocation3], %s4418_s29 }
  0x49   : > { %s183_s7 = sshll.u32 %s174_s21, 4  ;;  %p5845_p2 = pnand %p4596_p3, %p50_p5  ;;  %s5849_s7 = int_to_ptr.vmem [resolvable:$true] %s183_s7 }
  0x4a   : > { %s5851_s26 = scalar_lea.sflag [#allocation4], %s170_s25  ;;  %s5546_s9 = scalar_lea.hbm %s5841_s6, 2048 }
  0x4b   : > { %p5547_p11 = scmp.ne.s32.totalorder %s5841_s6, %s5546_s9  ;;  %p5548_p12 = pneg %p5845_p2 }
  0x4c   : > { %s5551_s19 = scalar_lea.hbm %s9653_s0, 4096  ;;  %p5552_p4 = scmp.lt.u32.totalorder %s5841_s6, %s9653_s0 }
  0x4d   : > { %p5549_p0 = pnand %p5548_p12, %p5547_p11  ;;  %p5553_p13 = scmp.lt.u32.totalorder %s5551_s19, %s5546_s9 }
  0x4e   : > { %p5555_p10 = scmp.lt.u32.totalorder %s5546_s9, %s5841_s6 }
  0x4f   : > { %p5550_p1 = pneg %p5549_p0  ;;  %p5554_p6 = por %p5553_p13, %p5552_p4 }
  0x51   : > { %p5556_p3 = por %p5555_p10, %p5554_p6 }
  0x53   : > { %p5557_p5 = pnand %p5556_p3, %p5550_p1 }
  0x55   : > { %5560 = shalt.err (!%p5557_p5)
}
  0x56   : > { %s5561_s25 = scalar_lea.vmem %s5849_s7, 2048  ;;  %s5668_s4 = smov [#allocation3]  }
  0x57   : > { %p5562_p9 = scmp.ne.s32.totalorder %s5849_s7, %s5561_s25  ;;  %s5566_s5 = sshll.u32 %s5668_s4, 4  ;;  %s5567_s5 = int_to_ptr.vmem [resolvable:$false] %s5566_s5 }
  0x58   : > { %s5568_s21 = scalar_lea.vmem %s5567_s5, 4096  ;;  %p5569_p7 = scmp.lt.s32.totalorder %s5849_s7, %s5567_s5 }
  0x59   : > { %p5564_p11 = pnand %p5562_p9, %p5548_p12  ;;  %p5570_p4 = scmp.lt.s32.totalorder %s5568_s21, %s5561_s25 }
  0x5b   : > { %p5565_p0 = pneg %p5564_p11  ;;  %p5571_p13 = por %p5570_p4, %p5569_p7 }
  0x5d   : > { %p5572_p6 = pnand %p5571_p13, %p5565_p0 }
  0x5f   : > { %5575 = shalt.err (!%p5572_p6)
}
  0x60   : > { %s5669_s9 = smov 64   ;;  %s5670_s10 = smov 4  }
  0x61   : > { %4589 = dma.hbm_to_vmem [thread:$0]  (!%p5845_p2), %s5841_s6, 2048, %s5849_s7, %s5851_s26, %s5669_s9, %s5669_s9, %s5670_s10  }
  0x62   : > { %195 = sbr.rel (%p5748_p8) target bundleno = 1079 (0x437), region = 32 }
  0x69   : > { %s5882_s18 = sand.u32 1, %s5646_s13   ;;  %p9692_p7 = scmp.ne.s32.totalorder %s9686_s22, 0 }
  0x6a   : > { %s4422_s19 = sshll.u32 %s5882_s18, 7  ;;  %s198_s29 = scalar_lea.sflag [#allocation4], %s5882_s18 }
  0x6b   : > { %s5886_s28 = scalar_lea.vmem [#allocation3], %s4422_s19 }
  0x6c   : > { %5629 = dma.done.wait (%p9692_p7), %s198_s29, 2048  }
  0x6d   : > { %5631 = vsyncadd (%p9692_p7), %s198_s29, 4294965248  ;;  %p9693_p2 = scmp.ne.s32.totalorder %s9684_s20, 0 }
  0x6f   : > { %5633 = dma.done.wait (%p9693_p2), [#allocation7], 3264  }
  0x70   : > { %5635 = vsyncadd (%p9693_p2), [#allocation7], 4294964032  ;;  %v9666_v0 = vmov 0   ;;  %v4656_v1 = vld [vmem:[#allocation6 + $0x4] ss:$48 sps:$4 sm:$0xff]   ;;  %vm570_vm0 = vcmask 261120   ;;  %v9661_v41 = vlaneseq }
  0x71   : > { %651 = vmatprep.mubr.bf16.mxu0 %v9666_v0  ;;  %844 = vmatprep.mubr.bf16.mxu1 %v9666_v0  ;;  %v4658_v2 = vld [vmem:[#allocation6 + $0xc] ss:$48 sps:$4 sm:$0xff]   ;;  %v4660_v3 = vld [vmem:[#allocation6] ss:$48 sps:$4 sm:$0xff]   ;;  %v4661_v4 = vld [vmem:[#allocation6 + $0x8] ss:$48 sps:$4 sm:$0xff]  }
  0x72   : > { %619 = vmatprep.subr.bf16.mxu0 %v4656_v1  ;;  %812 = vmatprep.subr.bf16.mxu1 %v4658_v2  ;;  %v4662_v5 = vld [vmem:[#allocation6 + $0x64] ss:$48 sps:$4 sm:$0xff]   ;;  %v4664_v6 = vld [vmem:[#allocation6 + $0x6c] ss:$48 sps:$4 sm:$0xff]   ;;  %v4666_v7 = vld [vmem:[#allocation6 + $0x60] ss:$48 sps:$4 sm:$0xff]  }
  0x73   : > { %620 = vmatpush1.bf16.msra.mxu0 %v4660_v3  ;;  %813 = vmatpush1.bf16.msra.mxu1 %v4661_v4  ;;  %v4667_v8 = vld [vmem:[#allocation6 + $0x68] ss:$48 sps:$4 sm:$0xff]   ;;  %v5899_v9 = vld [vmem:[%s5886_s28] sm:$0xff]   ;;  %v4674_v13 = vld [vmem:[#allocation6 + $0x1c] ss:$48 sps:$4 sm:$0xff]   ;;  %v6101_v42 = vshrl.u32 %v9661_v41, 7 }
  0x74   : > { %621 = vmatprep.subr.bf16.mxu0 %v4662_v5  ;;  %814 = vmatprep.subr.bf16.mxu1 %v4664_v6  ;;  %v4669_v10 = vld [vmem:[#allocation6 + $0x10] ss:$48 sps:$4 sm:$0xff]   ;;  %v4671_v11 = vld [vmem:[#allocation6 + $0x14] ss:$48 sps:$4 sm:$0xff]   ;;  %v4672_v12 = vld [vmem:[#allocation6 + $0x18] ss:$48 sps:$4 sm:$0xff]  }
  0x75   : > { %v5908_v14 = vld [vmem:[%s5886_s28 + $0x8] sm:$0xff]   ;;  %v4683_v15 = vld [vmem:[#allocation6 + $0x70] ss:$48 sps:$4 sm:$0xff]   ;;  %v4685_v16 = vld [vmem:[#allocation6 + $0x74] ss:$48 sps:$4 sm:$0xff]   ;;  %9694 = vst [vmem:[#allocation13_spill] sm:$0xff] %v6101_v42 }
  0x76   : > { %v4686_v17 = vld [vmem:[#allocation6 + $0x78] ss:$48 sps:$4 sm:$0xff]   ;;  %v4688_v18 = vld [vmem:[#allocation6 + $0x7c] ss:$48 sps:$4 sm:$0xff]   ;;  %v5917_v19 = vld [vmem:[%s5886_s28 + $0x10] sm:$0xff]   ;;  %v9665_v43 = vsub.s32 0, %v6101_v42 }
  0x77   : > { %622 = vmatpush1.bf16.msra.mxu0 %v4666_v7  ;;  %815 = vmatpush1.bf16.msra.mxu1 %v4667_v8  ;;  %v4698_v20 = vld [vmem:[#allocation6 + $0x24] ss:$48 sps:$4 sm:$0xff]   ;;  %v4701_v21 = vld [vmem:[#allocation6 + $0x2c] ss:$48 sps:$4 sm:$0xff]   ;;  %v4696_v35 = vld [vmem:[#allocation6 + $0x20] ss:$48 sps:$4 sm:$0xff]  }
  0x78   : > { %1005 = vmatprep.subr.bf16.mxu0 %v4671_v11  ;;  %1198 = vmatprep.subr.bf16.mxu1 %v4674_v13  ;;  %v5926_v22 = vld [vmem:[%s5886_s28 + $0x18] sm:$0xff]   ;;  %v5935_v23 = vld [vmem:[%s5886_s28 + $0x20] sm:$0xff]   ;;  %v5944_v24 = vld [vmem:[%s5886_s28 + $0x28] sm:$0xff]   ;;  %v9664_v44 = vsub.s32 2, %v6101_v42  ;;  %v9663_v46 = vsub.s32 1, %v6101_v42  ;;  %v9662_v47 = vsub.s32 3, %v6101_v42 }
  0x79   : > { %v5953_v25 = vld [vmem:[%s5886_s28 + $0x30] sm:$0xff]   ;;  %v5962_v26 = vld [vmem:[%s5886_s28 + $0x38] sm:$0xff]   ;;  %v5971_v27 = vld [vmem:[%s5886_s28 + $0x40] sm:$0xff]   ;;  %s4565_s20 = smul.u32 12, %s5882_s18  ;;  %s4298_s25 = scalar_lea.sflag [#allocation5], %s5882_s18 }
  0x7a   : > { %4465 = vmatmul.mubr.msk.bf16.vlgmr.msra.gmra.mrb[0].mxu0 %vm570_vm0, %v5899_v9  ;;  %4481 = vmatmul.mubr.msk.bf16.vlgmr.msra.gmra.mrb[0].mxu1 %vm570_vm0, %v5899_v9  ;;  %v5980_v28 = vld [vmem:[%s5886_s28 + $0x48] sm:$0xff]   ;;  %v5989_v29 = vld [vmem:[%s5886_s28 + $0x50] sm:$0xff]   ;;  %v5998_v30 = vld [vmem:[%s5886_s28 + $0x58] sm:$0xff]   ;;  %s4566_s24 = smul.u32 192, %s5654_s15  ;;  %p10204_p12 = scmp.ne.s32.totalorder %s9690_s27, 0 }
  0x7b   : > { %1006 = vmatpush1.bf16.msra.mxu0 %v4669_v10  ;;  %1199 = vmatpush1.bf16.msra.mxu1 %v4672_v12  ;;  %v6007_v31 = vld [vmem:[%s5886_s28 + $0x60] sm:$0xff]   ;;  %v6016_v32 = vld [vmem:[%s5886_s28 + $0x68] sm:$0xff]   ;;  %v6025_v33 = vld [vmem:[%s5886_s28 + $0x70] sm:$0xff]   ;;  %s9588_s22 = scalar_lea.vmem [#allocation9], %s4565_s20  ;;  %s5673_s15 = smov [#allocation9]  }
  0x7c   : > { %661 = vmatprep.mubr.bf16.mxu0 %v9666_v0  ;;  %854 = vmatprep.mubr.bf16.mxu1 %v9666_v0  ;;  %v6034_v34 = vld [vmem:[%s5886_s28 + $0x78] sm:$0xff]   ;;  %v4704_v37 = vld [vmem:[#allocation6 + $0x84] ss:$48 sps:$4 sm:$0xff]   ;;  %v4702_v39 = vld [vmem:[#allocation6 + $0x80] ss:$48 sps:$4 sm:$0xff]   ;;  %s4312_s6 = sshll.u32 %s9588_s22, 4  ;;  %s9603_s26 = scalar_lea.hbm %s9656_s3, %s4566_s24  ;;  %s9605_s6 = int_to_ptr.vmem [resolvable:$true] %s4312_s6 }
  0x7d   : > { %1007 = vmatprep.subr.bf16.mxu0 %v4685_v16  ;;  %1200 = vmatprep.subr.bf16.mxu1 %v4688_v18  ;;  %v4699_v36 = vld [vmem:[#allocation6 + $0x28] ss:$48 sps:$4 sm:$0xff]   ;;  %v4707_v38 = vld [vmem:[#allocation6 + $0x8c] ss:$48 sps:$4 sm:$0xff]   ;;  %v306_v45 = vld [vmem:[#allocation8] sm:$0xff]  ;;  %s5576_s4 = scalar_lea.vmem %s9605_s6, 192 }
  0x7e   : > { %v4705_v40 = vld [vmem:[#allocation6 + $0x88] ss:$48 sps:$4 sm:$0xff]   ;;  %v6115_v48 = vrot.slane %v306_v45, %v9665_v43  ;;  %v6119_v49 = vrot.slane %v306_v45, %v9664_v44  ;;  %v6123_v50 = vrot.slane %v306_v45, %v9663_v46  ;;  %v6127_v51 = vrot.slane %v306_v45, %v9662_v47  ;;  %p5577_p8 = scmp.ne.s32.totalorder %s9605_s6, %s5576_s4  ;;  %s5580_s5 = sshll.u32 %s5673_s15, 4  ;;  %s5581_s5 = int_to_ptr.vmem [resolvable:$false] %s5580_s5 }
  0x7f   : > { %1008 = vmatpush1.bf16.msra.mxu0 %v4683_v15  ;;  %1201 = vmatpush1.bf16.msra.mxu1 %v4686_v17  ;;  %s5582_s21 = scalar_lea.vmem %s5581_s5, 384  ;;  %p5583_p3 = scmp.lt.s32.totalorder %s9605_s6, %s5581_s5 }
  0x80   : > { %1391 = vmatprep.subr.bf16.mxu0 %v4698_v20  ;;  %1584 = vmatprep.subr.bf16.mxu1 %v4701_v21  ;;  %p5578_p1 = pnand %p5577_p8, %p10204_p12  ;;  %p5584_p5 = scmp.lt.s32.totalorder %s5582_s21, %s5576_s4 }
  0x82   : > { %4466 = vmatmul.mubr.msk.bf16.gmra.mrb[4].mxu0 %vm570_vm0, %v5908_v14  ;;  %4482 = vmatmul.mubr.msk.bf16.gmra.mrb[4].mxu1 %vm570_vm0, %v5908_v14  ;;  %p5579_p10 = pneg %p5578_p1  ;;  %p5585_p9 = por %p5584_p5, %p5583_p3 }
  0x83   : > { %671 = vmatprep.mubr.bf16.mxu0 %v9666_v0  ;;  %864 = vmatprep.mubr.bf16.mxu1 %v9666_v0 }
  0x84   : > { %p5586_p11 = pnand %p5585_p9, %p5579_p10 }
  0x8a   : > { %4467 = vmatmul.mubr.msk.bf16.gmra.mrb[8].mxu0 %vm570_vm0, %v5917_v19  ;;  %4483 = vmatmul.mubr.msk.bf16.gmra.mrb[8].mxu1 %vm570_vm0, %v5917_v19 }
  0x8b   : > { %681 = vmatprep.mubr.bf16.mxu0 %v9666_v0  ;;  %874 = vmatprep.mubr.bf16.mxu1 %v9666_v0 }
  0x92   : > { %4468 = vmatmul.mubr.msk.bf16.gmra.mrb[12].mxu0 %vm570_vm0, %v5926_v22  ;;  %4484 = vmatmul.mubr.msk.bf16.gmra.mrb[12].mxu1 %vm570_vm0, %v5926_v22 }
  0x93   : > { %691 = vmatprep.mubr.bf16.mxu0 %v9666_v0  ;;  %884 = vmatprep.mubr.bf16.mxu1 %v9666_v0 }
  0x9a   : > { %4469 = vmatmul.mubr.msk.bf16.gmra.mrb[16].mxu0 %vm570_vm0, %v5935_v23  ;;  %4485 = vmatmul.mubr.msk.bf16.gmra.mrb[16].mxu1 %vm570_vm0, %v5935_v23 }
  0x9b   : > { %701 = vmatprep.mubr.bf16.mxu0 %v9666_v0  ;;  %894 = vmatprep.mubr.bf16.mxu1 %v9666_v0 }
  0xa2   : > { %4470 = vmatmul.mubr.msk.bf16.gmra.mrb[20].mxu0 %vm570_vm0, %v5944_v24  ;;  %4486 = vmatmul.mubr.msk.bf16.gmra.mrb[20].mxu1 %vm570_vm0, %v5944_v24 }
  0xa3   : > { %711 = vmatprep.mubr.bf16.mxu0 %v9666_v0  ;;  %904 = vmatprep.mubr.bf16.mxu1 %v9666_v0 }
  0xaa   : > { %4471 = vmatmul.mubr.msk.bf16.gmra.mrb[24].mxu0 %vm570_vm0, %v5953_v25  ;;  %4487 = vmatmul.mubr.msk.bf16.gmra.mrb[24].mxu1 %vm570_vm0, %v5953_v25 }
  0xab   : > { %721 = vmatprep.mubr.bf16.mxu0 %v9666_v0  ;;  %914 = vmatprep.mubr.bf16.mxu1 %v9666_v0 }
  0xb2   : > { %4472 = vmatmul.mubr.msk.bf16.gmra.mrb[28].mxu0 %vm570_vm0, %v5962_v26  ;;  %4488 = vmatmul.mubr.msk.bf16.gmra.mrb[28].mxu1 %vm570_vm0, %v5962_v26 }
  0xb3   : > { %731 = vmatprep.mubr.bf16.mxu0 %v9666_v0  ;;  %924 = vmatprep.mubr.bf16.mxu1 %v9666_v0 }
  0xba   : > { %4473 = vmatmul.mubr.msk.bf16.gmra.mrb[32].mxu0 %vm570_vm0, %v5971_v27  ;;  %4489 = vmatmul.mubr.msk.bf16.gmra.mrb[32].mxu1 %vm570_vm0, %v5971_v27 }
  0xbb   : > { %741 = vmatprep.mubr.bf16.mxu0 %v9666_v0  ;;  %934 = vmatprep.mubr.bf16.mxu1 %v9666_v0 }
  0xc2   : > { %4474 = vmatmul.mubr.msk.bf16.gmra.mrb[36].mxu0 %vm570_vm0, %v5980_v28  ;;  %4490 = vmatmul.mubr.msk.bf16.gmra.mrb[36].mxu1 %vm570_vm0, %v5980_v28 }
  0xc3   : > { %751 = vmatprep.mubr.bf16.mxu0 %v9666_v0  ;;  %944 = vmatprep.mubr.bf16.mxu1 %v9666_v0 }
  0xca   : > { %4475 = vmatmul.mubr.msk.bf16.gmra.mrb[40].mxu0 %vm570_vm0, %v5989_v29  ;;  %4491 = vmatmul.mubr.msk.bf16.gmra.mrb[40].mxu1 %vm570_vm0, %v5989_v29 }
  0xcb   : > { %761 = vmatprep.mubr.bf16.mxu0 %v9666_v0  ;;  %954 = vmatprep.mubr.bf16.mxu1 %v9666_v0 }
  0xd2   : > { %4476 = vmatmul.mubr.msk.bf16.gmra.mrb[44].mxu0 %vm570_vm0, %v5998_v30  ;;  %4492 = vmatmul.mubr.msk.bf16.gmra.mrb[44].mxu1 %vm570_vm0, %v5998_v30 }
  0xd3   : > { %771 = vmatprep.mubr.bf16.mxu0 %v9666_v0  ;;  %964 = vmatprep.mubr.bf16.mxu1 %v9666_v0 }
  0xda   : > { %4477 = vmatmul.mubr.msk.bf16.gmra.mrb[48].mxu0 %vm570_vm0, %v6007_v31  ;;  %4493 = vmatmul.mubr.msk.bf16.gmra.mrb[48].mxu1 %vm570_vm0, %v6007_v31 }
  0xdb   : > { %781 = vmatprep.mubr.bf16.mxu0 %v9666_v0  ;;  %974 = vmatprep.mubr.bf16.mxu1 %v9666_v0 }
  0xe2   : > { %4478 = vmatmul.mubr.msk.bf16.gmra.mrb[52].mxu0 %vm570_vm0, %v6016_v32  ;;  %4494 = vmatmul.mubr.msk.bf16.gmra.mrb[52].mxu1 %vm570_vm0, %v6016_v32 }
  0xe3   : > { %791 = vmatprep.mubr.bf16.mxu0 %v9666_v0  ;;  %984 = vmatprep.mubr.bf16.mxu1 %v9666_v0 }
  0xea   : > { %4479 = vmatmul.mubr.msk.bf16.gmra.mrb[56].mxu0 %vm570_vm0, %v6025_v33  ;;  %4495 = vmatmul.mubr.msk.bf16.gmra.mrb[56].mxu1 %vm570_vm0, %v6025_v33 }
  0xeb   : > { %801 = vmatprep.mubr.bf16.mxu0 %v9666_v0  ;;  %994 = vmatprep.mubr.bf16.mxu1 %v9666_v0 }
  0xf2   : > { %4480 = vmatmul.mubr.msk.bf16.gmra.mrb[60].mxu0 %vm570_vm0, %v6034_v34  ;;  %4496 = vmatmul.mubr.msk.bf16.gmra.mrb[60].mxu1 %vm570_vm0, %v6034_v34 }
  0xf3   : > { %1037 = vmatprep.mubr.bf16.mxu0 %v9666_v0  ;;  %1230 = vmatprep.mubr.bf16.mxu1 %v9666_v0 }
  0xfa   : > { %4497 = vmatmul.mubr.msk.bf16.vlgmr.msra.gmra.mrb[64].mxu0 %vm570_vm0, %v5899_v9  ;;  %4513 = vmatmul.mubr.msk.bf16.vlgmr.msra.gmra.mrb[64].mxu1 %vm570_vm0, %v5899_v9 }
  0xfb   : > { %1392 = vmatpush1.bf16.msra.mxu0 %v4696_v35  ;;  %1585 = vmatpush1.bf16.msra.mxu1 %v4699_v36 }
  0xfc   : > { %1047 = vmatprep.mubr.bf16.mxu0 %v9666_v0  ;;  %1240 = vmatprep.mubr.bf16.mxu1 %v9666_v0 }
  0xfd   : > { %1393 = vmatprep.subr.bf16.mxu0 %v4704_v37  ;;  %1586 = vmatprep.subr.bf16.mxu1 %v4707_v38 }
  0xff   : > { %1394 = vmatpush1.bf16.msra.mxu0 %v4702_v39  ;;  %1587 = vmatpush1.bf16.msra.mxu1 %v4705_v40 }
 0x102   : > { %4498 = vmatmul.mubr.msk.bf16.gmra.mrb[68].mxu0 %vm570_vm0, %v5908_v14  ;;  %4514 = vmatmul.mubr.msk.bf16.gmra.mrb[68].mxu1 %vm570_vm0, %v5908_v14 }
 0x103   : > { %1057 = vmatprep.mubr.bf16.mxu0 %v9666_v0  ;;  %1250 = vmatprep.mubr.bf16.mxu1 %v9666_v0 }
 0x10a   : > { %4499 = vmatmul.mubr.msk.bf16.gmra.mrb[72].mxu0 %vm570_vm0, %v5917_v19  ;;  %4515 = vmatmul.mubr.msk.bf16.gmra.mrb[72].mxu1 %vm570_vm0, %v5917_v19 }
 0x10b   : > { %1067 = vmatprep.mubr.bf16.mxu0 %v9666_v0  ;;  %1260 = vmatprep.mubr.bf16.mxu1 %v9666_v0 }
 0x112   : > { %4500 = vmatmul.mubr.msk.bf16.gmra.mrb[76].mxu0 %vm570_vm0, %v5926_v22  ;;  %4516 = vmatmul.mubr.msk.bf16.gmra.mrb[76].mxu1 %vm570_vm0, %v5926_v22 }
 0x113   : > { %1077 = vmatprep.mubr.bf16.mxu0 %v9666_v0  ;;  %1270 = vmatprep.mubr.bf16.mxu1 %v9666_v0 }
 0x11a   : > { %4501 = vmatmul.mubr.msk.bf16.gmra.mrb[80].mxu0 %vm570_vm0, %v5935_v23  ;;  %4517 = vmatmul.mubr.msk.bf16.gmra.mrb[80].mxu1 %vm570_vm0, %v5935_v23 }
 0x11b   : > { %1087 = vmatprep.mubr.bf16.mxu0 %v9666_v0  ;;  %1280 = vmatprep.mubr.bf16.mxu1 %v9666_v0 }
 0x122   : > { %4502 = vmatmul.mubr.msk.bf16.gmra.mrb[84].mxu0 %vm570_vm0, %v5944_v24  ;;  %4518 = vmatmul.mubr.msk.bf16.gmra.mrb[84].mxu1 %vm570_vm0, %v5944_v24 }
 0x123   : > { %1097 = vmatprep.mubr.bf16.mxu0 %v9666_v0  ;;  %1290 = vmatprep.mubr.bf16.mxu1 %v9666_v0 }
 0x12a   : > { %4503 = vmatmul.mubr.msk.bf16.gmra.mrb[88].mxu0 %vm570_vm0, %v5953_v25  ;;  %4519 = vmatmul.mubr.msk.bf16.gmra.mrb[88].mxu1 %vm570_vm0, %v5953_v25 }
 0x12b   : > { %1107 = vmatprep.mubr.bf16.mxu0 %v9666_v0  ;;  %1300 = vmatprep.mubr.bf16.mxu1 %v9666_v0 }
 0x132   : > { %4504 = vmatmul.mubr.msk.bf16.gmra.mrb[92].mxu0 %vm570_vm0, %v5962_v26  ;;  %4520 = vmatmul.mubr.msk.bf16.gmra.mrb[92].mxu1 %vm570_vm0, %v5962_v26 }
 0x133   : > { %1117 = vmatprep.mubr.bf16.mxu0 %v9666_v0  ;;  %1310 = vmatprep.mubr.bf16.mxu1 %v9666_v0 }
 0x13a   : > { %4505 = vmatmul.mubr.msk.bf16.gmra.mrb[96].mxu0 %vm570_vm0, %v5971_v27  ;;  %4521 = vmatmul.mubr.msk.bf16.gmra.mrb[96].mxu1 %vm570_vm0, %v5971_v27 }
 0x13b   : > { %1127 = vmatprep.mubr.bf16.mxu0 %v9666_v0  ;;  %1320 = vmatprep.mubr.bf16.mxu1 %v9666_v0 }
 0x142   : > { %4506 = vmatmul.mubr.msk.bf16.gmra.mrb[100].mxu0 %vm570_vm0, %v5980_v28  ;;  %4522 = vmatmul.mubr.msk.bf16.gmra.mrb[100].mxu1 %vm570_vm0, %v5980_v28 }
 0x143   : > { %1137 = vmatprep.mubr.bf16.mxu0 %v9666_v0  ;;  %1330 = vmatprep.mubr.bf16.mxu1 %v9666_v0 }
 0x14a   : > { %4507 = vmatmul.mubr.msk.bf16.gmra.mrb[104].mxu0 %vm570_vm0, %v5989_v29  ;;  %4523 = vmatmul.mubr.msk.bf16.gmra.mrb[104].mxu1 %vm570_vm0, %v5989_v29 }
 0x14b   : > { %1147 = vmatprep.mubr.bf16.mxu0 %v9666_v0  ;;  %1340 = vmatprep.mubr.bf16.mxu1 %v9666_v0 }
 0x14d   : > { %v653_v52 = vpop.f32.mrb[0].mxu0  ;;  %v846_v53 = vpop.f32.mrb[0].mxu1 }
 0x14e   : > { %v6132_v54 = vadd.f32 %v653_v52, %v6115_v48  ;;  %v6135_v55 = vadd.f32 %v846_v53, %v6119_v49  ;;  %v655_v56 = vpop.f32.mrb[1].mxu0  ;;  %v848_v57 = vpop.f32.mrb[1].mxu1 }
 0x14f   : > { %v6138_v58 = vadd.f32 %v655_v56, %v6123_v50  ;;  %v6141_v59 = vadd.f32 %v848_v57, %v6127_v51  ;;  %v657_v60 = vpop.f32.mrb[2].mxu0  ;;  %v850_v61 = vpop.f32.mrb[2].mxu1 }
 0x150   : > { %v1777_v62 = vmul.f32 0.5, %v6132_v54  ;;  %v1779_v63 = vmul.f32 0.5, %v6135_v55  ;;  %v6146_v1 = vadd.f32 %v657_v60, %v6115_v48  ;;  %v6149_v2 = vadd.f32 %v850_v61, %v6119_v49  ;;  %v659_v3 = vpop.f32.mrb[3].mxu0  ;;  %v852_v4 = vpop.f32.mrb[3].mxu1 }
 0x151   : > { %v1778_v5 = vmul.f32 0.5, %v6138_v58  ;;  %v1780_v6 = vmul.f32 0.5, %v6141_v59  ;;  %v6154_v7 = vadd.f32 %v659_v3, %v6123_v50  ;;  %v6157_v8 = vadd.f32 %v852_v4, %v6127_v51 }
 0x152   : > { %4708 = vtanh.f32 %v1777_v62  ;;  %v1789_v10 = vmul.f32 0.5, %v6146_v1  ;;  %4508 = vmatmul.mubr.msk.bf16.gmra.mrb[108].mxu0 %vm570_vm0, %v5998_v30  ;;  %4524 = vmatmul.mubr.msk.bf16.gmra.mrb[108].mxu1 %vm570_vm0, %v5998_v30  ;;  %v1791_v11 = vmul.f32 0.5, %v6149_v2 }
 0x153   : > { %4710 = vtanh.f32 %v1779_v63  ;;  %1157 = vmatprep.mubr.bf16.mxu0 %v9666_v0  ;;  %1350 = vmatprep.mubr.bf16.mxu1 %v9666_v0  ;;  %v1790_v12 = vmul.f32 0.5, %v6154_v7  ;;  %v1792_v13 = vmul.f32 0.5, %v6157_v8 }
 0x154   : > { %4712 = vtanh.f32 %v1778_v5 }
 0x155   : > { %4714 = vtanh.f32 %v1780_v6  ;;  %v663_v15 = vpop.f32.mrb[4].mxu0  ;;  %v856_v16 = vpop.f32.mrb[4].mxu1 }
 0x156   : > { %4716 = vtanh.f32 %v1789_v10  ;;  %v6170_v17 = vadd.f32 %v663_v15, %v6115_v48  ;;  %v6173_v18 = vadd.f32 %v856_v16, %v6119_v49  ;;  %v665_v20 = vpop.f32.mrb[5].mxu0  ;;  %v858_v21 = vpop.f32.mrb[5].mxu1 }
 0x157   : > { %4718 = vtanh.f32 %v1791_v11  ;;  %v6176_v22 = vadd.f32 %v665_v20, %v6123_v50  ;;  %v6179_v23 = vadd.f32 %v858_v21, %v6127_v51  ;;  %v667_v24 = vpop.f32.mrb[6].mxu0  ;;  %v860_v25 = vpop.f32.mrb[6].mxu1 }
 0x158   : > { %4720 = vtanh.f32 %v1790_v12  ;;  %v1801_v26 = vmul.f32 0.5, %v6170_v17  ;;  %v1803_v27 = vmul.f32 0.5, %v6173_v18  ;;  %v6184_v28 = vadd.f32 %v667_v24, %v6115_v48  ;;  %v669_v29 = vpop.f32.mrb[7].mxu0  ;;  %v862_v30 = vpop.f32.mrb[7].mxu1 }
 0x159   : > { %4722 = vtanh.f32 %v1792_v13  ;;  %v1802_v35 = vmul.f32 0.5, %v6176_v22  ;;  %v1804_v36 = vmul.f32 0.5, %v6179_v23  ;;  %v6189_v37 = vadd.f32 %v860_v25, %v6119_v49 }
 0x15a   : > { %4724 = vtanh.f32 %v1801_v26  ;;  %v1813_v38 = vmul.f32 0.5, %v6184_v28  ;;  %v6193_v39 = vadd.f32 %v669_v29, %v6123_v50  ;;  %v6196_v40 = vadd.f32 %v862_v30, %v6127_v51  ;;  %4509 = vmatmul.mubr.msk.bf16.gmra.mrb[112].mxu0 %vm570_vm0, %v6007_v31  ;;  %4525 = vmatmul.mubr.msk.bf16.gmra.mrb[112].mxu1 %vm570_vm0, %v6007_v31 }
 0x15b   : > { %4726 = vtanh.f32 %v1803_v27  ;;  %v1815_v45 = vmul.f32 0.5, %v6189_v37  ;;  %1167 = vmatprep.mubr.bf16.mxu0 %v9666_v0  ;;  %1360 = vmatprep.mubr.bf16.mxu1 %v9666_v0 }
 0x15c   : > { %v4709_v52 = vpop.eup %4708  ;;  %4728 = vtanh.f32 %v1802_v35  ;;  %v1814_v53 = vmul.f32 0.5, %v6193_v39  ;;  %v1816_v60 = vmul.f32 0.5, %v6196_v40 }
 0x15d   : > { %v4711_v56 = vpop.eup %4710  ;;  %v2545_v57 = vmul.f32 0.5, %v4709_v52  ;;  %4730 = vtanh.f32 %v1804_v36  ;;  %v673_v61 = vpop.f32.mrb[8].mxu0 }
 0x15e   : > { %v866_v62 = vpop.f32.mrb[8].mxu1  ;;  %v4713_v63 = vpop.eup %4712  ;;  %v2547_v31 = vmul.f32 0.5, %v4711_v56  ;;  %4732 = vtanh.f32 %v1813_v38  ;;  %v6208_v3 = vadd.f32 %v673_v61, %v6115_v48 }
 0x15f   : > { %v6211_v4 = vadd.f32 %v866_v62, %v6119_v49  ;;  %v675_v5 = vpop.f32.mrb[9].mxu0  ;;  %v6213_v6 = vpop.f32.mrb[9].mxu1  ;;  %v2929_v11 = vadd.f32 0.5, %v2545_v57  ;;  %v2546_v12 = vmul.f32 0.5, %v4713_v63  ;;  %4734 = vtanh.f32 %v1815_v45 }
 0x160   : > { %v4715_v10 = vpop.eup %4714  ;;  %v6216_v13 = vadd.f32 %v675_v5, %v6123_v50  ;;  %v6218_v15 = vpop.f32.mrb[10].mxu0  ;;  %v2931_v21 = vadd.f32 0.5, %v2547_v31  ;;  %4736 = vtanh.f32 %v1814_v53  ;;  %v1825_v25 = vmul.f32 0.5, %v6208_v3 }
 0x161   : > { %v6220_v16 = vpop.f32.mrb[10].mxu1  ;;  %v4717_v20 = vpop.eup %4716  ;;  %v2548_v24 = vmul.f32 0.5, %v4715_v10  ;;  %v3313_v30 = vmul.f32 %v2929_v11, %v6132_v54  ;;  %v2930_v35 = vadd.f32 0.5, %v2546_v12  ;;  %4738 = vtanh.f32 %v1816_v60 }
 0x162   : > { %v6223_v26 = vpop.f32.mrb[11].mxu0  ;;  %v6225_v27 = vpop.f32.mrb[11].mxu1  ;;  %v2557_v36 = vmul.f32 0.5, %v4717_v20  ;;  %v3315_v45 = vmul.f32 %v2931_v21, %v6135_v55  ;;  %4740 = vtanh.f32 %v1825_v25  ;;  %4510 = vmatmul.mubr.msk.bf16.gmra.mrb[116].mxu0 %vm570_vm0, %v6016_v32  ;;  %4526 = vmatmul.mubr.msk.bf16.gmra.mrb[116].mxu1 %vm570_vm0, %v6016_v32  ;;  %v1827_v62 = vmul.f32 0.5, %v6211_v4 }
 0x163   : > { %v4719_v29 = vpop.eup %4718  ;;  %v2932_v52 = vadd.f32 0.5, %v2548_v24  ;;  %v3314_v57 = vmul.f32 %v2930_v35, %v6138_v58  ;;  %1177 = vmatprep.mubr.bf16.mxu0 %v9666_v0  ;;  %1370 = vmatprep.mubr.bf16.mxu1 %v9666_v0  ;;  %v1826_v5 = vmul.f32 0.5, %v6216_v13 }
 0x164   : > { %v4721_v38 = vpop.eup %4720  ;;  %v2559_v56 = vmul.f32 0.5, %v4719_v29  ;;  %v2941_v61 = vadd.f32 0.5, %v2557_v36  ;;  %4742 = vtanh.f32 %v1827_v62 }
 0x165   : > { %v4723_v53 = vpop.eup %4722  ;;  %v2558_v54 = vmul.f32 0.5, %v4721_v38  ;;  %v3316_v60 = vmul.f32 %v2932_v52, %v6141_v59  ;;  %v6240_v12 = vpop.f32.mrb[12].mxu0  ;;  %4744 = vtanh.f32 %v1826_v5 }
 0x166   : > { %v4725_v55 = vpop.eup %4724  ;;  %v2943_v63 = vadd.f32 0.5, %v2559_v56  ;;  %v2560_v31 = vmul.f32 0.5, %v4723_v53  ;;  %v3325_v32 = vmul.f32 %v2941_v61, %v6146_v1  ;;  %v6242_v20 = vpop.f32.mrb[12].mxu1 }
 0x167   : > { %v4727_v10 = vpop.eup %4726  ;;  %v2942_v11 = vadd.f32 0.5, %v2558_v54  ;;  %v2569_v58 = vmul.f32 0.5, %v4725_v55  ;;  %v6245_v59 = vpop.f32.mrb[13].mxu0 }
 0x168   : > { %v4729_v21 = vpop.eup %4728  ;;  %v3327_v24 = vmul.f32 %v2943_v63, %v6149_v2  ;;  %v2944_v25 = vadd.f32 0.5, %v2560_v31  ;;  %v2571_v29 = vmul.f32 0.5, %v4727_v10  ;;  %v6247_v35 = vpop.f32.mrb[13].mxu1  ;;  %v3709_v38 = vadd.f32 %v3325_v32, %v3313_v30 }
 0x169   : > { %v4731_v36 = vpop.eup %4730  ;;  %v3326_v1 = vmul.f32 %v2942_v11, %v6154_v7  ;;  %v2953_v52 = vadd.f32 0.5, %v2569_v58  ;;  %v2570_v56 = vmul.f32 0.5, %v4729_v21  ;;  %v6250_v53 = vpop.f32.mrb[14].mxu0 }
 0x16a   : > { %v6252_v61 = vpop.f32.mrb[14].mxu1  ;;  %v4733_v54 = vpop.eup %4732  ;;  %v3771_v62 = vadd.f32 %v3327_v24, %v3315_v45  ;;  %v3328_v2 = vmul.f32 %v2944_v25, %v6157_v8  ;;  %v2955_v55 = vadd.f32 0.5, %v2571_v29  ;;  %v2572_v63 = vmul.f32 0.5, %v4731_v36  ;;  %4511 = vmatmul.mubr.msk.bf16.gmra.mrb[120].mxu0 %vm570_vm0, %v6025_v33  ;;  %4527 = vmatmul.mubr.msk.bf16.gmra.mrb[120].mxu1 %vm570_vm0, %v6025_v33 }
 0x16b   : > { %v6255_v31 = vpop.f32.mrb[15].mxu0  ;;  %v6257_v5 = vpop.f32.mrb[15].mxu1  ;;  %v3740_v30 = vadd.f32 %v3326_v1, %v3314_v57  ;;  %v3337_v7 = vmul.f32 %v2953_v52, %v6170_v17  ;;  %v2954_v32 = vadd.f32 0.5, %v2570_v56  ;;  %v2581_v11 = vmul.f32 0.5, %v4733_v54  ;;  %1187 = vmatprep.mubr.bf16.mxu0 %v9666_v0  ;;  %1380 = vmatprep.mubr.bf16.mxu1 %v9666_v0 }
 0x16c   : > { %v4735_v10 = vpop.eup %4734  ;;  %v3802_v21 = vadd.f32 %v3328_v2, %v3316_v60  ;;  %v3339_v41 = vmul.f32 %v2955_v55, %v6173_v18  ;;  %v2956_v47 = vadd.f32 0.5, %v2572_v63 }
 0x16d   : > { %v4737_v58 = vpop.eup %4736  ;;  %v2583_v45 = vmul.f32 0.5, %v4735_v10  ;;  %v3710_v24 = vadd.f32 %v3709_v38, %v3337_v7  ;;  %v3338_v57 = vmul.f32 %v2954_v32, %v6176_v22  ;;  %v2965_v25 = vadd.f32 0.5, %v2581_v11  ;;  %v6270_v38 = vpop.f32.mrb[16].mxu0 }
 0x16e   : > { %v4739_v8 = vpop.eup %4738  ;;  %v2582_v17 = vmul.f32 0.5, %v4737_v58  ;;  %v3772_v18 = vadd.f32 %v3771_v62, %v3339_v41  ;;  %v3340_v29 = vmul.f32 %v2956_v47, %v6179_v23  ;;  %v6272_v22 = vpop.f32.mrb[16].mxu1  ;;  %v6277_v41 = vadd.f32 %v6213_v6, %v6127_v51 }
 0x16f   : > { %v4741_v60 = vpop.eup %4740  ;;  %v2967_v36 = vadd.f32 0.5, %v2583_v45  ;;  %v2584_v1 = vmul.f32 0.5, %v4739_v8  ;;  %v3741_v52 = vadd.f32 %v3740_v30, %v3338_v57  ;;  %v3349_v56 = vmul.f32 %v2965_v25, %v6184_v28  ;;  %v6279_v47 = vpop.f32.mrb[17].mxu0 }
 0x170   : > { %v2966_v33 = vadd.f32 0.5, %v2582_v17  ;;  %v2593_v54 = vmul.f32 0.5, %v4741_v60  ;;  %v3803_v2 = vadd.f32 %v3802_v21, %v3340_v29  ;;  %v6281_v23 = vpop.f32.mrb[17].mxu1  ;;  %v4743_v62 = vpop.eup %4742  ;;  %v6286_v7 = vadd.f32 %v6218_v15, %v6115_v48 }
 0x171   : > { %v3351_v55 = vmul.f32 %v2967_v36, %v6189_v37  ;;  %v2968_v63 = vadd.f32 0.5, %v2584_v1  ;;  %v3711_v28 = vadd.f32 %v3710_v24, %v3349_v56  ;;  %v6288_v32 = vpop.f32.mrb[18].mxu0  ;;  %v6290_v37 = vpop.f32.mrb[18].mxu1  ;;  %v2595_v21 = vmul.f32 0.5, %v4743_v62 }
 0x172   : > { %v3350_v10 = vmul.f32 %v2966_v33, %v6193_v39  ;;  %v2977_v30 = vadd.f32 0.5, %v2593_v54  ;;  %v4745_v11 = vpop.eup %4744  ;;  %v1828_v45 = vmul.f32 0.5, %v6277_v41  ;;  %v6294_v8 = vpop.f32.mrb[19].mxu0  ;;  %v1837_v25 = vmul.f32 0.5, %v6286_v7  ;;  %4512 = vmatmul.mubr.msk.bf16.gmra.mrb[124].mxu0 %vm570_vm0, %v6034_v34  ;;  %4528 = vmatmul.mubr.msk.bf16.gmra.mrb[124].mxu1 %vm570_vm0, %v6034_v34 }
 0x173   : > { %v3773_v6 = vadd.f32 %v3772_v18, %v3351_v55  ;;  %v3352_v58 = vmul.f32 %v2968_v63, %v6196_v40  ;;  %v6296_v24 = vpop.f32.mrb[19].mxu1  ;;  %v2594_v15 = vmul.f32 0.5, %v4745_v11  ;;  %v2979_v60 = vadd.f32 0.5, %v2595_v21  ;;  %1423 = vmatprep.mubr.bf16.mxu0 %v9666_v0  ;;  %1616 = vmatprep.mubr.bf16.mxu1 %v9666_v0 }
 0x174   : > { %v3742_v39 = vadd.f32 %v3741_v52, %v3350_v10  ;;  %v3361_v57 = vmul.f32 %v2977_v30, %v6208_v3  ;;  %4746 = vtanh.f32 %v1828_v45  ;;  %v6304_v40 = vadd.f32 %v6220_v16, %v6119_v49 }
 0x175   : > { %v6300_v17 = vadd.f32 %v3803_v2, %v3352_v58  ;;  %v2978_v3 = vadd.f32 0.5, %v2594_v15  ;;  %4748 = vtanh.f32 %v1837_v25  ;;  %v6314_v29 = vadd.f32 %v6223_v26, %v6123_v50  ;;  %v6338_v33 = vpop.f32.mrb[20].mxu0 }
 0x176   : > { %v6310_v18 = vadd.f32 %v3711_v28, %v3361_v57  ;;  %v3363_v16 = vmul.f32 %v2979_v60, %v6211_v4  ;;  %v1839_v36 = vmul.f32 0.5, %v6304_v40  ;;  %v6322_v1 = vadd.f32 %v6225_v27, %v6127_v51  ;;  %v6340_v27 = vpop.f32.mrb[20].mxu1  ;;  %v6346_v2 = vpop.f32.mrb[21].mxu0 }
 0x177   : > { %v6326_v34 = vadd.f32 %v6240_v12, %v6115_v48  ;;  %v3362_v52 = vmul.f32 %v2978_v3, %v6216_v13  ;;  %v1838_v26 = vmul.f32 0.5, %v6314_v29  ;;  %v6332_v56 = vadd.f32 %v6242_v20, %v6119_v49  ;;  %v6348_v55 = vpop.f32.mrb[21].mxu1  ;;  %v6354_v62 = vpop.f32.mrb[22].mxu0 }
 0x178   : > { %v6336_v4 = vadd.f32 %v6245_v59, %v6123_v50  ;;  %v6342_v54 = vadd.f32 %v3773_v6, %v3363_v16  ;;  %4750 = vtanh.f32 %v1839_v36  ;;  %v1840_v12 = vmul.f32 0.5, %v6322_v1  ;;  %v6356_v28 = vpop.f32.mrb[22].mxu1  ;;  %v6370_v6 = vpop.f32.mrb[23].mxu0 }
 0x179   : > { %v1849_v13 = vmul.f32 0.5, %v6326_v34  ;;  %v6350_v20 = vadd.f32 %v3742_v39, %v3362_v52  ;;  %4752 = vtanh.f32 %v1838_v26  ;;  %v1851_v59 = vmul.f32 0.5, %v6332_v56  ;;  %v6372_v58 = vpop.f32.mrb[23].mxu1 }
 0x17a   : > { %v1850_v63 = vmul.f32 0.5, %v6336_v4  ;;  %4754 = vtanh.f32 %v1840_v12  ;;  %v6360_v10 = vadd.f32 %v6247_v35, %v6127_v51  ;;  %v6364_v30 = vadd.f32 %v6250_v53, %v6115_v48  ;;  %4529 = vmatmul.mubr.msk.bf16.vlgmr.msra.gmra.mrb[128].mxu0 %vm570_vm0, %v5899_v9  ;;  %4545 = vmatmul.mubr.msk.bf16.vlgmr.msra.gmra.mrb[128].mxu1 %vm570_vm0, %v5899_v9 }
 0x17b   : > { %v6368_v11 = vadd.f32 %v6252_v61, %v6119_v49  ;;  %4756 = vtanh.f32 %v1849_v13  ;;  %v6376_v21 = vadd.f32 %v6255_v31, %v6123_v50  ;;  %v6380_v35 = vadd.f32 %v6257_v5, %v6127_v51  ;;  %1433 = vmatprep.mubr.bf16.mxu0 %v9666_v0  ;;  %1626 = vmatprep.mubr.bf16.mxu1 %v9666_v0 }
 0x17c   : > { %v6384_v53 = vadd.f32 %v6270_v38, %v6115_v48  ;;  %4758 = vtanh.f32 %v1851_v59  ;;  %v1852_v61 = vmul.f32 0.5, %v6360_v10  ;;  %v1861_v45 = vmul.f32 0.5, %v6364_v30 }
 0x17d   : > { %v1863_v39 = vmul.f32 0.5, %v6368_v11  ;;  %4760 = vtanh.f32 %v1850_v63  ;;  %v1862_v31 = vmul.f32 0.5, %v6376_v21  ;;  %v1864_v5 = vmul.f32 0.5, %v6380_v35  ;;  %v6420_v52 = vpop.f32.mrb[24].mxu1 }
 0x17e   : > { %v1873_v38 = vmul.f32 0.5, %v6384_v53  ;;  %v4747_v57 = vpop.eup %4746  ;;  %4762 = vtanh.f32 %v1852_v61  ;;  %v6400_v15 = vadd.f32 %v6272_v22, %v6119_v49  ;;  %v6404_v9 = vadd.f32 %v6279_v47, %v6123_v50  ;;  %v6418_v22 = vpop.f32.mrb[24].mxu0 }
 0x17f   : > { %v6408_v25 = vadd.f32 %v6281_v23, %v6127_v51  ;;  %v4749_v60 = vpop.eup %4748  ;;  %v2596_v3 = vmul.f32 0.5, %v4747_v57  ;;  %4764 = vtanh.f32 %v1861_v45  ;;  %v6412_v16 = vadd.f32 %v6288_v32, %v6115_v48  ;;  %v6424_v12 = vpop.f32.mrb[25].mxu0 }
 0x180   : > { %v6416_v36 = vadd.f32 %v6290_v37, %v6119_v49  ;;  %v2605_v47 = vmul.f32 0.5, %v4749_v60  ;;  %4766 = vtanh.f32 %v1863_v39  ;;  %v1875_v23 = vmul.f32 0.5, %v6400_v15  ;;  %v6426_v13 = vpop.f32.mrb[25].mxu1  ;;  %v6430_v63 = vpop.f32.mrb[26].mxu0 }
 0x181   : > { %v1874_v26 = vmul.f32 0.5, %v6404_v9  ;;  %v2980_v32 = vadd.f32 0.5, %v2596_v3  ;;  %4768 = vtanh.f32 %v1862_v31  ;;  %v1876_v59 = vmul.f32 0.5, %v6408_v25  ;;  %v6432_v61 = vpop.f32.mrb[26].mxu1  ;;  %v6439_v46 = vpop.f32.mrb[27].mxu0 }
 0x182   : > { %v1885_v37 = vmul.f32 0.5, %v6412_v16  ;;  %9695 = vst [vmem:[#allocation14_spill] sm:$0xff] %v6432_v61  ;;  %v4751_v45 = vpop.eup %4750  ;;  %v2989_v39 = vadd.f32 0.5, %v2605_v47  ;;  %4770 = vtanh.f32 %v1864_v5  ;;  %v1887_v57 = vmul.f32 0.5, %v6416_v36  ;;  %9697 = vst [vmem:[#allocation16_spill] sm:$0xff] %v6439_v46  ;;  %v6441_v31 = vpop.f32.mrb[27].mxu1  ;;  %4530 = vmatmul.mubr.msk.bf16.gmra.mrb[132].mxu0 %vm570_vm0, %v5908_v14  ;;  %4546 = vmatmul.mubr.msk.bf16.gmra.mrb[132].mxu1 %vm570_vm0, %v5908_v14 }
 0x183   : > { %v6437_v60 = vadd.f32 %v6294_v8, %v6123_v50  ;;  %9698 = vst [vmem:[#allocation17_spill] sm:$0xff] %v6441_v31  ;;  %v4753_v3 = vpop.eup %4752  ;;  %v3364_v44 = vmul.f32 %v2980_v32, %v6277_v41  ;;  %v2607_v43 = vmul.f32 0.5, %v4751_v45  ;;  %4772 = vtanh.f32 %v1873_v38 }
 0x184   : > { %v6446_v0 = vadd.f32 %v6296_v24, %v6127_v51  ;;  %v4755_v5 = vpop.eup %4754  ;;  %v3373_v47 = vmul.f32 %v2989_v39, %v6286_v7  ;;  %v2606_v42 = vmul.f32 0.5, %v4753_v3  ;;  %4774 = vtanh.f32 %v1875_v23 }
 0x185   : > { %9696 = vst [vmem:[#allocation15_spill] sm:$0xff] %v6437_v60  ;;  %v6450_v8 = vmul.f32 0.5, %v6437_v60  ;;  %v4757_v41 = vpop.eup %4756  ;;  %v3805_v38 = vadd.f32 %v6300_v17, %v3364_v44  ;;  %v2991_v32 = vadd.f32 0.5, %v2607_v43  ;;  %v2608_v24 = vmul.f32 0.5, %v4755_v5  ;;  %v6461_v44 = vpop.f32.mrb[28].mxu0 }
 0x186   : > { %4776 = vtanh.f32 %v1874_v26  ;;  %v9699_v45 = vmov 0   ;;  %v4759_v7 = vpop.eup %4758  ;;  %v3713_v23 = vadd.f32 %v6310_v18, %v3373_v47  ;;  %v2990_v39 = vadd.f32 0.5, %v2606_v42  ;;  %v6463_v43 = vpop.f32.mrb[28].mxu1 }
 0x187   : > { %1443 = vmatprep.mubr.bf16.mxu0 %v9699_v45  ;;  %1636 = vmatprep.mubr.bf16.mxu1 %v9699_v45  ;;  %v2617_v3 = vmul.f32 0.5, %v4757_v41  ;;  %4778 = vtanh.f32 %v1876_v59  ;;  %v4761_v60 = vpop.eup %4760  ;;  %v3375_v31 = vmul.f32 %v2991_v32, %v6304_v40  ;;  %v2992_v14 = vadd.f32 0.5, %v2608_v24  ;;  %v6466_v18 = vpop.f32.mrb[29].mxu0 }
 0x188   : > { %v2619_v46 = vmul.f32 0.5, %v4759_v7  ;;  %4780 = vtanh.f32 %v1885_v37  ;;  %v4763_v17 = vpop.eup %4762  ;;  %v3374_v26 = vmul.f32 %v2990_v39, %v6314_v29  ;;  %v2618_v61 = vmul.f32 0.5, %v4761_v60  ;;  %9700 = vst [vmem:[#allocation18_spill] sm:$0xff] %v6466_v18  ;;  %v6468_v42 = vpop.f32.mrb[29].mxu1 }
 0x189   : > { %v3001_v5 = vadd.f32 0.5, %v2617_v3  ;;  %4782 = vtanh.f32 %v1887_v57  ;;  %9701 = vst [vmem:[#allocation19_spill] sm:$0xff] %v6468_v42  ;;  %v4765_v59 = vpop.eup %4764  ;;  %v3775_v40 = vadd.f32 %v6342_v54, %v3375_v31  ;;  %v3376_v47 = vmul.f32 %v2992_v14, %v6322_v1  ;;  %v6472_v32 = vpop.f32.mrb[30].mxu0 }
 0x18a   : > { %v3003_v37 = vadd.f32 0.5, %v2619_v46  ;;  %v2620_v41 = vmul.f32 0.5, %v4763_v17  ;;  %9702 = vst [vmem:[#allocation20_spill] sm:$0xff] %v6472_v32  ;;  %v6474_v24 = vpop.f32.mrb[30].mxu1  ;;  %v4767_v7 = vpop.eup %4766  ;;  %v3744_v29 = vadd.f32 %v6350_v20, %v3374_v26  ;;  %v3002_v60 = vadd.f32 0.5, %v2618_v61  ;;  %4531 = vmatmul.mubr.msk.bf16.gmra.mrb[136].mxu0 %vm570_vm0, %v5917_v19  ;;  %4547 = vmatmul.mubr.msk.bf16.gmra.mrb[136].mxu1 %vm570_vm0, %v5917_v19 }
 0x18b   : > { %9703 = vst [vmem:[#allocation21_spill] sm:$0xff] %v6474_v24  ;;  %v3385_v57 = vmul.f32 %v3001_v5, %v6326_v34  ;;  %v2629_v39 = vmul.f32 0.5, %v4765_v59  ;;  %v6478_v3 = vpop.f32.mrb[31].mxu0  ;;  %v6480_v42 = vpop.f32.mrb[31].mxu1  ;;  %v3806_v31 = vadd.f32 %v3805_v38, %v3376_v47  ;;  %v2631_v14 = vmul.f32 0.5, %v4767_v7  ;;  %1453 = vmatprep.mubr.bf16.mxu0 %v9699_v45  ;;  %1646 = vmatprep.mubr.bf16.mxu1 %v9699_v45 }
 0x18c   : > { %v4769_v54 = vpop.eup %4768  ;;  %v3387_v46 = vmul.f32 %v3003_v37, %v6332_v56  ;;  %v3004_v1 = vadd.f32 0.5, %v2620_v41  ;;  %v3386_v24 = vmul.f32 %v3002_v60, %v6336_v4  ;;  %4784 = vtanh.f32 %v6450_v8 }
 0x18d   : > { %v4771_v17 = vpop.eup %4770  ;;  %v3714_v32 = vadd.f32 %v3713_v23, %v3385_v57  ;;  %v3013_v18 = vadd.f32 0.5, %v2629_v39  ;;  %v2630_v20 = vmul.f32 0.5, %v4769_v54  ;;  %v3015_v26 = vadd.f32 0.5, %v2631_v14  ;;  %v6493_v57 = vpop.f32.mrb[32].mxu0 }
 0x18e   : > { %v4773_v34 = vpop.eup %4772  ;;  %v3776_v61 = vadd.f32 %v3775_v40, %v3387_v46  ;;  %v3388_v38 = vmul.f32 %v3004_v1, %v6360_v10  ;;  %v2632_v56 = vmul.f32 0.5, %v4771_v17  ;;  %v3745_v4 = vadd.f32 %v3744_v29, %v3386_v24  ;;  %v6495_v10 = vpop.f32.mrb[32].mxu1 }
 0x18f   : > { %v4775_v23 = vpop.eup %4774  ;;  %v3397_v5 = vmul.f32 %v3013_v18, %v6364_v30  ;;  %v3014_v59 = vadd.f32 0.5, %v2630_v20  ;;  %v2641_v47 = vmul.f32 0.5, %v4773_v34  ;;  %v3399_v19 = vmul.f32 %v3015_v26, %v6368_v11  ;;  %v6498_v29 = vpop.f32.mrb[33].mxu0 }
 0x190   : > { %v4777_v37 = vpop.eup %4776  ;;  %v3807_v41 = vadd.f32 %v3806_v31, %v3388_v38  ;;  %v3016_v7 = vadd.f32 0.5, %v2632_v56  ;;  %v2643_v40 = vmul.f32 0.5, %v4775_v23  ;;  %v6500_v30 = vpop.f32.mrb[33].mxu1  ;;  %v6527_v8 = vadd.f32 %v6338_v33, %v6115_v48 }
 0x191   : > { %v4779_v60 = vpop.eup %4778  ;;  %v3715_v39 = vadd.f32 %v3714_v32, %v3397_v5  ;;  %v3398_v54 = vmul.f32 %v3014_v59, %v6376_v21  ;;  %v3025_v46 = vadd.f32 0.5, %v2641_v47  ;;  %v2642_v24 = vmul.f32 0.5, %v4777_v37  ;;  %v6503_v17 = vpop.f32.mrb[34].mxu0 }
 0x192   : > { %v4781_v18 = vpop.eup %4780  ;;  %v3777_v31 = vadd.f32 %v3776_v61, %v3399_v19  ;;  %v3400_v11 = vmul.f32 %v3016_v7, %v6380_v35  ;;  %v3027_v1 = vadd.f32 0.5, %v2643_v40  ;;  %v2644_v14 = vmul.f32 0.5, %v4779_v60  ;;  %v6505_v20 = vpop.f32.mrb[34].mxu1 }
 0x193   : > { %v4783_v32 = vpop.eup %4782  ;;  %v3746_v34 = vadd.f32 %v3745_v4, %v3398_v54  ;;  %v3409_v21 = vmul.f32 %v3025_v46, %v6384_v53  ;;  %v3026_v38 = vadd.f32 0.5, %v2642_v24  ;;  %v2653_v26 = vmul.f32 0.5, %v4781_v18  ;;  %v6508_v56 = vpop.f32.mrb[35].mxu0  ;;  %v5476_v4 = vld [vmem:[%s5886_s28 + $0x18] sm:$0xff]  }
 0x194   : > { %v6510_v23 = vpop.f32.mrb[35].mxu1  ;;  %v3808_v61 = vadd.f32 %v3807_v41, %v3400_v11  ;;  %v3411_v35 = vmul.f32 %v3027_v1, %v6400_v15  ;;  %v3028_v5 = vadd.f32 0.5, %v2644_v14  ;;  %v2655_v59 = vmul.f32 0.5, %v4783_v32  ;;  %4532 = vmatmul.mubr.msk.bf16.gmra.mrb[140].mxu0 %vm570_vm0, %v5476_v4  ;;  %4548 = vmatmul.mubr.msk.bf16.gmra.mrb[140].mxu1 %vm570_vm0, %v5476_v4 }
 0x195   : > { %v3716_v47 = vadd.f32 %v3715_v39, %v3409_v21  ;;  %v3410_v37 = vmul.f32 %v3026_v38, %v6404_v9  ;;  %v3037_v19 = vadd.f32 0.5, %v2653_v26  ;;  %v1888_v41 = vmul.f32 0.5, %v6446_v0  ;;  %1463 = vmatprep.mubr.bf16.mxu0 %v9699_v45  ;;  %1656 = vmatprep.mubr.bf16.mxu1 %v9699_v45  ;;  %v6540_v46 = vpop.f32.mrb[36].mxu0 }
 0x196   : > { %v3778_v53 = vadd.f32 %v3777_v31, %v3411_v35  ;;  %v3412_v7 = vmul.f32 %v3028_v5, %v6408_v25  ;;  %v3039_v40 = vadd.f32 0.5, %v2655_v59  ;;  %v6531_v60 = vadd.f32 %v6340_v27, %v6119_v49  ;;  %v5477_v59 = vld [vmem:[%s5886_s28 + $0x20] sm:$0xff]  }
 0x197   : > { %v6522_v15 = vadd.f32 %v3746_v34, %v3410_v37  ;;  %v3421_v9 = vmul.f32 %v3037_v19, %v6412_v16  ;;  %4786 = vtanh.f32 %v1888_v41  ;;  %v6538_v54 = vadd.f32 %v6346_v2, %v6123_v50  ;;  %v6542_v16 = vpop.f32.mrb[36].mxu1 }
 0x198   : > { %v6533_v25 = vadd.f32 %v3808_v61, %v3412_v7  ;;  %v3423_v39 = vmul.f32 %v3039_v40, %v6416_v36  ;;  %v1897_v33 = vmul.f32 0.5, %v6527_v8  ;;  %v1899_v27 = vmul.f32 0.5, %v6531_v60  ;;  %v6552_v36 = vpop.f32.mrb[37].mxu0  ;;  %v6554_v31 = vpop.f32.mrb[37].mxu1 }
 0x199   : > { %v6544_v24 = vadd.f32 %v3716_v47, %v3421_v9  ;;  %v6550_v18 = vadd.f32 %v6348_v55, %v6127_v51  ;;  %v1898_v11 = vmul.f32 0.5, %v6538_v54  ;;  %v6561_v1 = vadd.f32 %v6354_v62, %v6115_v48  ;;  %v6567_v32 = vpop.f32.mrb[38].mxu0  ;;  %v6569_v55 = vpop.f32.mrb[38].mxu1 }
 0x19a   : > { %v6556_v2 = vadd.f32 %v3778_v53, %v3423_v39  ;;  %v6565_v14 = vadd.f32 %v6356_v28, %v6119_v49  ;;  %9704 = vst [vmem:[#allocation22_spill] sm:$0xff] %v6567_v32  ;;  %9705 = vst [vmem:[#allocation23_spill] sm:$0xff] %v6569_v55  ;;  %4788 = vtanh.f32 %v1897_v33  ;;  %v6574_v21 = vadd.f32 %v6370_v6, %v6123_v50  ;;  %v6580_v38 = vpop.f32.mrb[39].mxu0  ;;  %v6582_v28 = vpop.f32.mrb[39].mxu1  ;;  %v9708_v53 = vld [vmem:[#allocation14_spill] sm:$0xff]  ;;  %v9711_v33 = vld [vmem:[#allocation16_spill] sm:$0xff] }
 0x19b   : > { %v1900_v34 = vmul.f32 0.5, %v6550_v18  ;;  %v6578_v62 = vadd.f32 %v6372_v58, %v6127_v51  ;;  %9706 = vst [vmem:[#allocation24_spill] sm:$0xff] %v6580_v38  ;;  %9707 = vst [vmem:[#allocation25_spill] sm:$0xff] %v6582_v28  ;;  %4790 = vtanh.f32 %v1899_v27  ;;  %v1909_v26 = vmul.f32 0.5, %v6561_v1 }
 0x19c   : > { %v1911_v61 = vmul.f32 0.5, %v6565_v14  ;;  %v6588_v35 = vadd.f32 %v6418_v22, %v6115_v48  ;;  %4792 = vtanh.f32 %v1898_v11  ;;  %v1910_v6 = vmul.f32 0.5, %v6574_v21  ;;  %4533 = vmatmul.mubr.msk.bf16.gmra.mrb[144].mxu0 %vm570_vm0, %v5477_v59  ;;  %4549 = vmatmul.mubr.msk.bf16.gmra.mrb[144].mxu1 %vm570_vm0, %v5477_v59  ;;  %v9714_v59 = vld [vmem:[#allocation17_spill] sm:$0xff] }
 0x19d   : > { %v1912_v5 = vmul.f32 0.5, %v6578_v62  ;;  %v6594_v58 = vadd.f32 %v6420_v52, %v6119_v49  ;;  %4794 = vtanh.f32 %v1900_v34  ;;  %v6602_v22 = vadd.f32 %v6424_v12, %v6123_v50  ;;  %1473 = vmatprep.mubr.bf16.mxu0 %v9699_v45  ;;  %1666 = vmatprep.mubr.bf16.mxu1 %v9699_v45  ;;  %v4785_v52 = vpop.eup %4784  ;;  %v6621_v41 = vpop.f32.mrb[40].mxu0 }
 0x19e   : > { %v1921_v47 = vmul.f32 0.5, %v6588_v35  ;;  %v6606_v37 = vadd.f32 %v6426_v13, %v6127_v51  ;;  %4796 = vtanh.f32 %v1909_v26  ;;  %v6613_v4 = vadd.f32 %v6430_v63, %v6115_v48  ;;  %9709 = vst [vmem:[#allocation14_spill] sm:$0xff] %v6621_v41  ;;  %v6623_v9 = vpop.f32.mrb[40].mxu1  ;;  %v6631_v11 = vpop.f32.mrb[41].mxu0 }
 0x19f   : > { %v1923_v19 = vmul.f32 0.5, %v6594_v58  ;;  %v6617_v12 = vadd.f32 %v9708_v53, %v6119_v49  ;;  %v2654_v7 = vmul.f32 0.5, %v4785_v52  ;;  %4798 = vtanh.f32 %v1911_v61  ;;  %9710 = vst [vmem:[#allocation26_spill] sm:$0xff] %v6623_v9  ;;  %9712 = vst [vmem:[#allocation16_spill] sm:$0xff] %v6631_v11  ;;  %v6633_v34 = vpop.f32.mrb[41].mxu1  ;;  %v6643_v53 = vpop.f32.mrb[42].mxu0 }
 0x1a0   : > { %v1922_v13 = vmul.f32 0.5, %v6602_v22  ;;  %v1924_v40 = vmul.f32 0.5, %v6606_v37  ;;  %4800 = vtanh.f32 %v1910_v6  ;;  %v1933_v39 = vmul.f32 0.5, %v6613_v4  ;;  %9713 = vst [vmem:[#allocation27_spill] sm:$0xff] %v6633_v34  ;;  %9715 = vst [vmem:[#allocation17_spill] sm:$0xff] %v6643_v53  ;;  %v6645_v9 = vpop.f32.mrb[42].mxu1 }
 0x1a1   : > { %v1935_v63 = vmul.f32 0.5, %v6617_v12  ;;  %v6629_v27 = vadd.f32 %v9711_v33, %v6123_v50  ;;  %v4787_v26 = vpop.eup %4786  ;;  %v3038_v61 = vadd.f32 0.5, %v2654_v7  ;;  %4802 = vtanh.f32 %v1912_v5  ;;  %9716 = vst [vmem:[#allocation28_spill] sm:$0xff] %v6645_v9  ;;  %v6652_v7 = vpop.f32.mrb[43].mxu0  ;;  %v9720_v11 = vld [vmem:[#allocation15_spill] sm:$0xff] }
 0x1a2   : > { %v6637_v52 = vadd.f32 %v9714_v59, %v6127_v51  ;;  %v6641_v6 = vadd.f32 %v6461_v44, %v6115_v48  ;;  %v2656_v33 = vmul.f32 0.5, %v4787_v26  ;;  %4804 = vtanh.f32 %v1921_v47  ;;  %9718 = vst [vmem:[#allocation30_spill] sm:$0xff] %v6652_v7  ;;  %v6654_v59 = vpop.f32.mrb[43].mxu1  ;;  %v5478_v7 = vld [vmem:[%s5886_s28 + $0x28] sm:$0xff]  }
 0x1a3   : > { %v1934_v34 = vmul.f32 0.5, %v6629_v27  ;;  %v6650_v5 = vadd.f32 %v6463_v43, %v6119_v49  ;;  %9719 = vst [vmem:[#allocation31_spill] sm:$0xff] %v6654_v59  ;;  %v3422_v44 = vmul.f32 %v3038_v61, %v9720_v11  ;;  %4806 = vtanh.f32 %v1923_v19  ;;  %v9721_v43 = vld [vmem:[#allocation18_spill] sm:$0xff] }
 0x1a4   : > { %v1936_v53 = vmul.f32 0.5, %v6637_v52  ;;  %v1945_v9 = vmul.f32 0.5, %v6641_v6  ;;  %v4789_v41 = vpop.eup %4788  ;;  %v3040_v26 = vadd.f32 0.5, %v2656_v33  ;;  %4808 = vtanh.f32 %v1922_v13  ;;  %4534 = vmatmul.mubr.msk.bf16.gmra.mrb[148].mxu0 %vm570_vm0, %v5478_v7  ;;  %4550 = vmatmul.mubr.msk.bf16.gmra.mrb[148].mxu1 %vm570_vm0, %v5478_v7  ;;  %v9723_v33 = vld [vmem:[#allocation19_spill] sm:$0xff] }
 0x1a5   : > { %9717 = vst [vmem:[#allocation29_spill] sm:$0xff] %v6650_v5  ;;  %v6660_v47 = vmul.f32 0.5, %v6650_v5  ;;  %v6664_v28 = vadd.f32 %v9721_v43, %v6123_v50  ;;  %v4791_v19 = vpop.eup %4790  ;;  %v3748_v11 = vadd.f32 %v6522_v15, %v3422_v44  ;;  %v2665_v61 = vmul.f32 0.5, %v4789_v41  ;;  %1483 = vmatprep.mubr.bf16.mxu0 %v9699_v45  ;;  %1676 = vmatprep.mubr.bf16.mxu1 %v9699_v45  ;;  %v6683_v44 = vpop.f32.mrb[44].mxu0 }
 0x1a6   : > { %4810 = vtanh.f32 %v1924_v40  ;;  %v6672_v13 = vadd.f32 %v9723_v33, %v6127_v51  ;;  %v4793_v43 = vpop.eup %4792  ;;  %v3424_v59 = vmul.f32 %v3040_v26, %v6446_v0  ;;  %v2667_v38 = vmul.f32 0.5, %v4791_v19  ;;  %9725 = vst [vmem:[#allocation19_spill] sm:$0xff] %v6683_v44  ;;  %v6685_v33 = vpop.f32.mrb[44].mxu1 }
 0x1a7   : > { %9722 = vst [vmem:[#allocation15_spill] sm:$0xff] %v6664_v28  ;;  %4812 = vtanh.f32 %v1933_v39  ;;  %v6678_v7 = vmul.f32 0.5, %v6664_v28  ;;  %v4795_v55 = vpop.eup %4794  ;;  %v3049_v15 = vadd.f32 0.5, %v2665_v61  ;;  %v2666_v41 = vmul.f32 0.5, %v4793_v43  ;;  %9726 = vst [vmem:[#allocation32_spill] sm:$0xff] %v6685_v33  ;;  %v6688_v39 = vpop.f32.mrb[45].mxu0 }
 0x1a8   : > { %9724 = vst [vmem:[#allocation18_spill] sm:$0xff] %v6672_v13  ;;  %4814 = vtanh.f32 %v1935_v63  ;;  %v6681_v40 = vmul.f32 0.5, %v6672_v13  ;;  %v4797_v32 = vpop.eup %4796  ;;  %v3810_v5 = vadd.f32 %v6533_v25, %v3424_v59  ;;  %v3051_v0 = vadd.f32 0.5, %v2667_v38  ;;  %v6690_v19 = vpop.f32.mrb[45].mxu1 }
 0x1a9   : > { %v2668_v26 = vmul.f32 0.5, %v4795_v55  ;;  %4816 = vtanh.f32 %v1934_v34  ;;  %9727 = vst [vmem:[#allocation33_spill] sm:$0xff] %v6690_v19  ;;  %v4799_v61 = vpop.eup %4798  ;;  %v3433_v63 = vmul.f32 %v3049_v15, %v6527_v8  ;;  %v3050_v43 = vadd.f32 0.5, %v2666_v41  ;;  %v6693_v28 = vpop.f32.mrb[46].mxu0 }
 0x1aa   : > { %v2677_v13 = vmul.f32 0.5, %v4797_v32  ;;  %4818 = vtanh.f32 %v1936_v53  ;;  %v6695_v44 = vpop.f32.mrb[46].mxu1  ;;  %v4801_v33 = vpop.eup %4800  ;;  %v3435_v25 = vmul.f32 %v3051_v0, %v6531_v60  ;;  %v2679_v38 = vmul.f32 0.5, %v4799_v61  ;;  %v5479_v61 = vld [vmem:[%s5886_s28 + $0x30] sm:$0xff]  }
 0x1ab   : > { %9728 = vst [vmem:[#allocation34_spill] sm:$0xff] %v6695_v44  ;;  %v3052_v55 = vadd.f32 0.5, %v2668_v26  ;;  %4820 = vtanh.f32 %v1945_v9  ;;  %v6698_v34 = vpop.f32.mrb[47].mxu0  ;;  %v6700_v59 = vpop.f32.mrb[47].mxu1  ;;  %v3718_v8 = vadd.f32 %v6544_v24, %v3433_v63  ;;  %v3434_v32 = vmul.f32 %v3050_v43, %v6538_v54 }
 0x1ac   : > { %9729 = vst [vmem:[#allocation35_spill] sm:$0xff] %v6700_v59  ;;  %v4803_v19 = vpop.eup %4802  ;;  %v3061_v53 = vadd.f32 0.5, %v2677_v13  ;;  %v2678_v15 = vmul.f32 0.5, %v4801_v33  ;;  %v3780_v44 = vadd.f32 %v6556_v2, %v3435_v25  ;;  %v3063_v0 = vadd.f32 0.5, %v2679_v38  ;;  %4535 = vmatmul.mubr.msk.bf16.gmra.mrb[152].mxu0 %vm570_vm0, %v5479_v61  ;;  %4551 = vmatmul.mubr.msk.bf16.gmra.mrb[152].mxu1 %vm570_vm0, %v5479_v61 }
 0x1ad   : > { %v4805_v41 = vpop.eup %4804  ;;  %v3436_v60 = vmul.f32 %v3052_v55, %v6550_v18  ;;  %v2680_v26 = vmul.f32 0.5, %v4803_v19  ;;  %v3749_v59 = vadd.f32 %v3748_v11, %v3434_v32  ;;  %1493 = vmatprep.mubr.bf16.mxu0 %v9699_v45  ;;  %1686 = vmatprep.mubr.bf16.mxu1 %v9699_v45  ;;  %v6714_v32 = vpop.f32.mrb[48].mxu0  ;;  %4822 = vtanh.f32 %v6660_v47 }
 0x1ae   : > { %v4807_v9 = vpop.eup %4806  ;;  %v3445_v24 = vmul.f32 %v3061_v53, %v6561_v1  ;;  %v3062_v63 = vadd.f32 0.5, %v2678_v15  ;;  %v2689_v54 = vmul.f32 0.5, %v4805_v41  ;;  %v3447_v18 = vmul.f32 %v3063_v0, %v6565_v14  ;;  %v6716_v1 = vpop.f32.mrb[48].mxu1 }
 0x1af   : > { %v4809_v2 = vpop.eup %4808  ;;  %v3811_v13 = vadd.f32 %v3810_v5, %v3436_v60  ;;  %v3064_v33 = vadd.f32 0.5, %v2680_v26  ;;  %v2691_v19 = vmul.f32 0.5, %v4807_v9  ;;  %v6719_v60 = vpop.f32.mrb[49].mxu0  ;;  %4824 = vtanh.f32 %v6678_v7 }
 0x1b0   : > { %v4811_v43 = vpop.eup %4810  ;;  %v3719_v25 = vadd.f32 %v3718_v8, %v3445_v24  ;;  %v3446_v55 = vmul.f32 %v3062_v63, %v6574_v21  ;;  %v3073_v38 = vadd.f32 0.5, %v2689_v54  ;;  %v2690_v11 = vmul.f32 0.5, %v4809_v2  ;;  %v6721_v14 = vpop.f32.mrb[49].mxu1 }
 0x1b1   : > { %v4813_v53 = vpop.eup %4812  ;;  %v3781_v15 = vadd.f32 %v3780_v44, %v3447_v18  ;;  %v3448_v41 = vmul.f32 %v3064_v33, %v6578_v62  ;;  %v3075_v61 = vadd.f32 0.5, %v2691_v19  ;;  %v2692_v5 = vmul.f32 0.5, %v4811_v43  ;;  %v6724_v24 = vpop.f32.mrb[50].mxu0 }
 0x1b2   : > { %v4815_v0 = vpop.eup %4814  ;;  %v3750_v8 = vadd.f32 %v3749_v59, %v3446_v55  ;;  %v3457_v21 = vmul.f32 %v3073_v38, %v6588_v35  ;;  %v3074_v26 = vadd.f32 0.5, %v2690_v11  ;;  %v2701_v9 = vmul.f32 0.5, %v4813_v53  ;;  %9730 = vst [vmem:[#allocation36_spill] sm:$0xff] %v6724_v24  ;;  %v6726_v63 = vpop.f32.mrb[50].mxu1  ;;  %v5480_v24 = vld [vmem:[%s5886_s28 + $0x38] sm:$0xff]  }
 0x1b3   : > { %9731 = vst [vmem:[#allocation37_spill] sm:$0xff] %v6726_v63  ;;  %v4817_v54 = vpop.eup %4816  ;;  %v3812_v44 = vadd.f32 %v3811_v13, %v3448_v41  ;;  %v3459_v62 = vmul.f32 %v3075_v61, %v6594_v58  ;;  %v3076_v2 = vadd.f32 0.5, %v2692_v5  ;;  %v2703_v18 = vmul.f32 0.5, %v4815_v0  ;;  %v6729_v33 = vpop.f32.mrb[51].mxu0 }
 0x1b4   : > { %v6731_v19 = vpop.f32.mrb[51].mxu1  ;;  %v4819_v59 = vpop.eup %4818  ;;  %v3720_v43 = vadd.f32 %v3719_v25, %v3457_v21  ;;  %v3458_v35 = vmul.f32 %v3074_v26, %v6602_v22  ;;  %v3085_v55 = vadd.f32 0.5, %v2701_v9  ;;  %v2702_v38 = vmul.f32 0.5, %v4817_v54  ;;  %4536 = vmatmul.mubr.msk.bf16.gmra.mrb[156].mxu0 %vm570_vm0, %v5480_v24  ;;  %4552 = vmatmul.mubr.msk.bf16.gmra.mrb[156].mxu1 %vm570_vm0, %v5480_v24 }
 0x1b5   : > { %v4821_v11 = vpop.eup %4820  ;;  %v3782_v53 = vadd.f32 %v3781_v15, %v3459_v62  ;;  %v3460_v63 = vmul.f32 %v3076_v2, %v6606_v37  ;;  %v3087_v13 = vadd.f32 0.5, %v2703_v18  ;;  %v2704_v41 = vmul.f32 0.5, %v4819_v59  ;;  %1503 = vmatprep.mubr.bf16.mxu0 %v9699_v45  ;;  %1696 = vmatprep.mubr.bf16.mxu1 %v9699_v45 }
 0x1b6   : > { %v3751_v58 = vadd.f32 %v3750_v8, %v3458_v35  ;;  %v3469_v61 = vmul.f32 %v3085_v55, %v6613_v4  ;;  %v3086_v5 = vadd.f32 0.5, %v2702_v38  ;;  %v2713_v25 = vmul.f32 0.5, %v4821_v11  ;;  %v6745_v8 = vpop.f32.mrb[52].mxu0  ;;  %v6747_v4 = vpop.f32.mrb[52].mxu1 }
 0x1b7   : > { %v3813_v22 = vadd.f32 %v3812_v44, %v3460_v63  ;;  %v3471_v15 = vmul.f32 %v3087_v13, %v6617_v12  ;;  %v3088_v37 = vadd.f32 0.5, %v2704_v41  ;;  %4826 = vtanh.f32 %v6681_v40  ;;  %v9732_v12 = vld [vmem:[#allocation20_spill] sm:$0xff]  ;;  %v6757_v47 = vpop.f32.mrb[53].mxu0  ;;  %v9733_v44 = vld [vmem:[#allocation21_spill] sm:$0xff] }
 0x1b8   : > { %v3721_v0 = vadd.f32 %v3720_v43, %v3469_v61  ;;  %v3470_v21 = vmul.f32 %v3086_v5, %v6629_v27  ;;  %v3097_v26 = vadd.f32 0.5, %v2713_v25  ;;  %v6755_v63 = vadd.f32 %v9732_v12, %v6115_v48  ;;  %v6759_v27 = vpop.f32.mrb[53].mxu1  ;;  %v6772_v40 = vpop.f32.mrb[54].mxu0  ;;  %v5481_v41 = vld [vmem:[%s5886_s28 + $0x40] sm:$0xff]  }
 0x1b9   : > { %v6749_v9 = vadd.f32 %v3782_v53, %v3471_v15  ;;  %v3472_v24 = vmul.f32 %v3088_v37, %v6637_v52  ;;  %v6766_v62 = vadd.f32 %v9733_v44, %v6119_v49  ;;  %v6770_v52 = vadd.f32 %v6478_v3, %v6123_v50  ;;  %v6774_v2 = vpop.f32.mrb[54].mxu1  ;;  %v6787_v35 = vpop.f32.mrb[55].mxu0 }
 0x1ba   : > { %v6761_v54 = vadd.f32 %v3751_v58, %v3470_v21  ;;  %v3481_v7 = vmul.f32 %v3097_v26, %v6641_v6  ;;  %v1957_v59 = vmul.f32 0.5, %v6755_v63  ;;  %v6781_v6 = vadd.f32 %v6480_v42, %v6127_v51  ;;  %9734 = vst [vmem:[#allocation20_spill] sm:$0xff] %v6787_v35  ;;  %v6789_v3 = vpop.f32.mrb[55].mxu1 }
 0x1bb   : > { %v6776_v18 = vadd.f32 %v3813_v22, %v3472_v24  ;;  %v6785_v43 = vadd.f32 %v6493_v57, %v6115_v48  ;;  %9735 = vst [vmem:[#allocation21_spill] sm:$0xff] %v6789_v3  ;;  %v1959_v38 = vmul.f32 0.5, %v6766_v62  ;;  %v1958_v11 = vmul.f32 0.5, %v6770_v52 }
 0x1bc   : > { %v6791_v55 = vadd.f32 %v3721_v0, %v3481_v7  ;;  %v6797_v53 = vadd.f32 %v6495_v10, %v6119_v49  ;;  %4828 = vtanh.f32 %v1957_v59  ;;  %v1960_v42 = vmul.f32 0.5, %v6781_v6  ;;  %4537 = vmatmul.mubr.msk.bf16.gmra.mrb[160].mxu0 %vm570_vm0, %v5481_v41  ;;  %4553 = vmatmul.mubr.msk.bf16.gmra.mrb[160].mxu1 %vm570_vm0, %v5481_v41  ;;  %v4823_v0 = vpop.eup %4822 }
 0x1bd   : > { %v1969_v57 = vmul.f32 0.5, %v6785_v43  ;;  %v6803_v13 = vadd.f32 %v6498_v29, %v6123_v50  ;;  %4830 = vtanh.f32 %v1959_v38  ;;  %v6811_v10 = vadd.f32 %v6500_v30, %v6127_v51  ;;  %1513 = vmatprep.mubr.bf16.mxu0 %v9699_v45  ;;  %1706 = vmatprep.mubr.bf16.mxu1 %v9699_v45  ;;  %v6834_v15 = vpop.f32.mrb[56].mxu0  ;;  %v6836_v37 = vpop.f32.mrb[56].mxu1 }
 0x1be   : > { %v1971_v58 = vmul.f32 0.5, %v6797_v53  ;;  %v6815_v61 = vadd.f32 %v6503_v17, %v6115_v48  ;;  %4832 = vtanh.f32 %v1958_v11  ;;  %v6822_v5 = vadd.f32 %v6505_v20, %v6119_v49  ;;  %9736 = vst [vmem:[#allocation38_spill] sm:$0xff] %v6834_v15  ;;  %9737 = vst [vmem:[#allocation39_spill] sm:$0xff] %v6836_v37  ;;  %v6844_v26 = vpop.f32.mrb[57].mxu0  ;;  %v6846_v24 = vpop.f32.mrb[57].mxu1 }
 0x1bf   : > { %v1970_v29 = vmul.f32 0.5, %v6803_v13  ;;  %v6826_v25 = vadd.f32 %v6508_v56, %v6123_v50  ;;  %4834 = vtanh.f32 %v1960_v42  ;;  %v1972_v30 = vmul.f32 0.5, %v6811_v10  ;;  %9738 = vst [vmem:[#allocation40_spill] sm:$0xff] %v6844_v26  ;;  %9739 = vst [vmem:[#allocation41_spill] sm:$0xff] %v6846_v24  ;;  %v6853_v59 = vpop.f32.mrb[58].mxu0  ;;  %v6855_v38 = vpop.f32.mrb[58].mxu1 }
 0x1c0   : > { %v1981_v17 = vmul.f32 0.5, %v6815_v61  ;;  %v6832_v22 = vadd.f32 %v6510_v23, %v6127_v51  ;;  %4836 = vtanh.f32 %v1969_v57  ;;  %v1983_v20 = vmul.f32 0.5, %v6822_v5  ;;  %v4825_v23 = vpop.eup %4824  ;;  %9740 = vst [vmem:[#allocation42_spill] sm:$0xff] %v6853_v59  ;;  %9741 = vst [vmem:[#allocation43_spill] sm:$0xff] %v6855_v38  ;;  %v6862_v41 = vpop.f32.mrb[59].mxu0  ;;  %v5482_v24 = vld [vmem:[%s5886_s28 + $0x48] sm:$0xff]  }
 0x1c1   : > { %v1982_v56 = vmul.f32 0.5, %v6826_v25  ;;  %v6842_v21 = vadd.f32 %v6540_v46, %v6115_v48  ;;  %v2715_v12 = vmul.f32 0.5, %v4823_v0  ;;  %4838 = vtanh.f32 %v1971_v58  ;;  %v4827_v46 = vpop.eup %4826  ;;  %9742 = vst [vmem:[#allocation44_spill] sm:$0xff] %v6862_v41  ;;  %v6864_v58 = vpop.f32.mrb[59].mxu1 }
 0x1c2   : > { %v1984_v7 = vmul.f32 0.5, %v6832_v22  ;;  %v6851_v44 = vadd.f32 %v6542_v16, %v6119_v49  ;;  %v2714_v11 = vmul.f32 0.5, %v4825_v23  ;;  %4840 = vtanh.f32 %v1970_v29  ;;  %9743 = vst [vmem:[#allocation45_spill] sm:$0xff] %v6864_v58 }
 0x1c3   : > { %v1993_v42 = vmul.f32 0.5, %v6842_v21  ;;  %v6860_v57 = vadd.f32 %v6552_v36, %v6123_v50  ;;  %v3099_v16 = vadd.f32 0.5, %v2715_v12  ;;  %v2716_v0 = vmul.f32 0.5, %v4827_v46  ;;  %v9744_v36 = vld [vmem:[#allocation29_spill] sm:$0xff] }
 0x1c4   : > { %4842 = vtanh.f32 %v1972_v30  ;;  %v1995_v59 = vmul.f32 0.5, %v6851_v44  ;;  %v3098_v38 = vadd.f32 0.5, %v2714_v11  ;;  %v6870_v29 = vadd.f32 %v6554_v31, %v6127_v51  ;;  %4538 = vmatmul.mubr.msk.bf16.gmra.mrb[164].mxu0 %vm570_vm0, %v5482_v24  ;;  %4554 = vmatmul.mubr.msk.bf16.gmra.mrb[164].mxu1 %vm570_vm0, %v5482_v24  ;;  %v9745_v30 = vld [vmem:[#allocation22_spill] sm:$0xff]  ;;  %v9746_v31 = vld [vmem:[#allocation15_spill] sm:$0xff] }
 0x1c5   : > { %4844 = vtanh.f32 %v1981_v17  ;;  %v1994_v23 = vmul.f32 0.5, %v6860_v57  ;;  %v3483_v58 = vmul.f32 %v3099_v16, %v9744_v36  ;;  %v3100_v12 = vadd.f32 0.5, %v2716_v0  ;;  %1523 = vmatprep.mubr.bf16.mxu0 %v9699_v45  ;;  %1716 = vmatprep.mubr.bf16.mxu1 %v9699_v45  ;;  %v9747_v24 = vld [vmem:[#allocation23_spill] sm:$0xff]  ;;  %v9748_v0 = vld [vmem:[#allocation18_spill] sm:$0xff]  ;;  %v6890_v37 = vpop.f32.mrb[60].mxu0  ;;  %v6892_v15 = vpop.f32.mrb[60].mxu1 }
 0x1c6   : > { %4846 = vtanh.f32 %v1983_v20  ;;  %v6878_v46 = vadd.f32 %v9745_v30, %v6115_v48  ;;  %v4829_v17 = vpop.eup %4828  ;;  %v3482_v11 = vmul.f32 %v3098_v38, %v9746_v31  ;;  %v1996_v41 = vmul.f32 0.5, %v6870_v29  ;;  %9749 = vst [vmem:[#allocation29_spill] sm:$0xff] %v6892_v15  ;;  %v6898_v35 = vpop.f32.mrb[61].mxu1 }
 0x1c7   : > { %4848 = vtanh.f32 %v1982_v56  ;;  %v6886_v26 = vadd.f32 %v9747_v24, %v6119_v49  ;;  %v4831_v16 = vpop.eup %4830  ;;  %v3784_v20 = vadd.f32 %v6749_v9, %v3483_v58  ;;  %v3484_v36 = vmul.f32 %v3100_v12, %v9748_v0  ;;  %v6896_v24 = vpop.f32.mrb[61].mxu0  ;;  %9751 = vst [vmem:[#allocation15_spill] sm:$0xff] %v6898_v35 }
 0x1c8   : > { %v2725_v30 = vmul.f32 0.5, %v4829_v17  ;;  %4850 = vtanh.f32 %v1984_v7  ;;  %v4833_v3 = vpop.eup %4832  ;;  %v3753_v56 = vadd.f32 %v6761_v54, %v3482_v11  ;;  %v2727_v38 = vmul.f32 0.5, %v4831_v16  ;;  %9750 = vst [vmem:[#allocation22_spill] sm:$0xff] %v6896_v24  ;;  %v6901_v17 = vpop.f32.mrb[62].mxu0 }
 0x1c9   : > { %4852 = vtanh.f32 %v1993_v42  ;;  %v2005_v31 = vmul.f32 0.5, %v6878_v46  ;;  %v4835_v9 = vpop.eup %4834  ;;  %v3815_v58 = vadd.f32 %v6776_v18, %v3484_v36  ;;  %v2726_v7 = vmul.f32 0.5, %v4833_v3  ;;  %9752 = vst [vmem:[#allocation23_spill] sm:$0xff] %v6901_v17  ;;  %v6903_v0 = vpop.f32.mrb[62].mxu1 }
 0x1ca   : > { %v3109_v12 = vadd.f32 0.5, %v2725_v30  ;;  %4854 = vtanh.f32 %v1995_v59  ;;  %9753 = vst [vmem:[#allocation18_spill] sm:$0xff] %v6903_v0  ;;  %v4837_v15 = vpop.eup %4836  ;;  %v3111_v54 = vadd.f32 0.5, %v2727_v38  ;;  %v2728_v42 = vmul.f32 0.5, %v4835_v9  ;;  %v6908_v16 = vpop.f32.mrb[63].mxu0 }
 0x1cb   : > { %4856 = vtanh.f32 %v1994_v23  ;;  %v6906_v11 = vmul.f32 0.5, %v6886_v26  ;;  %9754 = vst [vmem:[#allocation46_spill] sm:$0xff] %v6908_v16  ;;  %v6910_v35 = vpop.f32.mrb[63].mxu1  ;;  %v4839_v18 = vpop.eup %4838  ;;  %v3110_v59 = vadd.f32 0.5, %v2726_v7  ;;  %v2737_v36 = vmul.f32 0.5, %v4837_v15  ;;  %v5483_v23 = vld [vmem:[%s5886_s28 + $0x50] sm:$0xff]  }
 0x1cc   : > { %9755 = vst [vmem:[#allocation47_spill] sm:$0xff] %v6910_v35  ;;  %v3493_v3 = vmul.f32 %v3109_v12, %v6755_v63  ;;  %4858 = vtanh.f32 %v1996_v41  ;;  %v4841_v30 = vpop.eup %4840  ;;  %v3495_v0 = vmul.f32 %v3111_v54, %v6766_v62  ;;  %v3112_v38 = vadd.f32 0.5, %v2728_v42  ;;  %4539 = vmatmul.mubr.msk.bf16.gmra.mrb[168].mxu0 %vm570_vm0, %v5483_v23  ;;  %4555 = vmatmul.mubr.msk.bf16.gmra.mrb[168].mxu1 %vm570_vm0, %v5483_v23 }
 0x1cd   : > { %v2739_v17 = vmul.f32 0.5, %v4839_v18  ;;  %4860 = vtanh.f32 %v2005_v31  ;;  %v3494_v16 = vmul.f32 %v3110_v59, %v6770_v52  ;;  %v3121_v63 = vadd.f32 0.5, %v2737_v36  ;;  %1533 = vmatprep.mubr.bf16.mxu0 %v9699_v45  ;;  %1726 = vmatprep.mubr.bf16.mxu1 %v9699_v45  ;;  %v6925_v52 = vpop.f32.mrb[64].mxu1 }
 0x1ce   : > { %v4843_v9 = vpop.eup %4842  ;;  %v3723_v35 = vadd.f32 %v6791_v55, %v3493_v3  ;;  %v2738_v12 = vmul.f32 0.5, %v4841_v30  ;;  %v3785_v15 = vadd.f32 %v3784_v20, %v3495_v0  ;;  %v3496_v41 = vmul.f32 %v3112_v38, %v6781_v6  ;;  %v6923_v3 = vpop.f32.mrb[64].mxu0 }
 0x1cf   : > { %v4845_v62 = vpop.eup %4844  ;;  %v3123_v31 = vadd.f32 0.5, %v2739_v17  ;;  %v2740_v7 = vmul.f32 0.5, %v4843_v9  ;;  %v3754_v42 = vadd.f32 %v3753_v56, %v3494_v16  ;;  %v3505_v18 = vmul.f32 %v3121_v63, %v6785_v43  ;;  %v6928_v0 = vpop.f32.mrb[65].mxu0 }
 0x1d0   : > { %v4847_v54 = vpop.eup %4846  ;;  %v3122_v23 = vadd.f32 0.5, %v2738_v12  ;;  %v2749_v55 = vmul.f32 0.5, %v4845_v62  ;;  %v3816_v36 = vadd.f32 %v3815_v58, %v3496_v41  ;;  %v6930_v6 = vpop.f32.mrb[65].mxu1  ;;  %4862 = vtanh.f32 %v6906_v11 }
 0x1d1   : > { %v4849_v59 = vpop.eup %4848  ;;  %v3507_v30 = vmul.f32 %v3123_v31, %v6797_v53  ;;  %v3124_v24 = vadd.f32 0.5, %v2740_v7  ;;  %v2751_v20 = vmul.f32 0.5, %v4847_v54  ;;  %9756 = vst [vmem:[#allocation48_spill] sm:$0xff] %v6930_v6  ;;  %v3724_v56 = vadd.f32 %v3723_v35, %v3505_v18  ;;  %v6933_v9 = vpop.f32.mrb[66].mxu0 }
 0x1d2   : > { %v4851_v17 = vpop.eup %4850  ;;  %v3506_v43 = vmul.f32 %v3122_v23, %v6803_v13  ;;  %v3133_v16 = vadd.f32 0.5, %v2749_v55  ;;  %v2750_v38 = vmul.f32 0.5, %v4849_v59  ;;  %9757 = vst [vmem:[#allocation49_spill] sm:$0xff] %v6933_v9  ;;  %v6935_v63 = vpop.f32.mrb[66].mxu1  ;;  %v5484_v9 = vld [vmem:[%s5886_s28 + $0x58] sm:$0xff]  }
 0x1d3   : > { %9758 = vst [vmem:[#allocation50_spill] sm:$0xff] %v6935_v63  ;;  %v4853_v12 = vpop.eup %4852  ;;  %v3786_v58 = vadd.f32 %v3785_v15, %v3507_v30  ;;  %v3508_v53 = vmul.f32 %v3124_v24, %v6811_v10  ;;  %v3135_v62 = vadd.f32 0.5, %v2751_v20  ;;  %v2752_v41 = vmul.f32 0.5, %v4851_v17  ;;  %v6938_v31 = vpop.f32.mrb[67].mxu0 }
 0x1d4   : > { %9759 = vst [vmem:[#allocation51_spill] sm:$0xff] %v6938_v31  ;;  %v6940_v7 = vpop.f32.mrb[67].mxu1  ;;  %v4855_v35 = vpop.eup %4854  ;;  %v3755_v54 = vadd.f32 %v3754_v42, %v3506_v43  ;;  %v3517_v13 = vmul.f32 %v3133_v16, %v6815_v61  ;;  %v3134_v18 = vadd.f32 0.5, %v2750_v38  ;;  %v2761_v23 = vmul.f32 0.5, %v4853_v12  ;;  %4540 = vmatmul.mubr.msk.bf16.gmra.mrb[172].mxu0 %vm570_vm0, %v5484_v9  ;;  %4556 = vmatmul.mubr.msk.bf16.gmra.mrb[172].mxu1 %vm570_vm0, %v5484_v9 }
 0x1d5   : > { %9760 = vst [vmem:[#allocation52_spill] sm:$0xff] %v6940_v7  ;;  %v4857_v55 = vpop.eup %4856  ;;  %v3817_v59 = vadd.f32 %v3816_v36, %v3508_v53  ;;  %v3519_v63 = vmul.f32 %v3135_v62, %v6822_v5  ;;  %v3136_v15 = vadd.f32 0.5, %v2752_v41  ;;  %v2763_v30 = vmul.f32 0.5, %v4855_v35  ;;  %1543 = vmatprep.mubr.bf16.mxu0 %v9699_v45  ;;  %1736 = vmatprep.mubr.bf16.mxu1 %v9699_v45 }
 0x1d6   : > { %v4859_v10 = vpop.eup %4858  ;;  %v3725_v24 = vadd.f32 %v3724_v56, %v3517_v13  ;;  %v3518_v20 = vmul.f32 %v3134_v18, %v6826_v25  ;;  %v3145_v42 = vadd.f32 0.5, %v2761_v23  ;;  %v2762_v17 = vmul.f32 0.5, %v4857_v55  ;;  %v6952_v56 = vpop.f32.mrb[68].mxu0  ;;  %v9765_v13 = vld [vmem:[#allocation24_spill] sm:$0xff] }
 0x1d7   : > { %v4861_v61 = vpop.eup %4860  ;;  %v3787_v36 = vadd.f32 %v3786_v58, %v3519_v63  ;;  %v3520_v5 = vmul.f32 %v3136_v15, %v6832_v22  ;;  %v3147_v43 = vadd.f32 0.5, %v2763_v30  ;;  %v2764_v16 = vmul.f32 0.5, %v4859_v10  ;;  %9761 = vst [vmem:[#allocation53_spill] sm:$0xff] %v6952_v56  ;;  %v6954_v25 = vpop.f32.mrb[68].mxu1 }
 0x1d8   : > { %v3756_v38 = vadd.f32 %v3755_v54, %v3518_v20  ;;  %v3529_v12 = vmul.f32 %v3145_v42, %v6842_v21  ;;  %v3146_v9 = vadd.f32 0.5, %v2762_v17  ;;  %v2773_v53 = vmul.f32 0.5, %v4861_v61  ;;  %9762 = vst [vmem:[#allocation54_spill] sm:$0xff] %v6954_v25  ;;  %v6958_v63 = vpop.f32.mrb[69].mxu0  ;;  %v6960_v22 = vpop.f32.mrb[69].mxu1 }
 0x1d9   : > { %v3818_v62 = vadd.f32 %v3817_v59, %v3520_v5  ;;  %v3531_v41 = vmul.f32 %v3147_v43, %v6851_v44  ;;  %v3148_v35 = vadd.f32 0.5, %v2764_v16  ;;  %9763 = vst [vmem:[#allocation55_spill] sm:$0xff] %v6958_v63  ;;  %9764 = vst [vmem:[#allocation56_spill] sm:$0xff] %v6960_v22  ;;  %v6965_v18 = vadd.f32 %v9765_v13, %v6123_v50  ;;  %v6967_v23 = vpop.f32.mrb[70].mxu0  ;;  %v6969_v55 = vpop.f32.mrb[70].mxu1  ;;  %v9768_v59 = vld [vmem:[#allocation25_spill] sm:$0xff] }
 0x1da   : > { %v3726_v58 = vadd.f32 %v3725_v24, %v3529_v12  ;;  %v3530_v54 = vmul.f32 %v3146_v9, %v6860_v57  ;;  %v3157_v21 = vadd.f32 0.5, %v2773_v53  ;;  %9766 = vst [vmem:[#allocation24_spill] sm:$0xff] %v6967_v23  ;;  %9767 = vst [vmem:[#allocation57_spill] sm:$0xff] %v6969_v55  ;;  %v6976_v15 = vadd.f32 %v9768_v59, %v6127_v51  ;;  %v9769_v57 = vld [vmem:[#allocation14_spill] sm:$0xff]  ;;  %v6982_v10 = vpop.f32.mrb[71].mxu0  ;;  %v6984_v24 = vpop.f32.mrb[71].mxu1 }
 0x1db   : > { %v6971_v44 = vadd.f32 %v3787_v36, %v3531_v41  ;;  %v3532_v11 = vmul.f32 %v3148_v35, %v6870_v29  ;;  %v6980_v30 = vadd.f32 %v9769_v57, %v6115_v48  ;;  %9770 = vst [vmem:[#allocation25_spill] sm:$0xff] %v6982_v10  ;;  %9771 = vst [vmem:[#allocation14_spill] sm:$0xff] %v6984_v24  ;;  %v2006_v17 = vmul.f32 0.5, %v6965_v18  ;;  %v9772_v29 = vld [vmem:[#allocation26_spill] sm:$0xff]  ;;  %v9773_v16 = vld [vmem:[#allocation16_spill] sm:$0xff] }
 0x1dc   : > { %v6986_v20 = vadd.f32 %v3756_v38, %v3530_v54  ;;  %v3541_v42 = vmul.f32 %v3157_v21, %v6878_v46  ;;  %v6992_v61 = vadd.f32 %v9772_v29, %v6119_v49  ;;  %v2008_v5 = vmul.f32 0.5, %v6976_v15  ;;  %v5485_v38 = vld [vmem:[%s5886_s28 + $0x60] sm:$0xff]   ;;  %v9774_v53 = vld [vmem:[#allocation27_spill] sm:$0xff] }
 0x1dd   : > { %v6994_v36 = vadd.f32 %v3818_v62, %v3532_v11  ;;  %v2017_v43 = vmul.f32 0.5, %v6980_v30  ;;  %v7000_v12 = vadd.f32 %v9773_v16, %v6123_v50  ;;  %4541 = vmatmul.mubr.msk.bf16.gmra.mrb[176].mxu0 %vm570_vm0, %v5485_v38  ;;  %4557 = vmatmul.mubr.msk.bf16.gmra.mrb[176].mxu1 %vm570_vm0, %v5485_v38  ;;  %4864 = vtanh.f32 %v2006_v17  ;;  %v9775_v35 = vld [vmem:[#allocation17_spill] sm:$0xff]  ;;  %v9777_v11 = vld [vmem:[#allocation30_spill] sm:$0xff]  ;;  %v9778_v57 = vld [vmem:[#allocation31_spill] sm:$0xff]  ;;  %v7032_v17 = vpop.f32.mrb[72].mxu0  ;;  %v7034_v29 = vpop.f32.mrb[72].mxu1 }
 0x1de   : > { %v7005_v46 = vadd.f32 %v3726_v58, %v3541_v42  ;;  %v2019_v9 = vmul.f32 0.5, %v6992_v61  ;;  %v7010_v62 = vadd.f32 %v9774_v53, %v6127_v51  ;;  %1553 = vmatprep.mubr.bf16.mxu0 %v9699_v45  ;;  %1746 = vmatprep.mubr.bf16.mxu1 %v9699_v45  ;;  %4866 = vtanh.f32 %v2008_v5  ;;  %v9776_v58 = vld [vmem:[#allocation28_spill] sm:$0xff]  ;;  %9779 = vst [vmem:[#allocation26_spill] sm:$0xff] %v7032_v17  ;;  %v7042_v53 = vpop.f32.mrb[73].mxu0 }
 0x1df   : > { %v2018_v41 = vmul.f32 0.5, %v7000_v12  ;;  %v7017_v54 = vadd.f32 %v9775_v35, %v6115_v48  ;;  %v7021_v21 = vadd.f32 %v9776_v58, %v6119_v49  ;;  %4868 = vtanh.f32 %v2017_v43  ;;  %9780 = vst [vmem:[#allocation16_spill] sm:$0xff] %v7034_v29  ;;  %v9781_v43 = vld [vmem:[#allocation19_spill] sm:$0xff]  ;;  %9782 = vst [vmem:[#allocation27_spill] sm:$0xff] %v7042_v53  ;;  %v7044_v35 = vpop.f32.mrb[73].mxu1  ;;  %v7052_v29 = vpop.f32.mrb[74].mxu0 }
 0x1e0   : > { %v2020_v13 = vmul.f32 0.5, %v7010_v62  ;;  %v7026_v59 = vadd.f32 %v9777_v11, %v6123_v50  ;;  %v7030_v42 = vadd.f32 %v9778_v57, %v6127_v51  ;;  %4870 = vtanh.f32 %v2019_v9  ;;  %9783 = vst [vmem:[#allocation17_spill] sm:$0xff] %v7044_v35  ;;  %v9784_v57 = vld [vmem:[#allocation32_spill] sm:$0xff]  ;;  %9785 = vst [vmem:[#allocation28_spill] sm:$0xff] %v7052_v29  ;;  %v7054_v17 = vpop.f32.mrb[74].mxu1  ;;  %v9787_v35 = vld [vmem:[#allocation33_spill] sm:$0xff] }
 0x1e1   : > { %v2029_v5 = vmul.f32 0.5, %v7017_v54  ;;  %v2031_v16 = vmul.f32 0.5, %v7021_v21  ;;  %v7040_v38 = vadd.f32 %v9781_v43, %v6115_v48  ;;  %4872 = vtanh.f32 %v2018_v41  ;;  %9786 = vst [vmem:[#allocation30_spill] sm:$0xff] %v7054_v17  ;;  %v4863_v43 = vpop.eup %4862  ;;  %v7065_v10 = vpop.f32.mrb[75].mxu0 }
 0x1e2   : > { %v2030_v58 = vmul.f32 0.5, %v7026_v59  ;;  %v2032_v11 = vmul.f32 0.5, %v7030_v42  ;;  %v7050_v9 = vadd.f32 %v9784_v57, %v6119_v49  ;;  %4874 = vtanh.f32 %v2020_v13  ;;  %9788 = vst [vmem:[#allocation31_spill] sm:$0xff] %v7065_v10  ;;  %v7067_v57 = vpop.f32.mrb[75].mxu1  ;;  %v5486_v10 = vld [vmem:[%s5886_s28 + $0x68] sm:$0xff]  }
 0x1e3   : > { %v2041_v53 = vmul.f32 0.5, %v7040_v38  ;;  %v7059_v41 = vadd.f32 %v6688_v39, %v6123_v50  ;;  %v7063_v24 = vadd.f32 %v9787_v35, %v6127_v51  ;;  %9789 = vst [vmem:[#allocation19_spill] sm:$0xff] %v7067_v57  ;;  %v2775_v29 = vmul.f32 0.5, %v4863_v43  ;;  %v9790_v35 = vld [vmem:[#allocation34_spill] sm:$0xff] }
 0x1e4   : > { %4876 = vtanh.f32 %v2029_v5  ;;  %v2043_v17 = vmul.f32 0.5, %v7050_v9  ;;  %v7072_v13 = vadd.f32 %v6693_v28, %v6115_v48  ;;  %v7078_v23 = vadd.f32 %v9790_v35, %v6119_v49  ;;  %v9791_v35 = vld [vmem:[#allocation35_spill] sm:$0xff] }
 0x1e5   : > { %4878 = vtanh.f32 %v2031_v16  ;;  %v2042_v39 = vmul.f32 0.5, %v7059_v41  ;;  %v2044_v55 = vmul.f32 0.5, %v7063_v24  ;;  %4542 = vmatmul.mubr.msk.bf16.gmra.mrb[180].mxu0 %vm570_vm0, %v5486_v10  ;;  %4558 = vmatmul.mubr.msk.bf16.gmra.mrb[180].mxu1 %vm570_vm0, %v5486_v10  ;;  %v3159_v5 = vadd.f32 0.5, %v2775_v29  ;;  %v7107_v63 = vpop.f32.mrb[76].mxu1 }
 0x1e6   : > { %4880 = vtanh.f32 %v2030_v58  ;;  %v2053_v43 = vmul.f32 0.5, %v7072_v13  ;;  %v7086_v28 = vadd.f32 %v6698_v34, %v6123_v50  ;;  %1563 = vmatprep.mubr.bf16.mxu0 %v9699_v45  ;;  %1756 = vmatprep.mubr.bf16.mxu1 %v9699_v45  ;;  %v2055_v16 = vmul.f32 0.5, %v7078_v23  ;;  %9793 = vst [vmem:[#allocation33_spill] sm:$0xff] %v7107_v63 }
 0x1e7   : > { %4882 = vtanh.f32 %v2032_v11  ;;  %v7093_v57 = vadd.f32 %v9791_v35, %v6127_v51  ;;  %v7097_v10 = vadd.f32 %v6714_v32, %v6115_v48  ;;  %v4865_v29 = vpop.eup %4864  ;;  %v3543_v58 = vmul.f32 %v3159_v5, %v6886_v26  ;;  %v7105_v11 = vpop.f32.mrb[76].mxu0 }
 0x1e8   : > { %4884 = vtanh.f32 %v2041_v53  ;;  %v2054_v34 = vmul.f32 0.5, %v7086_v28  ;;  %v7103_v22 = vadd.f32 %v6716_v1, %v6119_v49  ;;  %9792 = vst [vmem:[#allocation32_spill] sm:$0xff] %v7105_v11  ;;  %v4867_v35 = vpop.eup %4866  ;;  %v2774_v25 = vmul.f32 0.5, %v4865_v29  ;;  %v7115_v26 = vpop.f32.mrb[77].mxu0 }
 0x1e9   : > { %4886 = vtanh.f32 %v2043_v17  ;;  %v7110_v32 = vmul.f32 0.5, %v7093_v57  ;;  %v7113_v56 = vmul.f32 0.5, %v7097_v10  ;;  %9794 = vst [vmem:[#allocation34_spill] sm:$0xff] %v7115_v26  ;;  %v7117_v53 = vpop.f32.mrb[77].mxu1  ;;  %v4869_v5 = vpop.eup %4868  ;;  %v3789_v1 = vadd.f32 %v6971_v44, %v3543_v58 }
 0x1ea   : > { %9795 = vst [vmem:[#allocation35_spill] sm:$0xff] %v7117_v53  ;;  %v2776_v7 = vmul.f32 0.5, %v4867_v35  ;;  %4888 = vtanh.f32 %v2042_v39  ;;  %v7121_v63 = vmul.f32 0.5, %v7103_v22  ;;  %v7123_v29 = vpop.f32.mrb[78].mxu0  ;;  %v7125_v17 = vpop.f32.mrb[78].mxu1  ;;  %v3158_v31 = vadd.f32 0.5, %v2774_v25 }
 0x1eb   : > { %9796 = vst [vmem:[#allocation58_spill] sm:$0xff] %v7123_v29  ;;  %9797 = vst [vmem:[#allocation59_spill] sm:$0xff] %v7125_v17  ;;  %v4871_v11 = vpop.eup %4870  ;;  %v2785_v6 = vmul.f32 0.5, %v4869_v5  ;;  %4890 = vtanh.f32 %v2044_v55  ;;  %v7129_v53 = vadd.f32 %v6719_v60, %v6123_v50  ;;  %v7131_v26 = vpop.f32.mrb[79].mxu0  ;;  %v7137_v17 = vadd.f32 %v6721_v14, %v6127_v51  ;;  %v5487_v60 = vld [vmem:[%s5886_s28 + $0x70] sm:$0xff]  }
 0x1ec   : > { %9798 = vst [vmem:[#allocation60_spill] sm:$0xff] %v7131_v26  ;;  %v7133_v44 = vpop.f32.mrb[79].mxu1  ;;  %v4873_v39 = vpop.eup %4872  ;;  %v3160_v58 = vadd.f32 0.5, %v2776_v7  ;;  %v2787_v35 = vmul.f32 0.5, %v4871_v11  ;;  %4892 = vtanh.f32 %v2053_v43  ;;  %v3542_v5 = vmul.f32 %v3158_v31, %v6965_v18 }
 0x1ed   : > { %9799 = vst [vmem:[#allocation61_spill] sm:$0xff] %v7133_v44  ;;  %v4875_v25 = vpop.eup %4874  ;;  %v3169_v55 = vadd.f32 0.5, %v2785_v6  ;;  %v2786_v29 = vmul.f32 0.5, %v4873_v39  ;;  %4894 = vtanh.f32 %v2055_v16  ;;  %4543 = vmatmul.mubr.msk.bf16.gmra.mrb[184].mxu0 %vm570_vm0, %v5487_v60  ;;  %4559 = vmatmul.mubr.msk.bf16.gmra.mrb[184].mxu1 %vm570_vm0, %v5487_v60 }
 0x1ee   : > { %v4877_v44 = vpop.eup %4876  ;;  %v3544_v7 = vmul.f32 %v3160_v58, %v6976_v15  ;;  %v3171_v11 = vadd.f32 0.5, %v2787_v35  ;;  %v2788_v43 = vmul.f32 0.5, %v4875_v25  ;;  %4896 = vtanh.f32 %v2054_v34  ;;  %1573 = vmatprep.mubr.bf16.mxu0 %v9699_v45  ;;  %1766 = vmatprep.mubr.bf16.mxu1 %v9699_v45  ;;  %v7150_v35 = vpop.f32.mrb[80].mxu0 }
 0x1ef   : > { %v4879_v14 = vpop.eup %4878  ;;  %v3758_v6 = vadd.f32 %v6986_v20, %v3542_v5  ;;  %v3553_v31 = vmul.f32 %v3169_v55, %v6980_v30  ;;  %v3170_v18 = vadd.f32 0.5, %v2786_v29  ;;  %v2797_v16 = vmul.f32 0.5, %v4877_v44  ;;  %v7152_v34 = vpop.f32.mrb[80].mxu1 }
 0x1f0   : > { %v4881_v39 = vpop.eup %4880  ;;  %v3820_v60 = vadd.f32 %v6994_v36, %v3544_v7  ;;  %v3555_v26 = vmul.f32 %v3171_v11, %v6992_v61  ;;  %v3172_v15 = vadd.f32 0.5, %v2788_v43  ;;  %v2799_v58 = vmul.f32 0.5, %v4879_v14  ;;  %9800 = vst [vmem:[#allocation62_spill] sm:$0xff] %v7152_v34  ;;  %v7156_v29 = vpop.f32.mrb[81].mxu0 }
 0x1f1   : > { %v4883_v25 = vpop.eup %4882  ;;  %v3728_v45 = vadd.f32 %v7005_v46, %v3553_v31  ;;  %v3554_v20 = vmul.f32 %v3170_v18, %v7000_v12  ;;  %v3181_v5 = vadd.f32 0.5, %v2797_v16  ;;  %v2798_v30 = vmul.f32 0.5, %v4881_v39  ;;  %v7158_v44 = vpop.f32.mrb[81].mxu1 }
 0x1f2   : > { %9801 = vst [vmem:[#allocation63_spill] sm:$0xff] %v7158_v44  ;;  %v4885_v36 = vpop.eup %4884  ;;  %v3790_v55 = vadd.f32 %v3789_v1, %v3555_v26  ;;  %v3556_v61 = vmul.f32 %v3172_v15, %v7010_v62  ;;  %v3183_v7 = vadd.f32 0.5, %v2799_v58  ;;  %v2800_v11 = vmul.f32 0.5, %v4883_v25  ;;  %v7161_v43 = vpop.f32.mrb[82].mxu0  ;;  %v5488_v44 = vld [vmem:[%s5886_s28 + $0x78] sm:$0xff]  }
 0x1f3   : > { %9802 = vst [vmem:[#allocation64_spill] sm:$0xff] %v7161_v43  ;;  %v7163_v14 = vpop.f32.mrb[82].mxu1  ;;  %v4887_v34 = vpop.eup %4886  ;;  %v3759_v46 = vadd.f32 %v3758_v6, %v3554_v20  ;;  %v3565_v12 = vmul.f32 %v3181_v5, %v7017_v54  ;;  %v3182_v31 = vadd.f32 0.5, %v2798_v30  ;;  %v2809_v18 = vmul.f32 0.5, %v4885_v36 }
 0x1f4   : > { %9803 = vst [vmem:[#allocation65_spill] sm:$0xff] %v7163_v14  ;;  %v7166_v16 = vpop.f32.mrb[83].mxu0  ;;  %v7168_v39 = vpop.f32.mrb[83].mxu1  ;;  %v3821_v1 = vadd.f32 %v3820_v60, %v3556_v61  ;;  %v3567_v62 = vmul.f32 %v3183_v7, %v7021_v21  ;;  %v3184_v15 = vadd.f32 0.5, %v2800_v11  ;;  %v2811_v58 = vmul.f32 0.5, %v4887_v34 }
 0x1f5   : > { %v4889_v26 = vpop.eup %4888  ;;  %v3729_v43 = vadd.f32 %v3728_v45, %v3565_v12  ;;  %v3566_v14 = vmul.f32 %v3182_v31, %v7026_v59  ;;  %v3193_v6 = vadd.f32 0.5, %v2809_v18  ;;  %4544 = vmatmul.mubr.msk.bf16.gmra.mrb[188].mxu0 %vm570_vm0, %v5488_v44  ;;  %4560 = vmatmul.mubr.msk.bf16.gmra.mrb[188].mxu1 %vm570_vm0, %v5488_v44  ;;  %v7180_v44 = vpop.f32.mrb[84].mxu1  ;;  %4898 = vtanh.f32 %v7110_v32 }
 0x1f6   : > { %v4891_v25 = vpop.eup %4890  ;;  %v2810_v20 = vmul.f32 0.5, %v4889_v26  ;;  %v3791_v5 = vadd.f32 %v3790_v55, %v3567_v62  ;;  %v3568_v30 = vmul.f32 %v3184_v15, %v7030_v42  ;;  %v3195_v60 = vadd.f32 0.5, %v2811_v58  ;;  %v7178_v26 = vpop.f32.mrb[84].mxu0 }
 0x1f7   : > { %v4893_v54 = vpop.eup %4892  ;;  %v2812_v36 = vmul.f32 0.5, %v4891_v25  ;;  %v3760_v61 = vadd.f32 %v3759_v46, %v3566_v14  ;;  %v3577_v34 = vmul.f32 %v3193_v6, %v7040_v38  ;;  %4900 = vtanh.f32 %v7113_v56 }
 0x1f8   : > { %v4895_v21 = vpop.eup %4894  ;;  %v3194_v45 = vadd.f32 0.5, %v2810_v20  ;;  %v2821_v7 = vmul.f32 0.5, %v4893_v54  ;;  %v3822_v11 = vadd.f32 %v3821_v1, %v3568_v30  ;;  %v3579_v12 = vmul.f32 %v3195_v60, %v7050_v9  ;;  %v7185_v1 = vpop.f32.mrb[85].mxu0  ;;  %v9804_v54 = vld [vmem:[#allocation36_spill] sm:$0xff] }
 0x1f9   : > { %v4897_v59 = vpop.eup %4896  ;;  %v3196_v31 = vadd.f32 0.5, %v2812_v36  ;;  %v2823_v18 = vmul.f32 0.5, %v4895_v21  ;;  %v3730_v55 = vadd.f32 %v3729_v43, %v3577_v34  ;;  %4902 = vtanh.f32 %v7121_v63 }
 0x1fa   : > { %v3578_v42 = vmul.f32 %v3194_v45, %v7059_v41  ;;  %v3205_v62 = vadd.f32 0.5, %v2821_v7  ;;  %v2822_v15 = vmul.f32 0.5, %v4897_v59  ;;  %v3792_v14 = vadd.f32 %v3791_v5, %v3579_v12  ;;  %v7202_v5 = vpop.f32.mrb[85].mxu1 }
 0x1fb   : > { %v3580_v38 = vmul.f32 %v3196_v31, %v7063_v24  ;;  %v3207_v46 = vadd.f32 0.5, %v2823_v18  ;;  %v2066_v43 = vmul.f32 0.5, %v7129_v53  ;;  %v2068_v20 = vmul.f32 0.5, %v7137_v17  ;;  %v7254_v31 = vpop.f32.mrb[86].mxu1 }
 0x1fc   : > { %v3761_v9 = vadd.f32 %v3760_v61, %v3578_v42  ;;  %v3589_v58 = vmul.f32 %v3205_v62, %v7072_v13  ;;  %v3206_v25 = vadd.f32 0.5, %v2822_v15  ;;  %v7200_v13 = vadd.f32 %v9804_v54, %v6115_v48  ;;  %v9807_v62 = vld [vmem:[#allocation21_spill] sm:$0xff] }
 0x1fd   : > { %v7189_v6 = vadd.f32 %v3822_v11, %v3580_v38  ;;  %v3591_v41 = vmul.f32 %v3207_v46, %v7078_v23  ;;  %4904 = vtanh.f32 %v2066_v43  ;;  %v9805_v23 = vld [vmem:[#allocation37_spill] sm:$0xff]  ;;  %v7212_v30 = vadd.f32 %v6729_v33, %v6123_v50  ;;  %v9808_v46 = vld [vmem:[#allocation38_spill] sm:$0xff] }
 0x1fe   : > { %v7194_v24 = vadd.f32 %v3730_v55, %v3589_v58  ;;  %v3590_v32 = vmul.f32 %v3206_v25, %v7086_v28  ;;  %v7208_v63 = vadd.f32 %v9805_v23, %v6119_v49  ;;  %4906 = vtanh.f32 %v2068_v20  ;;  %v7274_v20 = vpop.f32.mrb[87].mxu1 }
 0x1ff   : > { %v7204_v56 = vadd.f32 %v3792_v14, %v3591_v41  ;;  %v2077_v60 = vmul.f32 0.5, %v7200_v13  ;;  %v7219_v36 = vadd.f32 %v6731_v19, %v6127_v51  ;;  %v2078_v61 = vmul.f32 0.5, %v7212_v30  ;;  %v4899_v18 = vpop.eup %4898  ;;  %9810 = vst [vmem:[#allocation37_spill] sm:$0xff] %v7274_v20 }
 0x200   : > { %v7214_v28 = vadd.f32 %v3761_v9, %v3590_v32  ;;  %v2079_v21 = vmul.f32 0.5, %v7208_v63  ;;  %v7225_v34 = vadd.f32 %v6745_v8, %v6115_v48  ;;  %v7229_v33 = vadd.f32 %v6747_v4, %v6119_v49 }
 0x201   : > { %4908 = vtanh.f32 %v2077_v60  ;;  %v2080_v45 = vmul.f32 0.5, %v7219_v36  ;;  %v7234_v7 = vadd.f32 %v6757_v47, %v6123_v50  ;;  %v7238_v19 = vadd.f32 %v6759_v27, %v6127_v51  ;;  %v7252_v27 = vpop.f32.mrb[86].mxu0  ;;  %v4901_v14 = vpop.eup %4900 }
 0x202   : > { %4910 = vtanh.f32 %v2079_v21  ;;  %v2089_v59 = vmul.f32 0.5, %v7225_v34  ;;  %v2091_v8 = vmul.f32 0.5, %v7229_v33  ;;  %v7244_v4 = vadd.f32 %v6772_v40, %v6115_v48  ;;  %v9806_v40 = vld [vmem:[#allocation20_spill] sm:$0xff]  ;;  %v7272_v32 = vpop.f32.mrb[87].mxu0 }
 0x203   : > { %4912 = vtanh.f32 %v2078_v61  ;;  %v2090_v11 = vmul.f32 0.5, %v7234_v7  ;;  %v2092_v12 = vmul.f32 0.5, %v7238_v19  ;;  %v7250_v47 = vadd.f32 %v6774_v2, %v6119_v49  ;;  %v4903_v58 = vpop.eup %4902  ;;  %9809 = vst [vmem:[#allocation36_spill] sm:$0xff] %v7272_v32 }
 0x204   : > { %4914 = vtanh.f32 %v2080_v45  ;;  %v2101_v55 = vmul.f32 0.5, %v7244_v4  ;;  %v7259_v42 = vadd.f32 %v9806_v40, %v6123_v50  ;;  %v7263_v15 = vadd.f32 %v9807_v62, %v6127_v51  ;;  %v9811_v45 = vld [vmem:[#allocation39_spill] sm:$0xff] }
 0x205   : > { %v2824_v38 = vmul.f32 0.5, %v4899_v18  ;;  %4916 = vtanh.f32 %v2089_v59  ;;  %v2103_v2 = vmul.f32 0.5, %v7250_v47  ;;  %v7268_v9 = vadd.f32 %v9808_v46, %v6115_v48 }
 0x206   : > { %v2833_v25 = vmul.f32 0.5, %v4901_v14  ;;  %4918 = vtanh.f32 %v2091_v8  ;;  %v2102_v41 = vmul.f32 0.5, %v7259_v42  ;;  %v2104_v43 = vmul.f32 0.5, %v7263_v15  ;;  %v9812_v8 = vld [vmem:[#allocation40_spill] sm:$0xff] }
 0x207   : > { %v3208_v54 = vadd.f32 0.5, %v2824_v38  ;;  %v2835_v23 = vmul.f32 0.5, %v4903_v58  ;;  %4920 = vtanh.f32 %v2090_v11  ;;  %v2113_v60 = vmul.f32 0.5, %v7268_v9  ;;  %v4905_v21 = vpop.eup %4904 }
 0x208   : > { %v3217_v61 = vadd.f32 0.5, %v2833_v25  ;;  %4922 = vtanh.f32 %v2092_v12  ;;  %v7279_v59 = vadd.f32 %v9811_v45, %v6119_v49  ;;  %v7283_v18 = vadd.f32 %v9812_v8, %v6123_v50  ;;  %v4907_v40 = vpop.eup %4906 }
 0x209   : > { %v3592_v62 = vmul.f32 %v3208_v54, %v7093_v57  ;;  %v3219_v14 = vadd.f32 0.5, %v2835_v23  ;;  %v2834_v38 = vmul.f32 0.5, %v4905_v21  ;;  %4924 = vtanh.f32 %v2101_v55  ;;  %v7291_v55 = vpop.f32.mrb[88].mxu0 }
 0x20a   : > { %v3601_v11 = vmul.f32 %v3217_v61, %v7097_v10  ;;  %v2836_v46 = vmul.f32 0.5, %v4907_v40  ;;  %4926 = vtanh.f32 %v2103_v2  ;;  %v2115_v12 = vmul.f32 0.5, %v7279_v59  ;;  %v7293_v10 = vpop.f32.mrb[88].mxu1 }
 0x20b   : > { %v4909_v58 = vpop.eup %4908  ;;  %v3824_v25 = vadd.f32 %v7189_v6, %v3592_v62  ;;  %v3603_v45 = vmul.f32 %v3219_v14, %v7103_v22  ;;  %v3218_v20 = vadd.f32 0.5, %v2834_v38  ;;  %4928 = vtanh.f32 %v2102_v41  ;;  %v7297_v22 = vpop.f32.mrb[89].mxu0 }
 0x20c   : > { %v4911_v8 = vpop.eup %4910  ;;  %v3732_v32 = vadd.f32 %v7194_v24, %v3601_v11  ;;  %v3220_v57 = vadd.f32 0.5, %v2836_v46  ;;  %v2845_v54 = vmul.f32 0.5, %v4909_v58  ;;  %4930 = vtanh.f32 %v2104_v43  ;;  %v7299_v41 = vpop.f32.mrb[89].mxu1 }
 0x20d   : > { %v4913_v2 = vpop.eup %4912  ;;  %v3794_v23 = vadd.f32 %v7204_v56, %v3603_v45  ;;  %v3602_v21 = vmul.f32 %v3218_v20, %v7129_v53  ;;  %v2847_v6 = vmul.f32 0.5, %v4911_v8  ;;  %4932 = vtanh.f32 %v2113_v60  ;;  %v7302_v62 = vpop.f32.mrb[90].mxu0 }
 0x20e   : > { %v4915_v61 = vpop.eup %4914  ;;  %v3604_v24 = vmul.f32 %v3220_v57, %v7137_v17  ;;  %v3229_v40 = vadd.f32 0.5, %v2845_v54  ;;  %v2846_v43 = vmul.f32 0.5, %v4913_v2  ;;  %4934 = vtanh.f32 %v2115_v12  ;;  %9813 = vst [vmem:[#allocation20_spill] sm:$0xff] %v7302_v62  ;;  %v7304_v14 = vpop.f32.mrb[90].mxu1 }
 0x20f   : > { %9814 = vst [vmem:[#allocation21_spill] sm:$0xff] %v7304_v14  ;;  %v4917_v38 = vpop.eup %4916  ;;  %v3763_v56 = vadd.f32 %v7214_v28, %v3602_v21  ;;  %v3231_v53 = vadd.f32 0.5, %v2847_v6  ;;  %v2848_v20 = vmul.f32 0.5, %v4915_v61  ;;  %v2114_v60 = vmul.f32 0.5, %v7283_v18  ;;  %v7308_v11 = vpop.f32.mrb[91].mxu0 }
 0x210   : > { %9815 = vst [vmem:[#allocation38_spill] sm:$0xff] %v7308_v11  ;;  %v7310_v46 = vpop.f32.mrb[91].mxu1  ;;  %v4919_v58 = vpop.eup %4918  ;;  %v3825_v17 = vadd.f32 %v3824_v25, %v3604_v24  ;;  %v3613_v45 = vmul.f32 %v3229_v40, %v7200_v13  ;;  %v3230_v12 = vadd.f32 0.5, %v2846_v43  ;;  %v2857_v8 = vmul.f32 0.5, %v4917_v38 }
 0x211   : > { %9816 = vst [vmem:[#allocation39_spill] sm:$0xff] %v7310_v46  ;;  %v4921_v57 = vpop.eup %4920  ;;  %v3615_v54 = vmul.f32 %v3231_v53, %v7208_v63  ;;  %v3232_v2 = vadd.f32 0.5, %v2848_v20  ;;  %v2859_v14 = vmul.f32 0.5, %v4919_v58  ;;  %4936 = vtanh.f32 %v2114_v60  ;;  %v7317_v20 = vpop.f32.mrb[92].mxu0 }
 0x212   : > { %v4923_v28 = vpop.eup %4922  ;;  %v3733_v21 = vadd.f32 %v3732_v32, %v3613_v45  ;;  %v3614_v6 = vmul.f32 %v3230_v12, %v7212_v30  ;;  %v3241_v61 = vadd.f32 0.5, %v2857_v8  ;;  %v2858_v11 = vmul.f32 0.5, %v4921_v57  ;;  %v7319_v60 = vpop.f32.mrb[92].mxu1 }
 0x213   : > { %v4925_v62 = vpop.eup %4924  ;;  %v3795_v46 = vadd.f32 %v3794_v23, %v3615_v54  ;;  %v3616_v25 = vmul.f32 %v3232_v2, %v7219_v36  ;;  %v3243_v24 = vadd.f32 0.5, %v2859_v14  ;;  %v2860_v13 = vmul.f32 0.5, %v4923_v28  ;;  %v7322_v12 = vpop.f32.mrb[93].mxu0 }
 0x214   : > { %v4927_v40 = vpop.eup %4926  ;;  %v3764_v43 = vadd.f32 %v3763_v56, %v3614_v6  ;;  %v3625_v38 = vmul.f32 %v3241_v61, %v7225_v34  ;;  %v3242_v63 = vadd.f32 0.5, %v2858_v11  ;;  %v2869_v53 = vmul.f32 0.5, %v4925_v62  ;;  %v7324_v36 = vpop.f32.mrb[93].mxu1 }
 0x215   : > { %v4929_v32 = vpop.eup %4928  ;;  %v3826_v30 = vadd.f32 %v3825_v17, %v3616_v25  ;;  %v3627_v58 = vmul.f32 %v3243_v24, %v7229_v33  ;;  %v3244_v45 = vadd.f32 0.5, %v2860_v13  ;;  %v2871_v23 = vmul.f32 0.5, %v4927_v40  ;;  %v7327_v8 = vpop.f32.mrb[94].mxu0 }
 0x216   : > { %v4931_v14 = vpop.eup %4930  ;;  %v3734_v56 = vadd.f32 %v3733_v21, %v3625_v38  ;;  %v3626_v34 = vmul.f32 %v3242_v63, %v7234_v7  ;;  %v3253_v11 = vadd.f32 0.5, %v2869_v53  ;;  %v2870_v62 = vmul.f32 0.5, %v4929_v32  ;;  %9817 = vst [vmem:[#allocation40_spill] sm:$0xff] %v7327_v8 }
 0x217   : > { %v4933_v57 = vpop.eup %4932  ;;  %v3796_v54 = vadd.f32 %v3795_v46, %v3627_v58  ;;  %v3628_v17 = vmul.f32 %v3244_v45, %v7238_v19  ;;  %v3255_v2 = vadd.f32 0.5, %v2871_v23  ;;  %v2872_v33 = vmul.f32 0.5, %v4931_v14  ;;  %v9818_v46 = vld [vmem:[#allocation41_spill] sm:$0xff]  ;;  %v9819_v45 = vld [vmem:[#allocation42_spill] sm:$0xff] }
 0x218   : > { %v4935_v28 = vpop.eup %4934  ;;  %v3765_v6 = vadd.f32 %v3764_v43, %v3626_v34  ;;  %v3637_v61 = vmul.f32 %v3253_v11, %v7244_v4  ;;  %v3254_v25 = vadd.f32 0.5, %v2870_v62  ;;  %v2881_v24 = vmul.f32 0.5, %v4933_v57  ;;  %v9820_v62 = vld [vmem:[#allocation43_spill] sm:$0xff] }
 0x219   : > { %v3827_v13 = vadd.f32 %v3826_v30, %v3628_v17  ;;  %v3639_v21 = vmul.f32 %v3255_v2, %v7250_v47  ;;  %v3256_v7 = vadd.f32 0.5, %v2872_v33  ;;  %v2883_v40 = vmul.f32 0.5, %v4935_v28  ;;  %v9821_v17 = vld [vmem:[#allocation44_spill] sm:$0xff] }
 0x21a   : > { %v3735_v38 = vadd.f32 %v3734_v56, %v3637_v61  ;;  %v3638_v63 = vmul.f32 %v3254_v25, %v7259_v42  ;;  %v3265_v53 = vadd.f32 0.5, %v2881_v24  ;;  %v7335_v19 = vadd.f32 %v9818_v46, %v6127_v51  ;;  %v9823_v24 = vld [vmem:[#allocation29_spill] sm:$0xff] }
 0x21b   : > { %v4937_v32 = vpop.eup %4936  ;;  %v3797_v58 = vadd.f32 %v3796_v54, %v3639_v21  ;;  %v3640_v43 = vmul.f32 %v3256_v7, %v7263_v15  ;;  %v3267_v4 = vadd.f32 0.5, %v2883_v40  ;;  %v7340_v30 = vadd.f32 %v9819_v45, %v6115_v48  ;;  %v7375_v21 = vpop.f32.mrb[94].mxu1  ;;  %v9825_v40 = vld [vmem:[#allocation22_spill] sm:$0xff] }
 0x21c   : > { %v3766_v47 = vadd.f32 %v3765_v6, %v3638_v63  ;;  %v3649_v23 = vmul.f32 %v3265_v53, %v7268_v9  ;;  %v2882_v14 = vmul.f32 0.5, %v4937_v32  ;;  %v2116_v42 = vmul.f32 0.5, %v7335_v19  ;;  %9824 = vst [vmem:[#allocation41_spill] sm:$0xff] %v7375_v21  ;;  %v9828_v45 = vld [vmem:[#allocation18_spill] sm:$0xff] }
 0x21d   : > { %v7344_v56 = vadd.f32 %v3827_v13, %v3640_v43  ;;  %v3651_v34 = vmul.f32 %v3267_v4, %v7279_v59  ;;  %v2125_v11 = vmul.f32 0.5, %v7340_v30  ;;  %v7350_v15 = vadd.f32 %v9820_v62, %v6119_v49  ;;  %v9822_v59 = vld [vmem:[#allocation45_spill] sm:$0xff]  ;;  %v9827_v43 = vld [vmem:[#allocation23_spill] sm:$0xff] }
 0x21e   : > { %v7352_v57 = vadd.f32 %v3735_v38, %v3649_v23  ;;  %v3266_v54 = vadd.f32 0.5, %v2882_v14  ;;  %4938 = vtanh.f32 %v2116_v42  ;;  %v7356_v9 = vadd.f32 %v9821_v17, %v6123_v50  ;;  %v9830_v42 = vld [vmem:[#allocation47_spill] sm:$0xff] }
 0x21f   : > { %v7358_v2 = vadd.f32 %v3797_v58, %v3651_v34  ;;  %4940 = vtanh.f32 %v2125_v11  ;;  %v2127_v33 = vmul.f32 0.5, %v7350_v15  ;;  %v7363_v28 = vadd.f32 %v9822_v59, %v6127_v51  ;;  %v7408_v11 = vpop.f32.mrb[95].mxu0 }
 0x220   : > { %v3650_v6 = vmul.f32 %v3266_v54, %v7283_v18  ;;  %v2126_v61 = vmul.f32 0.5, %v7356_v9  ;;  %v7369_v25 = vadd.f32 %v6890_v37, %v6115_v48  ;;  %v7373_v13 = vadd.f32 %v9823_v24, %v6119_v49  ;;  %v9826_v18 = vld [vmem:[#allocation15_spill] sm:$0xff]  ;;  %9831 = vst [vmem:[#allocation42_spill] sm:$0xff] %v7408_v11 }
 0x221   : > { %4942 = vtanh.f32 %v2127_v33  ;;  %v2128_v7 = vmul.f32 0.5, %v7363_v28  ;;  %v7380_v38 = vadd.f32 %v9825_v40, %v6123_v50  ;;  %v7384_v63 = vadd.f32 %v9826_v18, %v6127_v51  ;;  %v7413_v33 = vpop.f32.mrb[95].mxu1 }
 0x222   : > { %v7386_v53 = vadd.f32 %v3766_v47, %v3650_v6  ;;  %4944 = vtanh.f32 %v2126_v61  ;;  %v2137_v37 = vmul.f32 0.5, %v7369_v25  ;;  %v2139_v46 = vmul.f32 0.5, %v7373_v13  ;;  %v9829_v47 = vld [vmem:[#allocation46_spill] sm:$0xff]  ;;  %9833 = vst [vmem:[#allocation43_spill] sm:$0xff] %v7413_v33 }
 0x223   : > { %4946 = vtanh.f32 %v2128_v7  ;;  %v2138_v32 = vmul.f32 0.5, %v7380_v38  ;;  %v2140_v58 = vmul.f32 0.5, %v7384_v63  ;;  %v7394_v4 = vadd.f32 %v9827_v43, %v6115_v48  ;;  %v9832_v48 = vld [vmem:[#allocation13_spill] sm:$0xff] }
 0x224   : > { %4948 = vtanh.f32 %v2137_v37  ;;  %v7398_v23 = vadd.f32 %v9828_v45, %v6119_v49  ;;  %v7402_v14 = vadd.f32 %v9829_v47, %v6123_v50  ;;  %v7406_v34 = vadd.f32 %v9830_v42, %v6127_v51  ;;  %v5489_v51 = vld [vmem:[#allocation8] sm:$0xff] }
 0x225   : > { %4950 = vtanh.f32 %v2139_v46  ;;  %v2149_v62 = vmul.f32 0.5, %v7394_v4  ;;  %v328_v54 = vsub.s32 4, %v9832_v48  ;;  %v336_v17 = vsub.s32 6, %v9832_v48 }
 0x226   : > { %4952 = vtanh.f32 %v2138_v32  ;;  %v2151_v49 = vmul.f32 0.5, %v7398_v23  ;;  %v2150_v50 = vmul.f32 0.5, %v7402_v14  ;;  %v2152_v59 = vmul.f32 0.5, %v7406_v34 }
 0x227   : > { %4954 = vtanh.f32 %v2140_v58  ;;  %v7418_v6 = vrot.slane %v5489_v51, %v328_v54  ;;  %v7420_v61 = vrot.slane %v5489_v51, %v336_v17  ;;  %v332_v24 = vsub.s32 5, %v9832_v48  ;;  %v7438_v17 = vpop.f32.mrb[96].mxu0 }
 0x228   : > { %v4939_v7 = vpop.eup %4938  ;;  %4956 = vtanh.f32 %v2149_v62  ;;  %v340_v40 = vsub.s32 7, %v9832_v48  ;;  %9834 = vst [vmem:[#allocation44_spill] sm:$0xff] %v7438_v17 }
 0x229   : > { %v4941_v18 = vpop.eup %4940  ;;  %v2884_v37 = vmul.f32 0.5, %v4939_v7  ;;  %4958 = vtanh.f32 %v2151_v49  ;;  %v7426_v46 = vadd.f32 %v6923_v3, %v7418_v6  ;;  %v7430_v32 = vadd.f32 %v6925_v52, %v7420_v61  ;;  %v7440_v3 = vpop.f32.mrb[96].mxu1 }
 0x22a   : > { %v2893_v58 = vmul.f32 0.5, %v4941_v18  ;;  %4960 = vtanh.f32 %v2150_v50  ;;  %v7432_v43 = vrot.slane %v5489_v51, %v332_v24  ;;  %v7434_v45 = vrot.slane %v5489_v51, %v340_v40  ;;  %9835 = vst [vmem:[#allocation45_spill] sm:$0xff] %v7440_v3  ;;  %v9836_v51 = vld [vmem:[#allocation48_spill] sm:$0xff]  ;;  %v7452_v40 = vpop.f32.mrb[97].mxu1 }
 0x22b   : > { %v4943_v47 = vpop.eup %4942  ;;  %v3268_v42 = vadd.f32 0.5, %v2884_v37  ;;  %4962 = vtanh.f32 %v2152_v59  ;;  %v1781_v62 = vmul.f32 0.5, %v7426_v46  ;;  %v1783_v54 = vmul.f32 0.5, %v7430_v32  ;;  %v7450_v59 = vpop.f32.mrb[97].mxu0  ;;  %9838 = vst [vmem:[#allocation22_spill] sm:$0xff] %v7452_v40 }
 0x22c   : > { %v4945_v49 = vpop.eup %4944  ;;  %v3277_v52 = vadd.f32 0.5, %v2893_v58  ;;  %v2895_v7 = vmul.f32 0.5, %v4943_v47  ;;  %v7444_v50 = vadd.f32 %v6928_v0, %v7432_v43  ;;  %v7448_v24 = vadd.f32 %v9836_v51, %v7434_v45  ;;  %9837 = vst [vmem:[#allocation29_spill] sm:$0xff] %v7450_v59  ;;  %v9839_v58 = vld [vmem:[#allocation49_spill] sm:$0xff]  ;;  %v7459_v3 = vpop.f32.mrb[98].mxu0 }
 0x22d   : > { %v4947_v18 = vpop.eup %4946  ;;  %v3652_v37 = vmul.f32 %v3268_v42, %v7335_v19  ;;  %v2894_v48 = vmul.f32 0.5, %v4945_v49  ;;  %4964 = vtanh.f32 %v1781_v62  ;;  %v7457_v47 = vadd.f32 %v9839_v58, %v7418_v6  ;;  %9840 = vst [vmem:[#allocation15_spill] sm:$0xff] %v7459_v3  ;;  %v7461_v0 = vpop.f32.mrb[98].mxu1 }
 0x22e   : > { %9841 = vst [vmem:[#allocation23_spill] sm:$0xff] %v7461_v0  ;;  %v4949_v17 = vpop.eup %4948  ;;  %v3661_v51 = vmul.f32 %v3277_v52, %v7340_v30  ;;  %v3279_v33 = vadd.f32 0.5, %v2895_v7  ;;  %v2896_v59 = vmul.f32 0.5, %v4947_v18  ;;  %4966 = vtanh.f32 %v1783_v54  ;;  %v7464_v40 = vpop.f32.mrb[99].mxu0 }
 0x22f   : > { %9842 = vst [vmem:[#allocation18_spill] sm:$0xff] %v7464_v40  ;;  %v7466_v11 = vpop.f32.mrb[99].mxu1  ;;  %v4951_v19 = vpop.eup %4950  ;;  %v3829_v42 = vadd.f32 %v7344_v56, %v3652_v37  ;;  %v3278_v62 = vadd.f32 0.5, %v2894_v48  ;;  %v2905_v49 = vmul.f32 0.5, %v4949_v17  ;;  %v1782_v58 = vmul.f32 0.5, %v7444_v50 }
 0x230   : > { %9843 = vst [vmem:[#allocation46_spill] sm:$0xff] %v7466_v11  ;;  %v4953_v3 = vpop.eup %4952  ;;  %v3737_v0 = vadd.f32 %v7352_v57, %v3661_v51  ;;  %v3663_v21 = vmul.f32 %v3279_v33, %v7350_v15  ;;  %v3280_v30 = vadd.f32 0.5, %v2896_v59  ;;  %v2907_v52 = vmul.f32 0.5, %v4951_v19  ;;  %v7477_v51 = vpop.f32.mrb[100].mxu0 }
 0x231   : > { %v4955_v7 = vpop.eup %4954  ;;  %v3662_v54 = vmul.f32 %v3278_v62, %v7356_v9  ;;  %v3289_v18 = vadd.f32 0.5, %v2905_v49  ;;  %v2906_v40 = vmul.f32 0.5, %v4953_v3  ;;  %4968 = vtanh.f32 %v1782_v58  ;;  %v7479_v9 = vpop.f32.mrb[100].mxu1 }
 0x232   : > { %v4957_v11 = vpop.eup %4956  ;;  %v3799_v56 = vadd.f32 %v7358_v2, %v3663_v21  ;;  %v3664_v48 = vmul.f32 %v3280_v30, %v7363_v28  ;;  %v3291_v17 = vadd.f32 0.5, %v2907_v52  ;;  %v2908_v37 = vmul.f32 0.5, %v4955_v7  ;;  %v7482_v28 = vpop.f32.mrb[101].mxu0 }
 0x233   : > { %v4959_v8 = vpop.eup %4958  ;;  %v3768_v57 = vadd.f32 %v7386_v53, %v3662_v54  ;;  %v3673_v15 = vmul.f32 %v3289_v18, %v7369_v25  ;;  %v3290_v33 = vadd.f32 0.5, %v2906_v40  ;;  %v2917_v59 = vmul.f32 0.5, %v4957_v11  ;;  %v7484_v49 = vpop.f32.mrb[101].mxu1 }
 0x234   : > { %v4961_v3 = vpop.eup %4960  ;;  %v3830_v19 = vadd.f32 %v3829_v42, %v3664_v48  ;;  %v3675_v62 = vmul.f32 %v3291_v17, %v7373_v13  ;;  %v3292_v2 = vadd.f32 0.5, %v2908_v37  ;;  %v2919_v21 = vmul.f32 0.5, %v4959_v8  ;;  %v7487_v30 = vpop.f32.mrb[102].mxu0 }
 0x235   : > { %v4963_v58 = vpop.eup %4962  ;;  %v3738_v53 = vadd.f32 %v3737_v0, %v3673_v15  ;;  %v3674_v25 = vmul.f32 %v3290_v33, %v7380_v38  ;;  %v3301_v40 = vadd.f32 0.5, %v2917_v59  ;;  %v2918_v11 = vmul.f32 0.5, %v4961_v3  ;;  %9844 = vst [vmem:[#allocation47_spill] sm:$0xff] %v7487_v30  ;;  %v7489_v52 = vpop.f32.mrb[102].mxu1 }
 0x236   : > { %9845 = vst [vmem:[#allocation48_spill] sm:$0xff] %v7489_v52  ;;  %v3800_v7 = vadd.f32 %v3799_v56, %v3675_v62  ;;  %v3676_v42 = vmul.f32 %v3292_v2, %v7384_v63  ;;  %v3303_v13 = vadd.f32 0.5, %v2919_v21  ;;  %v2920_v54 = vmul.f32 0.5, %v4963_v58  ;;  %v7492_v8 = vpop.f32.mrb[103].mxu0 }
 0x237   : > { %9846 = vst [vmem:[#allocation49_spill] sm:$0xff] %v7492_v8  ;;  %v4965_v18 = vpop.eup %4964  ;;  %v3769_v48 = vadd.f32 %v3768_v57, %v3674_v25  ;;  %v3685_v17 = vmul.f32 %v3301_v40, %v7394_v4  ;;  %v3302_v0 = vadd.f32 0.5, %v2918_v11  ;;  %v1784_v38 = vmul.f32 0.5, %v7448_v24 }
 0x238   : > { %v4967_v37 = vpop.eup %4966  ;;  %v3831_v15 = vadd.f32 %v3830_v19, %v3676_v42  ;;  %v3687_v33 = vmul.f32 %v3303_v13, %v7398_v23  ;;  %v3304_v59 = vadd.f32 0.5, %v2920_v54  ;;  %v2549_v3 = vmul.f32 0.5, %v4965_v18  ;;  %v9847_v19 = vld [vmem:[#allocation50_spill] sm:$0xff] }
 0x239   : > { %v3739_v56 = vadd.f32 %v3738_v53, %v3685_v17  ;;  %v3686_v63 = vmul.f32 %v3302_v0, %v7402_v14  ;;  %v2551_v62 = vmul.f32 0.5, %v4967_v37  ;;  %4970 = vtanh.f32 %v1784_v38 }
 0x23a   : > { %v3801_v2 = vadd.f32 %v3800_v7, %v3687_v33  ;;  %v3688_v21 = vmul.f32 %v3304_v59, %v7406_v34  ;;  %v2933_v57 = vadd.f32 0.5, %v2549_v3  ;;  %v1793_v4 = vmul.f32 0.5, %v7457_v47  ;;  %v9848_v33 = vld [vmem:[#allocation51_spill] sm:$0xff]  ;;  %v7519_v3 = vpop.f32.mrb[103].mxu1 }
 0x23b   : > { %v4969_v58 = vpop.eup %4968  ;;  %v4120_v25 = vrot.slane %v3739_v56, 4  ;;  %v3770_v40 = vadd.f32 %v3769_v48, %v3686_v63  ;;  %v2935_v11 = vadd.f32 0.5, %v2551_v62  ;;  %v7502_v23 = vadd.f32 %v9847_v19, %v7420_v61  ;;  %9850 = vst [vmem:[#allocation50_spill] sm:$0xff] %v7519_v3 }
 0x23c   : > { %v4132_v42 = vrot.slane %v3801_v2, 4  ;;  %v3832_v53 = vadd.f32 %v3831_v15, %v3688_v21  ;;  %v7505_v14 = vmul.f32 %v2933_v57, %v7426_v46  ;;  %v2550_v13 = vmul.f32 0.5, %v4969_v58  ;;  %v9849_v46 = vld [vmem:[#allocation52_spill] sm:$0xff] }
 0x23d   : > { %v4121_v7 = vadd.f32 %v4120_v25, %v3739_v56  ;;  %v4126_v54 = vrot.slane %v3770_v40, 4  ;;  %v7508_v34 = vmul.f32 %v2935_v11, %v7430_v32  ;;  %4972 = vtanh.f32 %v1793_v4  ;;  %v9851_v25 = vld [vmem:[#allocation53_spill] sm:$0xff]  ;;  %v9852_v11 = vld [vmem:[#allocation54_spill] sm:$0xff] }
 0x23e   : > { %v4133_v18 = vadd.f32 %v4132_v42, %v3801_v2  ;;  %v4138_v17 = vrot.slane %v3832_v53, 4  ;;  %v2934_v48 = vadd.f32 0.5, %v2550_v13  ;;  %v1795_v0 = vmul.f32 0.5, %v7502_v23  ;;  %v9853_v13 = vld [vmem:[#allocation55_spill] sm:$0xff] }
 0x23f   : > { %v4122_v38 = vrot.slane %v4121_v7, 2  ;;  %v4127_v37 = vadd.f32 %v4126_v54, %v3770_v40  ;;  %v7513_v15 = vadd.f32 %v9848_v33, %v7432_v43  ;;  %v7517_v59 = vadd.f32 %v9849_v46, %v7434_v45 }
 0x240   : > { %v4134_v32 = vrot.slane %v4133_v18, 2  ;;  %v4139_v56 = vadd.f32 %v4138_v17, %v3832_v53  ;;  %v7522_v63 = vmul.f32 %v2934_v48, %v7444_v50  ;;  %4974 = vtanh.f32 %v1795_v0 }
 0x241   : > { %v4123_v62 = vadd.f32 %v4122_v38, %v4121_v7  ;;  %v4128_v2 = vrot.slane %v4127_v37, 2  ;;  %v1794_v21 = vmul.f32 0.5, %v7513_v15  ;;  %v1796_v57 = vmul.f32 0.5, %v7517_v59 }
 0x242   : > { %v4135_v4 = vadd.f32 %v4134_v32, %v4133_v18  ;;  %v4140_v58 = vrot.slane %v4139_v56, 2  ;;  %v7528_v40 = vadd.f32 %v9851_v25, %v7418_v6  ;;  %v7532_v19 = vadd.f32 %v9852_v11, %v7420_v61 }
 0x243   : > { %v4971_v42 = vpop.eup %4970  ;;  %v4124_v50 = vrot.slane %v4123_v62, 1  ;;  %v4129_v53 = vadd.f32 %v4128_v2, %v4127_v37  ;;  %4976 = vtanh.f32 %v1794_v21  ;;  %v7536_v7 = vadd.f32 %v9853_v13, %v7432_v43  ;;  %v7541_v2 = vpop.f32.mrb[104].mxu0 }
 0x244   : > { %v4136_v54 = vrot.slane %v4135_v4, 1  ;;  %v4141_v17 = vadd.f32 %v4140_v58, %v4139_v56  ;;  %v2552_v18 = vmul.f32 0.5, %v4971_v42  ;;  %4978 = vtanh.f32 %v1796_v57  ;;  %9854 = vst [vmem:[#allocation51_spill] sm:$0xff] %v7541_v2  ;;  %v7543_v21 = vpop.f32.mrb[104].mxu1  ;;  %v7551_v58 = vpop.f32.mrb[105].mxu0 }
 0x245   : > { %v4125_v48 = vadd.f32 %v4124_v50, %v4123_v62  ;;  %v4130_v0 = vrot.slane %v4129_v53, 1  ;;  %v1805_v38 = vmul.f32 0.5, %v7528_v40  ;;  %v1807_v33 = vmul.f32 0.5, %v7532_v19  ;;  %9855 = vst [vmem:[#allocation52_spill] sm:$0xff] %v7543_v21  ;;  %v9857_v62 = vld [vmem:[#allocation56_spill] sm:$0xff]  ;;  %9858 = vst [vmem:[#allocation54_spill] sm:$0xff] %v7551_v58 }
 0x246   : > { %v4137_v46 = vadd.f32 %v4136_v54, %v4135_v4  ;;  %v4142_v32 = vrot.slane %v4141_v17, 1  ;;  %v2936_v25 = vadd.f32 0.5, %v2552_v18  ;;  %v1806_v37 = vmul.f32 0.5, %v7536_v7  ;;  %v7553_v4 = vpop.f32.mrb[105].mxu1 }
 0x247   : > { %v4973_v11 = vpop.eup %4972  ;;  %v7545_v13 = vmul.f32 0.00390625, %v4125_v48  ;;  %v4131_v56 = vadd.f32 %v4130_v0, %v4129_v53  ;;  %4980 = vtanh.f32 %v1805_v38  ;;  %v7549_v57 = vadd.f32 %v9857_v62, %v7434_v45  ;;  %9859 = vst [vmem:[#allocation55_spill] sm:$0xff] %v7553_v4  ;;  %v9862_v48 = vld [vmem:[#allocation24_spill] sm:$0xff]  ;;  %v7567_v38 = vpop.f32.mrb[106].mxu0 }
 0x248   : > { %v7555_v42 = vmul.f32 0.00390625, %v4137_v46  ;;  %v4143_v50 = vadd.f32 %v4142_v32, %v4141_v17  ;;  %v7558_v54 = vmul.f32 %v2936_v25, %v7448_v24  ;;  %v2561_v18 = vmul.f32 0.5, %v4973_v11  ;;  %9863 = vst [vmem:[#allocation24_spill] sm:$0xff] %v7567_v38  ;;  %v7569_v62 = vpop.f32.mrb[106].mxu1  ;;  %v9866_v24 = vld [vmem:[#allocation57_spill] sm:$0xff]  ;;  %v9873_v38 = vld [vmem:[#allocation27_spill] sm:$0xff] }
 0x249   : > { %9856 = vst [vmem:[#allocation53_spill] sm:$0xff] %v7545_v13  ;;  %v7560_v21 = vmul.f32 0.00390625, %v4131_v56  ;;  %4982 = vtanh.f32 %v1807_v33  ;;  %v1808_v53 = vmul.f32 0.5, %v7549_v57  ;;  %v7565_v0 = vadd.f32 %v9862_v48, %v7418_v6  ;;  %9864 = vst [vmem:[#allocation67_spill] sm:$0xff] %v7569_v62  ;;  %v7580_v56 = vpop.f32.mrb[107].mxu0  ;;  %v7582_v48 = vpop.f32.mrb[107].mxu1 }
 0x24a   : > { %9860 = vst [vmem:[#allocation56_spill] sm:$0xff] %v7555_v42  ;;  %v4975_v46 = vpop.eup %4974  ;;  %v7571_v4 = vmul.f32 0.00390625, %v4143_v50  ;;  %v2945_v17 = vadd.f32 0.5, %v2561_v18  ;;  %4984 = vtanh.f32 %v1806_v37  ;;  %v7575_v32 = vadd.f32 %v9866_v24, %v7420_v61  ;;  %9867 = vst [vmem:[#allocation57_spill] sm:$0xff] %v7580_v56  ;;  %v9869_v24 = vld [vmem:[#allocation25_spill] sm:$0xff]  ;;  %v9871_v13 = vld [vmem:[#allocation26_spill] sm:$0xff] }
 0x24b   : > { %9861 = vst [vmem:[#allocation66_spill] sm:$0xff] %v7560_v21  ;;  %v2563_v25 = vmul.f32 0.5, %v4975_v46  ;;  %4986 = vtanh.f32 %v1808_v53  ;;  %v1817_v11 = vmul.f32 0.5, %v7565_v0  ;;  %9868 = vst [vmem:[#allocation69_spill] sm:$0xff] %v7582_v48  ;;  %v7590_v62 = vadd.f32 %v9869_v24, %v7432_v43  ;;  %v9870_v53 = vld [vmem:[#allocation14_spill] sm:$0xff]  ;;  %v9872_v56 = vld [vmem:[#allocation16_spill] sm:$0xff] }
 0x24c   : > { %9865 = vst [vmem:[#allocation68_spill] sm:$0xff] %v7571_v4  ;;  %v3329_v37 = vmul.f32 %v2945_v17, %v7457_v47  ;;  %v1819_v18 = vmul.f32 0.5, %v7575_v32  ;;  %v7594_v21 = vadd.f32 %v9870_v53, %v7434_v45  ;;  %v7598_v48 = vadd.f32 %v9871_v13, %v7418_v6 }
 0x24d   : > { %v4977_v33 = vpop.eup %4976  ;;  %v2947_v46 = vadd.f32 0.5, %v2563_v25  ;;  %4988 = vtanh.f32 %v1817_v11  ;;  %v1818_v4 = vmul.f32 0.5, %v7590_v62  ;;  %v7607_v13 = vadd.f32 %v9872_v56, %v7420_v61 }
 0x24e   : > { %v4979_v50 = vpop.eup %4978  ;;  %v3833_v47 = vadd.f32 %v3329_v37, %v7505_v14  ;;  %v2562_v17 = vmul.f32 0.5, %v4977_v33  ;;  %4990 = vtanh.f32 %v1819_v18  ;;  %v1820_v25 = vmul.f32 0.5, %v7594_v21 }
 0x24f   : > { %v3331_v24 = vmul.f32 %v2947_v46, %v7502_v23  ;;  %v2564_v42 = vmul.f32 0.5, %v4979_v50  ;;  %v1829_v11 = vmul.f32 0.5, %v7598_v48  ;;  %4992 = vtanh.f32 %v1818_v4  ;;  %v9874_v23 = vld [vmem:[#allocation17_spill] sm:$0xff]  ;;  %v7618_v46 = vpop.f32.mrb[108].mxu0  ;;  %v7620_v4 = vpop.f32.mrb[108].mxu1 }
 0x250   : > { %v2946_v53 = vadd.f32 0.5, %v2562_v17  ;;  %v7611_v14 = vadd.f32 %v9873_v38, %v7432_v43  ;;  %4994 = vtanh.f32 %v1820_v25  ;;  %v7616_v50 = vadd.f32 %v9874_v23, %v7434_v45  ;;  %9875 = vst [vmem:[#allocation25_spill] sm:$0xff] %v7618_v46  ;;  %9876 = vst [vmem:[#allocation14_spill] sm:$0xff] %v7620_v4  ;;  %v7624_v58 = vpop.f32.mrb[109].mxu0  ;;  %v7626_v2 = vpop.f32.mrb[109].mxu1  ;;  %v9879_v23 = vld [vmem:[#allocation28_spill] sm:$0xff] }
 0x251   : > { %v4981_v33 = vpop.eup %4980  ;;  %v3895_v37 = vadd.f32 %v3331_v24, %v7508_v34  ;;  %v2948_v18 = vadd.f32 0.5, %v2564_v42  ;;  %4996 = vtanh.f32 %v1829_v11  ;;  %v1831_v38 = vmul.f32 0.5, %v7607_v13  ;;  %9877 = vst [vmem:[#allocation26_spill] sm:$0xff] %v7624_v58  ;;  %9878 = vst [vmem:[#allocation16_spill] sm:$0xff] %v7626_v2  ;;  %v7637_v11 = vpop.f32.mrb[110].mxu1 }
 0x252   : > { %v3330_v56 = vmul.f32 %v2946_v53, %v7513_v15  ;;  %v2573_v17 = vmul.f32 0.5, %v4981_v33  ;;  %v1830_v24 = vmul.f32 0.5, %v7611_v14  ;;  %v1832_v25 = vmul.f32 0.5, %v7616_v50  ;;  %v7635_v15 = vpop.f32.mrb[110].mxu0  ;;  %9881 = vst [vmem:[#allocation17_spill] sm:$0xff] %v7637_v11 }
 0x253   : > { %v4983_v34 = vpop.eup %4982  ;;  %v3332_v42 = vmul.f32 %v2948_v18, %v7517_v59  ;;  %v7633_v4 = vadd.f32 %v9879_v23, %v7418_v6  ;;  %9880 = vst [vmem:[#allocation27_spill] sm:$0xff] %v7635_v15  ;;  %4998 = vtanh.f32 %v1831_v38  ;;  %v7640_v46 = vpop.f32.mrb[111].mxu0 }
 0x254   : > { %v4985_v53 = vpop.eup %4984  ;;  %v3864_v33 = vadd.f32 %v3330_v56, %v7522_v63  ;;  %v2957_v58 = vadd.f32 0.5, %v2573_v17  ;;  %v2575_v2 = vmul.f32 0.5, %v4983_v34  ;;  %9882 = vst [vmem:[#allocation28_spill] sm:$0xff] %v7640_v46  ;;  %v7642_v59 = vpop.f32.mrb[111].mxu1  ;;  %5000 = vtanh.f32 %v1830_v24  ;;  %v9884_v17 = vld [vmem:[#allocation30_spill] sm:$0xff]  ;;  %v9885_v34 = vld [vmem:[#allocation31_spill] sm:$0xff] }
 0x255   : > { %9883 = vst [vmem:[#allocation70_spill] sm:$0xff] %v7642_v59  ;;  %v4987_v18 = vpop.eup %4986  ;;  %v3926_v3 = vadd.f32 %v3332_v42, %v7558_v54  ;;  %v2574_v8 = vmul.f32 0.5, %v4985_v53  ;;  %v1841_v23 = vmul.f32 0.5, %v7633_v4  ;;  %5002 = vtanh.f32 %v1832_v25 }
 0x256   : > { %v3341_v15 = vmul.f32 %v2957_v58, %v7528_v40  ;;  %v2959_v11 = vadd.f32 0.5, %v2575_v2  ;;  %v2576_v52 = vmul.f32 0.5, %v4987_v18  ;;  %v7649_v38 = vadd.f32 %v9884_v17, %v7420_v61  ;;  %v7659_v18 = vpop.f32.mrb[112].mxu0 }
 0x257   : > { %v4989_v63 = vpop.eup %4988  ;;  %v2958_v56 = vadd.f32 0.5, %v2574_v8  ;;  %5004 = vtanh.f32 %v1841_v23  ;;  %v7653_v59 = vadd.f32 %v9885_v34, %v7432_v43  ;;  %9886 = vst [vmem:[#allocation30_spill] sm:$0xff] %v7659_v18  ;;  %v7661_v23 = vpop.f32.mrb[112].mxu1 }
 0x258   : > { %v4991_v54 = vpop.eup %4990  ;;  %v3834_v42 = vadd.f32 %v3833_v47, %v3341_v15  ;;  %v3343_v24 = vmul.f32 %v2959_v11, %v7532_v19  ;;  %v2960_v53 = vadd.f32 0.5, %v2576_v52  ;;  %v2585_v40 = vmul.f32 0.5, %v4989_v63  ;;  %9887 = vst [vmem:[#allocation31_spill] sm:$0xff] %v7661_v23  ;;  %v9888_v19 = vld [vmem:[#allocation19_spill] sm:$0xff]  ;;  %v7668_v15 = vpop.f32.mrb[113].mxu0 }
 0x259   : > { %v3342_v2 = vmul.f32 %v2958_v56, %v7536_v7  ;;  %v2587_v58 = vmul.f32 0.5, %v4991_v54  ;;  %v1843_v8 = vmul.f32 0.5, %v7649_v38  ;;  %v1842_v25 = vmul.f32 0.5, %v7653_v59  ;;  %v4993_v17 = vpop.eup %4992  ;;  %9889 = vst [vmem:[#allocation19_spill] sm:$0xff] %v7668_v15  ;;  %v7670_v7 = vpop.f32.mrb[113].mxu1 }
 0x25a   : > { %v3896_v34 = vadd.f32 %v3895_v37, %v3343_v24  ;;  %v3344_v46 = vmul.f32 %v2960_v53, %v7549_v57  ;;  %v2969_v47 = vadd.f32 0.5, %v2585_v40  ;;  %v7666_v52 = vadd.f32 %v9888_v19, %v7434_v45  ;;  %9890 = vst [vmem:[#allocation71_spill] sm:$0xff] %v7670_v7  ;;  %v4995_v11 = vpop.eup %4994 }
 0x25b   : > { %v3865_v63 = vadd.f32 %v3864_v33, %v3342_v2  ;;  %v2971_v56 = vadd.f32 0.5, %v2587_v58  ;;  %v2586_v54 = vmul.f32 0.5, %v4993_v17  ;;  %5006 = vtanh.f32 %v1843_v8  ;;  %v4997_v18 = vpop.eup %4996  ;;  %v9891_v33 = vld [vmem:[#allocation32_spill] sm:$0xff]  ;;  %v9892_v58 = vld [vmem:[#allocation33_spill] sm:$0xff] }
 0x25c   : > { %v3927_v23 = vadd.f32 %v3926_v3, %v3344_v46  ;;  %v3353_v37 = vmul.f32 %v2969_v47, %v7565_v0  ;;  %v2588_v24 = vmul.f32 0.5, %v4995_v11  ;;  %5008 = vtanh.f32 %v1842_v25 }
 0x25d   : > { %v3355_v57 = vmul.f32 %v2971_v56, %v7575_v32  ;;  %v2970_v53 = vadd.f32 0.5, %v2586_v54  ;;  %v2597_v40 = vmul.f32 0.5, %v4997_v18  ;;  %v1844_v19 = vmul.f32 0.5, %v7666_v52  ;;  %v4999_v15 = vpop.eup %4998 }
 0x25e   : > { %v3835_v30 = vadd.f32 %v3834_v42, %v3353_v37  ;;  %v2972_v7 = vadd.f32 0.5, %v2588_v24  ;;  %v7677_v2 = vadd.f32 %v9891_v33, %v7418_v6  ;;  %v7681_v3 = vadd.f32 %v9892_v58, %v7420_v61  ;;  %v5001_v0 = vpop.eup %5000 }
 0x25f   : > { %v3897_v46 = vadd.f32 %v3896_v34, %v3355_v57  ;;  %v3354_v8 = vmul.f32 %v2970_v53, %v7590_v62  ;;  %v2981_v32 = vadd.f32 0.5, %v2597_v40  ;;  %v2599_v25 = vmul.f32 0.5, %v4999_v15  ;;  %v5003_v18 = vpop.eup %5002  ;;  %v9893_v40 = vld [vmem:[#allocation34_spill] sm:$0xff] }
 0x260   : > { %v3356_v17 = vmul.f32 %v2972_v7, %v7594_v21  ;;  %v2598_v47 = vmul.f32 0.5, %v5001_v0  ;;  %5010 = vtanh.f32 %v1844_v19  ;;  %v1853_v42 = vmul.f32 0.5, %v7677_v2 }
 0x261   : > { %v5005_v11 = vpop.eup %5004  ;;  %v3866_v56 = vadd.f32 %v3865_v63, %v3354_v8  ;;  %v3365_v54 = vmul.f32 %v2981_v32, %v7598_v48  ;;  %v2983_v37 = vadd.f32 0.5, %v2599_v25  ;;  %v2600_v24 = vmul.f32 0.5, %v5003_v18  ;;  %v9894_v48 = vld [vmem:[#allocation35_spill] sm:$0xff] }
 0x262   : > { %v3928_v33 = vadd.f32 %v3927_v23, %v3356_v17  ;;  %v2982_v58 = vadd.f32 0.5, %v2598_v47  ;;  %v2609_v34 = vmul.f32 0.5, %v5005_v11  ;;  %5012 = vtanh.f32 %v1853_v42 }
 0x263   : > { %v3836_v62 = vadd.f32 %v3835_v30, %v3365_v54  ;;  %v3367_v15 = vmul.f32 %v2983_v37, %v7607_v13  ;;  %v2984_v57 = vadd.f32 0.5, %v2600_v24  ;;  %v1855_v21 = vmul.f32 0.5, %v7681_v3  ;;  %v9895_v13 = vld [vmem:[#allocation58_spill] sm:$0xff]  ;;  %v9896_v37 = vld [vmem:[#allocation59_spill] sm:$0xff] }
 0x264   : > { %v3366_v7 = vmul.f32 %v2982_v58, %v7611_v14  ;;  %v2993_v53 = vadd.f32 0.5, %v2609_v34  ;;  %v7692_v63 = vadd.f32 %v9893_v40, %v7432_v43  ;;  %v7696_v19 = vadd.f32 %v9894_v48, %v7434_v45  ;;  %v7711_v58 = vpop.f32.mrb[114].mxu0 }
 0x265   : > { %v5007_v23 = vpop.eup %5006  ;;  %v3898_v0 = vadd.f32 %v3897_v46, %v3367_v15  ;;  %v3368_v30 = vmul.f32 %v2984_v57, %v7616_v50  ;;  %5014 = vtanh.f32 %v1855_v21  ;;  %v7701_v8 = vadd.f32 %v9895_v13, %v7418_v6  ;;  %v9898_v15 = vld [vmem:[#allocation61_spill] sm:$0xff]  ;;  %v7729_v40 = vpop.f32.mrb[115].mxu0 }
 0x266   : > { %v5009_v32 = vpop.eup %5008  ;;  %v3867_v14 = vadd.f32 %v3866_v56, %v3366_v7  ;;  %v3377_v25 = vmul.f32 %v2993_v53, %v7633_v4  ;;  %v2611_v18 = vmul.f32 0.5, %v5007_v23  ;;  %v1854_v17 = vmul.f32 0.5, %v7692_v63  ;;  %v7713_v56 = vpop.f32.mrb[114].mxu1 }
 0x267   : > { %v3929_v47 = vadd.f32 %v3928_v33, %v3368_v30  ;;  %v2610_v42 = vmul.f32 0.5, %v5009_v32  ;;  %v1856_v11 = vmul.f32 0.5, %v7696_v19  ;;  %v1865_v46 = vmul.f32 0.5, %v7701_v8  ;;  %v9897_v33 = vld [vmem:[#allocation60_spill] sm:$0xff]  ;;  %v7731_v48 = vpop.f32.mrb[115].mxu1 }
 0x268   : > { %v3837_v54 = vadd.f32 %v3836_v62, %v3377_v25  ;;  %v2995_v50 = vadd.f32 0.5, %v2611_v18  ;;  %5016 = vtanh.f32 %v1854_v17  ;;  %v7709_v24 = vadd.f32 %v9896_v37, %v7420_v61  ;;  %v9899_v17 = vld [vmem:[#allocation62_spill] sm:$0xff] }
 0x269   : > { %v2994_v4 = vadd.f32 0.5, %v2610_v42  ;;  %5018 = vtanh.f32 %v1856_v11  ;;  %v7717_v34 = vadd.f32 %v9897_v33, %v7432_v43  ;;  %v7721_v57 = vadd.f32 %v9898_v15, %v7434_v45 }
 0x26a   : > { %v5011_v62 = vpop.eup %5010  ;;  %v3379_v21 = vmul.f32 %v2995_v50, %v7649_v38  ;;  %5020 = vtanh.f32 %v1865_v46  ;;  %v1867_v7 = vmul.f32 0.5, %v7709_v24  ;;  %v7727_v53 = vadd.f32 %v7150_v35, %v7418_v6 }
 0x26b   : > { %v3378_v23 = vmul.f32 %v2994_v4, %v7653_v59  ;;  %v2612_v30 = vmul.f32 0.5, %v5011_v62  ;;  %v1866_v13 = vmul.f32 0.5, %v7717_v34  ;;  %v1868_v32 = vmul.f32 0.5, %v7721_v57 }
 0x26c   : > { %v5013_v25 = vpop.eup %5012  ;;  %v3899_v38 = vadd.f32 %v3898_v0, %v3379_v21  ;;  %5022 = vtanh.f32 %v1867_v7  ;;  %v1877_v18 = vmul.f32 0.5, %v7727_v53  ;;  %v7739_v35 = vadd.f32 %v9899_v17, %v7420_v61  ;;  %v9900_v0 = vld [vmem:[#allocation63_spill] sm:$0xff] }
 0x26d   : > { %v7741_v42 = vadd.f32 %v3867_v14, %v3378_v23  ;;  %v2996_v11 = vadd.f32 0.5, %v2612_v30  ;;  %v2621_v46 = vmul.f32 0.5, %v5013_v25  ;;  %5024 = vtanh.f32 %v1866_v13  ;;  %v9901_v14 = vld [vmem:[#allocation64_spill] sm:$0xff]  ;;  %v7759_v23 = vpop.f32.mrb[116].mxu0  ;;  %v7761_v30 = vpop.f32.mrb[116].mxu1  ;;  %v9904_v25 = vld [vmem:[#allocation65_spill] sm:$0xff] }
 0x26e   : > { %5026 = vtanh.f32 %v1868_v32  ;;  %v1879_v59 = vmul.f32 0.5, %v7739_v35  ;;  %v7746_v50 = vadd.f32 %v7156_v29, %v7432_v43  ;;  %v7750_v37 = vadd.f32 %v9900_v0, %v7434_v45  ;;  %9902 = vst [vmem:[#allocation32_spill] sm:$0xff] %v7759_v23  ;;  %9903 = vst [vmem:[#allocation33_spill] sm:$0xff] %v7761_v30  ;;  %v7769_v17 = vpop.f32.mrb[117].mxu0 }
 0x26f   : > { %v5015_v4 = vpop.eup %5014  ;;  %v3380_v33 = vmul.f32 %v2996_v11, %v7666_v52  ;;  %v3005_v15 = vadd.f32 0.5, %v2621_v46  ;;  %5028 = vtanh.f32 %v1877_v18  ;;  %v7755_v62 = vadd.f32 %v9901_v14, %v7418_v6  ;;  %9905 = vst [vmem:[#allocation34_spill] sm:$0xff] %v7769_v17  ;;  %v7771_v11 = vpop.f32.mrb[117].mxu1 }
 0x270   : > { %v2623_v21 = vmul.f32 0.5, %v5015_v4  ;;  %5030 = vtanh.f32 %v1879_v59  ;;  %v1878_v7 = vmul.f32 0.5, %v7746_v50  ;;  %v1880_v29 = vmul.f32 0.5, %v7750_v37  ;;  %9906 = vst [vmem:[#allocation35_spill] sm:$0xff] %v7771_v11  ;;  %v7783_v4 = vpop.f32.mrb[118].mxu1 }
 0x271   : > { %v3930_v13 = vadd.f32 %v3929_v47, %v3380_v33  ;;  %v3389_v32 = vmul.f32 %v3005_v15, %v7677_v2  ;;  %v1889_v52 = vmul.f32 0.5, %v7755_v62  ;;  %v7767_v18 = vadd.f32 %v9904_v25, %v7420_v61  ;;  %v7781_v47 = vpop.f32.mrb[118].mxu0  ;;  %9908 = vst [vmem:[#allocation59_spill] sm:$0xff] %v7783_v4 }
 0x272   : > { %v5017_v46 = vpop.eup %5016  ;;  %v3007_v59 = vadd.f32 0.5, %v2623_v21  ;;  %5032 = vtanh.f32 %v1878_v7  ;;  %v7775_v0 = vadd.f32 %v7166_v16, %v7432_v43  ;;  %v7779_v2 = vadd.f32 %v7168_v39, %v7434_v45  ;;  %9907 = vst [vmem:[#allocation58_spill] sm:$0xff] %v7781_v47  ;;  %v7786_v21 = vpop.f32.mrb[119].mxu0 }
 0x273   : > { %v5019_v33 = vpop.eup %5018  ;;  %v3838_v15 = vadd.f32 %v3837_v54, %v3389_v32  ;;  %v2622_v14 = vmul.f32 0.5, %v5017_v46  ;;  %5034 = vtanh.f32 %v1880_v29  ;;  %v1891_v25 = vmul.f32 0.5, %v7767_v18  ;;  %9909 = vst [vmem:[#allocation60_spill] sm:$0xff] %v7786_v21  ;;  %v7788_v7 = vpop.f32.mrb[119].mxu1 }
 0x274   : > { %9910 = vst [vmem:[#allocation61_spill] sm:$0xff] %v7788_v7  ;;  %v5021_v16 = vpop.eup %5020  ;;  %v3391_v11 = vmul.f32 %v3007_v59, %v7681_v3  ;;  %v2624_v17 = vmul.f32 0.5, %v5019_v33  ;;  %5036 = vtanh.f32 %v1889_v52  ;;  %v1890_v39 = vmul.f32 0.5, %v7775_v0 }
 0x275   : > { %v3006_v47 = vadd.f32 0.5, %v2622_v14  ;;  %v2633_v30 = vmul.f32 0.5, %v5021_v16  ;;  %5038 = vtanh.f32 %v1891_v25  ;;  %v1892_v54 = vmul.f32 0.5, %v7779_v2 }
 0x276   : > { %v5023_v32 = vpop.eup %5022  ;;  %v3900_v29 = vadd.f32 %v3899_v38, %v3391_v11  ;;  %v3008_v46 = vadd.f32 0.5, %v2624_v17  ;;  %5040 = vtanh.f32 %v1890_v39  ;;  %v7795_v21 = vadd.f32 %v7178_v26, %v7418_v6  ;;  %v7804_v17 = vpop.f32.mrb[120].mxu0 }
 0x277   : > { %v5025_v7 = vpop.eup %5024  ;;  %v3390_v3 = vmul.f32 %v3006_v47, %v7692_v63  ;;  %v3017_v59 = vadd.f32 0.5, %v2633_v30  ;;  %v2635_v52 = vmul.f32 0.5, %v5023_v32  ;;  %5042 = vtanh.f32 %v1892_v54  ;;  %9911 = vst [vmem:[#allocation62_spill] sm:$0xff] %v7804_v17  ;;  %v7806_v26 = vpop.f32.mrb[120].mxu1 }
 0x278   : > { %v5027_v33 = vpop.eup %5026  ;;  %v3392_v14 = vmul.f32 %v3008_v46, %v7696_v19  ;;  %v2634_v25 = vmul.f32 0.5, %v5025_v7  ;;  %v1901_v16 = vmul.f32 0.5, %v7795_v21  ;;  %v7802_v38 = vadd.f32 %v7180_v44, %v7420_v61  ;;  %9912 = vst [vmem:[#allocation63_spill] sm:$0xff] %v7806_v26  ;;  %v7810_v54 = vpop.f32.mrb[121].mxu0 }
 0x279   : > { %v5029_v11 = vpop.eup %5028  ;;  %v3869_v63 = vadd.f32 %v7741_v42, %v3390_v3  ;;  %v3401_v30 = vmul.f32 %v3017_v59, %v7701_v8  ;;  %v3019_v47 = vadd.f32 0.5, %v2635_v52  ;;  %v2636_v39 = vmul.f32 0.5, %v5027_v33  ;;  %v7812_v19 = vpop.f32.mrb[121].mxu1 }
 0x27a   : > { %9913 = vst [vmem:[#allocation64_spill] sm:$0xff] %v7812_v19  ;;  %v5031_v7 = vpop.eup %5030  ;;  %v3931_v32 = vadd.f32 %v3930_v13, %v3392_v14  ;;  %v3018_v46 = vadd.f32 0.5, %v2634_v25  ;;  %v2645_v44 = vmul.f32 0.5, %v5029_v11  ;;  %5044 = vtanh.f32 %v1901_v16  ;;  %v7814_v4 = vpop.f32.mrb[122].mxu0 }
 0x27b   : > { %9914 = vst [vmem:[#allocation65_spill] sm:$0xff] %v7814_v4  ;;  %v3839_v17 = vadd.f32 %v3838_v15, %v3401_v30  ;;  %v3403_v26 = vmul.f32 %v3019_v47, %v7709_v24  ;;  %v3020_v23 = vadd.f32 0.5, %v2636_v39  ;;  %v2647_v42 = vmul.f32 0.5, %v5031_v7 }
 0x27c   : > { %v5033_v3 = vpop.eup %5032  ;;  %v3402_v8 = vmul.f32 %v3018_v46, %v7717_v34  ;;  %v3029_v59 = vadd.f32 0.5, %v2645_v44  ;;  %v1903_v52 = vmul.f32 0.5, %v7802_v38  ;;  %v7821_v33 = vadd.f32 %v7185_v1, %v7432_v43 }
 0x27d   : > { %v5035_v13 = vpop.eup %5034  ;;  %v3901_v14 = vadd.f32 %v3900_v29, %v3403_v26  ;;  %v3404_v25 = vmul.f32 %v3020_v23, %v7721_v57  ;;  %v3031_v16 = vadd.f32 0.5, %v2647_v42  ;;  %v2646_v15 = vmul.f32 0.5, %v5033_v3 }
 0x27e   : > { %v5037_v11 = vpop.eup %5036  ;;  %v3870_v24 = vadd.f32 %v3869_v63, %v3402_v8  ;;  %v3413_v30 = vmul.f32 %v3029_v59, %v7727_v53  ;;  %v2648_v47 = vmul.f32 0.5, %v5035_v13  ;;  %5046 = vtanh.f32 %v1903_v52  ;;  %v7834_v13 = vpop.f32.mrb[122].mxu1 }
 0x27f   : > { %v5039_v34 = vpop.eup %5038  ;;  %v3932_v39 = vadd.f32 %v3931_v32, %v3404_v25  ;;  %v3415_v7 = vmul.f32 %v3031_v16, %v7739_v35  ;;  %v3030_v46 = vadd.f32 0.5, %v2646_v15  ;;  %v2657_v44 = vmul.f32 0.5, %v5037_v11 }
 0x280   : > { %v5041_v1 = vpop.eup %5040  ;;  %v3840_v4 = vadd.f32 %v3839_v17, %v3413_v30  ;;  %v3032_v19 = vadd.f32 0.5, %v2648_v47  ;;  %v2659_v29 = vmul.f32 0.5, %v5039_v34  ;;  %v1902_v57 = vmul.f32 0.5, %v7821_v33 }
 0x281   : > { %v5043_v23 = vpop.eup %5042  ;;  %v3902_v26 = vadd.f32 %v3901_v14, %v3415_v7  ;;  %v3414_v63 = vmul.f32 %v3030_v46, %v7746_v50  ;;  %v3041_v42 = vadd.f32 0.5, %v2657_v44  ;;  %v2658_v53 = vmul.f32 0.5, %v5041_v1 }
 0x282   : > { %v3416_v3 = vmul.f32 %v3032_v19, %v7750_v37  ;;  %v3043_v8 = vadd.f32 0.5, %v2659_v29  ;;  %v2660_v32 = vmul.f32 0.5, %v5043_v23  ;;  %5048 = vtanh.f32 %v1902_v57 }
 0x283   : > { %v3871_v35 = vadd.f32 %v3870_v24, %v3414_v63  ;;  %v3425_v59 = vmul.f32 %v3041_v42, %v7755_v62  ;;  %v3042_v52 = vadd.f32 0.5, %v2658_v53  ;;  %v7832_v17 = vadd.f32 %v7202_v5, %v7434_v45  ;;  %v7843_v24 = vpop.f32.mrb[123].mxu0  ;;  %v7845_v5 = vpop.f32.mrb[123].mxu1 }
 0x284   : > { %v5045_v14 = vpop.eup %5044  ;;  %v3933_v25 = vadd.f32 %v3932_v39, %v3416_v3  ;;  %v3427_v50 = vmul.f32 %v3043_v8, %v7767_v18  ;;  %v3044_v16 = vadd.f32 0.5, %v2660_v32  ;;  %v7839_v37 = vadd.f32 %v7252_v27, %v7418_v6  ;;  %v7882_v8 = vpop.f32.mrb[124].mxu0 }
 0x285   : > { %v3841_v19 = vadd.f32 %v3840_v4, %v3425_v59  ;;  %v3426_v15 = vmul.f32 %v3042_v52, %v7775_v0  ;;  %v2669_v62 = vmul.f32 0.5, %v5045_v14  ;;  %v1904_v11 = vmul.f32 0.5, %v7832_v17  ;;  %v9915_v0 = vld [vmem:[#allocation36_spill] sm:$0xff]  ;;  %v7892_v59 = vpop.f32.mrb[125].mxu0 }
 0x286   : > { %v3903_v30 = vadd.f32 %v3902_v26, %v3427_v50  ;;  %v3428_v47 = vmul.f32 %v3044_v16, %v7779_v2  ;;  %v1913_v18 = vmul.f32 0.5, %v7839_v37  ;;  %v7851_v34 = vadd.f32 %v7254_v31, %v7420_v61  ;;  %v9916_v2 = vld [vmem:[#allocation37_spill] sm:$0xff]  ;;  %v9917_v50 = vld [vmem:[#allocation20_spill] sm:$0xff] }
 0x287   : > { %v3872_v27 = vadd.f32 %v3871_v35, %v3426_v15  ;;  %v3053_v4 = vadd.f32 0.5, %v2669_v62  ;;  %5050 = vtanh.f32 %v1904_v11  ;;  %v7855_v39 = vadd.f32 %v9915_v0, %v7432_v43  ;;  %v9920_v62 = vld [vmem:[#allocation21_spill] sm:$0xff] }
 0x288   : > { %v5047_v7 = vpop.eup %5046  ;;  %v7857_v46 = vadd.f32 %v3933_v25, %v3428_v47  ;;  %5052 = vtanh.f32 %v1913_v18  ;;  %v1915_v44 = vmul.f32 0.5, %v7851_v34  ;;  %v7862_v1 = vadd.f32 %v9916_v2, %v7434_v45  ;;  %v9921_v47 = vld [vmem:[#allocation38_spill] sm:$0xff] }
 0x289   : > { %v3437_v31 = vmul.f32 %v3053_v4, %v7795_v21  ;;  %v2671_v29 = vmul.f32 0.5, %v5047_v7  ;;  %v1914_v57 = vmul.f32 0.5, %v7855_v39  ;;  %v7868_v23 = vadd.f32 %v7291_v55, %v7418_v6  ;;  %v7884_v55 = vpop.f32.mrb[124].mxu1 }
 0x28a   : > { %5054 = vtanh.f32 %v1915_v44  ;;  %v1916_v26 = vmul.f32 0.5, %v7862_v1  ;;  %v7873_v63 = vadd.f32 %v7293_v10, %v7420_v61  ;;  %v7877_v42 = vadd.f32 %v7297_v22, %v7432_v43  ;;  %v7894_v52 = vpop.f32.mrb[125].mxu1 }
 0x28b   : > { %v7879_v53 = vadd.f32 %v3841_v19, %v3437_v31  ;;  %v3055_v21 = vadd.f32 0.5, %v2671_v29  ;;  %5056 = vtanh.f32 %v1914_v57  ;;  %v1925_v3 = vmul.f32 0.5, %v7868_v23  ;;  %v7901_v19 = vpop.f32.mrb[126].mxu0  ;;  %v7903_v15 = vpop.f32.mrb[126].mxu1  ;;  %v9924_v29 = vld [vmem:[#allocation39_spill] sm:$0xff] }
 0x28c   : > { %v5049_v32 = vpop.eup %5048  ;;  %5058 = vtanh.f32 %v1916_v26  ;;  %v1927_v35 = vmul.f32 0.5, %v7873_v63  ;;  %v1926_v10 = vmul.f32 0.5, %v7877_v42  ;;  %v7890_v22 = vadd.f32 %v7299_v41, %v7434_v45  ;;  %9918 = vst [vmem:[#allocation36_spill] sm:$0xff] %v7901_v19  ;;  %9919 = vst [vmem:[#allocation37_spill] sm:$0xff] %v7903_v15  ;;  %v7917_v7 = vpop.f32.mrb[127].mxu0 }
 0x28d   : > { %v3439_v14 = vmul.f32 %v3055_v21, %v7802_v38  ;;  %v2670_v25 = vmul.f32 0.5, %v5049_v32  ;;  %5060 = vtanh.f32 %v1925_v3  ;;  %v7899_v16 = vadd.f32 %v9917_v50, %v7418_v6  ;;  %9922 = vst [vmem:[#allocation20_spill] sm:$0xff] %v7917_v7  ;;  %v7919_v44 = vpop.f32.mrb[127].mxu1 }
 0x28e   : > { %5062 = vtanh.f32 %v1927_v35  ;;  %v1928_v41 = vmul.f32 0.5, %v7890_v22  ;;  %v7908_v11 = vadd.f32 %v9920_v62, %v7420_v61  ;;  %v7912_v38 = vadd.f32 %v9921_v47, %v7432_v43  ;;  %9923 = vst [vmem:[#allocation21_spill] sm:$0xff] %v7919_v44 }
 0x28f   : > { %v7914_v18 = vadd.f32 %v3903_v30, %v3439_v14  ;;  %v3054_v4 = vadd.f32 0.5, %v2670_v25  ;;  %5064 = vtanh.f32 %v1926_v10  ;;  %v1937_v0 = vmul.f32 0.5, %v7899_v16 }
 0x290   : > { %5066 = vtanh.f32 %v1928_v41  ;;  %v1939_v2 = vmul.f32 0.5, %v7908_v11  ;;  %v1938_v31 = vmul.f32 0.5, %v7912_v38  ;;  %v7925_v57 = vadd.f32 %v9924_v29, %v7434_v45 }
 0x291   : > { %v5051_v26 = vpop.eup %5050  ;;  %v3438_v30 = vmul.f32 %v3054_v4, %v7821_v33  ;;  %5068 = vtanh.f32 %v1937_v0  ;;  %v7930_v21 = vadd.f32 %v7317_v20, %v7418_v6  ;;  %v7934_v3 = vadd.f32 %v7319_v60, %v7420_v61 }
 0x292   : > { %v5053_v32 = vpop.eup %5052  ;;  %v2672_v35 = vmul.f32 0.5, %v5051_v26  ;;  %5070 = vtanh.f32 %v1939_v2  ;;  %v1940_v10 = vmul.f32 0.5, %v7925_v57  ;;  %v7939_v14 = vadd.f32 %v7322_v12, %v7432_v43  ;;  %v7950_v2 = vpop.f32.mrb[128].mxu1 }
 0x293   : > { %v3873_v25 = vadd.f32 %v3872_v27, %v3438_v30  ;;  %v2681_v33 = vmul.f32 0.5, %v5053_v32  ;;  %5072 = vtanh.f32 %v1938_v31  ;;  %v1949_v50 = vmul.f32 0.5, %v7930_v21  ;;  %v7948_v27 = vpop.f32.mrb[128].mxu0  ;;  %9926 = vst [vmem:[#allocation39_spill] sm:$0xff] %v7950_v2  ;;  %v9927_v30 = vld [vmem:[#allocation40_spill] sm:$0xff] }
 0x294   : > { %v5055_v20 = vpop.eup %5054  ;;  %v3056_v41 = vadd.f32 0.5, %v2672_v35  ;;  %5074 = vtanh.f32 %v1940_v10  ;;  %v1951_v60 = vmul.f32 0.5, %v7934_v3  ;;  %v1950_v62 = vmul.f32 0.5, %v7939_v14  ;;  %9925 = vst [vmem:[#allocation38_spill] sm:$0xff] %v7948_v27  ;;  %v7957_v35 = vpop.f32.mrb[129].mxu0 }
 0x295   : > { %v5057_v47 = vpop.eup %5056  ;;  %v3065_v4 = vadd.f32 0.5, %v2681_v33  ;;  %v2683_v0 = vmul.f32 0.5, %v5055_v20  ;;  %5076 = vtanh.f32 %v1949_v50  ;;  %v7946_v12 = vadd.f32 %v7324_v36, %v7434_v45  ;;  %9928 = vst [vmem:[#allocation40_spill] sm:$0xff] %v7957_v35  ;;  %v7959_v10 = vpop.f32.mrb[129].mxu1 }
 0x296   : > { %v5059_v31 = vpop.eup %5058  ;;  %v3440_v29 = vmul.f32 %v3056_v41, %v7832_v17  ;;  %v2682_v26 = vmul.f32 0.5, %v5057_v47  ;;  %5078 = vtanh.f32 %v1951_v60  ;;  %v7955_v32 = vadd.f32 %v9927_v30, %v7418_v6  ;;  %9929 = vst [vmem:[#allocation72_spill] sm:$0xff] %v7959_v10  ;;  %v7962_v2 = vpop.f32.mrb[130].mxu0 }
 0x297   : > { %v5061_v33 = vpop.eup %5060  ;;  %v3449_v36 = vmul.f32 %v3065_v4, %v7839_v37  ;;  %v3067_v50 = vadd.f32 0.5, %v2683_v0  ;;  %v2684_v20 = vmul.f32 0.5, %v5059_v31  ;;  %5080 = vtanh.f32 %v1950_v62  ;;  %9930 = vst [vmem:[#allocation73_spill] sm:$0xff] %v7962_v2  ;;  %v7964_v27 = vpop.f32.mrb[130].mxu1 }
 0x298   : > { %9931 = vst [vmem:[#allocation74_spill] sm:$0xff] %v7964_v27  ;;  %v5063_v17 = vpop.eup %5062  ;;  %v3935_v41 = vadd.f32 %v7857_v46, %v3440_v29  ;;  %v3066_v60 = vadd.f32 0.5, %v2682_v26  ;;  %v2693_v47 = vmul.f32 0.5, %v5061_v33  ;;  %v1952_v30 = vmul.f32 0.5, %v7946_v12  ;;  %v7970_v0 = vpop.f32.mrb[131].mxu0 }
 0x299   : > { %v5065_v35 = vpop.eup %5064  ;;  %v3843_v10 = vadd.f32 %v7879_v53, %v3449_v36  ;;  %v3451_v44 = vmul.f32 %v3067_v50, %v7851_v34  ;;  %v3068_v37 = vadd.f32 0.5, %v2684_v20  ;;  %v2695_v4 = vmul.f32 0.5, %v5063_v17  ;;  %9932 = vst [vmem:[#allocation75_spill] sm:$0xff] %v7970_v0 }
 0x29a   : > { %v5067_v62 = vpop.eup %5066  ;;  %v3450_v31 = vmul.f32 %v3066_v60, %v7855_v39  ;;  %v3077_v27 = vadd.f32 0.5, %v2693_v47  ;;  %v2694_v2 = vmul.f32 0.5, %v5065_v35  ;;  %5082 = vtanh.f32 %v1952_v30 }
 0x29b   : > { %v5069_v46 = vpop.eup %5068  ;;  %v3905_v29 = vadd.f32 %v7914_v18, %v3451_v44  ;;  %v3452_v26 = vmul.f32 %v3068_v37, %v7862_v1  ;;  %v3079_v33 = vadd.f32 0.5, %v2695_v4  ;;  %v2696_v7 = vmul.f32 0.5, %v5067_v62 }
 0x29c   : > { %v5071_v53 = vpop.eup %5070  ;;  %v3874_v36 = vadd.f32 %v3873_v25, %v3450_v31  ;;  %v3461_v34 = vmul.f32 %v3077_v27, %v7868_v23  ;;  %v3078_v50 = vadd.f32 0.5, %v2694_v2  ;;  %v2705_v20 = vmul.f32 0.5, %v5069_v46 }
 0x29d   : > { %v5073_v17 = vpop.eup %5072  ;;  %v3936_v0 = vadd.f32 %v3935_v41, %v3452_v26  ;;  %v3463_v39 = vmul.f32 %v3079_v33, %v7873_v63  ;;  %v3080_v60 = vadd.f32 0.5, %v2696_v7  ;;  %v2707_v35 = vmul.f32 0.5, %v5071_v53 }
 0x29e   : > { %v5075_v47 = vpop.eup %5074  ;;  %v3844_v30 = vadd.f32 %v3843_v10, %v3461_v34  ;;  %v3462_v18 = vmul.f32 %v3078_v50, %v7877_v42  ;;  %v3089_v44 = vadd.f32 0.5, %v2705_v20  ;;  %v2706_v1 = vmul.f32 0.5, %v5073_v17 }
 0x29f   : > { %v5077_v37 = vpop.eup %5076  ;;  %v3906_v4 = vadd.f32 %v3905_v29, %v3463_v39  ;;  %v3464_v25 = vmul.f32 %v3080_v60, %v7890_v22  ;;  %v3091_v62 = vadd.f32 0.5, %v2707_v35  ;;  %v2708_v23 = vmul.f32 0.5, %v5075_v47  ;;  %v7989_v35 = vpop.f32.mrb[131].mxu1 }
 0x2a0   : > { %v5079_v27 = vpop.eup %5078  ;;  %v3875_v2 = vadd.f32 %v3874_v36, %v3462_v18  ;;  %v3473_v41 = vmul.f32 %v3089_v44, %v7899_v16  ;;  %v3090_v31 = vadd.f32 0.5, %v2706_v1  ;;  %v2717_v63 = vmul.f32 0.5, %v5077_v37 }
 0x2a1   : > { %v5081_v7 = vpop.eup %5080  ;;  %v3937_v46 = vadd.f32 %v3936_v0, %v3464_v25  ;;  %v3475_v10 = vmul.f32 %v3091_v62, %v7908_v11  ;;  %v3092_v26 = vadd.f32 0.5, %v2708_v23  ;;  %v2719_v42 = vmul.f32 0.5, %v5079_v27  ;;  %v9933_v11 = vld [vmem:[#allocation41_spill] sm:$0xff]  ;;  %v9936_v25 = vld [vmem:[#allocation43_spill] sm:$0xff] }
 0x2a2   : > { %v3845_v33 = vadd.f32 %v3844_v30, %v3473_v41  ;;  %v3474_v53 = vmul.f32 %v3090_v31, %v7912_v38  ;;  %v3101_v29 = vadd.f32 0.5, %v2717_v63  ;;  %v2718_v34 = vmul.f32 0.5, %v5081_v7  ;;  %9934 = vst [vmem:[#allocation41_spill] sm:$0xff] %v7989_v35 }
 0x2a3   : > { %v3907_v22 = vadd.f32 %v3906_v4, %v3475_v10  ;;  %v3476_v50 = vmul.f32 %v3092_v26, %v7925_v57  ;;  %v3103_v20 = vadd.f32 0.5, %v2719_v42  ;;  %v1961_v36 = vmul.f32 0.5, %v7955_v32  ;;  %v9940_v42 = vld [vmem:[#allocation22_spill] sm:$0xff] }
 0x2a4   : > { %v5083_v16 = vpop.eup %5082  ;;  %v3876_v17 = vadd.f32 %v3875_v2, %v3474_v53  ;;  %v3485_v39 = vmul.f32 %v3101_v29, %v7930_v21  ;;  %v3102_v0 = vadd.f32 0.5, %v2718_v34  ;;  %v7987_v60 = vadd.f32 %v9933_v11, %v7420_v61  ;;  %v9935_v21 = vld [vmem:[#allocation42_spill] sm:$0xff]  ;;  %v9938_v2 = vld [vmem:[#allocation45_spill] sm:$0xff]  ;;  %v9941_v53 = vld [vmem:[#allocation15_spill] sm:$0xff] }
 0x2a5   : > { %v3938_v38 = vadd.f32 %v3937_v46, %v3476_v50  ;;  %v3487_v47 = vmul.f32 %v3103_v20, %v7934_v3  ;;  %v2720_v30 = vmul.f32 0.5, %v5083_v16  ;;  %5084 = vtanh.f32 %v1961_v36  ;;  %v9937_v3 = vld [vmem:[#allocation44_spill] sm:$0xff]  ;;  %v9939_v46 = vld [vmem:[#allocation29_spill] sm:$0xff]  ;;  %v9943_v16 = vld [vmem:[#allocation18_spill] sm:$0xff] }
 0x2a6   : > { %v7992_v57 = vadd.f32 %v3845_v33, %v3485_v39  ;;  %v3486_v18 = vmul.f32 %v3102_v0, %v7939_v14  ;;  %v1963_v44 = vmul.f32 0.5, %v7987_v60  ;;  %v7998_v1 = vadd.f32 %v9935_v21, %v7432_v43  ;;  %v8046_v39 = vpop.f32.mrb[132].mxu0  ;;  %v8048_v0 = vpop.f32.mrb[132].mxu1 }
 0x2a7   : > { %v8000_v37 = vadd.f32 %v3907_v22, %v3487_v47  ;;  %v3104_v4 = vadd.f32 0.5, %v2720_v30  ;;  %v8004_v62 = vadd.f32 %v9936_v25, %v7434_v45  ;;  %v8008_v23 = vadd.f32 %v9937_v3, %v7418_v6  ;;  %v9942_v22 = vld [vmem:[#allocation23_spill] sm:$0xff]  ;;  %9944 = vst [vmem:[#allocation42_spill] sm:$0xff] %v8046_v39  ;;  %9945 = vst [vmem:[#allocation43_spill] sm:$0xff] %v8048_v0  ;;  %v8070_v25 = vpop.f32.mrb[133].mxu1 }
 0x2a8   : > { %v8010_v27 = vadd.f32 %v3876_v17, %v3486_v18  ;;  %5086 = vtanh.f32 %v1963_v44  ;;  %v1962_v14 = vmul.f32 0.5, %v7998_v1  ;;  %v8015_v41 = vadd.f32 %v9938_v2, %v7420_v61  ;;  %9948 = vst [vmem:[#allocation45_spill] sm:$0xff] %v8070_v25  ;;  %v9957_v25 = vld [vmem:[#allocation51_spill] sm:$0xff] }
 0x2a9   : > { %v3488_v31 = vmul.f32 %v3104_v4, %v7946_v12  ;;  %v1964_v63 = vmul.f32 0.5, %v8004_v62  ;;  %v1973_v7 = vmul.f32 0.5, %v8008_v23  ;;  %v8022_v10 = vadd.f32 %v9939_v46, %v7432_v43  ;;  %v8068_v4 = vpop.f32.mrb[133].mxu0 }
 0x2aa   : > { %5088 = vtanh.f32 %v1962_v14  ;;  %v1975_v26 = vmul.f32 0.5, %v8015_v41  ;;  %v8027_v33 = vadd.f32 %v9940_v42, %v7434_v45  ;;  %v8031_v29 = vadd.f32 %v9941_v53, %v7418_v6  ;;  %9947 = vst [vmem:[#allocation44_spill] sm:$0xff] %v8068_v4 }
 0x2ab   : > { %v8033_v12 = vadd.f32 %v3938_v38, %v3488_v31  ;;  %5090 = vtanh.f32 %v1964_v63  ;;  %v1974_v34 = vmul.f32 0.5, %v8022_v10  ;;  %v8038_v50 = vadd.f32 %v9942_v22, %v7420_v61  ;;  %v9946_v38 = vld [vmem:[#allocation46_spill] sm:$0xff]  ;;  %v8080_v63 = vpop.f32.mrb[134].mxu0 }
 0x2ac   : > { %5092 = vtanh.f32 %v1973_v7  ;;  %v1976_v20 = vmul.f32 0.5, %v8027_v33  ;;  %v1985_v36 = vmul.f32 0.5, %v8031_v29  ;;  %v8044_v17 = vadd.f32 %v9943_v16, %v7432_v43  ;;  %9949 = vst [vmem:[#allocation29_spill] sm:$0xff] %v8080_v63  ;;  %v8082_v7 = vpop.f32.mrb[134].mxu1  ;;  %v9954_v16 = vld [vmem:[#allocation50_spill] sm:$0xff] }
 0x2ad   : > { %5094 = vtanh.f32 %v1975_v26  ;;  %v1987_v11 = vmul.f32 0.5, %v8038_v50  ;;  %v8053_v47 = vadd.f32 %v9946_v38, %v7434_v45  ;;  %v8057_v30 = vadd.f32 %v7477_v51, %v7418_v6  ;;  %9950 = vst [vmem:[#allocation22_spill] sm:$0xff] %v8082_v7  ;;  %v9951_v26 = vld [vmem:[#allocation47_spill] sm:$0xff]  ;;  %v8103_v7 = vpop.f32.mrb[135].mxu0 }
 0x2ae   : > { %5096 = vtanh.f32 %v1974_v34  ;;  %v1986_v18 = vmul.f32 0.5, %v8044_v17  ;;  %v8062_v44 = vadd.f32 %v7479_v9, %v7420_v61  ;;  %v8066_v21 = vadd.f32 %v7482_v28, %v7432_v43  ;;  %9955 = vst [vmem:[#allocation15_spill] sm:$0xff] %v8103_v7  ;;  %v8129_v19 = vpop.f32.mrb[136].mxu0 }
 0x2af   : > { %v5085_v3 = vpop.eup %5084  ;;  %5098 = vtanh.f32 %v1976_v20  ;;  %v1988_v51 = vmul.f32 0.5, %v8053_v47  ;;  %v1997_v14 = vmul.f32 0.5, %v8057_v30  ;;  %v8076_v2 = vadd.f32 %v7484_v49, %v7434_v45  ;;  %v9952_v49 = vld [vmem:[#allocation48_spill] sm:$0xff]  ;;  %v9953_v20 = vld [vmem:[#allocation49_spill] sm:$0xff] }
 0x2b0   : > { %v2729_v9 = vmul.f32 0.5, %v5085_v3  ;;  %5100 = vtanh.f32 %v1985_v36  ;;  %v1999_v31 = vmul.f32 0.5, %v8062_v44  ;;  %v1998_v28 = vmul.f32 0.5, %v8066_v21 }
 0x2b1   : > { %5102 = vtanh.f32 %v1987_v11  ;;  %v2000_v46 = vmul.f32 0.5, %v8076_v2  ;;  %v8087_v42 = vadd.f32 %v9951_v26, %v7418_v6  ;;  %v8091_v53 = vadd.f32 %v9952_v49, %v7420_v61  ;;  %v8105_v49 = vpop.f32.mrb[135].mxu1 }
 0x2b2   : > { %v5087_v34 = vpop.eup %5086  ;;  %v3113_v22 = vadd.f32 0.5, %v2729_v9  ;;  %5104 = vtanh.f32 %v1986_v18  ;;  %v8095_v36 = vadd.f32 %v9953_v20, %v7432_v43  ;;  %v8099_v11 = vadd.f32 %v9954_v16, %v7434_v45  ;;  %9956 = vst [vmem:[#allocation23_spill] sm:$0xff] %v8105_v49 }
 0x2b3   : > { %v2731_v38 = vmul.f32 0.5, %v5087_v34  ;;  %5106 = vtanh.f32 %v1988_v51  ;;  %v2009_v3 = vmul.f32 0.5, %v8087_v42  ;;  %v2011_v26 = vmul.f32 0.5, %v8091_v53 }
 0x2b4   : > { %v5089_v9 = vpop.eup %5088  ;;  %v3497_v18 = vmul.f32 %v3113_v22, %v7955_v32  ;;  %5108 = vtanh.f32 %v1997_v14  ;;  %v8109_v20 = vmul.f32 0.5, %v8095_v36  ;;  %v8112_v16 = vmul.f32 0.5, %v8099_v11  ;;  %v9958_v32 = vld [vmem:[#allocation52_spill] sm:$0xff] }
 0x2b5   : > { %v5091_v34 = vpop.eup %5090  ;;  %v3115_v51 = vadd.f32 0.5, %v2731_v38  ;;  %v2730_v63 = vmul.f32 0.5, %v5089_v9  ;;  %5110 = vtanh.f32 %v1999_v31  ;;  %v8116_v4 = vadd.f32 %v9957_v25, %v7418_v6 }
 0x2b6   : > { %v5093_v7 = vpop.eup %5092  ;;  %v3847_v49 = vadd.f32 %v7992_v57, %v3497_v18  ;;  %v2732_v0 = vmul.f32 0.5, %v5091_v34  ;;  %5112 = vtanh.f32 %v1998_v28  ;;  %v8121_v14 = vadd.f32 %v9958_v32, %v7420_v61 }
 0x2b7   : > { %v5095_v22 = vpop.eup %5094  ;;  %v3499_v39 = vmul.f32 %v3115_v51, %v7987_v60  ;;  %v3114_v35 = vadd.f32 0.5, %v2730_v63  ;;  %v2741_v38 = vmul.f32 0.5, %v5093_v7  ;;  %5114 = vtanh.f32 %v2000_v46  ;;  %v8131_v60 = vpop.f32.mrb[136].mxu1 }
 0x2b8   : > { %v5097_v31 = vpop.eup %5096  ;;  %v3116_v9 = vadd.f32 0.5, %v2732_v0  ;;  %v2743_v15 = vmul.f32 0.5, %v5095_v22  ;;  %5116 = vtanh.f32 %v2009_v3  ;;  %v8125_v25 = vmul.f32 0.5, %v8116_v4  ;;  %9959 = vst [vmem:[#allocation18_spill] sm:$0xff] %v8131_v60  ;;  %v8134_v3 = vpop.f32.mrb[137].mxu0 }
 0x2b9   : > { %v5099_v57 = vpop.eup %5098  ;;  %v3909_v28 = vadd.f32 %v8000_v37, %v3499_v39  ;;  %v3498_v18 = vmul.f32 %v3114_v35, %v7998_v1  ;;  %v3125_v34 = vadd.f32 0.5, %v2741_v38  ;;  %v2742_v32 = vmul.f32 0.5, %v5097_v31  ;;  %9960 = vst [vmem:[#allocation46_spill] sm:$0xff] %v8134_v3  ;;  %v8136_v51 = vpop.f32.mrb[137].mxu1 }
 0x2ba   : > { %v5101_v63 = vpop.eup %5100  ;;  %v3500_v7 = vmul.f32 %v3116_v9, %v8004_v62  ;;  %v3127_v0 = vadd.f32 0.5, %v2743_v15  ;;  %v2744_v46 = vmul.f32 0.5, %v5099_v57  ;;  %5118 = vtanh.f32 %v2011_v26  ;;  %9961 = vst [vmem:[#allocation47_spill] sm:$0xff] %v8136_v51  ;;  %v8140_v38 = vpop.f32.mrb[138].mxu0 }
 0x2bb   : > { %v5103_v22 = vpop.eup %5102  ;;  %v3878_v37 = vadd.f32 %v8010_v27, %v3498_v18  ;;  %v3509_v35 = vmul.f32 %v3125_v34, %v8008_v23  ;;  %v3126_v1 = vadd.f32 0.5, %v2742_v32  ;;  %v2753_v39 = vmul.f32 0.5, %v5101_v63  ;;  %9962 = vst [vmem:[#allocation48_spill] sm:$0xff] %v8140_v38  ;;  %v8142_v31 = vpop.f32.mrb[138].mxu1 }
 0x2bc   : > { %9963 = vst [vmem:[#allocation49_spill] sm:$0xff] %v8142_v31  ;;  %v5105_v60 = vpop.eup %5104  ;;  %v3940_v15 = vadd.f32 %v8033_v12, %v3500_v7  ;;  %v3511_v62 = vmul.f32 %v3127_v0, %v8015_v41  ;;  %v3128_v26 = vadd.f32 0.5, %v2744_v46  ;;  %v2755_v9 = vmul.f32 0.5, %v5103_v22  ;;  %v8146_v57 = vpop.f32.mrb[139].mxu0 }
 0x2bd   : > { %9964 = vst [vmem:[#allocation50_spill] sm:$0xff] %v8146_v57  ;;  %v8148_v51 = vpop.f32.mrb[139].mxu1  ;;  %v5107_v27 = vpop.eup %5106  ;;  %v3848_v18 = vadd.f32 %v3847_v49, %v3509_v35  ;;  %v3510_v23 = vmul.f32 %v3126_v1, %v8022_v10  ;;  %v3137_v34 = vadd.f32 0.5, %v2753_v39  ;;  %v2754_v32 = vmul.f32 0.5, %v5105_v60 }
 0x2be   : > { %9965 = vst [vmem:[#allocation51_spill] sm:$0xff] %v8148_v51  ;;  %v5109_v63 = vpop.eup %5108  ;;  %v3910_v38 = vadd.f32 %v3909_v28, %v3511_v62  ;;  %v3512_v31 = vmul.f32 %v3128_v26, %v8027_v33  ;;  %v3139_v3 = vadd.f32 0.5, %v2755_v9  ;;  %v2756_v12 = vmul.f32 0.5, %v5107_v27 }
 0x2bf   : > { %v5111_v7 = vpop.eup %5110  ;;  %v3879_v41 = vadd.f32 %v3878_v37, %v3510_v23  ;;  %v3521_v0 = vmul.f32 %v3137_v34, %v8031_v29  ;;  %v3138_v46 = vadd.f32 0.5, %v2754_v32  ;;  %v2765_v22 = vmul.f32 0.5, %v5109_v63 }
 0x2c0   : > { %v5113_v57 = vpop.eup %5112  ;;  %v3941_v51 = vadd.f32 %v3940_v15, %v3512_v31  ;;  %v3523_v49 = vmul.f32 %v3139_v3, %v8038_v50  ;;  %v3140_v35 = vadd.f32 0.5, %v2756_v12  ;;  %v2767_v10 = vmul.f32 0.5, %v5111_v7  ;;  %v8157_v50 = vpop.f32.mrb[140].mxu0 }
 0x2c1   : > { %v5115_v1 = vpop.eup %5114  ;;  %v3849_v60 = vadd.f32 %v3848_v18, %v3521_v0  ;;  %v3522_v28 = vmul.f32 %v3138_v46, %v8044_v17  ;;  %v3149_v39 = vadd.f32 0.5, %v2765_v22  ;;  %v2766_v33 = vmul.f32 0.5, %v5113_v57  ;;  %v8159_v3 = vpop.f32.mrb[140].mxu1 }
 0x2c2   : > { %v5117_v62 = vpop.eup %5116  ;;  %v3911_v26 = vadd.f32 %v3910_v38, %v3523_v49  ;;  %v3524_v37 = vmul.f32 %v3140_v35, %v8053_v47  ;;  %v3151_v9 = vadd.f32 0.5, %v2767_v10  ;;  %v2768_v29 = vmul.f32 0.5, %v5115_v1  ;;  %v8192_v10 = vpop.f32.mrb[141].mxu0 }
 0x2c3   : > { %v3880_v27 = vadd.f32 %v3879_v41, %v3522_v28  ;;  %v3533_v23 = vmul.f32 %v3149_v39, %v8057_v30  ;;  %v3150_v31 = vadd.f32 0.5, %v2766_v33  ;;  %v2777_v15 = vmul.f32 0.5, %v5117_v62  ;;  %v9970_v28 = vld [vmem:[#allocation57_spill] sm:$0xff] }
 0x2c4   : > { %v5119_v18 = vpop.eup %5118  ;;  %v3942_v34 = vadd.f32 %v3941_v51, %v3524_v37  ;;  %v3535_v17 = vmul.f32 %v3151_v9, %v8062_v44  ;;  %v3152_v57 = vadd.f32 0.5, %v2768_v29  ;;  %5120 = vtanh.f32 %v8109_v20  ;;  %v9972_v9 = vld [vmem:[#allocation25_spill] sm:$0xff] }
 0x2c5   : > { %v3850_v38 = vadd.f32 %v3849_v60, %v3533_v23  ;;  %v3534_v47 = vmul.f32 %v3150_v31, %v8066_v21  ;;  %v3161_v32 = vadd.f32 0.5, %v2777_v15  ;;  %v2779_v63 = vmul.f32 0.5, %v5119_v18  ;;  %v9966_v21 = vld [vmem:[#allocation54_spill] sm:$0xff]  ;;  %v8218_v18 = vpop.f32.mrb[141].mxu1 }
 0x2c6   : > { %v3912_v12 = vadd.f32 %v3911_v26, %v3535_v17  ;;  %v3536_v30 = vmul.f32 %v3152_v57, %v8076_v2  ;;  %5122 = vtanh.f32 %v8112_v16  ;;  %v2023_v7 = vmul.f32 0.5, %v8121_v14  ;;  %v9967_v2 = vld [vmem:[#allocation55_spill] sm:$0xff]  ;;  %v9973_v31 = vld [vmem:[#allocation14_spill] sm:$0xff]  ;;  %9974 = vst [vmem:[#allocation52_spill] sm:$0xff] %v8218_v18 }
 0x2c7   : > { %v8167_v41 = vadd.f32 %v3880_v27, %v3534_v47  ;;  %v3545_v51 = vmul.f32 %v3161_v32, %v8087_v42  ;;  %v3163_v44 = vadd.f32 0.5, %v2779_v63  ;;  %5124 = vtanh.f32 %v8125_v25  ;;  %v9968_v42 = vld [vmem:[#allocation24_spill] sm:$0xff]  ;;  %v9969_v25 = vld [vmem:[#allocation67_spill] sm:$0xff]  ;;  %v9975_v17 = vld [vmem:[#allocation26_spill] sm:$0xff] }
 0x2c8   : > { %v8171_v20 = vadd.f32 %v3942_v34, %v3536_v30  ;;  %5126 = vtanh.f32 %v2023_v7  ;;  %v8175_v0 = vadd.f32 %v9966_v21, %v7432_v43  ;;  %v8179_v46 = vadd.f32 %v9967_v2, %v7434_v45  ;;  %v9978_v7 = vld [vmem:[#allocation17_spill] sm:$0xff] }
 0x2c9   : > { %v8181_v16 = vadd.f32 %v3850_v38, %v3545_v51  ;;  %v3547_v22 = vmul.f32 %v3163_v44, %v8091_v53  ;;  %v8186_v49 = vadd.f32 %v9968_v42, %v7418_v6  ;;  %v8190_v35 = vadd.f32 %v9969_v25, %v7420_v61  ;;  %v9971_v53 = vld [vmem:[#allocation69_spill] sm:$0xff]  ;;  %v9976_v38 = vld [vmem:[#allocation16_spill] sm:$0xff]  ;;  %v8242_v42 = vpop.f32.mrb[142].mxu1 }
 0x2ca   : > { %v2022_v1 = vmul.f32 0.5, %v8175_v0  ;;  %v2024_v60 = vmul.f32 0.5, %v8179_v46  ;;  %v8198_v39 = vadd.f32 %v9970_v28, %v7432_v43  ;;  %v8202_v33 = vadd.f32 %v9971_v53, %v7434_v45  ;;  %9980 = vst [vmem:[#allocation55_spill] sm:$0xff] %v8242_v42  ;;  %v9981_v28 = vld [vmem:[#allocation28_spill] sm:$0xff] }
 0x2cb   : > { %v8204_v62 = vadd.f32 %v3912_v12, %v3547_v22  ;;  %v2033_v26 = vmul.f32 0.5, %v8186_v49  ;;  %v2035_v37 = vmul.f32 0.5, %v8190_v35  ;;  %v8210_v29 = vadd.f32 %v9972_v9, %v7418_v6  ;;  %v9977_v12 = vld [vmem:[#allocation27_spill] sm:$0xff]  ;;  %v8240_v22 = vpop.f32.mrb[142].mxu0 }
 0x2cc   : > { %5128 = vtanh.f32 %v2022_v1  ;;  %v2034_v27 = vmul.f32 0.5, %v8198_v39  ;;  %v2036_v23 = vmul.f32 0.5, %v8202_v33  ;;  %v8216_v15 = vadd.f32 %v9973_v31, %v7420_v61  ;;  %9979 = vst [vmem:[#allocation54_spill] sm:$0xff] %v8240_v22  ;;  %v9982_v31 = vld [vmem:[#allocation70_spill] sm:$0xff] }
 0x2cd   : > { %5130 = vtanh.f32 %v2024_v60  ;;  %v2045_v34 = vmul.f32 0.5, %v8210_v29  ;;  %v8223_v57 = vadd.f32 %v9975_v17, %v7432_v43  ;;  %v8227_v47 = vadd.f32 %v9976_v38, %v7434_v45  ;;  %v8254_v38 = vpop.f32.mrb[143].mxu0 }
 0x2ce   : > { %v5121_v32 = vpop.eup %5120  ;;  %5132 = vtanh.f32 %v2033_v26  ;;  %v2047_v63 = vmul.f32 0.5, %v8216_v15  ;;  %v8232_v30 = vadd.f32 %v9977_v12, %v7418_v6  ;;  %v8236_v51 = vadd.f32 %v9978_v7, %v7420_v61  ;;  %9983 = vst [vmem:[#allocation24_spill] sm:$0xff] %v8254_v38  ;;  %v9984_v7 = vld [vmem:[#allocation30_spill] sm:$0xff] }
 0x2cf   : > { %v2778_v44 = vmul.f32 0.5, %v5121_v32  ;;  %5134 = vtanh.f32 %v2035_v37  ;;  %v2046_v21 = vmul.f32 0.5, %v8223_v57  ;;  %v2048_v2 = vmul.f32 0.5, %v8227_v47 }
 0x2d0   : > { %v5123_v25 = vpop.eup %5122  ;;  %5136 = vtanh.f32 %v2034_v27  ;;  %v2057_v1 = vmul.f32 0.5, %v8232_v30  ;;  %v2059_v60 = vmul.f32 0.5, %v8236_v51  ;;  %v8248_v53 = vadd.f32 %v9981_v28, %v7432_v43  ;;  %v8261_v28 = vpop.f32.mrb[143].mxu1 }
 0x2d1   : > { %v5125_v26 = vpop.eup %5124  ;;  %v3162_v37 = vadd.f32 0.5, %v2778_v44  ;;  %v2780_v9 = vmul.f32 0.5, %v5123_v25  ;;  %5138 = vtanh.f32 %v2036_v23  ;;  %v8252_v17 = vadd.f32 %v9982_v31, %v7434_v45  ;;  %9985 = vst [vmem:[#allocation67_spill] sm:$0xff] %v8261_v28 }
 0x2d2   : > { %v5127_v32 = vpop.eup %5126  ;;  %v2789_v27 = vmul.f32 0.5, %v5125_v26  ;;  %5140 = vtanh.f32 %v2045_v34  ;;  %v2058_v12 = vmul.f32 0.5, %v8248_v53  ;;  %v8259_v42 = vadd.f32 %v9984_v7, %v7418_v6 }
 0x2d3   : > { %v3546_v44 = vmul.f32 %v3162_v37, %v8095_v36  ;;  %v3164_v23 = vadd.f32 0.5, %v2780_v9  ;;  %v2791_v25 = vmul.f32 0.5, %v5127_v32  ;;  %5142 = vtanh.f32 %v2047_v63  ;;  %v9986_v36 = vld [vmem:[#allocation31_spill] sm:$0xff] }
 0x2d4   : > { %v3173_v31 = vadd.f32 0.5, %v2789_v27  ;;  %5144 = vtanh.f32 %v2046_v21  ;;  %v2060_v38 = vmul.f32 0.5, %v8252_v17  ;;  %v2069_v26 = vmul.f32 0.5, %v8259_v42  ;;  %v9987_v63 = vld [vmem:[#allocation19_spill] sm:$0xff] }
 0x2d5   : > { %v3882_v34 = vadd.f32 %v8167_v41, %v3546_v44  ;;  %v3548_v22 = vmul.f32 %v3164_v23, %v8099_v11  ;;  %v3175_v18 = vadd.f32 0.5, %v2791_v25  ;;  %5146 = vtanh.f32 %v2048_v2  ;;  %v8281_v44 = vpop.f32.mrb[144].mxu0  ;;  %v8283_v23 = vpop.f32.mrb[144].mxu1 }
 0x2d6   : > { %v5129_v7 = vpop.eup %5128  ;;  %v3557_v28 = vmul.f32 %v3173_v31, %v8116_v4  ;;  %5148 = vtanh.f32 %v2057_v1  ;;  %v8271_v37 = vadd.f32 %v9986_v36, %v7420_v61  ;;  %v8275_v21 = vadd.f32 %v9987_v63, %v7432_v43  ;;  %9988 = vst [vmem:[#allocation57_spill] sm:$0xff] %v8281_v44  ;;  %9989 = vst [vmem:[#allocation69_spill] sm:$0xff] %v8283_v23 }
 0x2d7   : > { %v5131_v9 = vpop.eup %5130  ;;  %v3944_v32 = vadd.f32 %v8171_v20, %v3548_v22  ;;  %v3559_v41 = vmul.f32 %v3175_v18, %v8121_v14  ;;  %v2790_v11 = vmul.f32 0.5, %v5129_v7  ;;  %5150 = vtanh.f32 %v2059_v60  ;;  %v8286_v14 = vpop.f32.mrb[145].mxu0 }
 0x2d8   : > { %v5133_v2 = vpop.eup %5132  ;;  %v3852_v27 = vadd.f32 %v8181_v16, %v3557_v28  ;;  %v2792_v4 = vmul.f32 0.5, %v5131_v9  ;;  %5152 = vtanh.f32 %v2058_v12  ;;  %v2071_v1 = vmul.f32 0.5, %v8271_v37  ;;  %9990 = vst [vmem:[#allocation25_spill] sm:$0xff] %v8286_v14  ;;  %v8288_v18 = vpop.f32.mrb[145].mxu1 }
 0x2d9   : > { %v5135_v25 = vpop.eup %5134  ;;  %v3914_v31 = vadd.f32 %v8204_v62, %v3559_v41  ;;  %v3174_v36 = vadd.f32 0.5, %v2790_v11  ;;  %v2801_v20 = vmul.f32 0.5, %v5133_v2  ;;  %5154 = vtanh.f32 %v2060_v38  ;;  %9991 = vst [vmem:[#allocation14_spill] sm:$0xff] %v8288_v18  ;;  %v8291_v28 = vpop.f32.mrb[146].mxu0 }
 0x2da   : > { %v5137_v22 = vpop.eup %5136  ;;  %v3176_v16 = vadd.f32 0.5, %v2792_v4  ;;  %v2803_v60 = vmul.f32 0.5, %v5135_v25  ;;  %5156 = vtanh.f32 %v2069_v26  ;;  %v2070_v12 = vmul.f32 0.5, %v8275_v21  ;;  %9992 = vst [vmem:[#allocation26_spill] sm:$0xff] %v8291_v28  ;;  %v8293_v7 = vpop.f32.mrb[146].mxu1 }
 0x2db   : > { %9993 = vst [vmem:[#allocation16_spill] sm:$0xff] %v8293_v7  ;;  %v5139_v63 = vpop.eup %5138  ;;  %v3558_v62 = vmul.f32 %v3174_v36, %v8175_v0  ;;  %v3185_v9 = vadd.f32 0.5, %v2801_v20  ;;  %v2802_v41 = vmul.f32 0.5, %v5137_v22  ;;  %5158 = vtanh.f32 %v2071_v1  ;;  %v8296_v38 = vpop.f32.mrb[147].mxu0 }
 0x2dc   : > { %9994 = vst [vmem:[#allocation27_spill] sm:$0xff] %v8296_v38  ;;  %v8298_v11 = vpop.f32.mrb[147].mxu1  ;;  %v5141_v2 = vpop.eup %5140  ;;  %v3560_v4 = vmul.f32 %v3176_v16, %v8179_v46  ;;  %v3187_v26 = vadd.f32 0.5, %v2803_v60  ;;  %v2804_v25 = vmul.f32 0.5, %v5139_v63  ;;  %5160 = vtanh.f32 %v2070_v12 }
 0x2dd   : > { %9995 = vst [vmem:[#allocation17_spill] sm:$0xff] %v8298_v11  ;;  %v5143_v18 = vpop.eup %5142  ;;  %v3883_v28 = vadd.f32 %v3882_v34, %v3558_v62  ;;  %v3569_v7 = vmul.f32 %v3185_v9, %v8186_v49  ;;  %v3186_v14 = vadd.f32 0.5, %v2802_v41  ;;  %v2813_v23 = vmul.f32 0.5, %v5141_v2  ;;  %v8305_v62 = vpop.f32.mrb[148].mxu0 }
 0x2de   : > { %v5145_v0 = vpop.eup %5144  ;;  %v3945_v36 = vadd.f32 %v3944_v32, %v3560_v4  ;;  %v3571_v1 = vmul.f32 %v3187_v26, %v8190_v35  ;;  %v3188_v20 = vadd.f32 0.5, %v2804_v25  ;;  %v2815_v22 = vmul.f32 0.5, %v5143_v18  ;;  %v8307_v9 = vpop.f32.mrb[148].mxu1 }
 0x2df   : > { %v5147_v38 = vpop.eup %5146  ;;  %v3853_v11 = vadd.f32 %v3852_v27, %v3569_v7  ;;  %v3570_v44 = vmul.f32 %v3186_v14, %v8198_v39  ;;  %v3197_v46 = vadd.f32 0.5, %v2813_v23  ;;  %v2814_v16 = vmul.f32 0.5, %v5145_v0  ;;  %9996 = vst [vmem:[#allocation28_spill] sm:$0xff] %v8307_v9  ;;  %v8310_v7 = vpop.f32.mrb[149].mxu0 }
 0x2e0   : > { %v5149_v60 = vpop.eup %5148  ;;  %v3915_v12 = vadd.f32 %v3914_v31, %v3571_v1  ;;  %v3572_v34 = vmul.f32 %v3188_v20, %v8202_v33  ;;  %v3199_v63 = vadd.f32 0.5, %v2815_v22  ;;  %v2816_v49 = vmul.f32 0.5, %v5147_v38  ;;  %9997 = vst [vmem:[#allocation70_spill] sm:$0xff] %v8310_v7  ;;  %v8312_v39 = vpop.f32.mrb[149].mxu1 }
 0x2e1   : > { %v5151_v32 = vpop.eup %5150  ;;  %v3884_v35 = vadd.f32 %v3883_v28, %v3570_v44  ;;  %v3581_v18 = vmul.f32 %v3197_v46, %v8210_v29  ;;  %v3198_v41 = vadd.f32 0.5, %v2814_v16  ;;  %v2825_v27 = vmul.f32 0.5, %v5149_v60  ;;  %9998 = vst [vmem:[#allocation30_spill] sm:$0xff] %v8312_v39  ;;  %v8316_v28 = vpop.f32.mrb[150].mxu0 }
 0x2e2   : > { %v5153_v23 = vpop.eup %5152  ;;  %v3946_v31 = vadd.f32 %v3945_v36, %v3572_v34  ;;  %v3583_v33 = vmul.f32 %v3199_v63, %v8216_v15  ;;  %v3200_v14 = vadd.f32 0.5, %v2816_v49  ;;  %v2827_v38 = vmul.f32 0.5, %v5151_v32  ;;  %9999 = vst [vmem:[#allocation31_spill] sm:$0xff] %v8316_v28 }
 0x2e3   : > { %v5155_v2 = vpop.eup %5154  ;;  %v3854_v4 = vadd.f32 %v3853_v11, %v3581_v18  ;;  %v3582_v26 = vmul.f32 %v3198_v41, %v8223_v57  ;;  %v3209_v25 = vadd.f32 0.5, %v2825_v27  ;;  %v2826_v44 = vmul.f32 0.5, %v5153_v23 }
 0x2e4   : > { %v5157_v29 = vpop.eup %5156  ;;  %v3916_v0 = vadd.f32 %v3915_v12, %v3583_v33  ;;  %v3584_v1 = vmul.f32 %v3200_v14, %v8227_v47  ;;  %v3211_v20 = vadd.f32 0.5, %v2827_v38  ;;  %v2828_v22 = vmul.f32 0.5, %v5155_v2  ;;  %v8327_v33 = vpop.f32.mrb[150].mxu1 }
 0x2e5   : > { %v5159_v46 = vpop.eup %5158  ;;  %v3885_v36 = vadd.f32 %v3884_v35, %v3582_v26  ;;  %v3593_v15 = vmul.f32 %v3209_v25, %v8232_v30  ;;  %v3210_v16 = vadd.f32 0.5, %v2826_v44  ;;  %v2837_v60 = vmul.f32 0.5, %v5157_v29  ;;  %v10000_v35 = vld [vmem:[#allocation71_spill] sm:$0xff]  ;;  %10001 = vst [vmem:[#allocation19_spill] sm:$0xff] %v8327_v33 }
 0x2e6   : > { %v5161_v34 = vpop.eup %5160  ;;  %v3947_v11 = vadd.f32 %v3946_v31, %v3584_v1  ;;  %v3595_v57 = vmul.f32 %v3211_v20, %v8236_v51  ;;  %v3212_v63 = vadd.f32 0.5, %v2828_v22  ;;  %v2839_v49 = vmul.f32 0.5, %v5159_v46  ;;  %v10004_v22 = vld [vmem:[#allocation33_spill] sm:$0xff] }
 0x2e7   : > { %v3855_v32 = vadd.f32 %v3854_v4, %v3593_v15  ;;  %v3594_v18 = vmul.f32 %v3210_v16, %v8248_v53  ;;  %v3221_v12 = vadd.f32 0.5, %v2837_v60  ;;  %v2838_v41 = vmul.f32 0.5, %v5161_v34  ;;  %v8375_v15 = vpop.f32.mrb[151].mxu1  ;;  %v10007_v60 = vld [vmem:[#allocation35_spill] sm:$0xff] }
 0x2e8   : > { %v3917_v47 = vadd.f32 %v3916_v0, %v3595_v57  ;;  %v3596_v27 = vmul.f32 %v3212_v63, %v8252_v17  ;;  %v3223_v23 = vadd.f32 0.5, %v2839_v49  ;;  %v8325_v30 = vadd.f32 %v10000_v35, %v7434_v45  ;;  %v10002_v0 = vld [vmem:[#allocation32_spill] sm:$0xff]  ;;  %v10011_v35 = vld [vmem:[#allocation61_spill] sm:$0xff] }
 0x2e9   : > { %v3886_v31 = vadd.f32 %v3885_v36, %v3594_v18  ;;  %v3605_v51 = vmul.f32 %v3221_v12, %v8259_v42  ;;  %v3222_v14 = vadd.f32 0.5, %v2838_v41  ;;  %v8332_v38 = vadd.f32 %v7711_v58, %v7418_v6  ;;  %10006 = vst [vmem:[#allocation32_spill] sm:$0xff] %v8375_v15 }
 0x2ea   : > { %v8334_v53 = vadd.f32 %v3947_v11, %v3596_v27  ;;  %v3607_v2 = vmul.f32 %v3223_v23, %v8271_v37  ;;  %v2072_v17 = vmul.f32 0.5, %v8325_v30  ;;  %v8340_v4 = vadd.f32 %v7713_v56, %v7420_v61  ;;  %v10008_v11 = vld [vmem:[#allocation58_spill] sm:$0xff] }
 0x2eb   : > { %v8342_v26 = vadd.f32 %v3855_v32, %v3605_v51  ;;  %v3606_v25 = vmul.f32 %v3222_v14, %v8275_v21  ;;  %v2081_v42 = vmul.f32 0.5, %v8332_v38  ;;  %v8348_v58 = vadd.f32 %v7729_v40, %v7432_v43  ;;  %v8364_v40 = vpop.f32.mrb[151].mxu0  ;;  %v10009_v32 = vld [vmem:[#allocation59_spill] sm:$0xff]  ;;  %v10012_v51 = vld [vmem:[#allocation62_spill] sm:$0xff] }
 0x2ec   : > { %v8350_v44 = vadd.f32 %v3917_v47, %v3607_v2  ;;  %5162 = vtanh.f32 %v2072_v17  ;;  %v2083_v37 = vmul.f32 0.5, %v8340_v4  ;;  %v8355_v29 = vadd.f32 %v7731_v48, %v7434_v45  ;;  %10003 = vst [vmem:[#allocation71_spill] sm:$0xff] %v8364_v40  ;;  %v10005_v48 = vld [vmem:[#allocation34_spill] sm:$0xff]  ;;  %v10010_v47 = vld [vmem:[#allocation60_spill] sm:$0xff]  ;;  %v10013_v17 = vld [vmem:[#allocation63_spill] sm:$0xff] }
 0x2ed   : > { %v8357_v56 = vadd.f32 %v3886_v31, %v3606_v25  ;;  %5164 = vtanh.f32 %v2081_v42  ;;  %v2082_v21 = vmul.f32 0.5, %v8348_v58  ;;  %v8362_v1 = vadd.f32 %v10002_v0, %v7418_v6  ;;  %v10014_v0 = vld [vmem:[#allocation64_spill] sm:$0xff] }
 0x2ee   : > { %5166 = vtanh.f32 %v2083_v37  ;;  %v2084_v20 = vmul.f32 0.5, %v8355_v29  ;;  %v8369_v46 = vadd.f32 %v10004_v22, %v7420_v61  ;;  %v8373_v36 = vadd.f32 %v10005_v48, %v7432_v43 }
 0x2ef   : > { %5168 = vtanh.f32 %v2082_v21  ;;  %v2093_v16 = vmul.f32 0.5, %v8362_v1  ;;  %v8380_v34 = vadd.f32 %v10007_v60, %v7434_v45  ;;  %v8384_v57 = vadd.f32 %v10008_v11, %v7418_v6  ;;  %v8430_v11 = vpop.f32.mrb[152].mxu1 }
 0x2f0   : > { %5170 = vtanh.f32 %v2084_v20  ;;  %v2095_v63 = vmul.f32 0.5, %v8369_v46  ;;  %v2094_v49 = vmul.f32 0.5, %v8373_v36  ;;  %v8390_v18 = vadd.f32 %v10009_v32, %v7420_v61  ;;  %10017 = vst [vmem:[#allocation34_spill] sm:$0xff] %v8430_v11 }
 0x2f1   : > { %5172 = vtanh.f32 %v2093_v16  ;;  %v2096_v12 = vmul.f32 0.5, %v8380_v34  ;;  %v2105_v41 = vmul.f32 0.5, %v8384_v57  ;;  %v8396_v27 = vadd.f32 %v10010_v47, %v7432_v43  ;;  %v10015_v16 = vld [vmem:[#allocation65_spill] sm:$0xff]  ;;  %v8443_v47 = vpop.f32.mrb[153].mxu1 }
 0x2f2   : > { %5174 = vtanh.f32 %v2095_v63  ;;  %v2107_v23 = vmul.f32 0.5, %v8390_v18  ;;  %v8401_v31 = vadd.f32 %v10011_v35, %v7434_v45  ;;  %v8405_v14 = vadd.f32 %v10012_v51, %v7418_v6  ;;  %10019 = vst [vmem:[#allocation58_spill] sm:$0xff] %v8443_v47 }
 0x2f3   : > { %5176 = vtanh.f32 %v2094_v49  ;;  %v2106_v2 = vmul.f32 0.5, %v8396_v27  ;;  %v8410_v25 = vadd.f32 %v10013_v17, %v7420_v61  ;;  %v8414_v42 = vadd.f32 %v7810_v54, %v7432_v43  ;;  %v8428_v54 = vpop.f32.mrb[152].mxu0 }
 0x2f4   : > { %5178 = vtanh.f32 %v2096_v12  ;;  %v2108_v37 = vmul.f32 0.5, %v8401_v31  ;;  %v2117_v21 = vmul.f32 0.5, %v8405_v14  ;;  %v8420_v20 = vadd.f32 %v10014_v0, %v7434_v45  ;;  %10016 = vst [vmem:[#allocation33_spill] sm:$0xff] %v8428_v54  ;;  %v8454_v0 = vpop.f32.mrb[154].mxu1 }
 0x2f5   : > { %5180 = vtanh.f32 %v2105_v41  ;;  %v2119_v22 = vmul.f32 0.5, %v8410_v25  ;;  %v2118_v48 = vmul.f32 0.5, %v8414_v42  ;;  %v8426_v60 = vadd.f32 %v10015_v16, %v7418_v6  ;;  %v8441_v41 = vpop.f32.mrb[153].mxu0  ;;  %10021 = vst [vmem:[#allocation60_spill] sm:$0xff] %v8454_v0  ;;  %v8464_v47 = vpop.f32.mrb[155].mxu1 }
 0x2f6   : > { %v5163_v63 = vpop.eup %5162  ;;  %5182 = vtanh.f32 %v2107_v23  ;;  %v2120_v49 = vmul.f32 0.5, %v8420_v20  ;;  %v8435_v32 = vadd.f32 %v7834_v13, %v7420_v61  ;;  %v8439_v12 = vadd.f32 %v7843_v24, %v7432_v43  ;;  %10018 = vst [vmem:[#allocation35_spill] sm:$0xff] %v8441_v41  ;;  %v8452_v13 = vpop.f32.mrb[154].mxu0  ;;  %10023 = vst [vmem:[#allocation62_spill] sm:$0xff] %v8464_v47 }
 0x2f7   : > { %v5165_v35 = vpop.eup %5164  ;;  %v2840_v51 = vmul.f32 0.5, %v5163_v63  ;;  %5184 = vtanh.f32 %v2106_v2  ;;  %v8446_v17 = vmul.f32 0.5, %v8426_v60  ;;  %v8450_v23 = vadd.f32 %v7845_v5, %v7434_v45  ;;  %10020 = vst [vmem:[#allocation59_spill] sm:$0xff] %v8452_v13  ;;  %v8462_v2 = vpop.f32.mrb[155].mxu0 }
 0x2f8   : > { %v5167_v24 = vpop.eup %5166  ;;  %v2849_v16 = vmul.f32 0.5, %v5165_v35  ;;  %5186 = vtanh.f32 %v2108_v37  ;;  %v8457_v41 = vmul.f32 0.5, %v8435_v32  ;;  %v8460_v63 = vmul.f32 0.5, %v8439_v12  ;;  %10022 = vst [vmem:[#allocation61_spill] sm:$0xff] %v8462_v2 }
 0x2f9   : > { %v5169_v11 = vpop.eup %5168  ;;  %v3224_v5 = vadd.f32 0.5, %v2840_v51  ;;  %v2851_v54 = vmul.f32 0.5, %v5167_v24  ;;  %5188 = vtanh.f32 %v2117_v21  ;;  %v8467_v13 = vmul.f32 0.5, %v8450_v23 }
 0x2fa   : > { %v5171_v0 = vpop.eup %5170  ;;  %v3233_v35 = vadd.f32 0.5, %v2849_v16  ;;  %v2850_v37 = vmul.f32 0.5, %v5169_v11  ;;  %5190 = vtanh.f32 %v2119_v22  ;;  %v8471_v15 = vadd.f32 %v7882_v8, %v7418_v6 }
 0x2fb   : > { %v5173_v40 = vpop.eup %5172  ;;  %v3608_v2 = vmul.f32 %v3224_v5, %v8325_v30  ;;  %v3235_v33 = vadd.f32 0.5, %v2851_v54  ;;  %v2852_v47 = vmul.f32 0.5, %v5171_v0  ;;  %5192 = vtanh.f32 %v2118_v48  ;;  %v8479_v0 = vpop.f32.mrb[156].mxu0 }
 0x2fc   : > { %v5175_v51 = vpop.eup %5174  ;;  %v3617_v21 = vmul.f32 %v3233_v35, %v8332_v38  ;;  %v3234_v24 = vadd.f32 0.5, %v2850_v37  ;;  %v2861_v28 = vmul.f32 0.5, %v5173_v40  ;;  %5194 = vtanh.f32 %v2120_v49  ;;  %v8481_v38 = vpop.f32.mrb[156].mxu1 }
 0x2fd   : > { %v5177_v39 = vpop.eup %5176  ;;  %v3949_v11 = vadd.f32 %v8334_v53, %v3608_v2  ;;  %v3619_v22 = vmul.f32 %v3235_v33, %v8340_v4  ;;  %v3236_v16 = vadd.f32 0.5, %v2852_v47  ;;  %v2863_v8 = vmul.f32 0.5, %v5175_v51  ;;  %v8485_v4 = vpop.f32.mrb[157].mxu0 }
 0x2fe   : > { %v5179_v7 = vpop.eup %5178  ;;  %v3857_v9 = vadd.f32 %v8342_v26, %v3617_v21  ;;  %v3618_v30 = vmul.f32 %v3234_v24, %v8348_v58  ;;  %v3245_v54 = vadd.f32 0.5, %v2861_v28  ;;  %v2862_v48 = vmul.f32 0.5, %v5177_v39  ;;  %v8487_v47 = vpop.f32.mrb[157].mxu1 }
 0x2ff   : > { %v5181_v40 = vpop.eup %5180  ;;  %v3919_v49 = vadd.f32 %v8350_v44, %v3619_v22  ;;  %v3620_v53 = vmul.f32 %v3236_v16, %v8355_v29  ;;  %v3247_v2 = vadd.f32 0.5, %v2863_v8  ;;  %v2864_v33 = vmul.f32 0.5, %v5179_v7  ;;  %v8491_v35 = vpop.f32.mrb[158].mxu0 }
 0x300   : > { %v5183_v26 = vpop.eup %5182  ;;  %v3888_v58 = vadd.f32 %v8357_v56, %v3618_v30  ;;  %v3629_v39 = vmul.f32 %v3245_v54, %v8362_v1  ;;  %v3246_v28 = vadd.f32 0.5, %v2862_v48  ;;  %v2873_v5 = vmul.f32 0.5, %v5181_v40  ;;  %10024 = vst [vmem:[#allocation63_spill] sm:$0xff] %v8491_v35  ;;  %v8493_v37 = vpop.f32.mrb[158].mxu1 }
 0x301   : > { %10025 = vst [vmem:[#allocation64_spill] sm:$0xff] %v8493_v37  ;;  %v5185_v44 = vpop.eup %5184  ;;  %v3950_v51 = vadd.f32 %v3949_v11, %v3620_v53  ;;  %v3631_v29 = vmul.f32 %v3247_v2, %v8369_v46  ;;  %v3248_v7 = vadd.f32 0.5, %v2864_v33  ;;  %v2875_v21 = vmul.f32 0.5, %v5183_v26  ;;  %v8498_v35 = vpop.f32.mrb[159].mxu0 }
 0x302   : > { %v5187_v24 = vpop.eup %5186  ;;  %v3858_v22 = vadd.f32 %v3857_v9, %v3629_v39  ;;  %v3630_v16 = vmul.f32 %v3246_v28, %v8373_v36  ;;  %v3257_v8 = vadd.f32 0.5, %v2873_v5  ;;  %v2874_v56 = vmul.f32 0.5, %v5185_v44 }
 0x303   : > { %v5189_v30 = vpop.eup %5188  ;;  %v3920_v1 = vadd.f32 %v3919_v49, %v3631_v29  ;;  %v3632_v54 = vmul.f32 %v3248_v7, %v8380_v34  ;;  %v3259_v48 = vadd.f32 0.5, %v2875_v21  ;;  %v2876_v40 = vmul.f32 0.5, %v5187_v24 }
 0x304   : > { %v5191_v37 = vpop.eup %5190  ;;  %v3889_v11 = vadd.f32 %v3888_v58, %v3630_v16  ;;  %v3641_v46 = vmul.f32 %v3257_v8, %v8384_v57  ;;  %v3258_v53 = vadd.f32 0.5, %v2874_v56  ;;  %v2885_v2 = vmul.f32 0.5, %v5189_v30 }
 0x305   : > { %v5193_v33 = vpop.eup %5192  ;;  %v3951_v9 = vadd.f32 %v3950_v51, %v3632_v54  ;;  %v3643_v36 = vmul.f32 %v3259_v48, %v8390_v18  ;;  %v3260_v26 = vadd.f32 0.5, %v2876_v40  ;;  %v2887_v39 = vmul.f32 0.5, %v5191_v37  ;;  %v8506_v18 = vpop.f32.mrb[159].mxu1 }
 0x306   : > { %v5195_v28 = vpop.eup %5194  ;;  %v3859_v49 = vadd.f32 %v3858_v22, %v3641_v46  ;;  %v3642_v34 = vmul.f32 %v3258_v53, %v8396_v27  ;;  %v3269_v5 = vadd.f32 0.5, %v2885_v2  ;;  %v2886_v44 = vmul.f32 0.5, %v5193_v33  ;;  %v10030_v2 = vld [vmem:[#allocation13_spill] sm:$0xff] }
 0x307   : > { %v3921_v29 = vadd.f32 %v3920_v1, %v3643_v36  ;;  %v3644_v7 = vmul.f32 %v3260_v26, %v8401_v31  ;;  %v3271_v58 = vadd.f32 0.5, %v2887_v39  ;;  %v2888_v21 = vmul.f32 0.5, %v5195_v28  ;;  %v10027_v1 = vld [vmem:[#allocation37_spill] sm:$0xff]  ;;  %v8562_v36 = vpop.f32.mrb[160].mxu1  ;;  %v10033_v28 = vld [vmem:[#allocation38_spill] sm:$0xff] }
 0x308   : > { %v3890_v57 = vadd.f32 %v3889_v11, %v3642_v34  ;;  %v3653_v24 = vmul.f32 %v3269_v5, %v8405_v14  ;;  %v3270_v16 = vadd.f32 0.5, %v2886_v44  ;;  %5196 = vtanh.f32 %v8446_v17  ;;  %v10029_v11 = vld [vmem:[#allocation21_spill] sm:$0xff] }
 0x309   : > { %v3952_v37 = vadd.f32 %v3951_v9, %v3644_v7  ;;  %v3655_v51 = vmul.f32 %v3271_v58, %v8410_v25  ;;  %v3272_v22 = vadd.f32 0.5, %v2888_v21  ;;  %5198 = vtanh.f32 %v8457_v41  ;;  %v8560_v9 = vpop.f32.mrb[160].mxu0  ;;  %v8584_v58 = vpop.f32.mrb[161].mxu1 }
 0x30a   : > { %v8510_v27 = vadd.f32 %v3859_v49, %v3653_v24  ;;  %v3654_v31 = vmul.f32 %v3270_v16, %v8414_v42  ;;  %5200 = vtanh.f32 %v8460_v63  ;;  %v2141_v8 = vmul.f32 0.5, %v8471_v15  ;;  %v307_v63 = vld [vmem:[#allocation8 + $0x8] sm:$0xf]  ;;  %v8582_v7 = vpop.f32.mrb[161].mxu0 }
 0x30b   : > { %v8515_v14 = vadd.f32 %v3921_v29, %v3655_v51  ;;  %v3656_v17 = vmul.f32 %v3272_v22, %v8420_v20  ;;  %5202 = vtanh.f32 %v8467_v13  ;;  %v8521_v25 = vadd.f32 %v7884_v55, %v7420_v61  ;;  %v10026_v13 = vld [vmem:[#allocation36_spill] sm:$0xff]  ;;  %v10037_v16 = vld [vmem:[#allocation73_spill] sm:$0xff]  ;;  %v10038_v51 = vld [vmem:[#allocation74_spill] sm:$0xff] }
 0x30c   : > { %v8523_v56 = vadd.f32 %v3890_v57, %v3654_v31  ;;  %5204 = vtanh.f32 %v2141_v8  ;;  %v8527_v42 = vadd.f32 %v7892_v59, %v7432_v43  ;;  %v8531_v41 = vadd.f32 %v7894_v52, %v7434_v45  ;;  %v10028_v52 = vld [vmem:[#allocation20_spill] sm:$0xff]  ;;  %v10036_v57 = vld [vmem:[#allocation39_spill] sm:$0xff] }
 0x30d   : > { %v8533_v30 = vadd.f32 %v3952_v37, %v3656_v17  ;;  %v2143_v20 = vmul.f32 0.5, %v8521_v25  ;;  %v8538_v55 = vadd.f32 %v10026_v13, %v7418_v6  ;;  %v8542_v54 = vadd.f32 %v10027_v1, %v7420_v61  ;;  %v8603_v13 = vpop.f32.mrb[162].mxu0  ;;  %v8605_v1 = vpop.f32.mrb[162].mxu1 }
 0x30e   : > { %v2142_v59 = vmul.f32 0.5, %v8527_v42  ;;  %v2144_v48 = vmul.f32 0.5, %v8531_v41  ;;  %v8548_v40 = vadd.f32 %v10028_v52, %v7432_v43  ;;  %v8552_v46 = vadd.f32 %v10029_v11, %v7434_v45  ;;  %v10040_v11 = vld [vmem:[#allocation72_spill] sm:$0xff] }
 0x30f   : > { %5206 = vtanh.f32 %v2143_v20  ;;  %v2153_v6 = vmul.f32 0.5, %v8538_v55  ;;  %v2155_v53 = vmul.f32 0.5, %v8542_v54  ;;  %v10031_v61 = vsub.s32 0, %v10030_v2 }
 0x310   : > { %5208 = vtanh.f32 %v2142_v59  ;;  %v2154_v43 = vmul.f32 0.5, %v8548_v40  ;;  %v2156_v26 = vmul.f32 0.5, %v8552_v46  ;;  %v10032_v45 = vsub.s32 2, %v10030_v2 }
 0x311   : > { %v8558_v33 = vrot.slane %v307_v63, %v10031_v61  ;;  %5210 = vtanh.f32 %v2144_v48  ;;  %v10034_v34 = vsub.s32 1, %v10030_v2  ;;  %v10035_v44 = vsub.s32 3, %v10030_v2 }
 0x312   : > { %v8568_v39 = vrot.slane %v307_v63, %v10032_v45  ;;  %v5197_v21 = vpop.eup %5196  ;;  %5212 = vtanh.f32 %v2153_v6 }
 0x313   : > { %v8572_v49 = vadd.f32 %v10033_v28, %v8558_v33  ;;  %v8576_v5 = vrot.slane %v307_v63, %v10034_v34  ;;  %v8580_v29 = vrot.slane %v307_v63, %v10035_v44  ;;  %v8592_v37 = vadd.f32 %v10037_v16, %v8558_v33  ;;  %v5199_v31 = vpop.eup %5198  ;;  %v10039_v63 = vld [vmem:[#allocation40_spill] sm:$0xff]  ;;  %v8613_v34 = vpop.f32.mrb[163].mxu0 }
 0x314   : > { %v8588_v24 = vadd.f32 %v10036_v57, %v8568_v39  ;;  %v8596_v22 = vadd.f32 %v10038_v51, %v8568_v39  ;;  %v2897_v8 = vmul.f32 0.5, %v5197_v21  ;;  %5214 = vtanh.f32 %v2155_v53  ;;  %v5201_v59 = vpop.eup %5200  ;;  %v8615_v44 = vpop.f32.mrb[163].mxu1 }
 0x315   : > { %v1785_v17 = vmul.f32 0.5, %v8572_v49  ;;  %v8601_v20 = vadd.f32 %v10039_v63, %v8576_v5  ;;  %v2899_v48 = vmul.f32 0.5, %v5199_v31  ;;  %5216 = vtanh.f32 %v2154_v43  ;;  %v5203_v53 = vpop.eup %5202  ;;  %10041 = vst [vmem:[#allocation65_spill] sm:$0xff] %v8615_v44 }
 0x316   : > { %v1787_v52 = vmul.f32 0.5, %v8588_v24  ;;  %v8610_v6 = vadd.f32 %v10040_v11, %v8580_v29  ;;  %v3281_v61 = vadd.f32 0.5, %v2897_v8  ;;  %v2898_v45 = vmul.f32 0.5, %v5201_v59  ;;  %v5205_v21 = vpop.eup %5204 }
 0x317   : > { %5218 = vtanh.f32 %v2156_v26  ;;  %v1786_v28 = vmul.f32 0.5, %v8601_v20  ;;  %v3283_v57 = vadd.f32 0.5, %v2899_v48  ;;  %v2900_v16 = vmul.f32 0.5, %v5203_v53 }
 0x318   : > { %5220 = vtanh.f32 %v1785_v17  ;;  %v1788_v43 = vmul.f32 0.5, %v8610_v6  ;;  %v3665_v51 = vmul.f32 %v3281_v61, %v8426_v60  ;;  %v3282_v31 = vadd.f32 0.5, %v2898_v45 }
 0x319   : > { %v2909_v63 = vmul.f32 0.5, %v5205_v21  ;;  %5222 = vtanh.f32 %v1787_v52  ;;  %v3667_v8 = vmul.f32 %v3283_v57, %v8435_v32  ;;  %v3284_v26 = vadd.f32 0.5, %v2900_v16  ;;  %v5207_v11 = vpop.eup %5206 }
 0x31a   : > { %5224 = vtanh.f32 %v1786_v28  ;;  %v1797_v59 = vmul.f32 0.5, %v8592_v37  ;;  %v3861_v2 = vadd.f32 %v8510_v27, %v3665_v51  ;;  %v3666_v48 = vmul.f32 %v3282_v31, %v8439_v12  ;;  %v5209_v17 = vpop.eup %5208  ;;  %v8628_v27 = vpop.f32.mrb[164].mxu0 }
 0x31b   : > { %v3293_v53 = vadd.f32 0.5, %v2909_v63  ;;  %5226 = vtanh.f32 %v1788_v43  ;;  %v3923_v44 = vadd.f32 %v8515_v14, %v3667_v8  ;;  %v3668_v60 = vmul.f32 %v3284_v26, %v8450_v23  ;;  %v5211_v52 = vpop.eup %5210  ;;  %10042 = vst [vmem:[#allocation36_spill] sm:$0xff] %v8628_v27  ;;  %v8630_v12 = vpop.f32.mrb[164].mxu1  ;;  %v10044_v23 = vld [vmem:[#allocation75_spill] sm:$0xff] }
 0x31c   : > { %v2911_v61 = vmul.f32 0.5, %v5207_v11  ;;  %5228 = vtanh.f32 %v1797_v59  ;;  %v3892_v32 = vadd.f32 %v8523_v56, %v3666_v48  ;;  %v2910_v28 = vmul.f32 0.5, %v5209_v17  ;;  %10043 = vst [vmem:[#allocation37_spill] sm:$0xff] %v8630_v12  ;;  %v5213_v57 = vpop.eup %5212  ;;  %v8637_v31 = vpop.f32.mrb[165].mxu0 }
 0x31d   : > { %v3677_v45 = vmul.f32 %v3293_v53, %v8471_v15  ;;  %v1799_v21 = vmul.f32 0.5, %v8596_v22  ;;  %v3954_v16 = vadd.f32 %v8533_v30, %v3668_v60  ;;  %v2912_v43 = vmul.f32 0.5, %v5211_v52  ;;  %10045 = vst [vmem:[#allocation20_spill] sm:$0xff] %v8637_v31  ;;  %v8639_v56 = vpop.f32.mrb[165].mxu1  ;;  %v8641_v59 = vpop.f32.mrb[166].mxu0 }
 0x31e   : > { %v3295_v14 = vadd.f32 0.5, %v2911_v61  ;;  %v8635_v51 = vadd.f32 %v10044_v23, %v8576_v5  ;;  %10046 = vst [vmem:[#allocation21_spill] sm:$0xff] %v8639_v56  ;;  %v5215_v15 = vpop.eup %5214  ;;  %v3294_v8 = vadd.f32 0.5, %v2910_v28  ;;  %v2921_v26 = vmul.f32 0.5, %v5213_v57  ;;  %10047 = vst [vmem:[#allocation38_spill] sm:$0xff] %v8641_v59  ;;  %v8643_v11 = vpop.f32.mrb[166].mxu1 }
 0x31f   : > { %v3862_v63 = vadd.f32 %v3861_v2, %v3677_v45  ;;  %5230 = vtanh.f32 %v1799_v21  ;;  %10048 = vst [vmem:[#allocation39_spill] sm:$0xff] %v8643_v11  ;;  %v5217_v30 = vpop.eup %5216  ;;  %v3296_v53 = vadd.f32 0.5, %v2912_v43  ;;  %v2923_v17 = vmul.f32 0.5, %v5215_v15  ;;  %v8647_v61 = vpop.f32.mrb[167].mxu0  ;;  %v10051_v21 = vld [vmem:[#allocation41_spill] sm:$0xff] }
 0x320   : > { %v3679_v48 = vmul.f32 %v3295_v14, %v8521_v25  ;;  %v1798_v60 = vmul.f32 0.5, %v8635_v51  ;;  %10049 = vst [vmem:[#allocation73_spill] sm:$0xff] %v8647_v61  ;;  %v8649_v52 = vpop.f32.mrb[167].mxu1  ;;  %v3678_v2 = vmul.f32 %v3294_v8, %v8527_v42  ;;  %v3305_v45 = vadd.f32 0.5, %v2921_v26 }
 0x321   : > { %10050 = vst [vmem:[#allocation74_spill] sm:$0xff] %v8649_v52  ;;  %v5219_v23 = vpop.eup %5218  ;;  %v2922_v28 = vmul.f32 0.5, %v5217_v30  ;;  %v8654_v57 = vadd.f32 %v10051_v21, %v8580_v29  ;;  %v3680_v25 = vmul.f32 %v3296_v53, %v8531_v41  ;;  %v3307_v14 = vadd.f32 0.5, %v2923_v17 }
 0x322   : > { %v5221_v11 = vpop.eup %5220  ;;  %v3924_v59 = vadd.f32 %v3923_v44, %v3679_v48  ;;  %v2924_v43 = vmul.f32 0.5, %v5219_v23  ;;  %v3893_v56 = vadd.f32 %v3892_v32, %v3678_v2  ;;  %v3689_v61 = vmul.f32 %v3305_v45, %v8538_v55  ;;  %v8661_v2 = vpop.f32.mrb[168].mxu0 }
 0x323   : > { %v5223_v15 = vpop.eup %5222  ;;  %v3306_v52 = vadd.f32 0.5, %v2922_v28  ;;  %v2553_v31 = vmul.f32 0.5, %v5221_v11  ;;  %v3955_v42 = vadd.f32 %v3954_v16, %v3680_v25  ;;  %v3691_v8 = vmul.f32 %v3307_v14, %v8542_v54 }
 0x324   : > { %v5225_v12 = vpop.eup %5224  ;;  %v3308_v26 = vadd.f32 0.5, %v2924_v43  ;;  %v2555_v30 = vmul.f32 0.5, %v5223_v15  ;;  %v3863_v27 = vadd.f32 %v3862_v63, %v3689_v61  ;;  %5232 = vtanh.f32 %v1798_v60 }
 0x325   : > { %v5227_v21 = vpop.eup %5226  ;;  %v3690_v44 = vmul.f32 %v3306_v52, %v8548_v40  ;;  %v2937_v48 = vadd.f32 0.5, %v2553_v31  ;;  %v2554_v41 = vmul.f32 0.5, %v5225_v12  ;;  %v3925_v17 = vadd.f32 %v3924_v59, %v3691_v8 }
 0x326   : > { %v5229_v53 = vpop.eup %5228  ;;  %v3692_v32 = vmul.f32 %v3308_v26, %v8552_v46  ;;  %v2939_v23 = vadd.f32 0.5, %v2555_v30  ;;  %v2556_v55 = vmul.f32 0.5, %v5227_v21  ;;  %v4144_v11 = vrot.slane %v3863_v27, 4 }
 0x327   : > { %v3894_v16 = vadd.f32 %v3893_v56, %v3690_v44  ;;  %v3321_v54 = vmul.f32 %v2937_v48, %v8572_v49  ;;  %v2938_v45 = vadd.f32 0.5, %v2554_v41  ;;  %v4156_v28 = vrot.slane %v3925_v17, 4  ;;  %v8671_v49 = vpop.f32.mrb[168].mxu1  ;;  %v10053_v48 = vld [vmem:[#allocation42_spill] sm:$0xff] }
 0x328   : > { %v3956_v25 = vadd.f32 %v3955_v42, %v3692_v32  ;;  %v3323_v63 = vmul.f32 %v2939_v23, %v8588_v24  ;;  %v2940_v40 = vadd.f32 0.5, %v2556_v55  ;;  %v4145_v12 = vadd.f32 %v4144_v11, %v3863_v27  ;;  %10052 = vst [vmem:[#allocation40_spill] sm:$0xff] %v8671_v49  ;;  %v8683_v11 = vpop.f32.mrb[169].mxu0 }
 0x329   : > { %v5231_v31 = vpop.eup %5230  ;;  %v4150_v61 = vrot.slane %v3894_v16, 4  ;;  %v8666_v59 = vmul.f32 %v2938_v45, %v8601_v20  ;;  %v2565_v46 = vmul.f32 0.5, %v5229_v53  ;;  %v4157_v52 = vadd.f32 %v4156_v28, %v3925_v17  ;;  %10054 = vst [vmem:[#allocation72_spill] sm:$0xff] %v8683_v11  ;;  %v10055_v28 = vld [vmem:[#allocation43_spill] sm:$0xff] }
 0x32a   : > { %v4162_v14 = vrot.slane %v3956_v25, 4  ;;  %v8669_v43 = vmul.f32 %v2940_v40, %v8610_v6  ;;  %v2567_v56 = vmul.f32 0.5, %v5231_v31  ;;  %v4146_v15 = vrot.slane %v4145_v12, 2 }
 0x32b   : > { %v4151_v42 = vadd.f32 %v4150_v61, %v3894_v16  ;;  %v2949_v8 = vadd.f32 0.5, %v2565_v46  ;;  %v4158_v24 = vrot.slane %v4157_v52, 2  ;;  %v1800_v30 = vmul.f32 0.5, %v8654_v57 }
 0x32c   : > { %v4163_v26 = vadd.f32 %v4162_v14, %v3956_v25  ;;  %v2951_v27 = vadd.f32 0.5, %v2567_v56  ;;  %v4147_v20 = vadd.f32 %v4146_v15, %v4145_v12  ;;  %v8677_v6 = vadd.f32 %v10053_v48, %v8558_v33 }
 0x32d   : > { %v4152_v21 = vrot.slane %v4151_v42, 2  ;;  %v3333_v44 = vmul.f32 %v2949_v8, %v8592_v37  ;;  %v4159_v41 = vadd.f32 %v4158_v24, %v4157_v52  ;;  %5234 = vtanh.f32 %v1800_v30  ;;  %v10060_v8 = vld [vmem:[#allocation29_spill] sm:$0xff] }
 0x32e   : > { %v4164_v53 = vrot.slane %v4163_v26, 2  ;;  %v3335_v17 = vmul.f32 %v2951_v27, %v8596_v22  ;;  %v4148_v32 = vrot.slane %v4147_v20, 1  ;;  %v1809_v55 = vmul.f32 0.5, %v8677_v6  ;;  %v10056_v22 = vld [vmem:[#allocation44_spill] sm:$0xff] }
 0x32f   : > { %v4153_v60 = vadd.f32 %v4152_v21, %v4151_v42  ;;  %v8680_v23 = vadd.f32 %v3333_v44, %v3321_v54  ;;  %v4160_v16 = vrot.slane %v4159_v41, 1  ;;  %v8689_v25 = vadd.f32 %v10055_v28, %v8568_v39  ;;  %v8695_v54 = vpop.f32.mrb[169].mxu1  ;;  %v5233_v44 = vpop.eup %5232 }
 0x330   : > { %v4165_v45 = vadd.f32 %v4164_v53, %v4163_v26  ;;  %v8685_v37 = vadd.f32 %v3335_v17, %v3323_v63  ;;  %v4149_v40 = vadd.f32 %v4148_v32, %v4147_v20  ;;  %5236 = vtanh.f32 %v1809_v55  ;;  %10057 = vst [vmem:[#allocation75_spill] sm:$0xff] %v8695_v54  ;;  %v10058_v63 = vld [vmem:[#allocation45_spill] sm:$0xff]  ;;  %v8709_v26 = vpop.f32.mrb[170].mxu0  ;;  %v8711_v27 = vpop.f32.mrb[170].mxu1  ;;  %v10065_v53 = vld [vmem:[#allocation22_spill] sm:$0xff] }
 0x331   : > { %v4154_v31 = vrot.slane %v4153_v60, 1  ;;  %v8693_v12 = vadd.f32 %v10056_v22, %v8576_v5  ;;  %v4161_v61 = vadd.f32 %v4160_v16, %v4159_v41  ;;  %v1811_v52 = vmul.f32 0.5, %v8689_v25  ;;  %10061 = vst [vmem:[#allocation42_spill] sm:$0xff] %v8709_v26  ;;  %10062 = vst [vmem:[#allocation43_spill] sm:$0xff] %v8711_v27  ;;  %v8723_v32 = vpop.f32.mrb[171].mxu0  ;;  %v10070_v22 = vld [vmem:[#allocation23_spill] sm:$0xff] }
 0x332   : > { %v4166_v46 = vrot.slane %v4165_v45, 1  ;;  %v8700_v14 = vadd.f32 %v10058_v63, %v8580_v29  ;;  %v8702_v56 = vmul.f32 0.00390625, %v4149_v40  ;;  %v8707_v24 = vadd.f32 %v10060_v8, %v8558_v33  ;;  %10066 = vst [vmem:[#allocation29_spill] sm:$0xff] %v8723_v32 }
 0x333   : > { %v4155_v15 = vadd.f32 %v4154_v31, %v4153_v60  ;;  %v1810_v42 = vmul.f32 0.5, %v8693_v12  ;;  %v8713_v30 = vmul.f32 0.00390625, %v4161_v61  ;;  %5238 = vtanh.f32 %v1811_v52  ;;  %v8725_v60 = vpop.f32.mrb[171].mxu1 }
 0x334   : > { %10059 = vst [vmem:[#allocation41_spill] sm:$0xff] %v8702_v56  ;;  %v4167_v20 = vadd.f32 %v4166_v46, %v4165_v45  ;;  %v1812_v21 = vmul.f32 0.5, %v8700_v14  ;;  %v1821_v41 = vmul.f32 0.5, %v8707_v24  ;;  %v8721_v17 = vadd.f32 %v10065_v53, %v8568_v39  ;;  %10067 = vst [vmem:[#allocation22_spill] sm:$0xff] %v8725_v60  ;;  %v10069_v45 = vld [vmem:[#allocation15_spill] sm:$0xff]  ;;  %v8765_v40 = vpop.f32.mrb[172].mxu1 }
 0x335   : > { %10063 = vst [vmem:[#allocation44_spill] sm:$0xff] %v8713_v30  ;;  %v8716_v48 = vmul.f32 0.00390625, %v4155_v15  ;;  %5240 = vtanh.f32 %v1810_v42  ;;  %v2566_v16 = vmul.f32 0.5, %v5233_v44  ;;  %v8731_v28 = vadd.f32 %v10069_v45, %v8576_v5  ;;  %10075 = vst [vmem:[#allocation23_spill] sm:$0xff] %v8765_v40 }
 0x336   : > { %v8727_v55 = vmul.f32 0.00390625, %v4167_v20  ;;  %5242 = vtanh.f32 %v1812_v21  ;;  %v1823_v31 = vmul.f32 0.5, %v8721_v17  ;;  %v8738_v61 = vadd.f32 %v10070_v22, %v8580_v29  ;;  %v10071_v21 = vld [vmem:[#allocation18_spill] sm:$0xff] }
 0x337   : > { %10064 = vst [vmem:[#allocation45_spill] sm:$0xff] %v8716_v48  ;;  %5244 = vtanh.f32 %v1821_v41  ;;  %v5235_v46 = vpop.eup %5234  ;;  %v2950_v63 = vadd.f32 0.5, %v2566_v16  ;;  %v1822_v15 = vmul.f32 0.5, %v8731_v28  ;;  %v8745_v42 = vadd.f32 %v8129_v19, %v8558_v33  ;;  %v10072_v16 = vld [vmem:[#allocation46_spill] sm:$0xff] }
 0x338   : > { %10068 = vst [vmem:[#allocation76_spill] sm:$0xff] %v8727_v55  ;;  %v2568_v8 = vmul.f32 0.5, %v5235_v46  ;;  %5246 = vtanh.f32 %v1823_v31  ;;  %v1824_v20 = vmul.f32 0.5, %v8738_v61  ;;  %v8750_v44 = vadd.f32 %v10071_v21, %v8568_v39  ;;  %v10073_v46 = vld [vmem:[#allocation47_spill] sm:$0xff]  ;;  %v8763_v21 = vpop.f32.mrb[172].mxu0  ;;  %v10078_v55 = vld [vmem:[#allocation48_spill] sm:$0xff] }
 0x339   : > { %v3334_v41 = vmul.f32 %v2950_v63, %v8635_v51  ;;  %5248 = vtanh.f32 %v1822_v15  ;;  %v1833_v53 = vmul.f32 0.5, %v8745_v42  ;;  %v8756_v45 = vadd.f32 %v10072_v16, %v8576_v5  ;;  %10074 = vst [vmem:[#allocation15_spill] sm:$0xff] %v8763_v21  ;;  %v8769_v16 = vpop.f32.mrb[173].mxu0 }
 0x33a   : > { %v5237_v22 = vpop.eup %5236  ;;  %v2952_v19 = vadd.f32 0.5, %v2568_v8  ;;  %5250 = vtanh.f32 %v1824_v20  ;;  %v1835_v31 = vmul.f32 0.5, %v8750_v44  ;;  %v8761_v52 = vadd.f32 %v10073_v46, %v8580_v29  ;;  %10076 = vst [vmem:[#allocation18_spill] sm:$0xff] %v8769_v16  ;;  %v8771_v8 = vpop.f32.mrb[173].mxu1 }
 0x33b   : > { %v3988_v51 = vadd.f32 %v3334_v41, %v8666_v59  ;;  %v2577_v63 = vmul.f32 0.5, %v5237_v22  ;;  %5252 = vtanh.f32 %v1833_v53  ;;  %v1834_v15 = vmul.f32 0.5, %v8756_v45  ;;  %10077 = vst [vmem:[#allocation46_spill] sm:$0xff] %v8771_v8  ;;  %v8779_v48 = vpop.f32.mrb[174].mxu0  ;;  %v8781_v59 = vpop.f32.mrb[174].mxu1  ;;  %v10081_v22 = vld [vmem:[#allocation49_spill] sm:$0xff] }
 0x33c   : > { %v3336_v20 = vmul.f32 %v2952_v19, %v8654_v57  ;;  %5254 = vtanh.f32 %v1835_v31  ;;  %v1836_v46 = vmul.f32 0.5, %v8761_v52  ;;  %v8777_v30 = vadd.f32 %v10078_v55, %v8558_v33  ;;  %10079 = vst [vmem:[#allocation47_spill] sm:$0xff] %v8779_v48  ;;  %10080 = vst [vmem:[#allocation48_spill] sm:$0xff] %v8781_v59  ;;  %v10082_v57 = vld [vmem:[#allocation50_spill] sm:$0xff]  ;;  %v8791_v31 = vpop.f32.mrb[175].mxu0  ;;  %v8793_v8 = vpop.f32.mrb[175].mxu1 }
 0x33d   : > { %v5239_v41 = vpop.eup %5238  ;;  %v2961_v53 = vadd.f32 0.5, %v2577_v63  ;;  %5256 = vtanh.f32 %v1834_v15  ;;  %v8785_v56 = vadd.f32 %v10081_v22, %v8568_v39  ;;  %v8789_v19 = vadd.f32 %v10082_v57, %v8576_v5  ;;  %10083 = vst [vmem:[#allocation49_spill] sm:$0xff] %v8791_v31  ;;  %10084 = vst [vmem:[#allocation50_spill] sm:$0xff] %v8793_v8  ;;  %v10085_v8 = vld [vmem:[#allocation51_spill] sm:$0xff]  ;;  %v8807_v27 = vpop.f32.mrb[176].mxu0 }
 0x33e   : > { %v4050_v48 = vadd.f32 %v3336_v20, %v8669_v43  ;;  %v2579_v16 = vmul.f32 0.5, %v5239_v41  ;;  %5258 = vtanh.f32 %v1836_v46  ;;  %v1845_v63 = vmul.f32 0.5, %v8777_v30  ;;  %10086 = vst [vmem:[#allocation51_spill] sm:$0xff] %v8807_v27 }
 0x33f   : > { %v5241_v55 = vpop.eup %5240  ;;  %v3345_v59 = vmul.f32 %v2961_v53, %v8677_v6  ;;  %v1847_v40 = vmul.f32 0.5, %v8785_v56  ;;  %v1846_v57 = vmul.f32 0.5, %v8789_v19  ;;  %v8802_v32 = vadd.f32 %v10085_v8, %v8580_v29 }
 0x340   : > { %v5243_v15 = vpop.eup %5242  ;;  %v2578_v22 = vmul.f32 0.5, %v5241_v55  ;;  %v2963_v60 = vadd.f32 0.5, %v2579_v16  ;;  %5260 = vtanh.f32 %v1845_v63  ;;  %v8809_v16 = vpop.f32.mrb[176].mxu1 }
 0x341   : > { %v5245_v21 = vpop.eup %5244  ;;  %v2580_v31 = vmul.f32 0.5, %v5243_v15  ;;  %v3958_v43 = vadd.f32 %v8680_v23, %v3345_v59  ;;  %5262 = vtanh.f32 %v1847_v40  ;;  %v1848_v55 = vmul.f32 0.5, %v8802_v32  ;;  %10087 = vst [vmem:[#allocation77_spill] sm:$0xff] %v8809_v16  ;;  %v8816_v40 = vpop.f32.mrb[177].mxu0 }
 0x342   : > { %v2962_v20 = vadd.f32 0.5, %v2578_v22  ;;  %v2589_v46 = vmul.f32 0.5, %v5245_v21  ;;  %v5247_v41 = vpop.eup %5246  ;;  %v3347_v6 = vmul.f32 %v2963_v60, %v8689_v25  ;;  %5264 = vtanh.f32 %v1846_v57  ;;  %10088 = vst [vmem:[#allocation78_spill] sm:$0xff] %v8816_v40  ;;  %v8818_v25 = vpop.f32.mrb[177].mxu1 }
 0x343   : > { %v2964_v53 = vadd.f32 0.5, %v2580_v31  ;;  %v5249_v63 = vpop.eup %5248  ;;  %v2591_v26 = vmul.f32 0.5, %v5247_v41  ;;  %v8814_v23 = vadd.f32 %v8157_v50, %v8558_v33  ;;  %10089 = vst [vmem:[#allocation79_spill] sm:$0xff] %v8818_v25  ;;  %5266 = vtanh.f32 %v1848_v55 }
 0x344   : > { %v3346_v8 = vmul.f32 %v2962_v20, %v8693_v12  ;;  %v2973_v15 = vadd.f32 0.5, %v2589_v46  ;;  %v5251_v60 = vpop.eup %5250  ;;  %v4020_v21 = vadd.f32 %v8685_v37, %v3347_v6  ;;  %v2590_v31 = vmul.f32 0.5, %v5249_v63 }
 0x345   : > { %v3348_v59 = vmul.f32 %v2964_v53, %v8700_v14  ;;  %v5253_v22 = vpop.eup %5252  ;;  %v2975_v20 = vadd.f32 0.5, %v2591_v26  ;;  %v2592_v46 = vmul.f32 0.5, %v5251_v60  ;;  %v1857_v40 = vmul.f32 0.5, %v8814_v23 }
 0x346   : > { %v3989_v57 = vadd.f32 %v3988_v51, %v3346_v8  ;;  %v3357_v12 = vmul.f32 %v2973_v15, %v8707_v24  ;;  %v5255_v41 = vpop.eup %5254  ;;  %v2974_v16 = vadd.f32 0.5, %v2590_v31  ;;  %v2601_v27 = vmul.f32 0.5, %v5253_v22 }
 0x347   : > { %v4051_v50 = vadd.f32 %v4050_v48, %v3348_v59  ;;  %v5257_v25 = vpop.eup %5256  ;;  %v3359_v37 = vmul.f32 %v2975_v20, %v8721_v17  ;;  %v2976_v6 = vadd.f32 0.5, %v2592_v46  ;;  %v2603_v14 = vmul.f32 0.5, %v5255_v41 }
 0x348   : > { %v3959_v54 = vadd.f32 %v3958_v43, %v3357_v12  ;;  %v5259_v53 = vpop.eup %5258  ;;  %v3358_v55 = vmul.f32 %v2974_v16, %v8731_v28  ;;  %v2985_v51 = vadd.f32 0.5, %v2601_v27  ;;  %v2602_v63 = vmul.f32 0.5, %v5257_v25 }
 0x349   : > { %5268 = vtanh.f32 %v1857_v40  ;;  %v4021_v24 = vadd.f32 %v4020_v21, %v3359_v37  ;;  %v3360_v26 = vmul.f32 %v2976_v6, %v8738_v61  ;;  %v2987_v48 = vadd.f32 0.5, %v2603_v14  ;;  %v8841_v14 = vpop.f32.mrb[178].mxu0 }
 0x34a   : > { %v2604_v8 = vmul.f32 0.5, %v5259_v53  ;;  %v5261_v15 = vpop.eup %5260  ;;  %v3990_v60 = vadd.f32 %v3989_v57, %v3358_v55  ;;  %v3369_v59 = vmul.f32 %v2985_v51, %v8745_v42  ;;  %v2986_v43 = vadd.f32 0.5, %v2602_v63  ;;  %10090 = vst [vmem:[#allocation80_spill] sm:$0xff] %v8841_v14  ;;  %v8843_v53 = vpop.f32.mrb[178].mxu1  ;;  %v10092_v51 = vld [vmem:[#allocation52_spill] sm:$0xff] }
 0x34b   : > { %v8830_v17 = vadd.f32 %v8159_v3, %v8568_v39  ;;  %v5263_v31 = vpop.eup %5262  ;;  %v4052_v22 = vadd.f32 %v4051_v50, %v3360_v26  ;;  %v3371_v27 = vmul.f32 %v2987_v48, %v8750_v44  ;;  %v2613_v16 = vmul.f32 0.5, %v5261_v15  ;;  %10091 = vst [vmem:[#allocation81_spill] sm:$0xff] %v8843_v53 }
 0x34c   : > { %v2988_v28 = vadd.f32 0.5, %v2604_v8  ;;  %v5265_v40 = vpop.eup %5264  ;;  %v3960_v25 = vadd.f32 %v3959_v54, %v3369_v59  ;;  %v3370_v61 = vmul.f32 %v2986_v43, %v8756_v45  ;;  %v2615_v21 = vmul.f32 0.5, %v5263_v31  ;;  %v10094_v8 = vld [vmem:[#allocation55_spill] sm:$0xff] }
 0x34d   : > { %v1859_v57 = vmul.f32 0.5, %v8830_v17  ;;  %v4022_v12 = vadd.f32 %v4021_v24, %v3371_v27  ;;  %v2997_v20 = vadd.f32 0.5, %v2613_v16  ;;  %v2614_v46 = vmul.f32 0.5, %v5265_v40  ;;  %v5267_v3 = vpop.eup %5266  ;;  %v8870_v16 = vpop.f32.mrb[179].mxu1  ;;  %v10097_v40 = vld [vmem:[#allocation24_spill] sm:$0xff] }
 0x34e   : > { %v3372_v42 = vmul.f32 %v2988_v28, %v8761_v52  ;;  %v3991_v41 = vadd.f32 %v3990_v60, %v3370_v61  ;;  %v2999_v37 = vadd.f32 0.5, %v2615_v21  ;;  %v8838_v44 = vadd.f32 %v8192_v10, %v8576_v5  ;;  %v10093_v10 = vld [vmem:[#allocation54_spill] sm:$0xff]  ;;  %v8868_v28 = vpop.f32.mrb[179].mxu0  ;;  %v10098_v61 = vld [vmem:[#allocation67_spill] sm:$0xff] }
 0x34f   : > { %5270 = vtanh.f32 %v1859_v57  ;;  %v3381_v54 = vmul.f32 %v2997_v20, %v8777_v30  ;;  %v2998_v45 = vadd.f32 0.5, %v2614_v46  ;;  %v2616_v6 = vmul.f32 0.5, %v5267_v3  ;;  %10095 = vst [vmem:[#allocation52_spill] sm:$0xff] %v8868_v28  ;;  %10096 = vst [vmem:[#allocation54_spill] sm:$0xff] %v8870_v16  ;;  %v10099_v57 = vld [vmem:[#allocation57_spill] sm:$0xff] }
 0x350   : > { %v4053_v50 = vadd.f32 %v4052_v22, %v3372_v42  ;;  %v3383_v52 = vmul.f32 %v2999_v37, %v8785_v56  ;;  %v1858_v55 = vmul.f32 0.5, %v8838_v44  ;;  %v8849_v63 = vadd.f32 %v10092_v51, %v8580_v29  ;;  %v10100_v20 = vld [vmem:[#allocation69_spill] sm:$0xff] }
 0x351   : > { %v8853_v24 = vadd.f32 %v10093_v10, %v8558_v33  ;;  %v3961_v26 = vadd.f32 %v3960_v25, %v3381_v54  ;;  %v3382_v30 = vmul.f32 %v2998_v45, %v8789_v19  ;;  %v3000_v48 = vadd.f32 0.5, %v2616_v6  ;;  %v10103_v10 = vld [vmem:[#allocation26_spill] sm:$0xff] }
 0x352   : > { %v8858_v15 = vadd.f32 %v10094_v8, %v8568_v39  ;;  %v8860_v56 = vadd.f32 %v4022_v12, %v3383_v52  ;;  %5272 = vtanh.f32 %v1858_v55  ;;  %v1860_v59 = vmul.f32 0.5, %v8849_v63  ;;  %v10102_v52 = vld [vmem:[#allocation14_spill] sm:$0xff] }
 0x353   : > { %v5269_v60 = vpop.eup %5268  ;;  %v1869_v43 = vmul.f32 0.5, %v8853_v24  ;;  %v8864_v31 = vadd.f32 %v3991_v41, %v3382_v30  ;;  %v3384_v22 = vmul.f32 %v3000_v48, %v8802_v32  ;;  %v8874_v25 = vadd.f32 %v10097_v40, %v8576_v5  ;;  %v10104_v48 = vld [vmem:[#allocation16_spill] sm:$0xff] }
 0x354   : > { %v2625_v27 = vmul.f32 0.5, %v5269_v60  ;;  %v1871_v19 = vmul.f32 0.5, %v8858_v15  ;;  %5274 = vtanh.f32 %v1860_v59  ;;  %v8878_v21 = vadd.f32 %v10098_v61, %v8580_v29 }
 0x355   : > { %v8882_v12 = vadd.f32 %v10099_v57, %v8558_v33  ;;  %v8884_v32 = vadd.f32 %v4053_v50, %v3384_v22  ;;  %5276 = vtanh.f32 %v1869_v43  ;;  %v8888_v46 = vadd.f32 %v10100_v20, %v8568_v39  ;;  %v10101_v50 = vld [vmem:[#allocation25_spill] sm:$0xff] }
 0x356   : > { %v3009_v42 = vadd.f32 0.5, %v2625_v27  ;;  %5278 = vtanh.f32 %v1871_v19  ;;  %v1870_v3 = vmul.f32 0.5, %v8874_v25  ;;  %v1872_v41 = vmul.f32 0.5, %v8878_v21  ;;  %v8918_v27 = vpop.f32.mrb[180].mxu0  ;;  %v8920_v19 = vpop.f32.mrb[180].mxu1 }
 0x357   : > { %v1881_v37 = vmul.f32 0.5, %v8882_v12  ;;  %v1883_v45 = vmul.f32 0.5, %v8888_v46  ;;  %v8897_v6 = vadd.f32 %v10101_v50, %v8576_v5  ;;  %v8901_v55 = vadd.f32 %v10102_v52, %v8580_v29  ;;  %10106 = vst [vmem:[#allocation55_spill] sm:$0xff] %v8918_v27  ;;  %10107 = vst [vmem:[#allocation24_spill] sm:$0xff] %v8920_v19  ;;  %v8927_v20 = vpop.f32.mrb[181].mxu1 }
 0x358   : > { %v3393_v54 = vmul.f32 %v3009_v42, %v8814_v23  ;;  %5280 = vtanh.f32 %v1870_v3  ;;  %v8905_v30 = vadd.f32 %v10103_v10, %v8558_v33  ;;  %v8909_v8 = vadd.f32 %v10104_v48, %v8568_v39  ;;  %v10105_v23 = vld [vmem:[#allocation27_spill] sm:$0xff]  ;;  %v8925_v42 = vpop.f32.mrb[181].mxu0  ;;  %10109 = vst [vmem:[#allocation57_spill] sm:$0xff] %v8927_v20  ;;  %v10113_v10 = vld [vmem:[#allocation28_spill] sm:$0xff] }
 0x359   : > { %v5271_v51 = vpop.eup %5270  ;;  %v8913_v60 = vadd.f32 %v10105_v23, %v8576_v5  ;;  %5282 = vtanh.f32 %v1872_v41  ;;  %v1882_v22 = vmul.f32 0.5, %v8897_v6  ;;  %v1884_v40 = vmul.f32 0.5, %v8901_v55  ;;  %10108 = vst [vmem:[#allocation67_spill] sm:$0xff] %v8925_v42  ;;  %v10110_v41 = vld [vmem:[#allocation17_spill] sm:$0xff]  ;;  %v8934_v50 = vpop.f32.mrb[182].mxu0 }
 0x35a   : > { %v8915_v59 = vadd.f32 %v3961_v26, %v3393_v54  ;;  %v2627_v43 = vmul.f32 0.5, %v5271_v51  ;;  %5284 = vtanh.f32 %v1881_v37  ;;  %v1893_v61 = vmul.f32 0.5, %v8905_v30  ;;  %10111 = vst [vmem:[#allocation69_spill] sm:$0xff] %v8934_v50  ;;  %v8936_v37 = vpop.f32.mrb[182].mxu1 }
 0x35b   : > { %v1895_v57 = vmul.f32 0.5, %v8909_v8  ;;  %5286 = vtanh.f32 %v1883_v45  ;;  %v1894_v3 = vmul.f32 0.5, %v8913_v60  ;;  %v8932_v54 = vadd.f32 %v10110_v41, %v8580_v29  ;;  %10112 = vst [vmem:[#allocation25_spill] sm:$0xff] %v8936_v37  ;;  %v10114_v45 = vld [vmem:[#allocation70_spill] sm:$0xff]  ;;  %v8952_v41 = vpop.f32.mrb[183].mxu1 }
 0x35c   : > { %v3011_v26 = vadd.f32 0.5, %v2627_v43  ;;  %v5273_v52 = vpop.eup %5272  ;;  %5288 = vtanh.f32 %v1882_v22  ;;  %v8940_v51 = vadd.f32 %v8305_v62, %v8558_v33  ;;  %v8944_v48 = vadd.f32 %v10113_v10, %v8568_v39  ;;  %v8950_v43 = vpop.f32.mrb[183].mxu0  ;;  %10116 = vst [vmem:[#allocation26_spill] sm:$0xff] %v8952_v41 }
 0x35d   : > { %v8948_v23 = vadd.f32 %v10114_v45, %v8576_v5  ;;  %10115 = vst [vmem:[#allocation14_spill] sm:$0xff] %v8950_v43  ;;  %v2626_v50 = vmul.f32 0.5, %v5273_v52  ;;  %5290 = vtanh.f32 %v1884_v40  ;;  %v1896_v22 = vmul.f32 0.5, %v8932_v54  ;;  %v10117_v40 = vld [vmem:[#allocation30_spill] sm:$0xff] }
 0x35e   : > { %v3395_v37 = vmul.f32 %v3011_v26, %v8830_v17  ;;  %v5275_v62 = vpop.eup %5274  ;;  %5292 = vtanh.f32 %v1893_v61  ;;  %v1905_v20 = vmul.f32 0.5, %v8940_v51  ;;  %v1907_v10 = vmul.f32 0.5, %v8944_v48  ;;  %v10118_v61 = vld [vmem:[#allocation31_spill] sm:$0xff] }
 0x35f   : > { %v1906_v42 = vmul.f32 0.5, %v8948_v23  ;;  %v5277_v45 = vpop.eup %5276  ;;  %v3010_v43 = vadd.f32 0.5, %v2626_v50  ;;  %v2628_v27 = vmul.f32 0.5, %v5275_v62  ;;  %5294 = vtanh.f32 %v1895_v57  ;;  %v8971_v50 = vpop.f32.mrb[184].mxu1 }
 0x360   : > { %v4024_v19 = vadd.f32 %v8860_v56, %v3395_v37  ;;  %v5279_v41 = vpop.eup %5278  ;;  %v2637_v17 = vmul.f32 0.5, %v5277_v45  ;;  %5296 = vtanh.f32 %v1894_v3  ;;  %v8962_v26 = vadd.f32 %v10117_v40, %v8580_v29  ;;  %v8969_v56 = vpop.f32.mrb[184].mxu0  ;;  %10120 = vst [vmem:[#allocation27_spill] sm:$0xff] %v8971_v50 }
 0x361   : > { %v8966_v52 = vadd.f32 %v10118_v61, %v8558_v33  ;;  %v3394_v16 = vmul.f32 %v3010_v43, %v8838_v44  ;;  %v3012_v28 = vadd.f32 0.5, %v2628_v27  ;;  %v2639_v53 = vmul.f32 0.5, %v5279_v41  ;;  %10119 = vst [vmem:[#allocation16_spill] sm:$0xff] %v8969_v56  ;;  %v8977_v45 = vpop.f32.mrb[185].mxu0  ;;  %v8979_v40 = vpop.f32.mrb[185].mxu1 }
 0x362   : > { %5298 = vtanh.f32 %v1896_v22  ;;  %v5281_v57 = vpop.eup %5280  ;;  %v3021_v37 = vadd.f32 0.5, %v2637_v17  ;;  %v1908_v3 = vmul.f32 0.5, %v8962_v26  ;;  %10121 = vst [vmem:[#allocation17_spill] sm:$0xff] %v8977_v45  ;;  %10122 = vst [vmem:[#allocation28_spill] sm:$0xff] %v8979_v40  ;;  %v8983_v61 = vpop.f32.mrb[186].mxu0  ;;  %v10125_v45 = vld [vmem:[#allocation19_spill] sm:$0xff] }
 0x363   : > { %5300 = vtanh.f32 %v1905_v20  ;;  %v8975_v62 = vmul.f32 0.5, %v8966_v52  ;;  %v5283_v44 = vpop.eup %5282  ;;  %v3993_v27 = vadd.f32 %v8864_v31, %v3394_v16  ;;  %v3396_v43 = vmul.f32 %v3012_v28, %v8849_v63  ;;  %10123 = vst [vmem:[#allocation70_spill] sm:$0xff] %v8983_v61  ;;  %v8985_v17 = vpop.f32.mrb[186].mxu1 }
 0x364   : > { %v3023_v41 = vadd.f32 0.5, %v2639_v53  ;;  %v2638_v22 = vmul.f32 0.5, %v5281_v57  ;;  %10124 = vst [vmem:[#allocation30_spill] sm:$0xff] %v8985_v17  ;;  %v5285_v20 = vpop.eup %5284  ;;  %v3405_v50 = vmul.f32 %v3021_v37, %v8853_v24  ;;  %v2640_v56 = vmul.f32 0.5, %v5283_v44  ;;  %v8992_v40 = vpop.f32.mrb[187].mxu0 }
 0x365   : > { %5302 = vtanh.f32 %v1907_v10  ;;  %v8990_v14 = vadd.f32 %v10125_v45, %v8568_v39  ;;  %10126 = vst [vmem:[#allocation31_spill] sm:$0xff] %v8992_v40  ;;  %v5287_v31 = vpop.eup %5286  ;;  %v4055_v63 = vadd.f32 %v8884_v32, %v3396_v43  ;;  %v2649_v16 = vmul.f32 0.5, %v5285_v20 }
 0x366   : > { %v3407_v53 = vmul.f32 %v3023_v41, %v8858_v15  ;;  %v3022_v28 = vadd.f32 0.5, %v2638_v22  ;;  %v5289_v57 = vpop.eup %5288  ;;  %v3963_v17 = vadd.f32 %v8915_v59, %v3405_v50  ;;  %v3024_v61 = vadd.f32 0.5, %v2640_v56 }
 0x367   : > { %v2651_v24 = vmul.f32 0.5, %v5287_v31  ;;  %5304 = vtanh.f32 %v1906_v42  ;;  %v5291_v10 = vpop.eup %5290  ;;  %v3033_v44 = vadd.f32 0.5, %v2649_v16  ;;  %v2650_v11 = vmul.f32 0.5, %v5289_v57 }
 0x368   : > { %v4025_v37 = vadd.f32 %v4024_v19, %v3407_v53  ;;  %v3406_v45 = vmul.f32 %v3022_v28, %v8874_v25  ;;  %v5293_v40 = vpop.eup %5292  ;;  %v3408_v49 = vmul.f32 %v3024_v61, %v8878_v21  ;;  %v2652_v43 = vmul.f32 0.5, %v5291_v10 }
 0x369   : > { %v3035_v32 = vadd.f32 0.5, %v2651_v24  ;;  %5306 = vtanh.f32 %v1908_v3  ;;  %v5295_v15 = vpop.eup %5294  ;;  %v3417_v22 = vmul.f32 %v3033_v44, %v8882_v12  ;;  %v3034_v59 = vadd.f32 0.5, %v2650_v11 }
 0x36a   : > { %v3994_v41 = vadd.f32 %v3993_v27, %v3406_v45  ;;  %v2661_v56 = vmul.f32 0.5, %v5293_v40  ;;  %v5297_v50 = vpop.eup %5296  ;;  %v4056_v42 = vadd.f32 %v4055_v63, %v3408_v49  ;;  %v3036_v20 = vadd.f32 0.5, %v2652_v43 }
 0x36b   : > { %v3419_v19 = vmul.f32 %v3035_v32, %v8888_v46  ;;  %v2663_v25 = vmul.f32 0.5, %v5295_v15  ;;  %v3964_v53 = vadd.f32 %v3963_v17, %v3417_v22  ;;  %v3418_v28 = vmul.f32 %v3034_v59, %v8897_v6  ;;  %v9006_v6 = vpop.f32.mrb[187].mxu1 }
 0x36c   : > { %v5299_v31 = vpop.eup %5298  ;;  %v3045_v21 = vadd.f32 0.5, %v2661_v56  ;;  %v2662_v61 = vmul.f32 0.5, %v5297_v50  ;;  %v3420_v27 = vmul.f32 %v3036_v20, %v8901_v55  ;;  %5308 = vtanh.f32 %v8975_v62 }
 0x36d   : > { %v5301_v16 = vpop.eup %5300  ;;  %v4026_v3 = vadd.f32 %v4025_v37, %v3419_v19  ;;  %v3047_v57 = vadd.f32 0.5, %v2663_v25  ;;  %v2664_v12 = vmul.f32 0.5, %v5299_v31  ;;  %v3995_v11 = vadd.f32 %v3994_v41, %v3418_v28  ;;  %v10127_v41 = vld [vmem:[#allocation71_spill] sm:$0xff]  ;;  %v10128_v19 = vld [vmem:[#allocation32_spill] sm:$0xff] }
 0x36e   : > { %v3429_v40 = vmul.f32 %v3045_v21, %v8905_v30  ;;  %v3046_v49 = vadd.f32 0.5, %v2662_v61  ;;  %v2673_v63 = vmul.f32 0.5, %v5301_v16  ;;  %v4057_v24 = vadd.f32 %v4056_v42, %v3420_v27  ;;  %v10130_v61 = vld [vmem:[#allocation34_spill] sm:$0xff]  ;;  %v9033_v27 = vpop.f32.mrb[188].mxu1 }
 0x36f   : > { %v5303_v46 = vpop.eup %5302  ;;  %v3431_v10 = vmul.f32 %v3047_v57, %v8909_v8  ;;  %v3048_v17 = vadd.f32 0.5, %v2664_v12  ;;  %v1919_v15 = vmul.f32 0.5, %v8990_v14  ;;  %v9013_v22 = vadd.f32 %v10127_v41, %v8576_v5  ;;  %v10134_v41 = vld [vmem:[#allocation60_spill] sm:$0xff] }
 0x370   : > { %v3965_v45 = vadd.f32 %v3964_v53, %v3429_v40  ;;  %v3430_v37 = vmul.f32 %v3046_v49, %v8913_v60  ;;  %v3057_v55 = vadd.f32 0.5, %v2673_v63  ;;  %v2675_v44 = vmul.f32 0.5, %v5303_v46  ;;  %v9044_v63 = vpop.f32.mrb[189].mxu1 }
 0x371   : > { %v5305_v32 = vpop.eup %5304  ;;  %v4027_v43 = vadd.f32 %v4026_v3, %v3431_v10  ;;  %v3432_v30 = vmul.f32 %v3048_v17, %v8932_v54  ;;  %5310 = vtanh.f32 %v1919_v15  ;;  %v1918_v60 = vmul.f32 0.5, %v9013_v22  ;;  %v9031_v3 = vpop.f32.mrb[188].mxu0  ;;  %v10132_v10 = vld [vmem:[#allocation58_spill] sm:$0xff] }
 0x372   : > { %v3996_v8 = vadd.f32 %v3995_v11, %v3430_v37  ;;  %v3441_v62 = vmul.f32 %v3057_v55, %v8940_v51  ;;  %v3059_v59 = vadd.f32 0.5, %v2675_v44  ;;  %v2674_v56 = vmul.f32 0.5, %v5305_v32  ;;  %v10129_v51 = vld [vmem:[#allocation33_spill] sm:$0xff]  ;;  %v10131_v11 = vld [vmem:[#allocation35_spill] sm:$0xff]  ;;  %v9042_v49 = vpop.f32.mrb[189].mxu0 }
 0x373   : > { %v5307_v50 = vpop.eup %5306  ;;  %v4058_v42 = vadd.f32 %v4057_v24, %v3432_v30  ;;  %v9019_v20 = vadd.f32 %v10128_v19, %v8580_v29  ;;  %5312 = vtanh.f32 %v1918_v60  ;;  %v9025_v21 = vadd.f32 %v10129_v51, %v8558_v33  ;;  %v10133_v55 = vld [vmem:[#allocation59_spill] sm:$0xff]  ;;  %v9060_v32 = vpop.f32.mrb[190].mxu0 }
 0x374   : > { %v3966_v54 = vadd.f32 %v3965_v45, %v3441_v62  ;;  %v3443_v25 = vmul.f32 %v3059_v59, %v8944_v48  ;;  %v3058_v31 = vadd.f32 0.5, %v2674_v56  ;;  %v2676_v53 = vmul.f32 0.5, %v5307_v50  ;;  %v9076_v60 = vpop.f32.mrb[191].mxu0 }
 0x375   : > { %v1920_v28 = vmul.f32 0.5, %v9019_v20  ;;  %v9029_v16 = vadd.f32 %v10130_v61, %v8568_v39  ;;  %v9040_v40 = vadd.f32 %v10131_v11, %v8576_v5  ;;  %v1929_v46 = vmul.f32 0.5, %v9025_v21  ;;  %10136 = vst [vmem:[#allocation19_spill] sm:$0xff] %v9076_v60 }
 0x376   : > { %v9035_v57 = vadd.f32 %v4027_v43, %v3443_v25  ;;  %v3442_v48 = vmul.f32 %v3058_v31, %v8948_v23  ;;  %v3060_v12 = vadd.f32 0.5, %v2676_v53  ;;  %v9050_v17 = vadd.f32 %v10132_v10, %v8580_v29  ;;  %v9062_v43 = vpop.f32.mrb[190].mxu1  ;;  %v5309_v30 = vpop.eup %5308  ;;  %v10138_v53 = vld [vmem:[#allocation62_spill] sm:$0xff] }
 0x377   : > { %5314 = vtanh.f32 %v1920_v28  ;;  %v1931_v24 = vmul.f32 0.5, %v9029_v16  ;;  %v1930_v37 = vmul.f32 0.5, %v9040_v40  ;;  %v9058_v44 = vadd.f32 %v10133_v55, %v8558_v33  ;;  %v9078_v19 = vpop.f32.mrb[191].mxu1 }
 0x378   : > { %v9052_v45 = vadd.f32 %v3996_v8, %v3442_v48  ;;  %v3444_v23 = vmul.f32 %v3060_v12, %v8962_v26  ;;  %5316 = vtanh.f32 %v1929_v46  ;;  %v1932_v15 = vmul.f32 0.5, %v9050_v17  ;;  %v10135_v26 = vld [vmem:[#allocation61_spill] sm:$0xff]  ;;  %10137 = vst [vmem:[#allocation71_spill] sm:$0xff] %v9078_v19 }
 0x379   : > { %v9067_v8 = vadd.f32 %v10134_v41, %v8568_v39  ;;  %v9071_v62 = vadd.f32 %v10135_v26, %v8576_v5  ;;  %v2685_v56 = vmul.f32 0.5, %v5309_v30  ;;  %5318 = vtanh.f32 %v1931_v24  ;;  %v10140_v26 = vld [vmem:[#allocation64_spill] sm:$0xff] }
 0x37a   : > { %v9073_v59 = vadd.f32 %v4058_v42, %v3444_v23  ;;  %v1941_v50 = vmul.f32 0.5, %v9058_v44  ;;  %5320 = vtanh.f32 %v1930_v37  ;;  %v9084_v28 = vadd.f32 %v10138_v53, %v8580_v29 }
 0x37b   : > { %v1943_v25 = vmul.f32 0.5, %v9067_v8  ;;  %v1942_v31 = vmul.f32 0.5, %v9071_v62  ;;  %v3069_v51 = vadd.f32 0.5, %v2685_v56  ;;  %5322 = vtanh.f32 %v1932_v15  ;;  %v5311_v48 = vpop.eup %5310 }
 0x37c   : > { %v9088_v42 = vadd.f32 %v8479_v0, %v8558_v33  ;;  %v9092_v61 = vadd.f32 %v8481_v38, %v8568_v39  ;;  %5324 = vtanh.f32 %v1941_v50  ;;  %v1944_v12 = vmul.f32 0.5, %v9084_v28 }
 0x37d   : > { %v9097_v11 = vadd.f32 %v8485_v4, %v8576_v5  ;;  %v9101_v46 = vadd.f32 %v8487_v47, %v8580_v29  ;;  %v3453_v24 = vmul.f32 %v3069_v51, %v8966_v52  ;;  %v2687_v0 = vmul.f32 0.5, %v5311_v48  ;;  %v5313_v38 = vpop.eup %5312  ;;  %v10139_v52 = vld [vmem:[#allocation63_spill] sm:$0xff] }
 0x37e   : > { %5326 = vtanh.f32 %v1943_v25  ;;  %v1953_v10 = vmul.f32 0.5, %v9088_v42  ;;  %v1955_v23 = vmul.f32 0.5, %v9092_v61  ;;  %v2686_v15 = vmul.f32 0.5, %v5313_v38 }
 0x37f   : > { %5328 = vtanh.f32 %v1942_v31  ;;  %v1954_v37 = vmul.f32 0.5, %v9097_v11  ;;  %v1956_v55 = vmul.f32 0.5, %v9101_v46  ;;  %v3967_v4 = vadd.f32 %v3966_v54, %v3453_v24 }
 0x380   : > { %v3071_v30 = vadd.f32 0.5, %v2687_v0  ;;  %5330 = vtanh.f32 %v1944_v12  ;;  %v9110_v41 = vadd.f32 %v10139_v52, %v8558_v33  ;;  %v9114_v56 = vadd.f32 %v10140_v26, %v8568_v39 }
 0x381   : > { %v5315_v47 = vpop.eup %5314  ;;  %5332 = vtanh.f32 %v1953_v10  ;;  %v9118_v50 = vadd.f32 %v8498_v35, %v8576_v5  ;;  %v3070_v54 = vadd.f32 0.5, %v2686_v15 }
 0x382   : > { %v3455_v25 = vmul.f32 %v3071_v30, %v8990_v14  ;;  %v2688_v31 = vmul.f32 0.5, %v5315_v47  ;;  %5334 = vtanh.f32 %v1955_v23  ;;  %v5317_v53 = vpop.eup %5316  ;;  %v1965_v51 = vmul.f32 0.5, %v9110_v41 }
 0x383   : > { %5336 = vtanh.f32 %v1954_v37  ;;  %v1967_v48 = vmul.f32 0.5, %v9114_v56  ;;  %v1966_v12 = vmul.f32 0.5, %v9118_v50  ;;  %v5319_v24 = vpop.eup %5318  ;;  %v3454_v10 = vmul.f32 %v3070_v54, %v9013_v22 }
 0x384   : > { %v4029_v0 = vadd.f32 %v9035_v57, %v3455_v25  ;;  %v3072_v35 = vadd.f32 0.5, %v2688_v31  ;;  %v2697_v38 = vmul.f32 0.5, %v5317_v53  ;;  %v5321_v52 = vpop.eup %5320  ;;  %v2699_v14 = vmul.f32 0.5, %v5319_v24 }
 0x385   : > { %5338 = vtanh.f32 %v1956_v55  ;;  %v9128_v23 = vadd.f32 %v8506_v18, %v8580_v29  ;;  %v9132_v37 = vadd.f32 %v8560_v9, %v8558_v33  ;;  %v5323_v30 = vpop.eup %5322  ;;  %v3998_v15 = vadd.f32 %v9052_v45, %v3454_v10 }
 0x386   : > { %v3456_v57 = vmul.f32 %v3072_v35, %v9019_v20  ;;  %v3081_v47 = vadd.f32 0.5, %v2697_v38  ;;  %v2698_v22 = vmul.f32 0.5, %v5321_v52  ;;  %v5325_v26 = vpop.eup %5324  ;;  %v3083_v25 = vadd.f32 0.5, %v2699_v14 }
 0x387   : > { %v2700_v54 = vmul.f32 0.5, %v5323_v30  ;;  %5340 = vtanh.f32 %v1965_v51  ;;  %v1968_v55 = vmul.f32 0.5, %v9128_v23  ;;  %v2709_v24 = vmul.f32 0.5, %v5325_v26 }
 0x388   : > { %v5327_v31 = vpop.eup %5326  ;;  %v4060_v18 = vadd.f32 %v9073_v59, %v3456_v57  ;;  %v3465_v53 = vmul.f32 %v3081_v47, %v9025_v21  ;;  %v3082_v9 = vadd.f32 0.5, %v2698_v22  ;;  %v3467_v45 = vmul.f32 %v3083_v25, %v9029_v16 }
 0x389   : > { %v5329_v19 = vpop.eup %5328  ;;  %v3084_v10 = vadd.f32 0.5, %v2700_v54  ;;  %v2711_v20 = vmul.f32 0.5, %v5327_v31  ;;  %5342 = vtanh.f32 %v1967_v48  ;;  %v3093_v51 = vadd.f32 0.5, %v2709_v24 }
 0x38a   : > { %v5331_v35 = vpop.eup %5330  ;;  %v3968_v38 = vadd.f32 %v3967_v4, %v3465_v53  ;;  %v3466_v52 = vmul.f32 %v3082_v9, %v9040_v40  ;;  %v2710_v14 = vmul.f32 0.5, %v5329_v19  ;;  %v4030_v60 = vadd.f32 %v4029_v0, %v3467_v45 }
 0x38b   : > { %v5333_v30 = vpop.eup %5332  ;;  %v3468_v59 = vmul.f32 %v3084_v10, %v9050_v17  ;;  %v3095_v57 = vadd.f32 0.5, %v2711_v20  ;;  %v2712_v21 = vmul.f32 0.5, %v5331_v35  ;;  %v3477_v26 = vmul.f32 %v3093_v51, %v9058_v44 }
 0x38c   : > { %v5335_v47 = vpop.eup %5334  ;;  %v3999_v22 = vadd.f32 %v3998_v15, %v3466_v52  ;;  %v3094_v16 = vadd.f32 0.5, %v2710_v14  ;;  %v2721_v25 = vmul.f32 0.5, %v5333_v30  ;;  %5344 = vtanh.f32 %v1966_v12 }
 0x38d   : > { %v5337_v54 = vpop.eup %5336  ;;  %v4061_v48 = vadd.f32 %v4060_v18, %v3468_v59  ;;  %v3479_v4 = vmul.f32 %v3095_v57, %v9067_v8  ;;  %v3096_v31 = vadd.f32 0.5, %v2712_v21  ;;  %v2723_v40 = vmul.f32 0.5, %v5335_v47 }
 0x38e   : > { %v3969_v53 = vadd.f32 %v3968_v38, %v3477_v26  ;;  %v3478_v19 = vmul.f32 %v3094_v16, %v9071_v62  ;;  %v3105_v0 = vadd.f32 0.5, %v2721_v25  ;;  %v2722_v9 = vmul.f32 0.5, %v5337_v54 }
 0x38f   : > { %v5339_v17 = vpop.eup %5338  ;;  %v4031_v24 = vadd.f32 %v4030_v60, %v3479_v4  ;;  %v3480_v45 = vmul.f32 %v3096_v31, %v9084_v28  ;;  %v3107_v15 = vadd.f32 0.5, %v2723_v40  ;;  %5346 = vtanh.f32 %v1968_v55  ;;  %v10141_v4 = vld [vmem:[#allocation65_spill] sm:$0xff]  ;;  %v10142_v40 = vld [vmem:[#allocation36_spill] sm:$0xff] }
 0x390   : > { %v4000_v44 = vadd.f32 %v3999_v22, %v3478_v19  ;;  %v3489_v10 = vmul.f32 %v3105_v0, %v9088_v42  ;;  %v3106_v20 = vadd.f32 0.5, %v2722_v9  ;;  %v2724_v18 = vmul.f32 0.5, %v5339_v17 }
 0x391   : > { %v5341_v35 = vpop.eup %5340  ;;  %v4062_v8 = vadd.f32 %v4061_v48, %v3480_v45  ;;  %v3491_v52 = vmul.f32 %v3107_v15, %v9092_v61  ;;  %v1977_v62 = vmul.f32 0.5, %v9132_v37  ;;  %v9152_v42 = vadd.f32 %v8562_v36, %v8568_v39  ;;  %v10144_v45 = vld [vmem:[#allocation20_spill] sm:$0xff] }
 0x392   : > { %v3970_v38 = vadd.f32 %v3969_v53, %v3489_v10  ;;  %v3490_v51 = vmul.f32 %v3106_v20, %v9097_v11  ;;  %v3108_v60 = vadd.f32 0.5, %v2724_v18  ;;  %v2733_v14 = vmul.f32 0.5, %v5341_v35 }
 0x393   : > { %v5343_v28 = vpop.eup %5342  ;;  %v4032_v30 = vadd.f32 %v4031_v24, %v3491_v52  ;;  %5348 = vtanh.f32 %v1977_v62  ;;  %v9156_v12 = vadd.f32 %v8582_v7, %v8576_v5  ;;  %v1979_v11 = vmul.f32 0.5, %v9152_v42  ;;  %v10146_v62 = vld [vmem:[#allocation38_spill] sm:$0xff] }
 0x394   : > { %v4001_v61 = vadd.f32 %v4000_v44, %v3490_v51  ;;  %v3492_v55 = vmul.f32 %v3108_v60, %v9101_v46  ;;  %v3117_v59 = vadd.f32 0.5, %v2733_v14  ;;  %v2735_v57 = vmul.f32 0.5, %v5343_v28 }
 0x395   : > { %v1978_v21 = vmul.f32 0.5, %v9156_v12  ;;  %v9163_v47 = vadd.f32 %v8584_v58, %v8580_v29  ;;  %v9167_v36 = vadd.f32 %v8603_v13, %v8558_v33  ;;  %v9172_v46 = vadd.f32 %v8605_v1, %v8568_v39 }
 0x396   : > { %v4063_v22 = vadd.f32 %v4062_v8, %v3492_v55  ;;  %v3501_v7 = vmul.f32 %v3117_v59, %v9110_v41  ;;  %v3119_v26 = vadd.f32 0.5, %v2735_v57  ;;  %5350 = vtanh.f32 %v1979_v11  ;;  %v5345_v48 = vpop.eup %5344  ;;  %v10145_v8 = vld [vmem:[#allocation21_spill] sm:$0xff]  ;;  %v10147_v55 = vld [vmem:[#allocation39_spill] sm:$0xff] }
 0x397   : > { %v1980_v16 = vmul.f32 0.5, %v9163_v47  ;;  %v1989_v25 = vmul.f32 0.5, %v9167_v36  ;;  %v9178_v58 = vadd.f32 %v8613_v34, %v8576_v5  ;;  %5352 = vtanh.f32 %v1978_v21 }
 0x398   : > { %v3971_v54 = vadd.f32 %v3970_v38, %v3501_v7  ;;  %v3503_v13 = vmul.f32 %v3119_v26, %v9114_v56  ;;  %v1991_v41 = vmul.f32 0.5, %v9172_v46  ;;  %v9185_v31 = vadd.f32 %v10141_v4, %v8580_v29  ;;  %v10143_v56 = vld [vmem:[#allocation37_spill] sm:$0xff] }
 0x399   : > { %5354 = vtanh.f32 %v1980_v16  ;;  %v1990_v1 = vmul.f32 0.5, %v9178_v58  ;;  %v9189_v53 = vadd.f32 %v10142_v40, %v8558_v33  ;;  %v2734_v19 = vmul.f32 0.5, %v5345_v48  ;;  %v5347_v9 = vpop.eup %5346  ;;  %v10148_v26 = vld [vmem:[#allocation73_spill] sm:$0xff] }
 0x39a   : > { %v9191_v34 = vadd.f32 %v4032_v30, %v3503_v13  ;;  %5356 = vtanh.f32 %v1989_v25  ;;  %v9195_v0 = vadd.f32 %v10143_v56, %v8568_v39  ;;  %v1992_v17 = vmul.f32 0.5, %v9185_v31  ;;  %v10149_v25 = vld [vmem:[#allocation74_spill] sm:$0xff] }
 0x39b   : > { %5358 = vtanh.f32 %v1991_v41  ;;  %v2001_v24 = vmul.f32 0.5, %v9189_v53  ;;  %v9201_v15 = vadd.f32 %v10144_v45, %v8576_v5  ;;  %v3118_v44 = vadd.f32 0.5, %v2734_v19 }
 0x39c   : > { %v2736_v10 = vmul.f32 0.5, %v5347_v9  ;;  %5360 = vtanh.f32 %v1990_v1  ;;  %v2003_v20 = vmul.f32 0.5, %v9195_v0  ;;  %v9207_v52 = vadd.f32 %v10145_v8, %v8580_v29 }
 0x39d   : > { %v5349_v18 = vpop.eup %5348  ;;  %5362 = vtanh.f32 %v1992_v17  ;;  %v2002_v35 = vmul.f32 0.5, %v9201_v15  ;;  %v9211_v38 = vadd.f32 %v10146_v62, %v8558_v33  ;;  %v3502_v51 = vmul.f32 %v3118_v44, %v9118_v50 }
 0x39e   : > { %v3120_v60 = vadd.f32 0.5, %v2736_v10  ;;  %v2745_v14 = vmul.f32 0.5, %v5349_v18  ;;  %5364 = vtanh.f32 %v2001_v24  ;;  %v2004_v28 = vmul.f32 0.5, %v9207_v52  ;;  %v10150_v10 = vld [vmem:[#allocation40_spill] sm:$0xff] }
 0x39f   : > { %5366 = vtanh.f32 %v2003_v20  ;;  %v2013_v30 = vmul.f32 0.5, %v9211_v38  ;;  %v9218_v59 = vadd.f32 %v10147_v55, %v8568_v39  ;;  %v4002_v57 = vadd.f32 %v4001_v61, %v3502_v51 }
 0x3a0   : > { %v3504_v11 = vmul.f32 %v3120_v60, %v9128_v23  ;;  %v3129_v21 = vadd.f32 0.5, %v2745_v14  ;;  %5368 = vtanh.f32 %v2002_v35  ;;  %v5351_v7 = vpop.eup %5350  ;;  %v9224_v16 = vadd.f32 %v10148_v26, %v8576_v5 }
 0x3a1   : > { %5370 = vtanh.f32 %v2004_v28  ;;  %v2015_v50 = vmul.f32 0.5, %v9218_v59  ;;  %v9228_v13 = vadd.f32 %v10149_v25, %v8580_v29  ;;  %v5353_v41 = vpop.eup %5352  ;;  %v2747_v1 = vmul.f32 0.5, %v5351_v7 }
 0x3a2   : > { %v4064_v48 = vadd.f32 %v4063_v22, %v3504_v11  ;;  %v3513_v61 = vmul.f32 %v3129_v21, %v9132_v37  ;;  %5372 = vtanh.f32 %v2013_v30  ;;  %v2746_v4 = vmul.f32 0.5, %v5353_v41 }
 0x3a3   : > { %v5355_v23 = vpop.eup %5354  ;;  %5374 = vtanh.f32 %v2015_v50  ;;  %v2014_v40 = vmul.f32 0.5, %v9224_v16  ;;  %v2016_v19 = vmul.f32 0.5, %v9228_v13  ;;  %v3131_v17 = vadd.f32 0.5, %v2747_v1 }
 0x3a4   : > { %v5357_v56 = vpop.eup %5356  ;;  %v3972_v9 = vadd.f32 %v3971_v54, %v3513_v61  ;;  %v2748_v24 = vmul.f32 0.5, %v5355_v23  ;;  %v9235_v45 = vadd.f32 %v8661_v2, %v8558_v33  ;;  %v3130_v44 = vadd.f32 0.5, %v2746_v4 }
 0x3a5   : > { %v5359_v22 = vpop.eup %5358  ;;  %v2757_v37 = vmul.f32 0.5, %v5357_v56  ;;  %5376 = vtanh.f32 %v2014_v40  ;;  %v9239_v20 = vadd.f32 %v10150_v10, %v8568_v39  ;;  %v3515_v35 = vmul.f32 %v3131_v17, %v9152_v42 }
 0x3a6   : > { %v5361_v18 = vpop.eup %5360  ;;  %v3132_v8 = vadd.f32 0.5, %v2748_v24  ;;  %v2759_v62 = vmul.f32 0.5, %v5359_v22  ;;  %5378 = vtanh.f32 %v2016_v19  ;;  %v3514_v51 = vmul.f32 %v3130_v44, %v9156_v12 }
 0x3a7   : > { %v5363_v54 = vpop.eup %5362  ;;  %v3141_v60 = vadd.f32 0.5, %v2757_v37  ;;  %v2758_v2 = vmul.f32 0.5, %v5361_v18  ;;  %v2025_v14 = vmul.f32 0.5, %v9235_v45  ;;  %v4034_v30 = vadd.f32 %v9191_v34, %v3515_v35 }
 0x3a8   : > { %v5365_v28 = vpop.eup %5364  ;;  %v3516_v55 = vmul.f32 %v3132_v8, %v9163_v47  ;;  %v3143_v11 = vadd.f32 0.5, %v2759_v62  ;;  %v2760_v21 = vmul.f32 0.5, %v5363_v54  ;;  %v4003_v50 = vadd.f32 %v4002_v57, %v3514_v51 }
 0x3a9   : > { %v5367_v7 = vpop.eup %5366  ;;  %v3525_v42 = vmul.f32 %v3141_v60, %v9167_v36  ;;  %v3142_v26 = vadd.f32 0.5, %v2758_v2  ;;  %v2769_v25 = vmul.f32 0.5, %v5365_v28  ;;  %5380 = vtanh.f32 %v2025_v14 }
 0x3aa   : > { %v5369_v41 = vpop.eup %5368  ;;  %v4065_v61 = vadd.f32 %v4064_v48, %v3516_v55  ;;  %v3527_v12 = vmul.f32 %v3143_v11, %v9172_v46  ;;  %v3144_v1 = vadd.f32 0.5, %v2760_v21  ;;  %v2771_v23 = vmul.f32 0.5, %v5367_v7 }
 0x3ab   : > { %v5371_v4 = vpop.eup %5370  ;;  %v3973_v40 = vadd.f32 %v3972_v9, %v3525_v42  ;;  %v3526_v34 = vmul.f32 %v3142_v26, %v9178_v58  ;;  %v3153_v19 = vadd.f32 0.5, %v2769_v25  ;;  %v2770_v47 = vmul.f32 0.5, %v5369_v41 }
 0x3ac   : > { %v5373_v56 = vpop.eup %5372  ;;  %v4035_v17 = vadd.f32 %v4034_v30, %v3527_v12  ;;  %v3528_v57 = vmul.f32 %v3144_v1, %v9185_v31  ;;  %v3155_v24 = vadd.f32 0.5, %v2771_v23  ;;  %v2772_v36 = vmul.f32 0.5, %v5371_v4  ;;  %v10154_v23 = vld [vmem:[#allocation43_spill] sm:$0xff] }
 0x3ad   : > { %v5375_v22 = vpop.eup %5374  ;;  %v4004_v44 = vadd.f32 %v4003_v50, %v3526_v34  ;;  %v3537_v48 = vmul.f32 %v3153_v19, %v9189_v53  ;;  %v3154_v37 = vadd.f32 0.5, %v2770_v47  ;;  %v2781_v46 = vmul.f32 0.5, %v5373_v56  ;;  %v10156_v47 = vld [vmem:[#allocation22_spill] sm:$0xff] }
 0x3ae   : > { %v4066_v10 = vadd.f32 %v4065_v61, %v3528_v57  ;;  %v3539_v18 = vmul.f32 %v3155_v24, %v9195_v0  ;;  %v3156_v9 = vadd.f32 0.5, %v2772_v36  ;;  %v2783_v35 = vmul.f32 0.5, %v5375_v22  ;;  %v10157_v36 = vld [vmem:[#allocation15_spill] sm:$0xff] }
 0x3af   : > { %v5377_v58 = vpop.eup %5376  ;;  %v3974_v8 = vadd.f32 %v3973_v40, %v3537_v48  ;;  %v3538_v62 = vmul.f32 %v3154_v37, %v9201_v15  ;;  %v3165_v54 = vadd.f32 0.5, %v2781_v46  ;;  %v2027_v0 = vmul.f32 0.5, %v9239_v20  ;;  %v10151_v15 = vld [vmem:[#allocation72_spill] sm:$0xff]  ;;  %v10155_v40 = vld [vmem:[#allocation29_spill] sm:$0xff]  ;;  %v10159_v46 = vld [vmem:[#allocation18_spill] sm:$0xff] }
 0x3b0   : > { %v5379_v31 = vpop.eup %5378  ;;  %v4036_v51 = vadd.f32 %v4035_v17, %v3539_v18  ;;  %v3540_v60 = vmul.f32 %v3156_v9, %v9207_v52  ;;  %v3167_v2 = vadd.f32 0.5, %v2783_v35  ;;  %v2782_v28 = vmul.f32 0.5, %v5377_v58  ;;  %v10152_v52 = vld [vmem:[#allocation75_spill] sm:$0xff]  ;;  %v10160_v18 = vld [vmem:[#allocation46_spill] sm:$0xff] }
 0x3b1   : > { %v4005_v53 = vadd.f32 %v4004_v44, %v3538_v62  ;;  %v3549_v30 = vmul.f32 %v3165_v54, %v9211_v38  ;;  %v2784_v55 = vmul.f32 0.5, %v5379_v31  ;;  %v9259_v50 = vadd.f32 %v10151_v15, %v8576_v5  ;;  %v10158_v44 = vld [vmem:[#allocation23_spill] sm:$0xff] }
 0x3b2   : > { %v4067_v11 = vadd.f32 %v4066_v10, %v3540_v60  ;;  %v3551_v21 = vmul.f32 %v3167_v2, %v9218_v59  ;;  %v3166_v7 = vadd.f32 0.5, %v2782_v28  ;;  %5382 = vtanh.f32 %v2027_v0  ;;  %v10153_v59 = vld [vmem:[#allocation42_spill] sm:$0xff]  ;;  %v10161_v35 = vld [vmem:[#allocation47_spill] sm:$0xff]  ;;  %v10162_v28 = vld [vmem:[#allocation48_spill] sm:$0xff] }
 0x3b3   : > { %v3975_v14 = vadd.f32 %v3974_v8, %v3549_v30  ;;  %v3168_v42 = vadd.f32 0.5, %v2784_v55  ;;  %v9263_v26 = vadd.f32 %v10152_v52, %v8580_v29  ;;  %v2026_v41 = vmul.f32 0.5, %v9259_v50  ;;  %v5381_v37 = vpop.eup %5380  ;;  %v10163_v30 = vld [vmem:[#allocation49_spill] sm:$0xff] }
 0x3b4   : > { %v9265_v25 = vadd.f32 %v4036_v51, %v3551_v21  ;;  %v3550_v38 = vmul.f32 %v3166_v7, %v9224_v16  ;;  %v9271_v61 = vadd.f32 %v10153_v59, %v8558_v33  ;;  %v9277_v4 = vadd.f32 %v10154_v23, %v8568_v39  ;;  %v10165_v7 = vld [vmem:[#allocation51_spill] sm:$0xff] }
 0x3b5   : > { %v3552_v12 = vmul.f32 %v3168_v42, %v9228_v13  ;;  %v2028_v1 = vmul.f32 0.5, %v9263_v26  ;;  %v9281_v34 = vadd.f32 %v10155_v40, %v8576_v5  ;;  %5384 = vtanh.f32 %v2026_v41  ;;  %v10166_v42 = vld [vmem:[#allocation77_spill] sm:$0xff] }
 0x3b6   : > { %v9283_v19 = vadd.f32 %v4005_v53, %v3550_v38  ;;  %v2037_v16 = vmul.f32 0.5, %v9271_v61  ;;  %v9288_v56 = vadd.f32 %v10156_v47, %v8580_v29  ;;  %v2039_v17 = vmul.f32 0.5, %v9277_v4 }
 0x3b7   : > { %v9290_v13 = vadd.f32 %v4067_v11, %v3552_v12  ;;  %5386 = vtanh.f32 %v2028_v1  ;;  %v2038_v57 = vmul.f32 0.5, %v9281_v34  ;;  %v9297_v22 = vadd.f32 %v10157_v36, %v8558_v33  ;;  %v10164_v11 = vld [vmem:[#allocation50_spill] sm:$0xff] }
 0x3b8   : > { %5388 = vtanh.f32 %v2037_v16  ;;  %v2040_v24 = vmul.f32 0.5, %v9288_v56  ;;  %v9301_v48 = vadd.f32 %v10158_v44, %v8568_v39  ;;  %v9305_v10 = vadd.f32 %v10159_v46, %v8576_v5  ;;  %v10168_v44 = vld [vmem:[#allocation79_spill] sm:$0xff] }
 0x3b9   : > { %5390 = vtanh.f32 %v2039_v17  ;;  %v9309_v9 = vadd.f32 %v10160_v18, %v8580_v29  ;;  %v9313_v58 = vadd.f32 %v10161_v35, %v8558_v33  ;;  %v2793_v8 = vmul.f32 0.5, %v5381_v37 }
 0x3ba   : > { %5392 = vtanh.f32 %v2038_v57  ;;  %v2049_v62 = vmul.f32 0.5, %v9297_v22  ;;  %v2051_v54 = vmul.f32 0.5, %v9301_v48  ;;  %v2050_v31 = vmul.f32 0.5, %v9305_v10 }
 0x3bb   : > { %5394 = vtanh.f32 %v2040_v24  ;;  %v2052_v51 = vmul.f32 0.5, %v9309_v9  ;;  %v2061_v60 = vmul.f32 0.5, %v9313_v58  ;;  %v3177_v2 = vadd.f32 0.5, %v2793_v8 }
 0x3bc   : > { %5396 = vtanh.f32 %v2049_v62  ;;  %v9322_v53 = vadd.f32 %v10162_v28, %v8568_v39  ;;  %v9326_v55 = vadd.f32 %v10163_v30, %v8576_v5  ;;  %v5383_v0 = vpop.eup %5382  ;;  %v9330_v21 = vadd.f32 %v10164_v11, %v8580_v29 }
 0x3bd   : > { %5398 = vtanh.f32 %v2051_v54  ;;  %v9334_v15 = vadd.f32 %v10165_v7, %v8558_v33  ;;  %v9338_v52 = vadd.f32 %v10166_v42, %v8568_v39  ;;  %v3561_v38 = vmul.f32 %v3177_v2, %v9235_v45  ;;  %v10167_v45 = vld [vmem:[#allocation78_spill] sm:$0xff] }
 0x3be   : > { %v2795_v41 = vmul.f32 0.5, %v5383_v0  ;;  %5400 = vtanh.f32 %v2050_v31  ;;  %v2063_v59 = vmul.f32 0.5, %v9322_v53  ;;  %v2062_v12 = vmul.f32 0.5, %v9326_v55 }
 0x3bf   : > { %5402 = vtanh.f32 %v2052_v51  ;;  %v2064_v1 = vmul.f32 0.5, %v9330_v21  ;;  %v2073_v23 = vmul.f32 0.5, %v9334_v15  ;;  %v5385_v40 = vpop.eup %5384  ;;  %v3976_v16 = vadd.f32 %v3975_v14, %v3561_v38  ;;  %v10169_v14 = vld [vmem:[#allocation80_spill] sm:$0xff] }
 0x3c0   : > { %v3179_v47 = vadd.f32 0.5, %v2795_v41  ;;  %5404 = vtanh.f32 %v2061_v60  ;;  %v2075_v17 = vmul.f32 0.5, %v9338_v52  ;;  %v2794_v24 = vmul.f32 0.5, %v5385_v40 }
 0x3c1   : > { %v5387_v57 = vpop.eup %5386  ;;  %5406 = vtanh.f32 %v2063_v59  ;;  %v9348_v36 = vadd.f32 %v10167_v45, %v8576_v5  ;;  %v9352_v37 = vadd.f32 %v10168_v44, %v8580_v29  ;;  %v9357_v8 = vadd.f32 %v10169_v14, %v8558_v33 }
 0x3c2   : > { %v5389_v46 = vpop.eup %5388  ;;  %v3563_v18 = vmul.f32 %v3179_v47, %v9239_v20  ;;  %v2796_v35 = vmul.f32 0.5, %v5387_v57  ;;  %5408 = vtanh.f32 %v2062_v12  ;;  %v3178_v54 = vadd.f32 0.5, %v2794_v24 }
 0x3c3   : > { %v5391_v62 = vpop.eup %5390  ;;  %v2805_v31 = vmul.f32 0.5, %v5389_v46  ;;  %5410 = vtanh.f32 %v2064_v1  ;;  %v2074_v51 = vmul.f32 0.5, %v9348_v36 }
 0x3c4   : > { %v5393_v60 = vpop.eup %5392  ;;  %v4038_v2 = vadd.f32 %v9265_v25, %v3563_v18  ;;  %v3180_v28 = vadd.f32 0.5, %v2796_v35  ;;  %v2807_v30 = vmul.f32 0.5, %v5391_v62  ;;  %5412 = vtanh.f32 %v2073_v23 }
 0x3c5   : > { %v5395_v0 = vpop.eup %5394  ;;  %v3562_v20 = vmul.f32 %v3178_v54, %v9259_v50  ;;  %v3189_v11 = vadd.f32 0.5, %v2805_v31  ;;  %v2806_v7 = vmul.f32 0.5, %v5393_v60  ;;  %5414 = vtanh.f32 %v2075_v17 }
 0x3c6   : > { %v5397_v42 = vpop.eup %5396  ;;  %v3564_v38 = vmul.f32 %v3180_v28, %v9263_v26  ;;  %v3191_v41 = vadd.f32 0.5, %v2807_v30  ;;  %v2808_v59 = vmul.f32 0.5, %v5395_v0  ;;  %5416 = vtanh.f32 %v2074_v51 }
 0x3c7   : > { %v5399_v12 = vpop.eup %5398  ;;  %v4007_v1 = vadd.f32 %v9283_v19, %v3562_v20  ;;  %v3573_v25 = vmul.f32 %v3189_v11, %v9271_v61  ;;  %v3190_v40 = vadd.f32 0.5, %v2806_v7  ;;  %v2817_v47 = vmul.f32 0.5, %v5397_v42 }
 0x3c8   : > { %v5401_v23 = vpop.eup %5400  ;;  %v4069_v57 = vadd.f32 %v9290_v13, %v3564_v38  ;;  %v3575_v50 = vmul.f32 %v3191_v41, %v9277_v4  ;;  %v3192_v24 = vadd.f32 0.5, %v2808_v59  ;;  %v2819_v17 = vmul.f32 0.5, %v5399_v12 }
 0x3c9   : > { %v5403_v45 = vpop.eup %5402  ;;  %v3977_v44 = vadd.f32 %v3976_v16, %v3573_v25  ;;  %v3574_v26 = vmul.f32 %v3190_v40, %v9281_v34  ;;  %v3201_v46 = vadd.f32 0.5, %v2817_v47  ;;  %v2818_v18 = vmul.f32 0.5, %v5401_v23 }
 0x3ca   : > { %v5405_v35 = vpop.eup %5404  ;;  %v4039_v14 = vadd.f32 %v4038_v2, %v3575_v50  ;;  %v3576_v19 = vmul.f32 %v3192_v24, %v9288_v56  ;;  %v3203_v61 = vadd.f32 0.5, %v2819_v17  ;;  %v2820_v62 = vmul.f32 0.5, %v5403_v45 }
 0x3cb   : > { %v5407_v54 = vpop.eup %5406  ;;  %v4008_v31 = vadd.f32 %v4007_v1, %v3574_v26  ;;  %v3585_v13 = vmul.f32 %v3201_v46, %v9297_v22  ;;  %v3202_v51 = vadd.f32 0.5, %v2818_v18  ;;  %v2829_v4 = vmul.f32 0.5, %v5405_v35 }
 0x3cc   : > { %v5409_v60 = vpop.eup %5408  ;;  %v4070_v28 = vadd.f32 %v4069_v57, %v3576_v19  ;;  %v3587_v16 = vmul.f32 %v3203_v61, %v9301_v48  ;;  %v3204_v30 = vadd.f32 0.5, %v2820_v62  ;;  %v2831_v34 = vmul.f32 0.5, %v5407_v54  ;;  %v10171_v54 = vld [vmem:[#allocation52_spill] sm:$0xff] }
 0x3cd   : > { %v5411_v0 = vpop.eup %5410  ;;  %v3978_v20 = vadd.f32 %v3977_v44, %v3585_v13  ;;  %v3586_v2 = vmul.f32 %v3202_v51, %v9305_v10  ;;  %v3213_v11 = vadd.f32 0.5, %v2829_v4  ;;  %v2830_v56 = vmul.f32 0.5, %v5409_v60  ;;  %v10173_v4 = vld [vmem:[#allocation55_spill] sm:$0xff] }
 0x3ce   : > { %v5413_v7 = vpop.eup %5412  ;;  %v4040_v42 = vadd.f32 %v4039_v14, %v3587_v16  ;;  %v3588_v38 = vmul.f32 %v3204_v30, %v9309_v9  ;;  %v3215_v41 = vadd.f32 0.5, %v2831_v34  ;;  %v2832_v22 = vmul.f32 0.5, %v5411_v0  ;;  %v10174_v16 = vld [vmem:[#allocation24_spill] sm:$0xff]  ;;  %v10175_v34 = vld [vmem:[#allocation67_spill] sm:$0xff] }
 0x3cf   : > { %v5415_v59 = vpop.eup %5414  ;;  %v4009_v12 = vadd.f32 %v4008_v31, %v3586_v2  ;;  %v3597_v1 = vmul.f32 %v3213_v11, %v9313_v58  ;;  %v3214_v25 = vadd.f32 0.5, %v2830_v56  ;;  %v2841_v48 = vmul.f32 0.5, %v5413_v7  ;;  %v10176_v11 = vld [vmem:[#allocation57_spill] sm:$0xff] }
 0x3d0   : > { %v5417_v40 = vpop.eup %5416  ;;  %v4071_v47 = vadd.f32 %v4070_v28, %v3588_v38  ;;  %v3599_v23 = vmul.f32 %v3215_v41, %v9322_v53  ;;  %v3216_v57 = vadd.f32 0.5, %v2832_v22  ;;  %v2843_v10 = vmul.f32 0.5, %v5415_v59  ;;  %v10177_v38 = vld [vmem:[#allocation69_spill] sm:$0xff] }
 0x3d1   : > { %v3979_v50 = vadd.f32 %v3978_v20, %v3597_v1  ;;  %v3598_v24 = vmul.f32 %v3214_v25, %v9326_v55  ;;  %v3225_v17 = vadd.f32 0.5, %v2841_v48  ;;  %v2842_v45 = vmul.f32 0.5, %v5417_v40  ;;  %v10170_v55 = vld [vmem:[#allocation81_spill] sm:$0xff]  ;;  %v10179_v1 = vld [vmem:[#allocation14_spill] sm:$0xff] }
 0x3d2   : > { %v4041_v9 = vadd.f32 %v4040_v42, %v3599_v23  ;;  %v3600_v44 = vmul.f32 %v3216_v57, %v9330_v21  ;;  %v3227_v26 = vadd.f32 0.5, %v2843_v10  ;;  %v2076_v46 = vmul.f32 0.5, %v9352_v37  ;;  %v10178_v59 = vld [vmem:[#allocation25_spill] sm:$0xff]  ;;  %v10180_v40 = vld [vmem:[#allocation26_spill] sm:$0xff]  ;;  %v10181_v23 = vld [vmem:[#allocation16_spill] sm:$0xff] }
 0x3d3   : > { %v4010_v58 = vadd.f32 %v4009_v12, %v3598_v24  ;;  %v3609_v18 = vmul.f32 %v3225_v17, %v9334_v15  ;;  %v3226_v35 = vadd.f32 0.5, %v2842_v45  ;;  %v2085_v14 = vmul.f32 0.5, %v9357_v8  ;;  %v10182_v24 = vld [vmem:[#allocation27_spill] sm:$0xff] }
 0x3d4   : > { %v9380_v53 = vadd.f32 %v4071_v47, %v3600_v44  ;;  %v3611_v19 = vmul.f32 %v3227_v26, %v9338_v52  ;;  %5418 = vtanh.f32 %v2076_v46  ;;  %v9385_v61 = vadd.f32 %v10170_v55, %v8568_v39  ;;  %v10172_v52 = vld [vmem:[#allocation54_spill] sm:$0xff]  ;;  %v10183_v44 = vld [vmem:[#allocation17_spill] sm:$0xff] }
 0x3d5   : > { %v9387_v62 = vadd.f32 %v3979_v50, %v3609_v18  ;;  %v3610_v21 = vmul.f32 %v3226_v35, %v9348_v36  ;;  %5420 = vtanh.f32 %v2085_v14  ;;  %v9392_v15 = vadd.f32 %v10171_v54, %v8576_v5  ;;  %v10184_v18 = vld [vmem:[#allocation28_spill] sm:$0xff]  ;;  %v10185_v14 = vld [vmem:[#allocation70_spill] sm:$0xff] }
 0x3d6   : > { %v9394_v31 = vadd.f32 %v4041_v9, %v3611_v19  ;;  %v2087_v13 = vmul.f32 0.5, %v9385_v61  ;;  %v9399_v51 = vadd.f32 %v10172_v52, %v8580_v29  ;;  %v9403_v60 = vadd.f32 %v10173_v4, %v8558_v33 }
 0x3d7   : > { %v9405_v28 = vadd.f32 %v4010_v58, %v3610_v21  ;;  %v2086_v36 = vmul.f32 0.5, %v9392_v15  ;;  %v9410_v30 = vadd.f32 %v10174_v16, %v8568_v39  ;;  %v9414_v0 = vadd.f32 %v10175_v34, %v8576_v5 }
 0x3d8   : > { %5422 = vtanh.f32 %v2087_v13  ;;  %v2088_v20 = vmul.f32 0.5, %v9399_v51  ;;  %v2097_v2 = vmul.f32 0.5, %v9403_v60  ;;  %v9420_v56 = vadd.f32 %v10176_v11, %v8580_v29  ;;  %v10186_v13 = vld [vmem:[#allocation30_spill] sm:$0xff] }
 0x3d9   : > { %5424 = vtanh.f32 %v2086_v36  ;;  %v2099_v7 = vmul.f32 0.5, %v9410_v30  ;;  %v2098_v42 = vmul.f32 0.5, %v9414_v0  ;;  %v9426_v41 = vadd.f32 %v10177_v38, %v8558_v33 }
 0x3da   : > { %5426 = vtanh.f32 %v2088_v20  ;;  %v2100_v22 = vmul.f32 0.5, %v9420_v56  ;;  %v9431_v12 = vadd.f32 %v10178_v59, %v8568_v39  ;;  %v9435_v25 = vadd.f32 %v10179_v1, %v8576_v5 }
 0x3db   : > { %5428 = vtanh.f32 %v2097_v2  ;;  %v2109_v48 = vmul.f32 0.5, %v9426_v41  ;;  %v9440_v47 = vadd.f32 %v10180_v40, %v8580_v29  ;;  %v9444_v57 = vadd.f32 %v10181_v23, %v8558_v33  ;;  %v10187_v2 = vld [vmem:[#allocation31_spill] sm:$0xff] }
 0x3dc   : > { %5430 = vtanh.f32 %v2099_v7  ;;  %v2111_v10 = vmul.f32 0.5, %v9431_v12  ;;  %v2110_v50 = vmul.f32 0.5, %v9435_v25  ;;  %v9450_v17 = vadd.f32 %v10182_v24, %v8568_v39 }
 0x3dd   : > { %5432 = vtanh.f32 %v2098_v42  ;;  %v2112_v45 = vmul.f32 0.5, %v9440_v47  ;;  %v2121_v9 = vmul.f32 0.5, %v9444_v57  ;;  %v9456_v26 = vadd.f32 %v10183_v44, %v8576_v5 }
 0x3de   : > { %v5419_v46 = vpop.eup %5418  ;;  %5434 = vtanh.f32 %v2100_v22  ;;  %v2123_v58 = vmul.f32 0.5, %v9450_v17  ;;  %v9461_v35 = vadd.f32 %v10184_v18, %v8580_v29  ;;  %v9465_v19 = vadd.f32 %v10185_v14, %v8558_v33 }
 0x3df   : > { %v5421_v55 = vpop.eup %5420  ;;  %v2844_v21 = vmul.f32 0.5, %v5419_v46  ;;  %5436 = vtanh.f32 %v2109_v48  ;;  %v2122_v54 = vmul.f32 0.5, %v9456_v26  ;;  %v9470_v52 = vadd.f32 %v10186_v13, %v8568_v39 }
 0x3e0   : > { %v2853_v4 = vmul.f32 0.5, %v5421_v55  ;;  %5438 = vtanh.f32 %v2111_v10  ;;  %v2124_v36 = vmul.f32 0.5, %v9461_v35  ;;  %v2133_v16 = vmul.f32 0.5, %v9465_v19 }
 0x3e1   : > { %v3228_v34 = vadd.f32 0.5, %v2844_v21  ;;  %5440 = vtanh.f32 %v2110_v50  ;;  %v2135_v20 = vmul.f32 0.5, %v9470_v52  ;;  %v9477_v11 = vadd.f32 %v10187_v2, %v8576_v5 }
 0x3e2   : > { %v5423_v7 = vpop.eup %5422  ;;  %v3237_v42 = vadd.f32 0.5, %v2853_v4  ;;  %5442 = vtanh.f32 %v2112_v45  ;;  %v9481_v38 = vadd.f32 %v9006_v6, %v8580_v29  ;;  %v9485_v22 = vadd.f32 %v9031_v3, %v8558_v33 }
 0x3e3   : > { %v5425_v59 = vpop.eup %5424  ;;  %v3612_v1 = vmul.f32 %v3228_v34, %v9352_v37  ;;  %v2855_v48 = vmul.f32 0.5, %v5423_v7  ;;  %5444 = vtanh.f32 %v2121_v9  ;;  %v9489_v40 = vmul.f32 0.5, %v9477_v11 }
 0x3e4   : > { %v5427_v23 = vpop.eup %5426  ;;  %v3621_v10 = vmul.f32 %v3237_v42, %v9357_v8  ;;  %v2854_v50 = vmul.f32 0.5, %v5425_v59  ;;  %5446 = vtanh.f32 %v2123_v58  ;;  %v9493_v6 = vmul.f32 0.5, %v9481_v38 }
 0x3e5   : > { %v5429_v24 = vpop.eup %5428  ;;  %v4073_v3 = vadd.f32 %v9380_v53, %v3612_v1  ;;  %v3239_v45 = vadd.f32 0.5, %v2855_v48  ;;  %v2856_v44 = vmul.f32 0.5, %v5427_v23  ;;  %5448 = vtanh.f32 %v2122_v54 }
 0x3e6   : > { %v5431_v37 = vpop.eup %5430  ;;  %v3981_v9 = vadd.f32 %v9387_v62, %v3621_v10  ;;  %v3238_v46 = vadd.f32 0.5, %v2854_v50  ;;  %v2865_v18 = vmul.f32 0.5, %v5429_v24  ;;  %5450 = vtanh.f32 %v2124_v36 }
 0x3e7   : > { %v5433_v14 = vpop.eup %5432  ;;  %v3623_v8 = vmul.f32 %v3239_v45, %v9385_v61  ;;  %v3240_v55 = vadd.f32 0.5, %v2856_v44  ;;  %v2867_v58 = vmul.f32 0.5, %v5431_v37  ;;  %5452 = vtanh.f32 %v2133_v16 }
 0x3e8   : > { %v5435_v21 = vpop.eup %5434  ;;  %v3622_v13 = vmul.f32 %v3238_v46, %v9392_v15  ;;  %v3249_v4 = vadd.f32 0.5, %v2865_v18  ;;  %v2866_v53 = vmul.f32 0.5, %v5433_v14  ;;  %5454 = vtanh.f32 %v2135_v20 }
 0x3e9   : > { %v5437_v34 = vpop.eup %5436  ;;  %v4043_v54 = vadd.f32 %v9394_v31, %v3623_v8  ;;  %v3624_v62 = vmul.f32 %v3240_v55, %v9399_v51  ;;  %v3251_v2 = vadd.f32 0.5, %v2867_v58  ;;  %v2868_v7 = vmul.f32 0.5, %v5435_v21 }
 0x3ea   : > { %v5439_v36 = vpop.eup %5438  ;;  %v4012_v42 = vadd.f32 %v9405_v28, %v3622_v13  ;;  %v3633_v61 = vmul.f32 %v3249_v4, %v9403_v60  ;;  %v3250_v59 = vadd.f32 0.5, %v2866_v53  ;;  %v2877_v16 = vmul.f32 0.5, %v5437_v34 }
 0x3eb   : > { %v5441_v1 = vpop.eup %5440  ;;  %v4074_v48 = vadd.f32 %v4073_v3, %v3624_v62  ;;  %v3635_v15 = vmul.f32 %v3251_v2, %v9410_v30  ;;  %v3252_v23 = vadd.f32 0.5, %v2868_v7  ;;  %v2879_v20 = vmul.f32 0.5, %v5439_v36 }
 0x3ec   : > { %v5443_v10 = vpop.eup %5442  ;;  %v3982_v50 = vadd.f32 %v3981_v9, %v3633_v61  ;;  %v3634_v31 = vmul.f32 %v3250_v59, %v9414_v0  ;;  %v3261_v51 = vadd.f32 0.5, %v2877_v16  ;;  %v2878_v24 = vmul.f32 0.5, %v5441_v1 }
 0x3ed   : > { %v5445_v45 = vpop.eup %5444  ;;  %v4044_v44 = vadd.f32 %v4043_v54, %v3635_v15  ;;  %v3636_v28 = vmul.f32 %v3252_v23, %v9420_v56  ;;  %v3263_v37 = vadd.f32 0.5, %v2879_v20  ;;  %v2880_v60 = vmul.f32 0.5, %v5443_v10 }
 0x3ee   : > { %v5447_v46 = vpop.eup %5446  ;;  %v4013_v18 = vadd.f32 %v4012_v42, %v3634_v31  ;;  %v3645_v3 = vmul.f32 %v3261_v51, %v9426_v41  ;;  %v3262_v14 = vadd.f32 0.5, %v2878_v24  ;;  %v2889_v30 = vmul.f32 0.5, %v5445_v45 }
 0x3ef   : > { %v5449_v8 = vpop.eup %5448  ;;  %v4075_v55 = vadd.f32 %v4074_v48, %v3636_v28  ;;  %v3647_v9 = vmul.f32 %v3263_v37, %v9431_v12  ;;  %v3264_v58 = vadd.f32 0.5, %v2880_v60  ;;  %v2891_v0 = vmul.f32 0.5, %v5447_v46 }
 0x3f0   : > { %v5451_v21 = vpop.eup %5450  ;;  %v3983_v13 = vadd.f32 %v3982_v50, %v3645_v3  ;;  %v3646_v4 = vmul.f32 %v3262_v14, %v9435_v25  ;;  %v3273_v53 = vadd.f32 0.5, %v2889_v30  ;;  %v2890_v56 = vmul.f32 0.5, %v5449_v8 }
 0x3f1   : > { %v5453_v34 = vpop.eup %5452  ;;  %v4045_v54 = vadd.f32 %v4044_v44, %v3647_v9  ;;  %v3648_v62 = vmul.f32 %v3264_v58, %v9440_v47  ;;  %v3275_v2 = vadd.f32 0.5, %v2891_v0  ;;  %v2892_v41 = vmul.f32 0.5, %v5451_v21  ;;  %v10188_v44 = vld [vmem:[#allocation19_spill] sm:$0xff]  ;;  %v10191_v0 = vld [vmem:[#allocation53_spill] sm:$0xff]  ;;  %v10192_v21 = vld [vmem:[#allocation66_spill] sm:$0xff] }
 0x3f2   : > { %v5455_v7 = vpop.eup %5454  ;;  %v4014_v36 = vadd.f32 %v4013_v18, %v3646_v4  ;;  %v3657_v42 = vmul.f32 %v3273_v53, %v9444_v57  ;;  %v3274_v61 = vadd.f32 0.5, %v2890_v56  ;;  %v2901_v12 = vmul.f32 0.5, %v5453_v34  ;;  %v10194_v53 = vld [vmem:[#allocation56_spill] sm:$0xff] }
 0x3f3   : > { %v4076_v59 = vadd.f32 %v4075_v55, %v3648_v62  ;;  %v3659_v16 = vmul.f32 %v3275_v2, %v9450_v17  ;;  %v3276_v1 = vadd.f32 0.5, %v2892_v41  ;;  %v2903_v48 = vmul.f32 0.5, %v5455_v7  ;;  %v10195_v56 = vld [vmem:[#allocation68_spill] sm:$0xff]  ;;  %v10197_v62 = vld [vmem:[#allocation41_spill] sm:$0xff] }
 0x3f4   : > { %v3984_v25 = vadd.f32 %v3983_v13, %v3657_v42  ;;  %v3658_v15 = vmul.f32 %v3274_v61, %v9456_v26  ;;  %v3285_v23 = vadd.f32 0.5, %v2901_v12  ;;  %5456 = vtanh.f32 %v9489_v40  ;;  %v10198_v2 = vld [vmem:[#allocation45_spill] sm:$0xff]  ;;  %v10200_v61 = vld [vmem:[#allocation44_spill] sm:$0xff] }
 0x3f5   : > { %v4046_v47 = vadd.f32 %v4045_v54, %v3659_v16  ;;  %v3660_v20 = vmul.f32 %v3276_v1, %v9461_v35  ;;  %v3287_v10 = vadd.f32 0.5, %v2903_v48  ;;  %5458 = vtanh.f32 %v9493_v6  ;;  %v10201_v12 = vld [vmem:[#allocation76_spill] sm:$0xff] }
 0x3f6   : > { %v4015_v57 = vadd.f32 %v4014_v36, %v3658_v15  ;;  %v3669_v50 = vmul.f32 %v3285_v23, %v9465_v19  ;;  %v2145_v31 = vmul.f32 0.5, %v9485_v22  ;;  %v9520_v17 = vadd.f32 %v9033_v27, %v8568_v39 }
 0x3f7   : > { %v4077_v51 = vadd.f32 %v4076_v59, %v3660_v20  ;;  %v3671_v26 = vmul.f32 %v3287_v10, %v9470_v52  ;;  %v9525_v40 = vadd.f32 %v9042_v49, %v8576_v5  ;;  %v9529_v35 = vadd.f32 %v9044_v63, %v8580_v29 }
 0x3f8   : > { %v3985_v6 = vadd.f32 %v3984_v25, %v3669_v50  ;;  %5460 = vtanh.f32 %v2145_v31  ;;  %v2147_v19 = vmul.f32 0.5, %v9520_v17  ;;  %v9534_v24 = vadd.f32 %v9060_v32, %v8558_v33  ;;  %v10189_v33 = vld [vmem:[#allocation71_spill] sm:$0xff] }
 0x3f9   : > { %v9536_v27 = vadd.f32 %v4046_v47, %v3671_v26  ;;  %v2146_v52 = vmul.f32 0.5, %v9525_v40  ;;  %v2148_v45 = vmul.f32 0.5, %v9529_v35  ;;  %v9542_v49 = vadd.f32 %v9062_v43, %v8568_v39 }
 0x3fa   : > { %5462 = vtanh.f32 %v2147_v19  ;;  %v2157_v63 = vmul.f32 0.5, %v9534_v24  ;;  %v9547_v28 = vadd.f32 %v10188_v44, %v8576_v5  ;;  %v9551_v32 = vadd.f32 %v10189_v33, %v8580_v29  ;;  %v10190_v29 = vld [vmem:[#allocation13_spill] sm:$0xff] }
 0x3fb   : > { %5464 = vtanh.f32 %v2146_v52  ;;  %v2159_v37 = vmul.f32 0.5, %v9542_v49  ;;  %v5672_v43 = vmov 1966171168   ;;  %v10193_v13 = vcombine.low %v10191_v0, %v10192_v21 }
 0x3fc   : > { %5466 = vtanh.f32 %v2148_v45  ;;  %v2158_v60 = vmul.f32 0.5, %v9547_v28  ;;  %v2160_v39 = vmul.f32 0.5, %v9551_v32  ;;  %v4221_v46 = vunpack.c.l.s4 %v5672_v43 }
 0x3fd   : > { %5468 = vtanh.f32 %v2157_v63  ;;  %v10196_v34 = vcombine.low %v10194_v53, %v10195_v56  ;;  %v10199_v41 = vcombine.low %v10197_v62, %v10198_v2  ;;  %v10202_v59 = vcombine.low %v10200_v61, %v10201_v12 }
 0x3fe   : > { %v5457_v18 = vpop.eup %5456  ;;  %5470 = vtanh.f32 %v2159_v37  ;;  %v4222_v3 = vunpack.c.0.s8 %v4221_v46 }
 0x3ff   : > { %v5459_v5 = vpop.eup %5458  ;;  %v2902_v14 = vmul.f32 0.5, %v5457_v18  ;;  %5472 = vtanh.f32 %v2158_v60 }
 0x400   : > { %v2904_v30 = vmul.f32 0.5, %v5459_v5  ;;  %5474 = vtanh.f32 %v2160_v39  ;;  %v9557_v8 = vsub.s32 %v4222_v3, %v10190_v29 }
 0x401   : > { %v3286_v55 = vadd.f32 0.5, %v2902_v14 }
 0x402   : > { %v5461_v9 = vpop.eup %5460  ;;  %v3288_v58 = vadd.f32 0.5, %v2904_v30  ;;  %v4226_v4 = vrot.slane %v10193_v13, %v9557_v8  ;;  %v4233_v54 = vrot.slane %v10196_v34, %v9557_v8  ;;  %v4240_v7 = vrot.slane %v10199_v41, %v9557_v8 }
 0x403   : > { %v3670_v36 = vmul.f32 %v3286_v55, %v9477_v11  ;;  %v2913_v42 = vmul.f32 0.5, %v5461_v9  ;;  %v4247_v16 = vrot.slane %v10202_v59, %v9557_v8 }
 0x404   : > { %v5463_v1 = vpop.eup %5462  ;;  %v3672_v48 = vmul.f32 %v3288_v58, %v9481_v38  ;;  %v4248_v25 = vcombine.low %v4226_v4, %v4233_v54 }
 0x405   : > { %v5465_v15 = vpop.eup %5464  ;;  %v4016_v23 = vadd.f32 %v4015_v57, %v3670_v36  ;;  %v3297_v47 = vadd.f32 0.5, %v2913_v42  ;;  %v2915_v20 = vmul.f32 0.5, %v5463_v1  ;;  %v4249_v10 = vcombine.low %v4240_v7, %v4247_v16 }
 0x406   : > { %v5467_v50 = vpop.eup %5466  ;;  %v4078_v31 = vadd.f32 %v4077_v51, %v3672_v48  ;;  %v2914_v26 = vmul.f32 0.5, %v5465_v15  ;;  %v4256_v37 = vrot.slane %v4248_v25, %v9557_v8 }
 0x407   : > { %v5469_v11 = vpop.eup %5468  ;;  %v3681_v19 = vmul.f32 %v3297_v47, %v9485_v22  ;;  %v3299_v52 = vadd.f32 0.5, %v2915_v20  ;;  %v2916_v45 = vmul.f32 0.5, %v5467_v50  ;;  %v4263_v63 = vrot.slane %v4249_v10, %v9557_v8 }
 0x408   : > { %v5471_v44 = vpop.eup %5470  ;;  %v3298_v33 = vadd.f32 0.5, %v2914_v26  ;;  %v2925_v38 = vmul.f32 0.5, %v5469_v11 }
 0x409   : > { %v5473_v57 = vpop.eup %5472  ;;  %v3986_v60 = vadd.f32 %v3985_v6, %v3681_v19  ;;  %v3683_v39 = vmul.f32 %v3299_v52, %v9520_v17  ;;  %v3300_v43 = vadd.f32 0.5, %v2916_v45  ;;  %v2927_v51 = vmul.f32 0.5, %v5471_v44 }
 0x40a   : > { %v5475_v46 = vpop.eup %5474  ;;  %v3682_v18 = vmul.f32 %v3298_v33, %v9525_v40  ;;  %v3309_v22 = vadd.f32 0.5, %v2925_v38  ;;  %v2926_v3 = vmul.f32 0.5, %v5473_v57  ;;  %v4264_v5 = vcombine.low %v4256_v37, %v4263_v63 }
 0x40b   : > { %v4048_v14 = vadd.f32 %v9536_v27, %v3683_v39  ;;  %v3684_v30 = vmul.f32 %v3300_v43, %v9529_v35  ;;  %v3311_v29 = vadd.f32 0.5, %v2927_v51  ;;  %v2928_v55 = vmul.f32 0.5, %v5475_v46 }
 0x40c   : > { %v4017_v9 = vadd.f32 %v4016_v23, %v3682_v18  ;;  %v3693_v6 = vmul.f32 %v3309_v22, %v9534_v24  ;;  %v3310_v58 = vadd.f32 0.5, %v2926_v3  ;;  %4291 = vst [vmem:[%s9588_s22] sm:$0xff] %v4264_v5  ;;  %v10203_v44 = vlaneseq }
 0x40d   : > { %v4079_v17 = vadd.f32 %v4078_v31, %v3684_v30  ;;  %v3695_v40 = vmul.f32 %v3311_v29, %v9542_v49  ;;  %v3312_v0 = vadd.f32 0.5, %v2928_v55 }
 0x40e   : > { %v3987_v21 = vadd.f32 %v3986_v60, %v3693_v6  ;;  %v3694_v27 = vmul.f32 %v3310_v58, %v9547_v28  ;;  %vm4294_vm1 = vcmp.lt.s32.totalorder %v10203_v44, 512 }
 0x40f   : > { %v4049_v13 = vadd.f32 %v4048_v14, %v3695_v40  ;;  %v3696_v35 = vmul.f32 %v3312_v0, %v9551_v32 }
 0x410   : > { %v4168_v4 = vrot.slane %v3987_v21, 4  ;;  %v4018_v53 = vadd.f32 %v4017_v9, %v3694_v27 }
 0x411   : > { %v4180_v56 = vrot.slane %v4049_v13, 4  ;;  %v4080_v24 = vadd.f32 %v4079_v17, %v3696_v35 }
 0x412   : > { %v4169_v34 = vadd.f32 %v4168_v4, %v3987_v21  ;;  %v4174_v54 = vrot.slane %v4018_v53, 4 }
 0x413   : > { %v4181_v62 = vadd.f32 %v4180_v56, %v4049_v13  ;;  %v4186_v2 = vrot.slane %v4080_v24, 4 }
 0x414   : > { %v4170_v41 = vrot.slane %v4169_v34, 2  ;;  %v4175_v7 = vadd.f32 %v4174_v54, %v4018_v53 }
 0x415   : > { %v4182_v36 = vrot.slane %v4181_v62, 2  ;;  %v4187_v42 = vadd.f32 %v4186_v2, %v4080_v24 }
 0x416   : > { %v4171_v49 = vadd.f32 %v4170_v41, %v4169_v34  ;;  %v4176_v61 = vrot.slane %v4175_v7, 2 }
 0x417   : > { %v4183_v12 = vadd.f32 %v4182_v36, %v4181_v62  ;;  %v4188_v59 = vrot.slane %v4187_v42, 2 }
 0x418   : > { %v4172_v28 = vrot.slane %v4171_v49, 1  ;;  %v4177_v16 = vadd.f32 %v4176_v61, %v4175_v7 }
 0x419   : > { %v4184_v1 = vrot.slane %v4183_v12, 1  ;;  %v4189_v32 = vadd.f32 %v4188_v59, %v4187_v42 }
 0x41a   : > { %v4173_v48 = vadd.f32 %v4172_v28, %v4171_v49  ;;  %v4178_v25 = vrot.slane %v4177_v16, 1 }
 0x41b   : > { %v4185_v15 = vadd.f32 %v4184_v1, %v4183_v12  ;;  %v4190_v23 = vrot.slane %v4189_v32, 1 }
 0x41c   : > { %v4200_v47 = vmul.f32 0.00390625, %v4173_v48  ;;  %v4179_v20 = vadd.f32 %v4178_v25, %v4177_v16 }
 0x41d   : > { %v4202_v10 = vmul.f32 0.00390625, %v4185_v15  ;;  %v4191_v50 = vadd.f32 %v4190_v23, %v4189_v32 }
 0x41e   : > { %v4201_v31 = vmul.f32 0.00390625, %v4179_v20 }
 0x41f   : > { %v4203_v26 = vmul.f32 0.00390625, %v4191_v50 }
 0x420   : > { %v4265_v11 = vcombine.low %v4200_v47, %v4201_v31 }
 0x421   : > { %v4266_v19 = vcombine.low %v4202_v10, %v4203_v26 }
 0x422   : > { %v4273_v52 = vrot.slane %v4265_v11, %v9557_v8 }
 0x423   : > { %v4280_v45 = vrot.slane %v4266_v19, %v9557_v8 }
 0x425   : > { %v4281_v63 = vcombine.low %v4273_v52, %v4280_v45 }
 0x427   : > { %v4288_v33 = vrot.slane %v4281_v63, %v9557_v8 }
 0x429   : > { %4296 = vst.msk [vmem:[%s9588_s22 + $0x8] sm:$0xf] %vm4294_vm1, %v4288_v33 }
 0x42a   : > { %5589 = shalt.err (!%p5586_p11)
}
 0x42b   : > { %s5590_s9 = scalar_lea.hbm %s9603_s26, 192  ;;  %s5594_s19 = scalar_lea.hbm %s9656_s3, 384 }
 0x42c   : > { %p5591_p0 = scmp.ne.s32.totalorder %s9603_s26, %s5590_s9  ;;  %p5595_p6 = scmp.lt.u32.totalorder %s9603_s26, %s9656_s3 }
 0x42d   : > { %p5596_p7 = scmp.lt.u32.totalorder %s5594_s19, %s5590_s9  ;;  %p5598_p8 = scmp.lt.u32.totalorder %s5590_s9, %s9603_s26 }
 0x42e   : > { %p5592_p4 = pnand %p5591_p0, %p10204_p12 }
 0x42f   : > { %p5597_p2 = por %p5596_p7, %p5595_p6 }
 0x430   : > { %p5593_p13 = pneg %p5592_p4 }
 0x431   : > { %p5599_p1 = por %p5598_p8, %p5597_p2 }
 0x433   : > { %p5600_p10 = pnand %p5599_p1, %p5593_p13 }
 0x435   : > { %5603 = shalt.err (!%p5600_p10)
}
 0x436   : > { %4577 = dma.vmem_to_hbm [thread:$0]  (%p10204_p12), %s9605_s6, 192, %s9603_s26, %s4298_s25  }
 0x437 PF: > { %s4324_s20 = sand.u32 1, %s5642_s12   ;;  %p10205_p3 = scmp.ne.s32.totalorder %s9687_s23, 0 }
 0x438   : > { %p10206_p5 = scmp.ge.s32.totalorder %s5662_s17, 2  ;;  %s4325_s22 = scalar_lea.sflag [#allocation5], %s4324_s20 }
 0x43a   : > { %p4591_p9 = pnand %p10206_p5, %p10205_p3 }
 0x43c   : > { %5637 = dma.done.wait (!%p4591_p9), %s4325_s22, 192  }
 0x43d   : > { %5639 = vsyncadd (!%p4591_p9), %s4325_s22, 4294967104  ;;  %s20_s17 = sadd.s32 1, %s5662_s17   ;;  %s10207_s12 = smov %s5646_s13 }
 0x43e   : > { %p17_p11 = scmp.ge.s32.totalorder %s20_s17, 4   ;;  %s10208_s13 = smov %s5650_s14 }
 0x43f   : > { %s10209_s14 = smov %s5836_s30  ;;  %s10210_s15 = smov %s5658_s16 }
 0x440   : > { %s10211_s16 = smov %s10213_s11  ;;  %19 = sbr.rel (!%p17_p11) target bundleno = 7 (0x7), region = 93 }
 0x447   :  { %4330 = vsyncpa [#allocation4], 1 }
 0x448   :  { %4332 = vsyncpa [#allocation4 + $0x1], 1 }
 0x449   :  { %4333 = vsyncpa [#allocation7], 1 }
 0x44a   :  { %4334 = vsyncpa [#allocation5], 1 }
 0x44b   :  { %4336 = vsyncpa [#allocation5 + $0x1], 1 }

// kernel: effnet_forward.3
= control target key start
LH: loop header
LB: loop body
LE: loop exit
PB: predicated region body
PF: predicated region fallthrough
CT: control target
= control target key end

     0   :  { %10 = vsyncpa [#allocation3], 0  ;;  %s8008_s0 = inlined_call_operand.hbm [shape: f32[2,1536], index: 0, kind: input, shape index: {}]   ;;  %s8009_s1 = inlined_call_operand.hbm [shape: bf16[1536,1024], index: 1, kind: input, shape index: {}]   ;;  %s8010_s2 = inlined_call_operand.hbm [shape: f32[1,1024], index: 2, kind: input, shape index: {}]   ;;  %s8011_s3 = inlined_call_operand.hbm [shape: bf16[1024,128], index: 3, kind: input, shape index: {}]   ;;  %s8012_s4 = inlined_call_operand.hbm [shape: f32[1,128], index: 4, kind: input, shape index: {}]   ;;  %s8013_s5 = inlined_call_operand.hbm [shape: f32[2,128], index: 5, kind: output, shape index: {}]  }
   0x1   :  { %11 = vsyncpa [#allocation6], 0 }
   0x2   :  { %12 = vsyncpa [#allocation9], 0 }
   0x3   :  { %13 = vsyncpa [#allocation4], 0  ;;  %s7731_s18 = smov [#allocation5]   ;;  %s7591_s22 = scalar_lea.hbm %s8009_s1, 98304 }
   0x4   :  { %s29_s19 = sshll.u32 %s7731_s18, 4  ;;  %p7592_p0 = scmp.ne.s32.totalorder %s8009_s1, %s7591_s22  ;;  %s30_s19 = int_to_ptr.vmem [resolvable:$true] %s29_s19 }
   0x5   :  { %p7595_p1 = scmp.lt.u32.totalorder %s7591_s22, %s8009_s1 }
   0x7   :  { %p7597_p2 = pnand %p7595_p1, %p7592_p0 }
   0x9   :  { %7600 = shalt.err (!%p7597_p2)
}
   0xa   :  { %s7601_s27 = scalar_lea.vmem %s30_s19, 98304  ;;  %p7606_p4 = scmp.lt.s32.totalorder %s30_s19, %s30_s19 }
   0xb   :  { %p7602_p3 = scmp.ne.s32.totalorder %s30_s19, %s7601_s27  ;;  %p7607_p5 = scmp.lt.s32.totalorder %s7601_s27, %s7601_s27 }
   0xd   :  { %p7608_p6 = por %p7607_p5, %p7606_p4 }
   0xf   :  { %p7609_p7 = pnand %p7608_p6, %p7602_p3 }
  0x11   :  { %7612 = shalt.err (!%p7609_p7)
}
  0x12   :  { %s7732_s28 = smov 512   ;;  %s7733_s29 = smov 32  }
  0x13   :  { %35 = dma.hbm_to_vmem [thread:$0]  %s8009_s1, 98304, %s30_s19, [#allocation6], %s7732_s28, %s7732_s28, %s7733_s29  }
  0x14   :  { %s7734_s7 = smov [#allocation8]   ;;  %s7613_s11 = scalar_lea.hbm %s8011_s3, 8192 }
  0x15   :  { %s51_s8 = sshll.u32 %s7734_s7, 4  ;;  %p7614_p8 = scmp.ne.s32.totalorder %s8011_s3, %s7613_s11  ;;  %s52_s8 = int_to_ptr.vmem [resolvable:$true] %s51_s8 }
  0x16   :  { %p7617_p9 = scmp.lt.u32.totalorder %s7613_s11, %s8011_s3 }
  0x18   :  { %p7619_p10 = pnand %p7617_p9, %p7614_p8 }
  0x1a   :  { %7622 = shalt.err (!%p7619_p10)
}
  0x1b   :  { %s7623_s16 = scalar_lea.vmem %s52_s8, 8192  ;;  %p7628_p12 = scmp.lt.s32.totalorder %s52_s8, %s52_s8 }
  0x1c   :  { %p7624_p11 = scmp.ne.s32.totalorder %s52_s8, %s7623_s16  ;;  %p7629_p13 = scmp.lt.s32.totalorder %s7623_s16, %s7623_s16 }
  0x1e   :  { %p7630_p0 = por %p7629_p13, %p7628_p12 }
  0x20   :  { %p7631_p1 = pnand %p7630_p0, %p7624_p11 }
  0x22   :  { %7634 = shalt.err (!%p7631_p1)
}
  0x23   :  { %s7735_s1 = smov 64   ;;  %s7736_s17 = smov 4  }
  0x24   :  { %57 = dma.hbm_to_vmem [thread:$0]  %s8011_s3, 8192, %s52_s8, [#allocation9], %s7735_s1, %s7735_s1, %s7736_s17  }
  0x25   :  { %s7737_s20 = smov [#allocation2]   ;;  %s7738_s22 = smov [#allocation7]  }
  0x26   :  { %s20_s21 = sshll.u32 %s7737_s20, 4  ;;  %s42_s23 = sshll.u32 %s7738_s22, 4  ;;  %s21_s21 = int_to_ptr.vmem [resolvable:$true] %s20_s21  ;;  %s43_s23 = int_to_ptr.vmem [resolvable:$true] %s42_s23 }
  0x27   :  { %s7635_s26 = scalar_lea.hbm %s8008_s0, 384 }
  0x28   :  { %p7636_p2 = scmp.ne.s32.totalorder %s8008_s0, %s7635_s26  ;;  %p7639_p3 = scmp.lt.u32.totalorder %s7635_s26, %s8008_s0 }
  0x2a   :  { %p7641_p4 = pnand %p7639_p3, %p7636_p2 }
  0x2c   :  { %7644 = shalt.err (!%p7641_p4)
}
  0x2d   :  { %s7645_s3 = scalar_lea.vmem %s21_s21, 384  ;;  %p7650_p6 = scmp.lt.s32.totalorder %s21_s21, %s21_s21 }
  0x2e   :  { %p7646_p5 = scmp.ne.s32.totalorder %s21_s21, %s7645_s3  ;;  %p7651_p7 = scmp.lt.s32.totalorder %s7645_s3, %s7645_s3 }
  0x30   :  { %p7652_p8 = por %p7651_p7, %p7650_p6 }
  0x32   :  { %p7653_p9 = pnand %p7652_p8, %p7646_p5 }
  0x34   :  { %7656 = shalt.err (!%p7653_p9)
}
  0x35   :  { %23 = dma.hbm_to_vmem [thread:$0]  %s8008_s0, 384, %s21_s21, [#allocation3]  }
  0x36   :  { %s7657_s10 = scalar_lea.hbm %s8010_s2, 128 }
  0x37   :  { %p7658_p10 = scmp.ne.s32.totalorder %s8010_s2, %s7657_s10  ;;  %p7661_p11 = scmp.lt.u32.totalorder %s7657_s10, %s8010_s2 }
  0x39   :  { %p7663_p12 = pnand %p7661_p11, %p7658_p10 }
  0x3b   :  { %7666 = shalt.err (!%p7663_p12)
}
  0x3c   :  { %s7667_s15 = scalar_lea.vmem %s43_s23, 128  ;;  %p7672_p0 = scmp.lt.s32.totalorder %s43_s23, %s43_s23 }
  0x3d   :  { %p7668_p13 = scmp.ne.s32.totalorder %s43_s23, %s7667_s15  ;;  %p7673_p1 = scmp.lt.s32.totalorder %s7667_s15, %s7667_s15 }
  0x3f   :  { %p7674_p2 = por %p7673_p1, %p7672_p0 }
  0x41   :  { %p7675_p3 = pnand %p7674_p2, %p7668_p13 }
  0x43   :  { %7678 = shalt.err (!%p7675_p3)
}
  0x44   :  { %45 = dma.hbm_to_vmem [thread:$0]  %s8010_s2, 128, %s43_s23, [#allocation6]  }
  0x45   :  { %s7739_s1 = smov [#allocation10]   ;;  %s7679_s20 = scalar_lea.hbm %s8012_s4, 16 }
  0x46   :  { %s64_s17 = sshll.u32 %s7739_s1, 4  ;;  %p7680_p4 = scmp.ne.s32.totalorder %s8012_s4, %s7679_s20  ;;  %s65_s17 = int_to_ptr.vmem [resolvable:$true] %s64_s17 }
  0x47   :  { %p7683_p5 = scmp.lt.u32.totalorder %s7679_s20, %s8012_s4 }
  0x49   :  { %p7685_p6 = pnand %p7683_p5, %p7680_p4 }
  0x4b   :  { %7688 = shalt.err (!%p7685_p6)
}
  0x4c   :  { %s7689_s26 = scalar_lea.vmem %s65_s17, 16  ;;  %s7693_s2 = scalar_lea.vmem %s65_s17, 32 }
  0x4d   :  { %p7690_p7 = scmp.ne.s32.totalorder %s65_s17, %s7689_s26  ;;  %p7694_p8 = scmp.lt.s32.totalorder %s65_s17, %s65_s17 }
  0x4e   :  { %p7695_p9 = scmp.lt.s32.totalorder %s7693_s2, %s7689_s26 }
  0x50   :  { %p7696_p10 = por %p7695_p9, %p7694_p8 }
  0x52   :  { %p7697_p11 = pnand %p7696_p10, %p7690_p7 }
  0x54   :  { %7700 = shalt.err (!%p7697_p11)
}
  0x55   :  { %67 = dma.hbm_to_vmem [thread:$0]  %s8012_s4, 16, %s65_s17, [#allocation9]  }
  0x56   :  { %7723 = dma.done.wait [#allocation3], 384  }
  0x57   :  { %7724 = vsyncadd [#allocation3], 4294966912 }
  0x58   :  { %7725 = dma.done.wait [#allocation6], 98432  }
  0x59   :  { %7726 = vsyncadd [#allocation6], 4294868864 }
  0x5a   :  { %7727 = dma.done.wait [#allocation9], 8208  }
  0x5b   :  { %7728 = vsyncadd [#allocation9], 4294959088  ;;  %v165_v0 = vld [vmem:[#allocation5] sm:$0xff]  ;;  %v166_v2 = vld [vmem:[#allocation5 + $0x8] sm:$0xff]  ;;  %v7740_v32 = vmov 1983009808   ;;  %v94_v34 = vlaneseq }
  0x5c   :  { %v169_v1 = vld [vmem:[#allocation5 + $0x20] sm:$0xff]  ;;  %v170_v4 = vld [vmem:[#allocation5 + $0x28] sm:$0xff]  ;;  %v92_v33 = vunpack.c.l.s4 %v7740_v32  ;;  %s7741_s4 = smov [#allocation11]  }
  0x5d   :  { %v6505_v3 = vcombine.high %v165_v0, %v169_v1  ;;  %v6504_v5 = vcombine.low %v165_v0, %v169_v1  ;;  %v173_v6 = vld [vmem:[#allocation5 + $0x40] sm:$0xff]  ;;  %v6507_v8 = vcombine.high %v166_v2, %v170_v4  ;;  %v6506_v9 = vcombine.low %v166_v2, %v170_v4  ;;  %v174_v11 = vld [vmem:[#allocation5 + $0x48] sm:$0xff]  ;;  %s6493_s28 = sshll.u32 %s7741_s4, 4  ;;  %s6494_s28 = int_to_ptr.vmem [resolvable:$true] %s6493_s28 }
  0x5e   :  { %v177_v7 = vld [vmem:[#allocation5 + $0x60] sm:$0xff]  ;;  %v178_v12 = vld [vmem:[#allocation5 + $0x68] sm:$0xff]  ;;  %v93_v43 = vunpack.c.0.s8 %v92_v33  ;;  %v7832_v44 = vshrl.u32 %v94_v34, 7  ;;  %s7701_s29 = scalar_lea.vmem %s6494_s28, 32  ;;  %p7706_p13 = scmp.lt.s32.totalorder %s6494_s28, %s6494_s28 }
  0x5f   :  { %v6513_v10 = vcombine.high %v173_v6, %v177_v7  ;;  %v181_v13 = vld [vmem:[#allocation5 + $0x80] sm:$0xff]  ;;  %4815 = vmatprep.subr.bf16.mxu0 %v6505_v3  ;;  %v6515_v14 = vcombine.high %v174_v11, %v178_v12  ;;  %v182_v16 = vld [vmem:[#allocation5 + $0x88] sm:$0xff]  ;;  %5061 = vmatprep.subr.bf16.mxu1 %v6507_v8  ;;  %v6512_v18 = vcombine.low %v173_v6, %v177_v7  ;;  %p7702_p12 = scmp.ne.s32.totalorder %s6494_s28, %s7701_s29  ;;  %p7707_p0 = scmp.lt.s32.totalorder %s7701_s29, %s7701_s29 }
  0x60   :  { %v185_v15 = vld [vmem:[#allocation5 + $0xa0] sm:$0xff]  ;;  %v186_v17 = vld [vmem:[#allocation5 + $0xa8] sm:$0xff]  ;;  %4816 = vmatpush1.bf16.msra.mxu0 %v6504_v5  ;;  %5062 = vmatpush1.bf16.msra.mxu1 %v6506_v9  ;;  %v6514_v19 = vcombine.low %v174_v11, %v178_v12  ;;  %v7835_v53 = vsub.s32 %v93_v43, %v7832_v44 }
  0x61   :  { %4817 = vmatprep.subr.bf16.mxu0 %v6513_v10  ;;  %v6521_v20 = vcombine.high %v181_v13, %v185_v15  ;;  %5063 = vmatprep.subr.bf16.mxu1 %v6515_v14  ;;  %v6523_v21 = vcombine.high %v182_v16, %v186_v17  ;;  %v189_v22 = vld [vmem:[#allocation5 + $0xc0] sm:$0xff]  ;;  %v190_v24 = vld [vmem:[#allocation5 + $0xc8] sm:$0xff]  ;;  %v6520_v26 = vcombine.low %v181_v13, %v185_v15  ;;  %p7708_p1 = por %p7707_p0, %p7706_p13 }
  0x62   :  { %v193_v23 = vld [vmem:[#allocation5 + $0xe0] sm:$0xff]  ;;  %v194_v25 = vld [vmem:[#allocation5 + $0xe8] sm:$0xff]  ;;  %v6522_v27 = vcombine.low %v182_v16, %v186_v17 }
  0x63   :  { %v6529_v28 = vcombine.high %v189_v22, %v193_v23  ;;  %v6531_v29 = vcombine.high %v190_v24, %v194_v25  ;;  %v197_v30 = vld [vmem:[#allocation5 + $0x100] sm:$0xff]  ;;  %v198_v35 = vld [vmem:[#allocation5 + $0x108] sm:$0xff]  ;;  %v6528_v37 = vcombine.low %v189_v22, %v193_v23  ;;  %v6530_v38 = vcombine.low %v190_v24, %v194_v25  ;;  %p7709_p2 = pnand %p7708_p1, %p7702_p12 }
  0x64   :  { %4818 = vmatpush1.bf16.msra.mxu0 %v6512_v18  ;;  %5064 = vmatpush1.bf16.msra.mxu1 %v6514_v19  ;;  %v201_v31 = vld [vmem:[#allocation5 + $0x120] sm:$0xff]  ;;  %v202_v36 = vld [vmem:[#allocation5 + $0x128] sm:$0xff] }
  0x65   :  { %4819 = vmatprep.subr.bf16.mxu0 %v6521_v20  ;;  %5065 = vmatprep.subr.bf16.mxu1 %v6523_v21  ;;  %v6537_v39 = vcombine.high %v197_v30, %v201_v31  ;;  %v6539_v40 = vcombine.high %v198_v35, %v202_v36  ;;  %v205_v41 = vld [vmem:[#allocation5 + $0x140] sm:$0xff]  ;;  %v206_v45 = vld [vmem:[#allocation5 + $0x148] sm:$0xff]  ;;  %v6536_v47 = vcombine.low %v197_v30, %v201_v31 }
  0x66   :  { %v209_v42 = vld [vmem:[#allocation5 + $0x160] sm:$0xff]  ;;  %v210_v46 = vld [vmem:[#allocation5 + $0x168] sm:$0xff]  ;;  %v6538_v48 = vcombine.low %v198_v35, %v202_v36 }
  0x67   :  { %v6545_v49 = vcombine.high %v205_v41, %v209_v42  ;;  %v6547_v50 = vcombine.high %v206_v45, %v210_v46  ;;  %v213_v51 = vld [vmem:[#allocation5 + $0x180] sm:$0xff]  ;;  %v214_v54 = vld [vmem:[#allocation5 + $0x188] sm:$0xff]  ;;  %v6544_v56 = vcombine.low %v205_v41, %v209_v42  ;;  %v6546_v57 = vcombine.low %v206_v45, %v210_v46 }
  0x68   :  { %4820 = vmatpush1.bf16.msra.mxu0 %v6520_v26  ;;  %5066 = vmatpush1.bf16.msra.mxu1 %v6522_v27  ;;  %v217_v52 = vld [vmem:[#allocation5 + $0x1a0] sm:$0xff]  ;;  %v218_v55 = vld [vmem:[#allocation5 + $0x1a8] sm:$0xff] }
  0x69   :  { %4821 = vmatprep.subr.bf16.mxu0 %v6529_v28  ;;  %5067 = vmatprep.subr.bf16.mxu1 %v6531_v29  ;;  %v6553_v58 = vcombine.high %v213_v51, %v217_v52  ;;  %v7837_v59 = vld [vmem:[#allocation2] sm:$0xff]  ;;  %v6555_v60 = vcombine.high %v214_v54, %v218_v55  ;;  %v221_v61 = vld [vmem:[#allocation5 + $0x1c0] sm:$0xff]  ;;  %v6552_v2 = vcombine.low %v213_v51, %v217_v52 }
  0x6a   :  { %v225_v62 = vld [vmem:[#allocation5 + $0x1e0] sm:$0xff]  ;;  %v7841_v63 = vrot.slane %v7837_v59, %v7835_v53  ;;  %v222_v0 = vld [vmem:[#allocation5 + $0x1c8] sm:$0xff]  ;;  %v6554_v4 = vcombine.low %v214_v54, %v218_v55 }
  0x6b   :  { %v226_v1 = vld [vmem:[#allocation5 + $0x1e8] sm:$0xff]  ;;  %v6561_v5 = vcombine.high %v221_v61, %v225_v62  ;;  %v229_v7 = vld [vmem:[#allocation5 + $0x200] sm:$0xff]  ;;  %v6560_v12 = vcombine.low %v221_v61, %v225_v62 }
  0x6c   :  { %4822 = vmatpush1.bf16.msra.mxu0 %v6528_v37  ;;  %5068 = vmatpush1.bf16.msra.mxu1 %v6530_v38  ;;  %v105_v3 = vcombine.high %v7841_v63, %v7841_v63  ;;  %v6563_v6 = vcombine.high %v222_v0, %v226_v1  ;;  %v233_v8 = vld [vmem:[#allocation5 + $0x220] sm:$0xff]  ;;  %v230_v10 = vld [vmem:[#allocation5 + $0x208] sm:$0xff]  ;;  %v6562_v13 = vcombine.low %v222_v0, %v226_v1 }
  0x6d   :  { %4823 = vmatprep.subr.bf16.mxu0 %v6537_v39  ;;  %5069 = vmatprep.subr.bf16.mxu1 %v6539_v40  ;;  %v234_v11 = vld [vmem:[#allocation5 + $0x228] sm:$0xff]  ;;  %v6569_v14 = vcombine.high %v229_v7, %v233_v8  ;;  %v237_v16 = vld [vmem:[#allocation5 + $0x240] sm:$0xff]  ;;  %v6568_v20 = vcombine.low %v229_v7, %v233_v8 }
  0x6e   :  { %v7845_v9 = vpack.c.bf16 %v105_v3, %v105_v3  ;;  %v6571_v15 = vcombine.high %v230_v10, %v234_v11  ;;  %v241_v17 = vld [vmem:[#allocation5 + $0x260] sm:$0xff]  ;;  %v238_v18 = vld [vmem:[#allocation5 + $0x248] sm:$0xff]  ;;  %v6570_v21 = vcombine.low %v230_v10, %v234_v11 }
  0x6f   :  { %v242_v19 = vld [vmem:[#allocation5 + $0x268] sm:$0xff]  ;;  %v6577_v22 = vcombine.high %v237_v16, %v241_v17  ;;  %v245_v24 = vld [vmem:[#allocation5 + $0x280] sm:$0xff]  ;;  %v6576_v28 = vcombine.low %v237_v16, %v241_v17 }
  0x70   :  { %4824 = vmatpush1.bf16.msra.mxu0 %v6536_v47  ;;  %5070 = vmatpush1.bf16.msra.mxu1 %v6538_v48  ;;  %v6579_v23 = vcombine.high %v238_v18, %v242_v19  ;;  %v249_v25 = vld [vmem:[#allocation5 + $0x2a0] sm:$0xff]  ;;  %v246_v26 = vld [vmem:[#allocation5 + $0x288] sm:$0xff]  ;;  %v6578_v29 = vcombine.low %v238_v18, %v242_v19 }
  0x71   :  { %4825 = vmatprep.subr.bf16.mxu0 %v6545_v49  ;;  %5071 = vmatprep.subr.bf16.mxu1 %v6547_v50  ;;  %v250_v27 = vld [vmem:[#allocation5 + $0x2a8] sm:$0xff]  ;;  %v6585_v30 = vcombine.high %v245_v24, %v249_v25  ;;  %v253_v32 = vld [vmem:[#allocation5 + $0x2c0] sm:$0xff]  ;;  %v6584_v36 = vcombine.low %v245_v24, %v249_v25  ;;  %v7858_v25 = vpack.c.bf16 %v7841_v63, %v7841_v63 }
  0x72   :  { %4847 = vmatprep.mubr.bf16.mxu0 %v7845_v9  ;;  %5093 = vmatprep.mubr.bf16.mxu1 %v7845_v9  ;;  %v6587_v31 = vcombine.high %v246_v26, %v250_v27  ;;  %v257_v33 = vld [vmem:[#allocation5 + $0x2e0] sm:$0xff]  ;;  %v254_v34 = vld [vmem:[#allocation5 + $0x2c8] sm:$0xff]  ;;  %v6586_v37 = vcombine.low %v246_v26, %v250_v27 }
  0x73   :  { %v258_v35 = vld [vmem:[#allocation5 + $0x2e8] sm:$0xff]  ;;  %v6593_v38 = vcombine.high %v253_v32, %v257_v33  ;;  %v261_v40 = vld [vmem:[#allocation5 + $0x300] sm:$0xff]  ;;  %v6592_v45 = vcombine.low %v253_v32, %v257_v33 }
  0x74   :  { %4826 = vmatpush1.bf16.msra.mxu0 %v6544_v56  ;;  %5072 = vmatpush1.bf16.msra.mxu1 %v6546_v57  ;;  %v6595_v39 = vcombine.high %v254_v34, %v258_v35  ;;  %v265_v41 = vld [vmem:[#allocation5 + $0x320] sm:$0xff]  ;;  %v262_v42 = vld [vmem:[#allocation5 + $0x308] sm:$0xff]  ;;  %v6594_v46 = vcombine.low %v254_v34, %v258_v35 }
  0x75   :  { %4827 = vmatprep.subr.bf16.mxu0 %v6553_v58  ;;  %5073 = vmatprep.subr.bf16.mxu1 %v6555_v60  ;;  %v266_v43 = vld [vmem:[#allocation5 + $0x328] sm:$0xff]  ;;  %v6601_v47 = vcombine.high %v261_v40, %v265_v41  ;;  %v269_v49 = vld [vmem:[#allocation5 + $0x340] sm:$0xff]  ;;  %v6600_v54 = vcombine.low %v261_v40, %v265_v41 }
  0x76   :  { %v6603_v48 = vcombine.high %v262_v42, %v266_v43  ;;  %v273_v50 = vld [vmem:[#allocation5 + $0x360] sm:$0xff]  ;;  %v270_v51 = vld [vmem:[#allocation5 + $0x348] sm:$0xff]  ;;  %v6602_v55 = vcombine.low %v262_v42, %v266_v43 }
  0x77   :  { %v274_v52 = vld [vmem:[#allocation5 + $0x368] sm:$0xff]  ;;  %v6609_v56 = vcombine.high %v269_v49, %v273_v50  ;;  %v277_v58 = vld [vmem:[#allocation5 + $0x380] sm:$0xff]  ;;  %v6608_v0 = vcombine.low %v269_v49, %v273_v50 }
  0x78   :  { %4828 = vmatpush1.bf16.msra.mxu0 %v6552_v2  ;;  %5074 = vmatpush1.bf16.msra.mxu1 %v6554_v4  ;;  %v6611_v57 = vcombine.high %v270_v51, %v274_v52  ;;  %v281_v60 = vld [vmem:[#allocation5 + $0x3a0] sm:$0xff]  ;;  %v278_v61 = vld [vmem:[#allocation5 + $0x388] sm:$0xff]  ;;  %v6610_v1 = vcombine.low %v270_v51, %v274_v52 }
  0x79   :  { %4829 = vmatprep.subr.bf16.mxu0 %v6561_v5  ;;  %5075 = vmatprep.subr.bf16.mxu1 %v6563_v6  ;;  %v282_v62 = vld [vmem:[#allocation5 + $0x3a8] sm:$0xff]  ;;  %v6617_v2 = vcombine.high %v277_v58, %v281_v60  ;;  %v285_v4 = vld [vmem:[#allocation5 + $0x3c0] sm:$0xff]  ;;  %v90_v6 = vcombine.high %v7837_v59, %v7837_v59  ;;  %v6616_v10 = vcombine.low %v277_v58, %v281_v60 }
  0x7a   :  { %v6619_v3 = vcombine.high %v278_v61, %v282_v62  ;;  %v289_v5 = vld [vmem:[#allocation5 + $0x3e0] sm:$0xff]  ;;  %v286_v7 = vld [vmem:[#allocation5 + $0x3c8] sm:$0xff]  ;;  %v6618_v11 = vcombine.low %v278_v61, %v282_v62 }
  0x7b   :  { %v290_v8 = vld [vmem:[#allocation5 + $0x3e8] sm:$0xff]  ;;  %v7852_v16 = vrot.slane %v90_v6, %v7835_v53  ;;  %v6624_v19 = vcombine.low %v285_v4, %v289_v5  ;;  %v313_v32 = vld [vmem:[#allocation5 + $0x4a0] sm:$0xff] }
  0x7c   :  { %4830 = vmatpush1.bf16.msra.mxu0 %v6560_v12  ;;  %5076 = vmatpush1.bf16.msra.mxu1 %v6562_v13  ;;  %v6625_v12 = vcombine.high %v285_v4, %v289_v5  ;;  %v6627_v13 = vcombine.high %v286_v7, %v290_v8  ;;  %v294_v17 = vld [vmem:[#allocation5 + $0x408] sm:$0xff]  ;;  %v6626_v59 = vcombine.low %v286_v7, %v290_v8  ;;  %v321_v40 = vld [vmem:[#allocation5 + $0x4e0] sm:$0xff] }
  0x7d   :  { %4831 = vmatprep.subr.bf16.mxu0 %v6569_v14  ;;  %5077 = vmatprep.subr.bf16.mxu1 %v6571_v15  ;;  %v293_v14 = vld [vmem:[#allocation5 + $0x400] sm:$0xff]  ;;  %v298_v18 = vld [vmem:[#allocation5 + $0x428] sm:$0xff]  ;;  %v106_v24 = vcombine.high %v7852_v16, %v7852_v16 }
  0x7e   :  { %v297_v15 = vld [vmem:[#allocation5 + $0x420] sm:$0xff]  ;;  %v302_v26 = vld [vmem:[#allocation5 + $0x448] sm:$0xff] }
  0x7f   :  { %v306_v27 = vld [vmem:[#allocation5 + $0x468] sm:$0xff]  ;;  %v329_v49 = vld [vmem:[#allocation5 + $0x520] sm:$0xff] }
  0x80   :  { %4832 = vmatpush1.bf16.msra.mxu0 %v6568_v20  ;;  %5078 = vmatpush1.bf16.msra.mxu1 %v6570_v21  ;;  %v6633_v20 = vcombine.high %v293_v14, %v297_v15  ;;  %v6635_v21 = vcombine.high %v294_v17, %v298_v18  ;;  %v310_v33 = vld [vmem:[#allocation5 + $0x488] sm:$0xff]  ;;  %v6643_v34 = vcombine.high %v302_v26, %v306_v27  ;;  %v337_v58 = vld [vmem:[#allocation5 + $0x560] sm:$0xff] }
  0x81   :  { %4833 = vmatprep.subr.bf16.mxu0 %v6577_v22  ;;  %5079 = vmatprep.subr.bf16.mxu1 %v6579_v23  ;;  %v301_v22 = vld [vmem:[#allocation5 + $0x440] sm:$0xff]  ;;  %v314_v35 = vld [vmem:[#allocation5 + $0x4a8] sm:$0xff] }
  0x82   :  { %v305_v23 = vld [vmem:[#allocation5 + $0x460] sm:$0xff]  ;;  %v318_v41 = vld [vmem:[#allocation5 + $0x4c8] sm:$0xff]  ;;  %v6651_v42 = vcombine.high %v310_v33, %v314_v35 }
  0x83   :  { %v6640_v63 = vcombine.low %v301_v22, %v305_v23  ;;  %v322_v43 = vld [vmem:[#allocation5 + $0x4e8] sm:$0xff]  ;;  %v345_v4 = vld [vmem:[#allocation5 + $0x5a0] sm:$0xff] }
  0x84   :  { %4834 = vmatpush1.bf16.msra.mxu0 %v6576_v28  ;;  %5080 = vmatpush1.bf16.msra.mxu1 %v6578_v29  ;;  %v6632_v28 = vcombine.low %v293_v14, %v297_v15  ;;  %v6634_v29 = vcombine.low %v294_v17, %v298_v18  ;;  %v326_v50 = vld [vmem:[#allocation5 + $0x508] sm:$0xff]  ;;  %v6659_v51 = vcombine.high %v318_v41, %v322_v43 }
  0x85   :  { %4835 = vmatprep.subr.bf16.mxu0 %v6585_v30  ;;  %5081 = vmatprep.subr.bf16.mxu1 %v6587_v31  ;;  %v6641_v30 = vcombine.high %v301_v22, %v305_v23  ;;  %v309_v31 = vld [vmem:[#allocation5 + $0x480] sm:$0xff]  ;;  %v330_v52 = vld [vmem:[#allocation5 + $0x528] sm:$0xff] }
  0x86   :  { %v334_v60 = vld [vmem:[#allocation5 + $0x548] sm:$0xff]  ;;  %v6667_v61 = vcombine.high %v326_v50, %v330_v52 }
  0x87   :  { %v338_v62 = vld [vmem:[#allocation5 + $0x568] sm:$0xff] }
  0x88   :  { %4836 = vmatpush1.bf16.msra.mxu0 %v6584_v36  ;;  %5082 = vmatpush1.bf16.msra.mxu1 %v6586_v37  ;;  %v7860_v36 = vpack.c.bf16 %v106_v24, %v106_v24  ;;  %v6642_v37 = vcombine.low %v302_v26, %v306_v27  ;;  %v342_v5 = vld [vmem:[#allocation5 + $0x588] sm:$0xff]  ;;  %v6675_v6 = vcombine.high %v334_v60, %v338_v62 }
  0x89   :  { %4837 = vmatprep.subr.bf16.mxu0 %v6593_v38  ;;  %5083 = vmatprep.subr.bf16.mxu1 %v6595_v39  ;;  %v6649_v38 = vcombine.high %v309_v31, %v313_v32  ;;  %v317_v39 = vld [vmem:[#allocation5 + $0x4c0] sm:$0xff]  ;;  %v346_v7 = vld [vmem:[#allocation5 + $0x5a8] sm:$0xff] }
  0x8a   :  { %v350_v14 = vld [vmem:[#allocation5 + $0x5c8] sm:$0xff]  ;;  %v6683_v15 = vcombine.high %v342_v5, %v346_v7 }
  0x8b   :  { %v354_v17 = vld [vmem:[#allocation5 + $0x5e8] sm:$0xff] }
  0x8c   :  { %4838 = vmatpush1.bf16.msra.mxu0 %v6592_v45  ;;  %5084 = vmatpush1.bf16.msra.mxu1 %v6594_v46  ;;  %v6648_v45 = vcombine.low %v309_v31, %v313_v32  ;;  %v6650_v46 = vcombine.low %v310_v33, %v314_v35  ;;  %v358_v22 = vld [vmem:[#allocation5 + $0x608] sm:$0xff]  ;;  %v6691_v23 = vcombine.high %v350_v14, %v354_v17 }
  0x8d   :  { %4839 = vmatprep.subr.bf16.mxu0 %v6601_v47  ;;  %5085 = vmatprep.subr.bf16.mxu1 %v6603_v48  ;;  %v6657_v47 = vcombine.high %v317_v39, %v321_v40  ;;  %v325_v48 = vld [vmem:[#allocation5 + $0x500] sm:$0xff]  ;;  %v362_v24 = vld [vmem:[#allocation5 + $0x628] sm:$0xff]  ;;  %v6690_v27 = vcombine.low %v350_v14, %v354_v17 }
  0x8e   :  { %v366_v31 = vld [vmem:[#allocation5 + $0x648] sm:$0xff]  ;;  %v6699_v32 = vcombine.high %v358_v22, %v362_v24  ;;  %v6698_v35 = vcombine.low %v358_v22, %v362_v24  ;;  %v413_v17 = vld [vmem:[#allocation5 + $0x7c0] sm:$0xff] }
  0x8f   :  { %v370_v33 = vld [vmem:[#allocation5 + $0x668] sm:$0xff] }
  0x90   :  { %4840 = vmatpush1.bf16.msra.mxu0 %v6600_v54  ;;  %5086 = vmatpush1.bf16.msra.mxu1 %v6602_v55  ;;  %v6656_v54 = vcombine.low %v317_v39, %v321_v40  ;;  %v6658_v55 = vcombine.low %v318_v41, %v322_v43  ;;  %v374_v39 = vld [vmem:[#allocation5 + $0x688] sm:$0xff]  ;;  %v6707_v40 = vcombine.high %v366_v31, %v370_v33 }
  0x91   :  { %4841 = vmatprep.subr.bf16.mxu0 %v6609_v56  ;;  %5087 = vmatprep.subr.bf16.mxu1 %v6611_v57  ;;  %v6665_v56 = vcombine.high %v325_v48, %v329_v49  ;;  %v333_v57 = vld [vmem:[#allocation5 + $0x540] sm:$0xff]  ;;  %v378_v41 = vld [vmem:[#allocation5 + $0x6a8] sm:$0xff]  ;;  %v6706_v43 = vcombine.low %v366_v31, %v370_v33 }
  0x92   :  { %v6672_v8 = vcombine.low %v333_v57, %v337_v58  ;;  %v410_v14 = vld [vmem:[#allocation5 + $0x7a8] sm:$0xff] }
  0x94   :  { %4842 = vmatpush1.bf16.msra.mxu0 %v6608_v0  ;;  %5088 = vmatpush1.bf16.msra.mxu1 %v6610_v1  ;;  %v6664_v0 = vcombine.low %v325_v48, %v329_v49  ;;  %v6666_v1 = vcombine.low %v326_v50, %v330_v52  ;;  %v382_v48 = vld [vmem:[#allocation5 + $0x6c8] sm:$0xff]  ;;  %v6715_v49 = vcombine.high %v374_v39, %v378_v41 }
  0x95   :  { %4843 = vmatprep.subr.bf16.mxu0 %v6617_v2  ;;  %5089 = vmatprep.subr.bf16.mxu1 %v6619_v3  ;;  %v6673_v2 = vcombine.high %v333_v57, %v337_v58  ;;  %v341_v3 = vld [vmem:[#allocation5 + $0x580] sm:$0xff]  ;;  %v386_v50 = vld [vmem:[#allocation5 + $0x6e8] sm:$0xff]  ;;  %v6714_v52 = vcombine.low %v374_v39, %v378_v41 }
  0x96   :  { %v6680_v18 = vcombine.low %v341_v3, %v345_v4  ;;  %v390_v57 = vld [vmem:[#allocation5 + $0x708] sm:$0xff]  ;;  %v6723_v58 = vcombine.high %v382_v48, %v386_v50 }
  0x97   :  { %v430_v39 = vld [vmem:[#allocation5 + $0x848] sm:$0xff] }
  0x98   :  { %4844 = vmatpush1.bf16.msra.mxu0 %v6616_v10  ;;  %5090 = vmatpush1.bf16.msra.mxu1 %v6618_v11  ;;  %v6674_v10 = vcombine.low %v334_v60, %v338_v62  ;;  %v6681_v11 = vcombine.high %v341_v3, %v345_v4  ;;  %v394_v60 = vld [vmem:[#allocation5 + $0x728] sm:$0xff]  ;;  %v6722_v62 = vcombine.low %v382_v48, %v386_v50  ;;  %v441_v50 = vld [vmem:[#allocation5 + $0x8a0] sm:$0xff] }
  0x99   :  { %4845 = vmatprep.subr.bf16.mxu0 %v6625_v12  ;;  %5091 = vmatprep.subr.bf16.mxu1 %v6627_v13  ;;  %v349_v12 = vld [vmem:[#allocation5 + $0x5c0] sm:$0xff]  ;;  %v398_v3 = vld [vmem:[#allocation5 + $0x748] sm:$0xff]  ;;  %v6731_v4 = vcombine.high %v390_v57, %v394_v60 }
  0x9a   :  { %v353_v13 = vld [vmem:[#allocation5 + $0x5e0] sm:$0xff]  ;;  %v434_v41 = vld [vmem:[#allocation5 + $0x868] sm:$0xff] }
  0x9b   :  { %v6688_v26 = vcombine.low %v349_v12, %v353_v13  ;;  %v6771_v48 = vcombine.high %v430_v39, %v434_v41 }
  0x9c   :  { %4846 = vmatpush1.bf16.msra.mxu0 %v6624_v19  ;;  %5092 = vmatpush1.bf16.msra.mxu1 %v6626_v59  ;;  %v6682_v19 = vcombine.low %v342_v5, %v346_v7  ;;  %v6689_v59 = vcombine.high %v349_v12, %v353_v13  ;;  %v402_v5 = vld [vmem:[#allocation5 + $0x768] sm:$0xff]  ;;  %v6730_v7 = vcombine.low %v390_v57, %v394_v60  ;;  %v449_v60 = vld [vmem:[#allocation5 + $0x8e0] sm:$0xff] }
  0x9d   :  { %4856 = vmatprep.subr.bf16.mxu0 %v6633_v20  ;;  %5102 = vmatprep.subr.bf16.mxu1 %v6635_v21  ;;  %v357_v20 = vld [vmem:[#allocation5 + $0x600] sm:$0xff]  ;;  %v406_v12 = vld [vmem:[#allocation5 + $0x788] sm:$0xff]  ;;  %v6739_v13 = vcombine.high %v398_v3, %v402_v5 }
  0x9e   :  { %v361_v21 = vld [vmem:[#allocation5 + $0x620] sm:$0xff]  ;;  %v6747_v22 = vcombine.high %v406_v12, %v410_v14 }
  0x9f   :  { %4848 = vmatmul.mubr.bf16.vlgmr.msra.gmra.mrb[0].mxu0 %v7858_v25  ;;  %5094 = vmatmul.mubr.bf16.vlgmr.msra.gmra.mrb[0].mxu1 %v7858_v25 }
  0xa0   :  { %4857 = vmatpush1.bf16.msra.mxu0 %v6632_v28  ;;  %5103 = vmatpush1.bf16.msra.mxu1 %v6634_v29  ;;  %v6697_v28 = vcombine.high %v357_v20, %v361_v21  ;;  %v365_v29 = vld [vmem:[#allocation5 + $0x640] sm:$0xff] }
  0xa1   :  { %4858 = vmatprep.subr.bf16.mxu0 %v6641_v30  ;;  %5104 = vmatprep.subr.bf16.mxu1 %v6643_v34  ;;  %v369_v30 = vld [vmem:[#allocation5 + $0x660] sm:$0xff]  ;;  %v6696_v34 = vcombine.low %v357_v20, %v361_v21  ;;  %v414_v20 = vld [vmem:[#allocation5 + $0x7c8] sm:$0xff] }
  0xa2   :  { %4888 = vmatprep.mubr.bf16.mxu0 %v7860_v36  ;;  %5134 = vmatprep.mubr.bf16.mxu1 %v7860_v36  ;;  %v418_v21 = vld [vmem:[#allocation5 + $0x7e8] sm:$0xff] }
  0xa3   :  { %v6755_v31 = vcombine.high %v414_v20, %v418_v21 }
  0xa4   :  { %4859 = vmatpush1.bf16.msra.mxu0 %v6640_v63  ;;  %5105 = vmatpush1.bf16.msra.mxu1 %v6642_v37  ;;  %v6705_v63 = vcombine.high %v365_v29, %v369_v30  ;;  %v373_v37 = vld [vmem:[#allocation5 + $0x680] sm:$0xff] }
  0xa5   :  { %4860 = vmatprep.subr.bf16.mxu0 %v6649_v38  ;;  %5106 = vmatprep.subr.bf16.mxu1 %v6651_v42  ;;  %v377_v38 = vld [vmem:[#allocation5 + $0x6a0] sm:$0xff]  ;;  %v6704_v42 = vcombine.low %v365_v29, %v369_v30  ;;  %v422_v30 = vld [vmem:[#allocation5 + $0x808] sm:$0xff] }
  0xa6   :  { %v425_v29 = vld [vmem:[#allocation5 + $0x820] sm:$0xff] }
  0xa8   :  { %4861 = vmatpush1.bf16.msra.mxu0 %v6648_v45  ;;  %5107 = vmatpush1.bf16.msra.mxu1 %v6650_v46  ;;  %v6713_v45 = vcombine.high %v373_v37, %v377_v38  ;;  %v381_v46 = vld [vmem:[#allocation5 + $0x6c0] sm:$0xff] }
  0xa9   :  { %4862 = vmatprep.subr.bf16.mxu0 %v6657_v47  ;;  %5108 = vmatprep.subr.bf16.mxu1 %v6659_v51  ;;  %v385_v47 = vld [vmem:[#allocation5 + $0x6e0] sm:$0xff]  ;;  %v6712_v51 = vcombine.low %v373_v37, %v377_v38 }
  0xaa   :  { %v429_v37 = vld [vmem:[#allocation5 + $0x840] sm:$0xff] }
  0xab   :  { %v433_v38 = vld [vmem:[#allocation5 + $0x860] sm:$0xff] }
  0xac   :  { %4863 = vmatpush1.bf16.msra.mxu0 %v6656_v54  ;;  %5109 = vmatpush1.bf16.msra.mxu1 %v6658_v55  ;;  %v6721_v54 = vcombine.high %v381_v46, %v385_v47  ;;  %v389_v55 = vld [vmem:[#allocation5 + $0x700] sm:$0xff] }
  0xad   :  { %4864 = vmatprep.subr.bf16.mxu0 %v6665_v56  ;;  %5110 = vmatprep.subr.bf16.mxu1 %v6667_v61  ;;  %v393_v56 = vld [vmem:[#allocation5 + $0x720] sm:$0xff]  ;;  %v6720_v61 = vcombine.low %v381_v46, %v385_v47  ;;  %v6769_v47 = vcombine.high %v429_v37, %v433_v38 }
  0xb0   :  { %4865 = vmatpush1.bf16.msra.mxu0 %v6664_v0  ;;  %5111 = vmatpush1.bf16.msra.mxu1 %v6666_v1  ;;  %v6729_v0 = vcombine.high %v389_v55, %v393_v56  ;;  %v397_v1 = vld [vmem:[#allocation5 + $0x740] sm:$0xff] }
  0xb1   :  { %4866 = vmatprep.subr.bf16.mxu0 %v6673_v2  ;;  %5112 = vmatprep.subr.bf16.mxu1 %v6675_v6  ;;  %v401_v2 = vld [vmem:[#allocation5 + $0x760] sm:$0xff]  ;;  %v6728_v6 = vcombine.low %v389_v55, %v393_v56  ;;  %v6770_v55 = vcombine.low %v430_v39, %v434_v41 }
  0xb2   :  { %v489_v41 = vld [vmem:[#allocation5 + $0xa20] sm:$0xff] }
  0xb4   :  { %4867 = vmatpush1.bf16.msra.mxu0 %v6672_v8  ;;  %5113 = vmatpush1.bf16.msra.mxu1 %v6674_v10  ;;  %v6737_v8 = vcombine.high %v397_v1, %v401_v2  ;;  %v405_v10 = vld [vmem:[#allocation5 + $0x780] sm:$0xff] }
  0xb5   :  { %4868 = vmatprep.subr.bf16.mxu0 %v6681_v11  ;;  %5114 = vmatprep.subr.bf16.mxu1 %v6683_v15  ;;  %v409_v11 = vld [vmem:[#allocation5 + $0x7a0] sm:$0xff]  ;;  %v6736_v15 = vcombine.low %v397_v1, %v401_v2 }
  0xb6   :  { %v6744_v24 = vcombine.low %v405_v10, %v409_v11 }
  0xb8   :  { %4869 = vmatpush1.bf16.msra.mxu0 %v6680_v18  ;;  %5115 = vmatpush1.bf16.msra.mxu1 %v6682_v19  ;;  %v6738_v18 = vcombine.low %v398_v3, %v402_v5  ;;  %v6745_v19 = vcombine.high %v405_v10, %v409_v11  ;;  %v457_v5 = vld [vmem:[#allocation5 + $0x920] sm:$0xff] }
  0xb9   :  { %4870 = vmatprep.subr.bf16.mxu0 %v6689_v59  ;;  %5116 = vmatprep.subr.bf16.mxu1 %v6691_v23  ;;  %v417_v59 = vld [vmem:[#allocation5 + $0x7e0] sm:$0xff]  ;;  %v7866_v23 = vld [vmem:[#allocation2 + $0x8] sm:$0xff] }
  0xba   :  { %v7870_v33 = vrot.slane %v7866_v23, %v7835_v53 }
  0xbc   :  { %4871 = vmatpush1.bf16.msra.mxu0 %v6688_v26  ;;  %5117 = vmatpush1.bf16.msra.mxu1 %v6690_v27  ;;  %v6746_v26 = vcombine.low %v406_v12, %v410_v14  ;;  %v6753_v27 = vcombine.high %v413_v17, %v417_v59  ;;  %v465_v14 = vld [vmem:[#allocation5 + $0x960] sm:$0xff] }
  0xbd   :  { %4872 = vmatprep.subr.bf16.mxu0 %v6697_v28  ;;  %5118 = vmatprep.subr.bf16.mxu1 %v6699_v32  ;;  %v421_v28 = vld [vmem:[#allocation5 + $0x800] sm:$0xff]  ;;  %v426_v32 = vld [vmem:[#allocation5 + $0x828] sm:$0xff] }
  0xbe   :  { %v6762_v46 = vcombine.low %v422_v30, %v426_v32 }
  0xc0   :  { %4873 = vmatpush1.bf16.msra.mxu0 %v6696_v34  ;;  %5119 = vmatpush1.bf16.msra.mxu1 %v6698_v35  ;;  %v6752_v34 = vcombine.low %v413_v17, %v417_v59  ;;  %v6754_v35 = vcombine.low %v414_v20, %v418_v21  ;;  %v466_v17 = vld [vmem:[#allocation5 + $0x968] sm:$0xff]  ;;  %v469_v21 = vld [vmem:[#allocation5 + $0x980] sm:$0xff] }
  0xc1   :  { %4874 = vmatprep.subr.bf16.mxu0 %v6705_v63  ;;  %5120 = vmatprep.subr.bf16.mxu1 %v6707_v40  ;;  %v6761_v63 = vcombine.high %v421_v28, %v425_v29  ;;  %v6763_v40 = vcombine.high %v422_v30, %v426_v32  ;;  %v481_v32 = vld [vmem:[#allocation5 + $0x9e0] sm:$0xff] }
  0xc4   :  { %4875 = vmatpush1.bf16.msra.mxu0 %v6704_v42  ;;  %5121 = vmatpush1.bf16.msra.mxu1 %v6706_v43  ;;  %v122_v42 = vcombine.high %v7870_v33, %v7870_v33  ;;  %v7876_v43 = vpack.c.bf16 %v7852_v16, %v7852_v16  ;;  %v6768_v16 = vcombine.low %v429_v37, %v433_v38 }
  0xc5   :  { %4876 = vmatprep.subr.bf16.mxu0 %v6713_v45  ;;  %5122 = vmatprep.subr.bf16.mxu1 %v6715_v49  ;;  %v6760_v45 = vcombine.low %v421_v28, %v425_v29  ;;  %v437_v49 = vld [vmem:[#allocation5 + $0x880] sm:$0xff] }
  0xc6   :  { %v6777_v56 = vcombine.high %v437_v49, %v441_v50 }
  0xc8   :  { %4877 = vmatpush1.bf16.msra.mxu0 %v6712_v51  ;;  %5123 = vmatpush1.bf16.msra.mxu1 %v6714_v52  ;;  %v7878_v51 = vpack.c.bf16 %v122_v42, %v122_v42  ;;  %v438_v52 = vld [vmem:[#allocation5 + $0x888] sm:$0xff] }
  0xc9   :  { %4878 = vmatprep.subr.bf16.mxu0 %v6721_v54  ;;  %5124 = vmatprep.subr.bf16.mxu1 %v6723_v58  ;;  %v442_v54 = vld [vmem:[#allocation5 + $0x8a8] sm:$0xff]  ;;  %v445_v58 = vld [vmem:[#allocation5 + $0x8c0] sm:$0xff] }
  0xca   :  { %v6779_v57 = vcombine.high %v438_v52, %v442_v54  ;;  %v6778_v1 = vcombine.low %v438_v52, %v442_v54  ;;  %v6785_v2 = vcombine.high %v445_v58, %v449_v60  ;;  %v486_v42 = vld [vmem:[#allocation5 + $0xa08] sm:$0xff]  ;;  %v497_v52 = vld [vmem:[#allocation5 + $0xa60] sm:$0xff] }
  0xcb   :  { %v494_v54 = vld [vmem:[#allocation5 + $0xa48] sm:$0xff] }
  0xcc   :  { %4879 = vmatpush1.bf16.msra.mxu0 %v6720_v61  ;;  %5125 = vmatpush1.bf16.msra.mxu1 %v6722_v62  ;;  %v446_v61 = vld [vmem:[#allocation5 + $0x8c8] sm:$0xff] }
  0xcd   :  { %4880 = vmatprep.subr.bf16.mxu0 %v6729_v0  ;;  %5126 = vmatprep.subr.bf16.mxu1 %v6731_v4  ;;  %v450_v62 = vld [vmem:[#allocation5 + $0x8e8] sm:$0xff]  ;;  %v6776_v0 = vcombine.low %v437_v49, %v441_v50  ;;  %v453_v4 = vld [vmem:[#allocation5 + $0x900] sm:$0xff] }
  0xce   :  { %v6787_v3 = vcombine.high %v446_v61, %v450_v62  ;;  %v6786_v10 = vcombine.low %v446_v61, %v450_v62  ;;  %v6793_v11 = vcombine.high %v453_v4, %v457_v5  ;;  %v493_v50 = vld [vmem:[#allocation5 + $0xa40] sm:$0xff]  ;;  %v502_v62 = vld [vmem:[#allocation5 + $0xa88] sm:$0xff] }
  0xcf   :  { %v505_v61 = vld [vmem:[#allocation5 + $0xaa0] sm:$0xff] }
  0xd0   :  { %4881 = vmatpush1.bf16.msra.mxu0 %v6728_v6  ;;  %5127 = vmatpush1.bf16.msra.mxu1 %v6730_v7  ;;  %v454_v6 = vld [vmem:[#allocation5 + $0x908] sm:$0xff] }
  0xd1   :  { %4882 = vmatprep.subr.bf16.mxu0 %v6737_v8  ;;  %5128 = vmatprep.subr.bf16.mxu1 %v6739_v13  ;;  %v458_v7 = vld [vmem:[#allocation5 + $0x928] sm:$0xff]  ;;  %v6784_v8 = vcombine.low %v445_v58, %v449_v60  ;;  %v461_v13 = vld [vmem:[#allocation5 + $0x940] sm:$0xff] }
  0xd2   :  { %v6795_v12 = vcombine.high %v454_v6, %v458_v7  ;;  %v6801_v59 = vcombine.high %v461_v13, %v465_v14  ;;  %v501_v60 = vld [vmem:[#allocation5 + $0xa80] sm:$0xff] }
  0xd4   :  { %4883 = vmatpush1.bf16.msra.mxu0 %v6736_v15  ;;  %5129 = vmatpush1.bf16.msra.mxu1 %v6738_v18  ;;  %v462_v15 = vld [vmem:[#allocation5 + $0x948] sm:$0xff]  ;;  %v6792_v18 = vcombine.low %v453_v4, %v457_v5  ;;  %v509_v5 = vld [vmem:[#allocation5 + $0xac0] sm:$0xff] }
  0xd5   :  { %4884 = vmatprep.subr.bf16.mxu0 %v6745_v19  ;;  %5130 = vmatprep.subr.bf16.mxu1 %v6747_v22  ;;  %v6794_v19 = vcombine.low %v454_v6, %v458_v7  ;;  %v6803_v20 = vcombine.high %v462_v15, %v466_v17  ;;  %v473_v22 = vld [vmem:[#allocation5 + $0x9a0] sm:$0xff]  ;;  %v6802_v28 = vcombine.low %v462_v15, %v466_v17  ;;  %v510_v7 = vld [vmem:[#allocation5 + $0xac8] sm:$0xff] }
  0xd6   :  { %v6809_v29 = vcombine.high %v469_v21, %v473_v22  ;;  %v513_v6 = vld [vmem:[#allocation5 + $0xae0] sm:$0xff]  ;;  %v518_v17 = vld [vmem:[#allocation5 + $0xb08] sm:$0xff] }
  0xd7   :  { %v521_v15 = vld [vmem:[#allocation5 + $0xb20] sm:$0xff] }
  0xd8   :  { %4885 = vmatpush1.bf16.msra.mxu0 %v6744_v24  ;;  %5131 = vmatpush1.bf16.msra.mxu1 %v6746_v26  ;;  %v470_v24 = vld [vmem:[#allocation5 + $0x988] sm:$0xff] }
  0xd9   :  { %4886 = vmatprep.subr.bf16.mxu0 %v6753_v27  ;;  %5132 = vmatprep.subr.bf16.mxu1 %v6755_v31  ;;  %v474_v26 = vld [vmem:[#allocation5 + $0x9a8] sm:$0xff]  ;;  %v6800_v27 = vcombine.low %v461_v13, %v465_v14  ;;  %v477_v31 = vld [vmem:[#allocation5 + $0x9c0] sm:$0xff] }
  0xda   :  { %v6811_v30 = vcombine.high %v470_v24, %v474_v26  ;;  %v6810_v37 = vcombine.low %v470_v24, %v474_v26  ;;  %v6817_v38 = vcombine.high %v477_v31, %v481_v32  ;;  %v517_v14 = vld [vmem:[#allocation5 + $0xb00] sm:$0xff]  ;;  %v526_v26 = vld [vmem:[#allocation5 + $0xb48] sm:$0xff] }
  0xdb   :  { %v529_v24 = vld [vmem:[#allocation5 + $0xb60] sm:$0xff] }
  0xdc   :  { %4887 = vmatpush1.bf16.msra.mxu0 %v6752_v34  ;;  %5133 = vmatpush1.bf16.msra.mxu1 %v6754_v35  ;;  %v478_v34 = vld [vmem:[#allocation5 + $0x9c8] sm:$0xff] }
  0xdd   :  { %4897 = vmatprep.subr.bf16.mxu0 %v6761_v63  ;;  %5143 = vmatprep.subr.bf16.mxu1 %v6763_v40  ;;  %v482_v35 = vld [vmem:[#allocation5 + $0x9e8] sm:$0xff]  ;;  %v6808_v63 = vcombine.low %v469_v21, %v473_v22  ;;  %v485_v40 = vld [vmem:[#allocation5 + $0xa00] sm:$0xff] }
  0xde   :  { %v6819_v39 = vcombine.high %v478_v34, %v482_v35  ;;  %v525_v22 = vld [vmem:[#allocation5 + $0xb40] sm:$0xff] }
  0xdf   :  { %4889 = vmatmul.mubr.bf16.vlgmr.msra.gmra.mrb[0].mxu0 %v7876_v43  ;;  %5135 = vmatmul.mubr.bf16.vlgmr.msra.gmra.mrb[0].mxu1 %v7876_v43 }
  0xe0   :  { %4898 = vmatpush1.bf16.msra.mxu0 %v6760_v45  ;;  %5144 = vmatpush1.bf16.msra.mxu1 %v6762_v46  ;;  %v490_v45 = vld [vmem:[#allocation5 + $0xa28] sm:$0xff]  ;;  %v6816_v46 = vcombine.low %v477_v31, %v481_v32  ;;  %v533_v32 = vld [vmem:[#allocation5 + $0xb80] sm:$0xff] }
  0xe1   :  { %4899 = vmatprep.subr.bf16.mxu0 %v6769_v47  ;;  %5145 = vmatprep.subr.bf16.mxu1 %v6771_v48  ;;  %v6818_v47 = vcombine.low %v478_v34, %v482_v35  ;;  %v6825_v48 = vcombine.high %v485_v40, %v489_v41  ;;  %v6827_v49 = vcombine.high %v486_v42, %v490_v45  ;;  %v537_v34 = vld [vmem:[#allocation5 + $0xba0] sm:$0xff]  ;;  %v534_v35 = vld [vmem:[#allocation5 + $0xb88] sm:$0xff] }
  0xe2   :  { %4929 = vmatprep.mubr.bf16.mxu0 %v7878_v51  ;;  %5175 = vmatprep.mubr.bf16.mxu1 %v7878_v51 }
  0xe4   :  { %4900 = vmatpush1.bf16.msra.mxu0 %v6768_v16  ;;  %5146 = vmatpush1.bf16.msra.mxu1 %v6770_v55  ;;  %v498_v16 = vld [vmem:[#allocation5 + $0xa68] sm:$0xff]  ;;  %v6824_v55 = vcombine.low %v485_v40, %v489_v41  ;;  %v541_v41 = vld [vmem:[#allocation5 + $0xbc0] sm:$0xff] }
  0xe5   :  { %4901 = vmatprep.subr.bf16.mxu0 %v6777_v56  ;;  %5147 = vmatprep.subr.bf16.mxu1 %v6779_v57  ;;  %v6826_v56 = vcombine.low %v486_v42, %v490_v45  ;;  %v6833_v57 = vcombine.high %v493_v50, %v497_v52  ;;  %v6835_v58 = vcombine.high %v494_v54, %v498_v16  ;;  %v545_v42 = vld [vmem:[#allocation5 + $0xbe0] sm:$0xff] }
  0xe6   :  { %v107_v45 = vcombine.high %v7866_v23, %v7866_v23 }
  0xe8   :  { %4902 = vmatpush1.bf16.msra.mxu0 %v6776_v0  ;;  %5148 = vmatpush1.bf16.msra.mxu1 %v6778_v1  ;;  %v506_v0 = vld [vmem:[#allocation5 + $0xaa8] sm:$0xff]  ;;  %v6832_v1 = vcombine.low %v493_v50, %v497_v52  ;;  %v6881_v50 = vcombine.high %v541_v41, %v545_v42 }
  0xe9   :  { %4903 = vmatprep.subr.bf16.mxu0 %v6785_v2  ;;  %5149 = vmatprep.subr.bf16.mxu1 %v6787_v3  ;;  %v6834_v2 = vcombine.low %v494_v54, %v498_v16  ;;  %v6841_v3 = vcombine.high %v501_v60, %v505_v61  ;;  %v6843_v4 = vcombine.high %v502_v62, %v506_v0  ;;  %v549_v54 = vld [vmem:[#allocation5 + $0xc00] sm:$0xff] }
  0xea   :  { %v553_v16 = vld [vmem:[#allocation5 + $0xc20] sm:$0xff] }
  0xec   :  { %4904 = vmatpush1.bf16.msra.mxu0 %v6784_v8  ;;  %5150 = vmatpush1.bf16.msra.mxu1 %v6786_v10  ;;  %v514_v8 = vld [vmem:[#allocation5 + $0xae8] sm:$0xff]  ;;  %v6840_v10 = vcombine.low %v501_v60, %v505_v61  ;;  %v6889_v60 = vcombine.high %v549_v54, %v553_v16 }
  0xed   :  { %4905 = vmatprep.subr.bf16.mxu0 %v6793_v11  ;;  %5151 = vmatprep.subr.bf16.mxu1 %v6795_v12  ;;  %v6842_v11 = vcombine.low %v502_v62, %v506_v0  ;;  %v6849_v12 = vcombine.high %v509_v5, %v513_v6  ;;  %v6851_v13 = vcombine.high %v510_v7, %v514_v8  ;;  %v557_v62 = vld [vmem:[#allocation5 + $0xc40] sm:$0xff] }
  0xee   :  { %v561_v0 = vld [vmem:[#allocation5 + $0xc60] sm:$0xff] }
  0xf0   :  { %4906 = vmatpush1.bf16.msra.mxu0 %v6792_v18  ;;  %5152 = vmatpush1.bf16.msra.mxu1 %v6794_v19  ;;  %v522_v18 = vld [vmem:[#allocation5 + $0xb28] sm:$0xff]  ;;  %v6848_v19 = vcombine.low %v509_v5, %v513_v6  ;;  %v6888_v5 = vcombine.low %v549_v54, %v553_v16 }
  0xf1   :  { %4907 = vmatprep.subr.bf16.mxu0 %v6801_v59  ;;  %5153 = vmatprep.subr.bf16.mxu1 %v6803_v20  ;;  %v6850_v59 = vcombine.low %v510_v7, %v514_v8  ;;  %v6857_v20 = vcombine.high %v517_v14, %v521_v15  ;;  %v6859_v21 = vcombine.high %v518_v17, %v522_v18 }
  0xf2   :  { %v6897_v7 = vcombine.high %v557_v62, %v561_v0 }
  0xf4   :  { %4908 = vmatpush1.bf16.msra.mxu0 %v6800_v27  ;;  %5154 = vmatpush1.bf16.msra.mxu1 %v6802_v28  ;;  %v530_v27 = vld [vmem:[#allocation5 + $0xb68] sm:$0xff]  ;;  %v6856_v28 = vcombine.low %v517_v14, %v521_v15 }
  0xf5   :  { %4909 = vmatprep.subr.bf16.mxu0 %v6809_v29  ;;  %5155 = vmatprep.subr.bf16.mxu1 %v6811_v30  ;;  %v6858_v29 = vcombine.low %v518_v17, %v522_v18  ;;  %v6865_v30 = vcombine.high %v525_v22, %v529_v24  ;;  %v6867_v31 = vcombine.high %v526_v26, %v530_v27  ;;  %v570_v14 = vld [vmem:[#allocation5 + $0xca8] sm:$0xff] }
  0xf8   :  { %4910 = vmatpush1.bf16.msra.mxu0 %v6808_v63  ;;  %5156 = vmatpush1.bf16.msra.mxu1 %v6810_v37  ;;  %v538_v63 = vld [vmem:[#allocation5 + $0xba8] sm:$0xff]  ;;  %v6864_v37 = vcombine.low %v525_v22, %v529_v24 }
  0xf9   :  { %4911 = vmatprep.subr.bf16.mxu0 %v6817_v38  ;;  %5157 = vmatprep.subr.bf16.mxu1 %v6819_v39  ;;  %v6866_v38 = vcombine.low %v526_v26, %v530_v27  ;;  %v6873_v39 = vcombine.high %v533_v32, %v537_v34  ;;  %v6875_v40 = vcombine.high %v534_v35, %v538_v63 }
  0xfc   :  { %4912 = vmatpush1.bf16.msra.mxu0 %v6816_v46  ;;  %5158 = vmatpush1.bf16.msra.mxu1 %v6818_v47  ;;  %v542_v46 = vld [vmem:[#allocation5 + $0xbc8] sm:$0xff] }
  0xfd   :  { %4913 = vmatprep.subr.bf16.mxu0 %v6825_v48  ;;  %5159 = vmatprep.subr.bf16.mxu1 %v6827_v49  ;;  %v546_v47 = vld [vmem:[#allocation5 + $0xbe8] sm:$0xff]  ;;  %v6872_v48 = vcombine.low %v533_v32, %v537_v34  ;;  %v6874_v49 = vcombine.low %v534_v35, %v538_v63 }
  0xfe   :  { %v6883_v52 = vcombine.high %v542_v46, %v546_v47  ;;  %v6882_v23 = vcombine.low %v542_v46, %v546_v47  ;;  %v597_v47 = vld [vmem:[#allocation5 + $0xd80] sm:$0xff] }
 0x100   :  { %4914 = vmatpush1.bf16.msra.mxu0 %v6824_v55  ;;  %5160 = vmatpush1.bf16.msra.mxu1 %v6826_v56  ;;  %v7887_v55 = vrot.slane %v107_v45, %v7835_v53  ;;  %v550_v56 = vld [vmem:[#allocation5 + $0xc08] sm:$0xff] }
 0x101   :  { %4915 = vmatprep.subr.bf16.mxu0 %v6833_v57  ;;  %5161 = vmatprep.subr.bf16.mxu1 %v6835_v58  ;;  %v554_v57 = vld [vmem:[#allocation5 + $0xc28] sm:$0xff]  ;;  %v6880_v58 = vcombine.low %v541_v41, %v545_v42 }
 0x102   :  { %v6891_v61 = vcombine.high %v550_v56, %v554_v57  ;;  %v6890_v6 = vcombine.low %v550_v56, %v554_v57  ;;  %v605_v57 = vld [vmem:[#allocation5 + $0xdc0] sm:$0xff] }
 0x104   :  { %4916 = vmatpush1.bf16.msra.mxu0 %v6832_v1  ;;  %5162 = vmatpush1.bf16.msra.mxu1 %v6834_v2  ;;  %v123_v1 = vcombine.high %v7887_v55, %v7887_v55  ;;  %v7893_v2 = vpack.c.bf16 %v7870_v33, %v7870_v33  ;;  %v6896_v33 = vcombine.low %v557_v62, %v561_v0 }
 0x105   :  { %4917 = vmatprep.subr.bf16.mxu0 %v6841_v3  ;;  %5163 = vmatprep.subr.bf16.mxu1 %v6843_v4  ;;  %v558_v3 = vld [vmem:[#allocation5 + $0xc48] sm:$0xff] }
 0x106   :  { %v562_v4 = vld [vmem:[#allocation5 + $0xc68] sm:$0xff] }
 0x107   :  { %v6899_v8 = vcombine.high %v558_v3, %v562_v4  ;;  %v6898_v15 = vcombine.low %v558_v3, %v562_v4  ;;  %v613_v3 = vld [vmem:[#allocation5 + $0xe00] sm:$0xff] }
 0x108   :  { %4918 = vmatpush1.bf16.msra.mxu0 %v6840_v10  ;;  %5164 = vmatpush1.bf16.msra.mxu1 %v6842_v11  ;;  %v565_v10 = vld [vmem:[#allocation5 + $0xc80] sm:$0xff] }
 0x109   :  { %4919 = vmatprep.subr.bf16.mxu0 %v6849_v12  ;;  %5165 = vmatprep.subr.bf16.mxu1 %v6851_v13  ;;  %v569_v11 = vld [vmem:[#allocation5 + $0xca0] sm:$0xff]  ;;  %v7895_v12 = vpack.c.bf16 %v123_v1, %v123_v1  ;;  %v566_v13 = vld [vmem:[#allocation5 + $0xc88] sm:$0xff] }
 0x10a   :  { %v6905_v17 = vcombine.high %v565_v10, %v569_v11  ;;  %v6907_v18 = vcombine.high %v566_v13, %v570_v14  ;;  %v6904_v22 = vcombine.low %v565_v10, %v569_v11  ;;  %v6906_v24 = vcombine.low %v566_v13, %v570_v14  ;;  %v617_v4 = vld [vmem:[#allocation5 + $0xe20] sm:$0xff] }
 0x10b   :  { %v6953_v10 = vcombine.high %v613_v3, %v617_v4  ;;  %v621_v13 = vld [vmem:[#allocation5 + $0xe40] sm:$0xff] }
 0x10c   :  { %4920 = vmatpush1.bf16.msra.mxu0 %v6848_v19  ;;  %5166 = vmatpush1.bf16.msra.mxu1 %v6850_v59  ;;  %v573_v19 = vld [vmem:[#allocation5 + $0xcc0] sm:$0xff] }
 0x10d   :  { %4921 = vmatprep.subr.bf16.mxu0 %v6857_v20  ;;  %5167 = vmatprep.subr.bf16.mxu1 %v6859_v21  ;;  %v577_v59 = vld [vmem:[#allocation5 + $0xce0] sm:$0xff]  ;;  %v574_v20 = vld [vmem:[#allocation5 + $0xcc8] sm:$0xff] }
 0x10e   :  { %v578_v21 = vld [vmem:[#allocation5 + $0xce8] sm:$0xff]  ;;  %v6913_v26 = vcombine.high %v573_v19, %v577_v59  ;;  %v6912_v32 = vcombine.low %v573_v19, %v577_v59  ;;  %v625_v14 = vld [vmem:[#allocation5 + $0xe60] sm:$0xff] }
 0x10f   :  { %v6915_v27 = vcombine.high %v574_v20, %v578_v21  ;;  %v6914_v34 = vcombine.low %v574_v20, %v578_v21  ;;  %v6961_v19 = vcombine.high %v621_v13, %v625_v14  ;;  %v629_v20 = vld [vmem:[#allocation5 + $0xe80] sm:$0xff] }
 0x110   :  { %4922 = vmatpush1.bf16.msra.mxu0 %v6856_v28  ;;  %5168 = vmatpush1.bf16.msra.mxu1 %v6858_v29  ;;  %v581_v28 = vld [vmem:[#allocation5 + $0xd00] sm:$0xff] }
 0x111   :  { %4923 = vmatprep.subr.bf16.mxu0 %v6865_v30  ;;  %5169 = vmatprep.subr.bf16.mxu1 %v6867_v31  ;;  %v585_v29 = vld [vmem:[#allocation5 + $0xd20] sm:$0xff]  ;;  %v582_v30 = vld [vmem:[#allocation5 + $0xd08] sm:$0xff] }
 0x112   :  { %v586_v31 = vld [vmem:[#allocation5 + $0xd28] sm:$0xff]  ;;  %v6921_v35 = vcombine.high %v581_v28, %v585_v29  ;;  %v6920_v41 = vcombine.low %v581_v28, %v585_v29  ;;  %v633_v21 = vld [vmem:[#allocation5 + $0xea0] sm:$0xff] }
 0x113   :  { %v6923_v63 = vcombine.high %v582_v30, %v586_v31  ;;  %v6922_v42 = vcombine.low %v582_v30, %v586_v31  ;;  %v6969_v28 = vcombine.high %v629_v20, %v633_v21  ;;  %v637_v30 = vld [vmem:[#allocation5 + $0xec0] sm:$0xff] }
 0x114   :  { %4924 = vmatpush1.bf16.msra.mxu0 %v6864_v37  ;;  %5170 = vmatpush1.bf16.msra.mxu1 %v6866_v38  ;;  %v589_v37 = vld [vmem:[#allocation5 + $0xd40] sm:$0xff] }
 0x115   :  { %4925 = vmatprep.subr.bf16.mxu0 %v6873_v39  ;;  %5171 = vmatprep.subr.bf16.mxu1 %v6875_v40  ;;  %v593_v38 = vld [vmem:[#allocation5 + $0xd60] sm:$0xff]  ;;  %v590_v39 = vld [vmem:[#allocation5 + $0xd48] sm:$0xff] }
 0x116   :  { %v594_v40 = vld [vmem:[#allocation5 + $0xd68] sm:$0xff]  ;;  %v6929_v45 = vcombine.high %v589_v37, %v593_v38  ;;  %v641_v31 = vld [vmem:[#allocation5 + $0xee0] sm:$0xff] }
 0x117   :  { %v6931_v46 = vcombine.high %v590_v39, %v594_v40  ;;  %v6930_v54 = vcombine.low %v590_v39, %v594_v40  ;;  %v645_v39 = vld [vmem:[#allocation5 + $0xf00] sm:$0xff] }
 0x118   :  { %4926 = vmatpush1.bf16.msra.mxu0 %v6872_v48  ;;  %5172 = vmatpush1.bf16.msra.mxu1 %v6874_v49  ;;  %v601_v48 = vld [vmem:[#allocation5 + $0xda0] sm:$0xff]  ;;  %v598_v49 = vld [vmem:[#allocation5 + $0xd88] sm:$0xff] }
 0x119   :  { %4927 = vmatprep.subr.bf16.mxu0 %v6881_v50  ;;  %5173 = vmatprep.subr.bf16.mxu1 %v6883_v52  ;;  %v602_v50 = vld [vmem:[#allocation5 + $0xda8] sm:$0xff]  ;;  %v6928_v52 = vcombine.low %v589_v37, %v593_v38  ;;  %v6937_v16 = vcombine.high %v597_v47, %v601_v48  ;;  %v6977_v37 = vcombine.high %v637_v30, %v641_v31  ;;  %v649_v40 = vld [vmem:[#allocation5 + $0xf20] sm:$0xff] }
 0x11a   :  { %v6939_v56 = vcombine.high %v598_v49, %v602_v50  ;;  %v6938_v62 = vcombine.low %v598_v49, %v602_v50  ;;  %v653_v49 = vld [vmem:[#allocation5 + $0xf40] sm:$0xff] }
 0x11b   :  { %v657_v50 = vld [vmem:[#allocation5 + $0xf60] sm:$0xff] }
 0x11c   :  { %4928 = vmatpush1.bf16.msra.mxu0 %v6880_v58  ;;  %5174 = vmatpush1.bf16.msra.mxu1 %v6882_v23  ;;  %v609_v58 = vld [vmem:[#allocation5 + $0xde0] sm:$0xff]  ;;  %v606_v23 = vld [vmem:[#allocation5 + $0xdc8] sm:$0xff] }
 0x11d   :  { %4938 = vmatprep.subr.bf16.mxu0 %v6889_v60  ;;  %5184 = vmatprep.subr.bf16.mxu1 %v6891_v61  ;;  %v610_v60 = vld [vmem:[#allocation5 + $0xde8] sm:$0xff]  ;;  %v6936_v61 = vcombine.low %v597_v47, %v601_v48  ;;  %v6945_v0 = vcombine.high %v605_v57, %v609_v58  ;;  %v6985_v47 = vcombine.high %v645_v39, %v649_v40 }
 0x11e   :  { %v6947_v1 = vcombine.high %v606_v23, %v610_v60 }
 0x11f   :  { %4930 = vmatmul.mubr.bf16.vlgmr.msra.gmra.mrb[0].mxu0 %v7893_v2  ;;  %5176 = vmatmul.mubr.bf16.vlgmr.msra.gmra.mrb[0].mxu1 %v7893_v2 }
 0x120   :  { %4939 = vmatpush1.bf16.msra.mxu0 %v6888_v5  ;;  %5185 = vmatpush1.bf16.msra.mxu1 %v6890_v6  ;;  %v614_v5 = vld [vmem:[#allocation5 + $0xe08] sm:$0xff] }
 0x121   :  { %4940 = vmatprep.subr.bf16.mxu0 %v6897_v7  ;;  %5186 = vmatprep.subr.bf16.mxu1 %v6899_v8  ;;  %v618_v6 = vld [vmem:[#allocation5 + $0xe28] sm:$0xff]  ;;  %v6944_v7 = vcombine.low %v605_v57, %v609_v58  ;;  %v6946_v8 = vcombine.low %v606_v23, %v610_v60  ;;  %v6993_v57 = vcombine.high %v653_v49, %v657_v50  ;;  %v661_v23 = vld [vmem:[#allocation5 + $0xf80] sm:$0xff] }
 0x122   :  { %4970 = vmatprep.mubr.bf16.mxu0 %v7895_v12  ;;  %5216 = vmatprep.mubr.bf16.mxu1 %v7895_v12  ;;  %v6955_v11 = vcombine.high %v614_v5, %v618_v6  ;;  %v665_v60 = vld [vmem:[#allocation5 + $0xfa0] sm:$0xff] }
 0x124   :  { %4941 = vmatpush1.bf16.msra.mxu0 %v6896_v33  ;;  %5187 = vmatpush1.bf16.msra.mxu1 %v6898_v15  ;;  %v622_v33 = vld [vmem:[#allocation5 + $0xe48] sm:$0xff] }
 0x125   :  { %4942 = vmatprep.subr.bf16.mxu0 %v6905_v17  ;;  %5188 = vmatprep.subr.bf16.mxu1 %v6907_v18  ;;  %v626_v15 = vld [vmem:[#allocation5 + $0xe68] sm:$0xff]  ;;  %v6952_v17 = vcombine.low %v613_v3, %v617_v4  ;;  %v6954_v18 = vcombine.low %v614_v5, %v618_v6  ;;  %v7001_v3 = vcombine.high %v661_v23, %v665_v60  ;;  %v669_v5 = vld [vmem:[#allocation5 + $0xfc0] sm:$0xff] }
 0x126   :  { %v6963_v59 = vcombine.high %v622_v33, %v626_v15  ;;  %v673_v6 = vld [vmem:[#allocation5 + $0xfe0] sm:$0xff] }
 0x128   :  { %4943 = vmatpush1.bf16.msra.mxu0 %v6904_v22  ;;  %5189 = vmatpush1.bf16.msra.mxu1 %v6906_v24  ;;  %v630_v22 = vld [vmem:[#allocation5 + $0xe88] sm:$0xff] }
 0x129   :  { %4944 = vmatprep.subr.bf16.mxu0 %v6913_v26  ;;  %5190 = vmatprep.subr.bf16.mxu1 %v6915_v27  ;;  %v634_v24 = vld [vmem:[#allocation5 + $0xea8] sm:$0xff]  ;;  %v6960_v26 = vcombine.low %v621_v13, %v625_v14  ;;  %v6962_v27 = vcombine.low %v622_v33, %v626_v15  ;;  %v7009_v14 = vcombine.high %v669_v5, %v673_v6  ;;  %v677_v15 = vld [vmem:[#allocation5 + $0x1000] sm:$0xff] }
 0x12a   :  { %v6971_v29 = vcombine.high %v630_v22, %v634_v24 }
 0x12c   :  { %4945 = vmatpush1.bf16.msra.mxu0 %v6912_v32  ;;  %5191 = vmatpush1.bf16.msra.mxu1 %v6914_v34  ;;  %v638_v32 = vld [vmem:[#allocation5 + $0xec8] sm:$0xff] }
 0x12d   :  { %4946 = vmatprep.subr.bf16.mxu0 %v6921_v35  ;;  %5192 = vmatprep.subr.bf16.mxu1 %v6923_v63  ;;  %v642_v34 = vld [vmem:[#allocation5 + $0xee8] sm:$0xff]  ;;  %v6968_v35 = vcombine.low %v629_v20, %v633_v21  ;;  %v6970_v63 = vcombine.low %v630_v22, %v634_v24  ;;  %v7008_v20 = vcombine.low %v669_v5, %v673_v6 }
 0x12e   :  { %v6979_v38 = vcombine.high %v638_v32, %v642_v34  ;;  %v718_v5 = vld [vmem:[#allocation5 + $0x1148] sm:$0xff] }
 0x12f   :  { %v722_v6 = vld [vmem:[#allocation5 + $0x1168] sm:$0xff] }
 0x130   :  { %4947 = vmatpush1.bf16.msra.mxu0 %v6920_v41  ;;  %5193 = vmatpush1.bf16.msra.mxu1 %v6922_v42  ;;  %v646_v41 = vld [vmem:[#allocation5 + $0xf08] sm:$0xff] }
 0x131   :  { %4948 = vmatprep.subr.bf16.mxu0 %v6929_v45  ;;  %5194 = vmatprep.subr.bf16.mxu1 %v6931_v46  ;;  %v650_v42 = vld [vmem:[#allocation5 + $0xf28] sm:$0xff]  ;;  %v6976_v45 = vcombine.low %v637_v30, %v641_v31  ;;  %v6978_v46 = vcombine.low %v638_v32, %v642_v34 }
 0x132   :  { %v6987_v48 = vcombine.high %v646_v41, %v650_v42  ;;  %v686_v30 = vld [vmem:[#allocation5 + $0x1048] sm:$0xff] }
 0x133   :  { %v690_v31 = vld [vmem:[#allocation5 + $0x1068] sm:$0xff] }
 0x134   :  { %4949 = vmatpush1.bf16.msra.mxu0 %v6928_v52  ;;  %5195 = vmatpush1.bf16.msra.mxu1 %v6930_v54  ;;  %v654_v52 = vld [vmem:[#allocation5 + $0xf48] sm:$0xff] }
 0x135   :  { %4950 = vmatprep.subr.bf16.mxu0 %v6937_v16  ;;  %5196 = vmatprep.subr.bf16.mxu1 %v6939_v56  ;;  %v658_v54 = vld [vmem:[#allocation5 + $0xf68] sm:$0xff]  ;;  %v6984_v16 = vcombine.low %v645_v39, %v649_v40  ;;  %v6986_v56 = vcombine.low %v646_v41, %v650_v42  ;;  %v7026_v42 = vcombine.low %v686_v30, %v690_v31 }
 0x136   :  { %v6995_v58 = vcombine.high %v654_v52, %v658_v54  ;;  %v694_v40 = vld [vmem:[#allocation5 + $0x1088] sm:$0xff] }
 0x137   :  { %v698_v41 = vld [vmem:[#allocation5 + $0x10a8] sm:$0xff] }
 0x138   :  { %4951 = vmatpush1.bf16.msra.mxu0 %v6936_v61  ;;  %5197 = vmatpush1.bf16.msra.mxu1 %v6938_v62  ;;  %v662_v61 = vld [vmem:[#allocation5 + $0xf88] sm:$0xff] }
 0x139   :  { %4952 = vmatprep.subr.bf16.mxu0 %v6945_v0  ;;  %5198 = vmatprep.subr.bf16.mxu1 %v6947_v1  ;;  %v666_v62 = vld [vmem:[#allocation5 + $0xfa8] sm:$0xff]  ;;  %v6992_v0 = vcombine.low %v653_v49, %v657_v50  ;;  %v6994_v1 = vcombine.low %v654_v52, %v658_v54  ;;  %v7034_v54 = vcombine.low %v694_v40, %v698_v41 }
 0x13a   :  { %v7003_v4 = vcombine.high %v662_v61, %v666_v62  ;;  %v7002_v13 = vcombine.low %v662_v61, %v666_v62  ;;  %v702_v49 = vld [vmem:[#allocation5 + $0x10c8] sm:$0xff] }
 0x13b   :  { %v706_v50 = vld [vmem:[#allocation5 + $0x10e8] sm:$0xff] }
 0x13c   :  { %4953 = vmatpush1.bf16.msra.mxu0 %v6944_v7  ;;  %5199 = vmatpush1.bf16.msra.mxu1 %v6946_v8  ;;  %v670_v7 = vld [vmem:[#allocation5 + $0xfc8] sm:$0xff]  ;;  %v7042_v62 = vcombine.low %v702_v49, %v706_v50 }
 0x13d   :  { %4954 = vmatprep.subr.bf16.mxu0 %v6953_v10  ;;  %5200 = vmatprep.subr.bf16.mxu1 %v6955_v11  ;;  %v674_v8 = vld [vmem:[#allocation5 + $0xfe8] sm:$0xff]  ;;  %v7901_v10 = vld [vmem:[#allocation2 + $0x10] sm:$0xff]  ;;  %v7000_v11 = vcombine.low %v661_v23, %v665_v60 }
 0x13e   :  { %v7011_v33 = vcombine.high %v670_v7, %v674_v8  ;;  %v7010_v21 = vcombine.low %v670_v7, %v674_v8  ;;  %v710_v23 = vld [vmem:[#allocation5 + $0x1108] sm:$0xff] }
 0x13f   :  { %v714_v60 = vld [vmem:[#allocation5 + $0x1128] sm:$0xff] }
 0x140   :  { %4955 = vmatpush1.bf16.msra.mxu0 %v6952_v17  ;;  %5201 = vmatpush1.bf16.msra.mxu1 %v6954_v18  ;;  %v681_v17 = vld [vmem:[#allocation5 + $0x1020] sm:$0xff]  ;;  %v7905_v18 = vrot.slane %v7901_v10, %v7835_v53  ;;  %v7050_v8 = vcombine.low %v710_v23, %v714_v60 }
 0x141   :  { %4956 = vmatprep.subr.bf16.mxu0 %v6961_v19  ;;  %5202 = vmatprep.subr.bf16.mxu1 %v6963_v59  ;;  %v678_v19 = vld [vmem:[#allocation5 + $0x1008] sm:$0xff]  ;;  %v7017_v22 = vcombine.high %v677_v15, %v681_v17  ;;  %v7016_v32 = vcombine.low %v677_v15, %v681_v17 }
 0x142   :  { %v682_v59 = vld [vmem:[#allocation5 + $0x1028] sm:$0xff] }
 0x143   :  { %v7019_v24 = vcombine.high %v678_v19, %v682_v59  ;;  %v7018_v34 = vcombine.low %v678_v19, %v682_v59  ;;  %v726_v15 = vld [vmem:[#allocation5 + $0x1188] sm:$0xff]  ;;  %v7058_v59 = vcombine.low %v718_v5, %v722_v6 }
 0x144   :  { %4957 = vmatpush1.bf16.msra.mxu0 %v6960_v26  ;;  %5203 = vmatpush1.bf16.msra.mxu1 %v6962_v27  ;;  %v685_v26 = vld [vmem:[#allocation5 + $0x1040] sm:$0xff]  ;;  %v730_v17 = vld [vmem:[#allocation5 + $0x11a8] sm:$0xff] }
 0x145   :  { %4958 = vmatprep.subr.bf16.mxu0 %v6969_v28  ;;  %5204 = vmatprep.subr.bf16.mxu1 %v6971_v29  ;;  %v689_v27 = vld [vmem:[#allocation5 + $0x1060] sm:$0xff]  ;;  %v139_v28 = vcombine.high %v7905_v18, %v7905_v18  ;;  %v7911_v29 = vpack.c.bf16 %v7887_v55, %v7887_v55 }
 0x146   :  { %v7024_v55 = vcombine.low %v685_v26, %v689_v27 }
 0x147   :  { %v7913_v39 = vpack.c.bf16 %v139_v28, %v139_v28 }
 0x148   :  { %4959 = vmatpush1.bf16.msra.mxu0 %v6968_v35  ;;  %5205 = vmatpush1.bf16.msra.mxu1 %v6970_v63  ;;  %v7025_v35 = vcombine.high %v685_v26, %v689_v27  ;;  %v7027_v63 = vcombine.high %v686_v30, %v690_v31  ;;  %v734_v26 = vld [vmem:[#allocation5 + $0x11c8] sm:$0xff]  ;;  %v7066_v30 = vcombine.low %v726_v15, %v730_v17 }
 0x149   :  { %4960 = vmatprep.subr.bf16.mxu0 %v6977_v37  ;;  %5206 = vmatprep.subr.bf16.mxu1 %v6979_v38  ;;  %v693_v37 = vld [vmem:[#allocation5 + $0x1080] sm:$0xff]  ;;  %v738_v27 = vld [vmem:[#allocation5 + $0x11e8] sm:$0xff] }
 0x14a   :  { %v697_v38 = vld [vmem:[#allocation5 + $0x10a0] sm:$0xff] }
 0x14b   :  { %v7032_v52 = vcombine.low %v693_v37, %v697_v38 }
 0x14c   :  { %4961 = vmatpush1.bf16.msra.mxu0 %v6976_v45  ;;  %5207 = vmatpush1.bf16.msra.mxu1 %v6978_v46  ;;  %v7033_v45 = vcombine.high %v693_v37, %v697_v38  ;;  %v7035_v46 = vcombine.high %v694_v40, %v698_v41  ;;  %v746_v37 = vld [vmem:[#allocation5 + $0x1228] sm:$0xff]  ;;  %v7074_v40 = vcombine.low %v734_v26, %v738_v27 }
 0x14d   :  { %4962 = vmatprep.subr.bf16.mxu0 %v6985_v47  ;;  %5208 = vmatprep.subr.bf16.mxu1 %v6987_v48  ;;  %v701_v47 = vld [vmem:[#allocation5 + $0x10c0] sm:$0xff] }
 0x14e   :  { %v705_v48 = vld [vmem:[#allocation5 + $0x10e0] sm:$0xff] }
 0x14f   :  { %v7040_v61 = vcombine.low %v701_v47, %v705_v48 }
 0x150   :  { %4963 = vmatpush1.bf16.msra.mxu0 %v6984_v16  ;;  %5209 = vmatpush1.bf16.msra.mxu1 %v6986_v56  ;;  %v7041_v16 = vcombine.high %v701_v47, %v705_v48  ;;  %v7043_v56 = vcombine.high %v702_v49, %v706_v50  ;;  %v754_v47 = vld [vmem:[#allocation5 + $0x1268] sm:$0xff] }
 0x151   :  { %4964 = vmatprep.subr.bf16.mxu0 %v6993_v57  ;;  %5210 = vmatprep.subr.bf16.mxu1 %v6995_v58  ;;  %v709_v57 = vld [vmem:[#allocation5 + $0x1100] sm:$0xff] }
 0x152   :  { %v713_v58 = vld [vmem:[#allocation5 + $0x1120] sm:$0xff] }
 0x153   :  { %v7048_v7 = vcombine.low %v709_v57, %v713_v58 }
 0x154   :  { %4965 = vmatpush1.bf16.msra.mxu0 %v6992_v0  ;;  %5211 = vmatpush1.bf16.msra.mxu1 %v6994_v1  ;;  %v7049_v0 = vcombine.high %v709_v57, %v713_v58  ;;  %v7051_v1 = vcombine.high %v710_v23, %v714_v60  ;;  %v762_v57 = vld [vmem:[#allocation5 + $0x12a8] sm:$0xff] }
 0x155   :  { %4966 = vmatprep.subr.bf16.mxu0 %v7001_v3  ;;  %5212 = vmatprep.subr.bf16.mxu1 %v7003_v4  ;;  %v717_v3 = vld [vmem:[#allocation5 + $0x1140] sm:$0xff] }
 0x156   :  { %v721_v4 = vld [vmem:[#allocation5 + $0x1160] sm:$0xff] }
 0x157   :  { %v7056_v19 = vcombine.low %v717_v3, %v721_v4 }
 0x158   :  { %4967 = vmatpush1.bf16.msra.mxu0 %v7000_v11  ;;  %5213 = vmatpush1.bf16.msra.mxu1 %v7002_v13  ;;  %v7057_v11 = vcombine.high %v717_v3, %v721_v4  ;;  %v7059_v13 = vcombine.high %v718_v5, %v722_v6  ;;  %v770_v3 = vld [vmem:[#allocation5 + $0x12e8] sm:$0xff] }
 0x159   :  { %4968 = vmatprep.subr.bf16.mxu0 %v7009_v14  ;;  %5214 = vmatprep.subr.bf16.mxu1 %v7011_v33  ;;  %v725_v14 = vld [vmem:[#allocation5 + $0x1180] sm:$0xff] }
 0x15a   :  { %v729_v33 = vld [vmem:[#allocation5 + $0x11a0] sm:$0xff] }
 0x15b   :  { %v7064_v28 = vcombine.low %v725_v14, %v729_v33 }
 0x15c   :  { %4969 = vmatpush1.bf16.msra.mxu0 %v7008_v20  ;;  %5215 = vmatpush1.bf16.msra.mxu1 %v7010_v21  ;;  %v7065_v20 = vcombine.high %v725_v14, %v729_v33  ;;  %v7067_v21 = vcombine.high %v726_v15, %v730_v17  ;;  %v778_v14 = vld [vmem:[#allocation5 + $0x1328] sm:$0xff] }
 0x15d   :  { %4979 = vmatprep.subr.bf16.mxu0 %v7017_v22  ;;  %5225 = vmatprep.subr.bf16.mxu1 %v7019_v24  ;;  %v733_v22 = vld [vmem:[#allocation5 + $0x11c0] sm:$0xff] }
 0x15e   :  { %v737_v24 = vld [vmem:[#allocation5 + $0x11e0] sm:$0xff] }
 0x15f   :  { %4971 = vmatmul.mubr.bf16.vlgmr.msra.gmra.mrb[0].mxu0 %v7911_v29  ;;  %5217 = vmatmul.mubr.bf16.vlgmr.msra.gmra.mrb[0].mxu1 %v7911_v29  ;;  %v7073_v31 = vcombine.high %v733_v22, %v737_v24  ;;  %v7072_v38 = vcombine.low %v733_v22, %v737_v24  ;;  %v786_v22 = vld [vmem:[#allocation5 + $0x1368] sm:$0xff] }
 0x160   :  { %4980 = vmatpush1.bf16.msra.mxu0 %v7016_v32  ;;  %5226 = vmatpush1.bf16.msra.mxu1 %v7018_v34  ;;  %v7075_v32 = vcombine.high %v734_v26, %v738_v27  ;;  %v741_v34 = vld [vmem:[#allocation5 + $0x1200] sm:$0xff] }
 0x161   :  { %4981 = vmatprep.subr.bf16.mxu0 %v7025_v35  ;;  %5227 = vmatprep.subr.bf16.mxu1 %v7027_v63  ;;  %v745_v35 = vld [vmem:[#allocation5 + $0x1220] sm:$0xff]  ;;  %v742_v63 = vld [vmem:[#allocation5 + $0x1208] sm:$0xff] }
 0x162   :  { %5011 = vmatprep.mubr.bf16.mxu0 %v7913_v39  ;;  %5257 = vmatprep.mubr.bf16.mxu1 %v7913_v39  ;;  %v7081_v41 = vcombine.high %v741_v34, %v745_v35  ;;  %v7080_v48 = vcombine.low %v741_v34, %v745_v35  ;;  %v7082_v49 = vcombine.low %v742_v63, %v746_v37  ;;  %v794_v34 = vld [vmem:[#allocation5 + $0x13a8] sm:$0xff] }
 0x164   :  { %4982 = vmatpush1.bf16.msra.mxu0 %v7024_v55  ;;  %5228 = vmatpush1.bf16.msra.mxu1 %v7026_v42  ;;  %v7083_v55 = vcombine.high %v742_v63, %v746_v37  ;;  %v749_v42 = vld [vmem:[#allocation5 + $0x1240] sm:$0xff] }
 0x165   :  { %4983 = vmatprep.subr.bf16.mxu0 %v7033_v45  ;;  %5229 = vmatprep.subr.bf16.mxu1 %v7035_v46  ;;  %v753_v45 = vld [vmem:[#allocation5 + $0x1260] sm:$0xff]  ;;  %v750_v46 = vld [vmem:[#allocation5 + $0x1248] sm:$0xff] }
 0x166   :  { %v7089_v50 = vcombine.high %v749_v42, %v753_v45  ;;  %v7088_v58 = vcombine.low %v749_v42, %v753_v45  ;;  %v7090_v23 = vcombine.low %v750_v46, %v754_v47  ;;  %v798_v42 = vld [vmem:[#allocation5 + $0x13c8] sm:$0xff] }
 0x167   :  { %v802_v45 = vld [vmem:[#allocation5 + $0x13e8] sm:$0xff] }
 0x168   :  { %4984 = vmatpush1.bf16.msra.mxu0 %v7032_v52  ;;  %5230 = vmatpush1.bf16.msra.mxu1 %v7034_v54  ;;  %v7091_v52 = vcombine.high %v750_v46, %v754_v47  ;;  %v757_v54 = vld [vmem:[#allocation5 + $0x1280] sm:$0xff] }
 0x169   :  { %4985 = vmatprep.subr.bf16.mxu0 %v7041_v16  ;;  %5231 = vmatprep.subr.bf16.mxu1 %v7043_v56  ;;  %v761_v16 = vld [vmem:[#allocation5 + $0x12a0] sm:$0xff]  ;;  %v758_v56 = vld [vmem:[#allocation5 + $0x1288] sm:$0xff] }
 0x16a   :  { %v7097_v60 = vcombine.high %v757_v54, %v761_v16  ;;  %v7096_v4 = vcombine.low %v757_v54, %v761_v16  ;;  %v7098_v5 = vcombine.low %v758_v56, %v762_v57  ;;  %v806_v16 = vld [vmem:[#allocation5 + $0x1408] sm:$0xff] }
 0x16c   :  { %4986 = vmatpush1.bf16.msra.mxu0 %v7040_v61  ;;  %5232 = vmatpush1.bf16.msra.mxu1 %v7042_v62  ;;  %v7099_v61 = vcombine.high %v758_v56, %v762_v57  ;;  %v765_v62 = vld [vmem:[#allocation5 + $0x12c0] sm:$0xff]  ;;  %v810_v56 = vld [vmem:[#allocation5 + $0x1428] sm:$0xff] }
 0x16d   :  { %4987 = vmatprep.subr.bf16.mxu0 %v7049_v0  ;;  %5233 = vmatprep.subr.bf16.mxu1 %v7051_v1  ;;  %v769_v0 = vld [vmem:[#allocation5 + $0x12e0] sm:$0xff]  ;;  %v766_v1 = vld [vmem:[#allocation5 + $0x12c8] sm:$0xff] }
 0x16e   :  { %v7105_v6 = vcombine.high %v765_v62, %v769_v0  ;;  %v7104_v33 = vcombine.low %v765_v62, %v769_v0  ;;  %v7106_v15 = vcombine.low %v766_v1, %v770_v3  ;;  %v7928_v0 = vpack.c.bf16 %v7905_v18, %v7905_v18 }
 0x170   :  { %4988 = vmatpush1.bf16.msra.mxu0 %v7048_v7  ;;  %5234 = vmatpush1.bf16.msra.mxu1 %v7050_v8  ;;  %v7107_v7 = vcombine.high %v766_v1, %v770_v3  ;;  %v773_v8 = vld [vmem:[#allocation5 + $0x1300] sm:$0xff]  ;;  %v818_v1 = vld [vmem:[#allocation5 + $0x1468] sm:$0xff] }
 0x171   :  { %4989 = vmatprep.subr.bf16.mxu0 %v7057_v11  ;;  %5235 = vmatprep.subr.bf16.mxu1 %v7059_v13  ;;  %v777_v11 = vld [vmem:[#allocation5 + $0x1320] sm:$0xff]  ;;  %v774_v13 = vld [vmem:[#allocation5 + $0x1308] sm:$0xff] }
 0x172   :  { %v7113_v17 = vcombine.high %v773_v8, %v777_v11  ;;  %v7112_v24 = vcombine.low %v773_v8, %v777_v11  ;;  %v7114_v26 = vcombine.low %v774_v13, %v778_v14  ;;  %v825_v8 = vld [vmem:[#allocation5 + $0x14a0] sm:$0xff] }
 0x174   :  { %4990 = vmatpush1.bf16.msra.mxu0 %v7056_v19  ;;  %5236 = vmatpush1.bf16.msra.mxu1 %v7058_v59  ;;  %v7115_v19 = vcombine.high %v774_v13, %v778_v14  ;;  %v781_v59 = vld [vmem:[#allocation5 + $0x1340] sm:$0xff]  ;;  %v822_v13 = vld [vmem:[#allocation5 + $0x1488] sm:$0xff] }
 0x175   :  { %4991 = vmatprep.subr.bf16.mxu0 %v7065_v20  ;;  %5237 = vmatprep.subr.bf16.mxu1 %v7067_v21  ;;  %v785_v20 = vld [vmem:[#allocation5 + $0x1360] sm:$0xff]  ;;  %v782_v21 = vld [vmem:[#allocation5 + $0x1348] sm:$0xff] }
 0x176   :  { %v7121_v27 = vcombine.high %v781_v59, %v785_v20  ;;  %v7120_v35 = vcombine.low %v781_v59, %v785_v20  ;;  %v7122_v63 = vcombine.low %v782_v21, %v786_v22  ;;  %v826_v14 = vld [vmem:[#allocation5 + $0x14a8] sm:$0xff]  ;;  %v833_v59 = vld [vmem:[#allocation5 + $0x14e0] sm:$0xff] }
 0x177   :  { %v830_v20 = vld [vmem:[#allocation5 + $0x14c8] sm:$0xff] }
 0x178   :  { %4992 = vmatpush1.bf16.msra.mxu0 %v7064_v28  ;;  %5238 = vmatpush1.bf16.msra.mxu1 %v7066_v30  ;;  %v7123_v28 = vcombine.high %v782_v21, %v786_v22  ;;  %v789_v30 = vld [vmem:[#allocation5 + $0x1380] sm:$0xff]  ;;  %v834_v21 = vld [vmem:[#allocation5 + $0x14e8] sm:$0xff] }
 0x179   :  { %4993 = vmatprep.subr.bf16.mxu0 %v7073_v31  ;;  %5239 = vmatprep.subr.bf16.mxu1 %v7075_v32  ;;  %v793_v31 = vld [vmem:[#allocation5 + $0x13a0] sm:$0xff]  ;;  %v790_v32 = vld [vmem:[#allocation5 + $0x1388] sm:$0xff] }
 0x17a   :  { %v7129_v37 = vcombine.high %v789_v30, %v793_v31  ;;  %v7128_v46 = vcombine.low %v789_v30, %v793_v31  ;;  %v7130_v47 = vcombine.low %v790_v32, %v794_v34  ;;  %v841_v30 = vld [vmem:[#allocation5 + $0x1520] sm:$0xff]  ;;  %v838_v31 = vld [vmem:[#allocation5 + $0x1508] sm:$0xff] }
 0x17c   :  { %4994 = vmatpush1.bf16.msra.mxu0 %v7072_v38  ;;  %5240 = vmatpush1.bf16.msra.mxu1 %v7074_v40  ;;  %v7131_v38 = vcombine.high %v790_v32, %v794_v34  ;;  %v797_v40 = vld [vmem:[#allocation5 + $0x13c0] sm:$0xff]  ;;  %v842_v32 = vld [vmem:[#allocation5 + $0x1528] sm:$0xff] }
 0x17d   :  { %4995 = vmatprep.subr.bf16.mxu0 %v7081_v41  ;;  %5241 = vmatprep.subr.bf16.mxu1 %v7083_v55  ;;  %v801_v41 = vld [vmem:[#allocation5 + $0x13e0] sm:$0xff]  ;;  %v124_v55 = vcombine.high %v7901_v10, %v7901_v10  ;;  %v7138_v10 = vcombine.low %v798_v42, %v802_v45 }
 0x17e   :  { %v7136_v57 = vcombine.low %v797_v40, %v801_v41 }
 0x17f   :  { %v7922_v54 = vrot.slane %v124_v55, %v7835_v53  ;;  %v814_v53 = vld [vmem:[#allocation5 + $0x1448] sm:$0xff] }
 0x180   :  { %4996 = vmatpush1.bf16.msra.mxu0 %v7080_v48  ;;  %5242 = vmatpush1.bf16.msra.mxu1 %v7082_v49  ;;  %v7137_v48 = vcombine.high %v797_v40, %v801_v41  ;;  %v7139_v49 = vcombine.high %v798_v42, %v802_v45  ;;  %v849_v40 = vld [vmem:[#allocation5 + $0x1560] sm:$0xff]  ;;  %v846_v41 = vld [vmem:[#allocation5 + $0x1548] sm:$0xff]  ;;  %v7178_v45 = vcombine.low %v838_v31, %v842_v32 }
 0x181   :  { %4997 = vmatprep.subr.bf16.mxu0 %v7089_v50  ;;  %5243 = vmatprep.subr.bf16.mxu1 %v7091_v52  ;;  %v805_v50 = vld [vmem:[#allocation5 + $0x1400] sm:$0xff]  ;;  %v140_v62 = vcombine.high %v7922_v54, %v7922_v54  ;;  %v850_v55 = vld [vmem:[#allocation5 + $0x1568] sm:$0xff] }
 0x182   :  { %v809_v52 = vld [vmem:[#allocation5 + $0x1420] sm:$0xff] }
 0x183   :  { %v7144_v3 = vcombine.low %v805_v50, %v809_v52  ;;  %v7930_v11 = vpack.c.bf16 %v140_v62, %v140_v62 }
 0x184   :  { %4998 = vmatpush1.bf16.msra.mxu0 %v7088_v58  ;;  %5244 = vmatpush1.bf16.msra.mxu1 %v7090_v23  ;;  %v7145_v58 = vcombine.high %v805_v50, %v809_v52  ;;  %v7147_v23 = vcombine.high %v806_v16, %v810_v56  ;;  %v854_v50 = vld [vmem:[#allocation5 + $0x1588] sm:$0xff] }
 0x185   :  { %4999 = vmatprep.subr.bf16.mxu0 %v7097_v60  ;;  %5245 = vmatprep.subr.bf16.mxu1 %v7099_v61  ;;  %v813_v60 = vld [vmem:[#allocation5 + $0x1440] sm:$0xff]  ;;  %v858_v52 = vld [vmem:[#allocation5 + $0x15a8] sm:$0xff] }
 0x186   :  { %v817_v61 = vld [vmem:[#allocation5 + $0x1460] sm:$0xff] }
 0x187   :  { %v7152_v18 = vcombine.low %v813_v60, %v817_v61 }
 0x188   :  { %5000 = vmatpush1.bf16.msra.mxu0 %v7096_v4  ;;  %5246 = vmatpush1.bf16.msra.mxu1 %v7098_v5  ;;  %v7146_v4 = vcombine.low %v806_v16, %v810_v56  ;;  %v7153_v5 = vcombine.high %v813_v60, %v817_v61  ;;  %v7186_v56 = vcombine.low %v846_v41, %v850_v55  ;;  %v862_v60 = vld [vmem:[#allocation5 + $0x15c8] sm:$0xff] }
 0x189   :  { %5001 = vmatprep.subr.bf16.mxu0 %v7105_v6  ;;  %5247 = vmatprep.subr.bf16.mxu1 %v7107_v7  ;;  %v7155_v6 = vcombine.high %v814_v53, %v818_v1  ;;  %v821_v7 = vld [vmem:[#allocation5 + $0x1480] sm:$0xff]  ;;  %v866_v61 = vld [vmem:[#allocation5 + $0x15e8] sm:$0xff] }
 0x18a   :  { %v7160_v22 = vcombine.low %v821_v7, %v825_v8 }
 0x18c   :  { %5002 = vmatpush1.bf16.msra.mxu0 %v7104_v33  ;;  %5248 = vmatpush1.bf16.msra.mxu1 %v7106_v15  ;;  %v7154_v33 = vcombine.low %v814_v53, %v818_v1  ;;  %v7161_v15 = vcombine.high %v821_v7, %v825_v8  ;;  %v7194_v53 = vcombine.low %v854_v50, %v858_v52  ;;  %v874_v7 = vld [vmem:[#allocation5 + $0x1628] sm:$0xff] }
 0x18d   :  { %5003 = vmatprep.subr.bf16.mxu0 %v7113_v17  ;;  %5249 = vmatprep.subr.bf16.mxu1 %v7115_v19  ;;  %v7163_v17 = vcombine.high %v822_v13, %v826_v14  ;;  %v829_v19 = vld [vmem:[#allocation5 + $0x14c0] sm:$0xff] }
 0x18e   :  { %v7168_v34 = vcombine.low %v829_v19, %v833_v59 }
 0x190   :  { %5004 = vmatpush1.bf16.msra.mxu0 %v7112_v24  ;;  %5250 = vmatpush1.bf16.msra.mxu1 %v7114_v26  ;;  %v7162_v24 = vcombine.low %v822_v13, %v826_v14  ;;  %v7169_v26 = vcombine.high %v829_v19, %v833_v59  ;;  %v7202_v13 = vcombine.low %v862_v60, %v866_v61  ;;  %v882_v19 = vld [vmem:[#allocation5 + $0x1668] sm:$0xff] }
 0x191   :  { %5005 = vmatprep.subr.bf16.mxu0 %v7121_v27  ;;  %5251 = vmatprep.subr.bf16.mxu1 %v7123_v28  ;;  %v7171_v27 = vcombine.high %v830_v20, %v834_v21  ;;  %v837_v28 = vld [vmem:[#allocation5 + $0x1500] sm:$0xff] }
 0x192   :  { %v7176_v42 = vcombine.low %v837_v28, %v841_v30 }
 0x194   :  { %5006 = vmatpush1.bf16.msra.mxu0 %v7120_v35  ;;  %5252 = vmatpush1.bf16.msra.mxu1 %v7122_v63  ;;  %v7170_v35 = vcombine.low %v830_v20, %v834_v21  ;;  %v7177_v63 = vcombine.high %v837_v28, %v841_v30  ;;  %v890_v28 = vld [vmem:[#allocation5 + $0x16a8] sm:$0xff] }
 0x195   :  { %5007 = vmatprep.subr.bf16.mxu0 %v7129_v37  ;;  %5253 = vmatprep.subr.bf16.mxu1 %v7131_v38  ;;  %v7179_v37 = vcombine.high %v838_v31, %v842_v32  ;;  %v845_v38 = vld [vmem:[#allocation5 + $0x1540] sm:$0xff] }
 0x196   :  { %v7184_v16 = vcombine.low %v845_v38, %v849_v40 }
 0x198   :  { %5008 = vmatpush1.bf16.msra.mxu0 %v7128_v46  ;;  %5254 = vmatpush1.bf16.msra.mxu1 %v7130_v47  ;;  %v7185_v46 = vcombine.high %v845_v38, %v849_v40  ;;  %v7187_v47 = vcombine.high %v846_v41, %v850_v55  ;;  %v898_v38 = vld [vmem:[#allocation5 + $0x16e8] sm:$0xff] }
 0x199   :  { %5009 = vmatprep.subr.bf16.mxu0 %v7137_v48  ;;  %5255 = vmatprep.subr.bf16.mxu1 %v7139_v49  ;;  %v853_v48 = vld [vmem:[#allocation5 + $0x1580] sm:$0xff] }
 0x19a   :  { %v857_v49 = vld [vmem:[#allocation5 + $0x15a0] sm:$0xff] }
 0x19b   :  { %v7192_v62 = vcombine.low %v853_v48, %v857_v49 }
 0x19c   :  { %5010 = vmatpush1.bf16.msra.mxu0 %v7136_v57  ;;  %5256 = vmatpush1.bf16.msra.mxu1 %v7138_v10  ;;  %v7193_v57 = vcombine.high %v853_v48, %v857_v49  ;;  %v7195_v10 = vcombine.high %v854_v50, %v858_v52  ;;  %v906_v48 = vld [vmem:[#allocation5 + $0x1728] sm:$0xff] }
 0x19d   :  { %5020 = vmatprep.subr.bf16.mxu0 %v7145_v58  ;;  %5266 = vmatprep.subr.bf16.mxu1 %v7147_v23  ;;  %v861_v58 = vld [vmem:[#allocation5 + $0x15c0] sm:$0xff] }
 0x19e   :  { %v865_v23 = vld [vmem:[#allocation5 + $0x15e0] sm:$0xff] }
 0x19f   :  { %5012 = vmatmul.mubr.bf16.vlgmr.msra.gmra.mrb[0].mxu0 %v7928_v0  ;;  %5258 = vmatmul.mubr.bf16.vlgmr.msra.gmra.mrb[0].mxu1 %v7928_v0  ;;  %v7201_v1 = vcombine.high %v861_v58, %v865_v23  ;;  %v7200_v8 = vcombine.low %v861_v58, %v865_v23  ;;  %v914_v58 = vld [vmem:[#allocation5 + $0x1768] sm:$0xff] }
 0x1a0   :  { %5021 = vmatpush1.bf16.msra.mxu0 %v7144_v3  ;;  %5267 = vmatpush1.bf16.msra.mxu1 %v7146_v4  ;;  %v7203_v3 = vcombine.high %v862_v60, %v866_v61  ;;  %v869_v4 = vld [vmem:[#allocation5 + $0x1600] sm:$0xff] }
 0x1a1   :  { %5022 = vmatprep.subr.bf16.mxu0 %v7153_v5  ;;  %5268 = vmatprep.subr.bf16.mxu1 %v7155_v6  ;;  %v873_v5 = vld [vmem:[#allocation5 + $0x1620] sm:$0xff]  ;;  %v870_v6 = vld [vmem:[#allocation5 + $0x1608] sm:$0xff] }
 0x1a2   :  { %5052 = vmatprep.mubr.bf16.mxu0 %v7930_v11  ;;  %5298 = vmatprep.mubr.bf16.mxu1 %v7930_v11  ;;  %v7209_v14 = vcombine.high %v869_v4, %v873_v5  ;;  %v7208_v59 = vcombine.low %v869_v4, %v873_v5  ;;  %v7210_v20 = vcombine.low %v870_v6, %v874_v7  ;;  %v922_v4 = vld [vmem:[#allocation5 + $0x17a8] sm:$0xff] }
 0x1a4   :  { %5023 = vmatpush1.bf16.msra.mxu0 %v7152_v18  ;;  %5269 = vmatpush1.bf16.msra.mxu1 %v7154_v33  ;;  %v7211_v18 = vcombine.high %v870_v6, %v874_v7  ;;  %v877_v33 = vld [vmem:[#allocation5 + $0x1640] sm:$0xff] }
 0x1a5   :  { %5024 = vmatprep.subr.bf16.mxu0 %v7161_v15  ;;  %5270 = vmatprep.subr.bf16.mxu1 %v7163_v17  ;;  %v881_v15 = vld [vmem:[#allocation5 + $0x1660] sm:$0xff]  ;;  %v878_v17 = vld [vmem:[#allocation5 + $0x1648] sm:$0xff] }
 0x1a6   :  { %v7217_v21 = vcombine.high %v877_v33, %v881_v15  ;;  %v7216_v30 = vcombine.low %v877_v33, %v881_v15  ;;  %v7218_v31 = vcombine.low %v878_v17, %v882_v19  ;;  %v930_v33 = vld [vmem:[#allocation5 + $0x17e8] sm:$0xff] }
 0x1a8   :  { %5025 = vmatpush1.bf16.msra.mxu0 %v7160_v22  ;;  %5271 = vmatpush1.bf16.msra.mxu1 %v7162_v24  ;;  %v7219_v22 = vcombine.high %v878_v17, %v882_v19  ;;  %v885_v24 = vld [vmem:[#allocation5 + $0x1680] sm:$0xff] }
 0x1a9   :  { %5026 = vmatprep.subr.bf16.mxu0 %v7169_v26  ;;  %5272 = vmatprep.subr.bf16.mxu1 %v7171_v27  ;;  %v889_v26 = vld [vmem:[#allocation5 + $0x16a0] sm:$0xff]  ;;  %v886_v27 = vld [vmem:[#allocation5 + $0x1688] sm:$0xff] }
 0x1aa   :  { %v7225_v32 = vcombine.high %v885_v24, %v889_v26  ;;  %v7224_v40 = vcombine.low %v885_v24, %v889_v26  ;;  %v7226_v41 = vcombine.low %v886_v27, %v890_v28  ;;  %v172_v24 = vld [vmem:[#allocation5 + $0x38] sm:$0xff] }
 0x1ac   :  { %5027 = vmatpush1.bf16.msra.mxu0 %v7168_v34  ;;  %5273 = vmatpush1.bf16.msra.mxu1 %v7170_v35  ;;  %v7227_v34 = vcombine.high %v886_v27, %v890_v28  ;;  %v893_v35 = vld [vmem:[#allocation5 + $0x16c0] sm:$0xff] }
 0x1ad   :  { %5028 = vmatprep.subr.bf16.mxu0 %v7177_v63  ;;  %5274 = vmatprep.subr.bf16.mxu1 %v7179_v37  ;;  %v897_v63 = vld [vmem:[#allocation5 + $0x16e0] sm:$0xff]  ;;  %v894_v37 = vld [vmem:[#allocation5 + $0x16c8] sm:$0xff] }
 0x1ae   :  { %v7233_v55 = vcombine.high %v893_v35, %v897_v63  ;;  %v7232_v49 = vcombine.low %v893_v35, %v897_v63  ;;  %v7234_v50 = vcombine.low %v894_v37, %v898_v38  ;;  %v176_v35 = vld [vmem:[#allocation5 + $0x58] sm:$0xff] }
 0x1af   :  { %v180_v63 = vld [vmem:[#allocation5 + $0x78] sm:$0xff] }
 0x1b0   :  { %5029 = vmatpush1.bf16.msra.mxu0 %v7176_v42  ;;  %5275 = vmatpush1.bf16.msra.mxu1 %v7178_v45  ;;  %v7235_v42 = vcombine.high %v894_v37, %v898_v38  ;;  %v901_v45 = vld [vmem:[#allocation5 + $0x1700] sm:$0xff] }
 0x1b1   :  { %5030 = vmatprep.subr.bf16.mxu0 %v7185_v46  ;;  %5276 = vmatprep.subr.bf16.mxu1 %v7187_v47  ;;  %v905_v46 = vld [vmem:[#allocation5 + $0x1720] sm:$0xff]  ;;  %v902_v47 = vld [vmem:[#allocation5 + $0x1708] sm:$0xff] }
 0x1b2   :  { %v7241_v52 = vcombine.high %v901_v45, %v905_v46  ;;  %v7240_v23 = vcombine.low %v901_v45, %v905_v46  ;;  %v7242_v60 = vcombine.low %v902_v47, %v906_v48  ;;  %v184_v45 = vld [vmem:[#allocation5 + $0x98] sm:$0xff] }
 0x1b3   :  { %v188_v46 = vld [vmem:[#allocation5 + $0xb8] sm:$0xff] }
 0x1b4   :  { %5031 = vmatpush1.bf16.msra.mxu0 %v7184_v16  ;;  %5277 = vmatpush1.bf16.msra.mxu1 %v7186_v56  ;;  %v7243_v16 = vcombine.high %v902_v47, %v906_v48  ;;  %v909_v56 = vld [vmem:[#allocation5 + $0x1740] sm:$0xff]  ;;  %v6518_v47 = vcombine.low %v176_v35, %v180_v63 }
 0x1b5   :  { %5032 = vmatprep.subr.bf16.mxu0 %v7193_v57  ;;  %5278 = vmatprep.subr.bf16.mxu1 %v7195_v10  ;;  %v913_v57 = vld [vmem:[#allocation5 + $0x1760] sm:$0xff]  ;;  %v910_v10 = vld [vmem:[#allocation5 + $0x1748] sm:$0xff] }
 0x1b6   :  { %v7249_v61 = vcombine.high %v909_v56, %v913_v57  ;;  %v7248_v5 = vcombine.low %v909_v56, %v913_v57  ;;  %v7250_v6 = vcombine.low %v910_v10, %v914_v58  ;;  %v196_v56 = vld [vmem:[#allocation5 + $0xf8] sm:$0xff] }
 0x1b8   :  { %5033 = vmatpush1.bf16.msra.mxu0 %v7192_v62  ;;  %5279 = vmatpush1.bf16.msra.mxu1 %v7194_v53  ;;  %v7251_v62 = vcombine.high %v910_v10, %v914_v58  ;;  %v917_v53 = vld [vmem:[#allocation5 + $0x1780] sm:$0xff]  ;;  %v6526_v10 = vcombine.low %v184_v45, %v188_v46 }
 0x1b9   :  { %5034 = vmatprep.subr.bf16.mxu0 %v7201_v1  ;;  %5280 = vmatprep.subr.bf16.mxu1 %v7203_v3  ;;  %v921_v1 = vld [vmem:[#allocation5 + $0x17a0] sm:$0xff]  ;;  %v918_v3 = vld [vmem:[#allocation5 + $0x1788] sm:$0xff] }
 0x1ba   :  { %v7257_v7 = vcombine.high %v917_v53, %v921_v1  ;;  %v7256_v15 = vcombine.low %v917_v53, %v921_v1  ;;  %v7258_v17 = vcombine.low %v918_v3, %v922_v4  ;;  %v204_v53 = vld [vmem:[#allocation5 + $0x138] sm:$0xff] }
 0x1bc   :  { %5035 = vmatpush1.bf16.msra.mxu0 %v7200_v8  ;;  %5281 = vmatpush1.bf16.msra.mxu1 %v7202_v13  ;;  %v7259_v8 = vcombine.high %v918_v3, %v922_v4  ;;  %v925_v13 = vld [vmem:[#allocation5 + $0x17c0] sm:$0xff] }
 0x1bd   :  { %5036 = vmatprep.subr.bf16.mxu0 %v7209_v14  ;;  %5282 = vmatprep.subr.bf16.mxu1 %v7211_v18  ;;  %v929_v14 = vld [vmem:[#allocation5 + $0x17e0] sm:$0xff]  ;;  %v926_v18 = vld [vmem:[#allocation5 + $0x17c8] sm:$0xff] }
 0x1be   :  { %v7265_v19 = vcombine.high %v925_v13, %v929_v14  ;;  %v7264_v26 = vcombine.low %v925_v13, %v929_v14  ;;  %v7266_v27 = vcombine.low %v926_v18, %v930_v33 }
 0x1c0   :  { %5037 = vmatpush1.bf16.msra.mxu0 %v7208_v59  ;;  %5283 = vmatpush1.bf16.msra.mxu1 %v7210_v20  ;;  %v7267_v59 = vcombine.high %v926_v18, %v930_v33  ;;  %v167_v20 = vld [vmem:[#allocation5 + $0x10] sm:$0xff] }
 0x1c1   :  { %5038 = vmatprep.subr.bf16.mxu0 %v7217_v21  ;;  %5284 = vmatprep.subr.bf16.mxu1 %v7219_v22  ;;  %v171_v21 = vld [vmem:[#allocation5 + $0x30] sm:$0xff]  ;;  %v168_v22 = vld [vmem:[#allocation5 + $0x18] sm:$0xff] }
 0x1c2   :  { %v6509_v28 = vcombine.high %v167_v20, %v171_v21  ;;  %v6508_v37 = vcombine.low %v167_v20, %v171_v21  ;;  %v6510_v38 = vcombine.low %v168_v22, %v172_v24 }
 0x1c4   :  { %5039 = vmatpush1.bf16.msra.mxu0 %v7216_v30  ;;  %5285 = vmatpush1.bf16.msra.mxu1 %v7218_v31  ;;  %v6511_v30 = vcombine.high %v168_v22, %v172_v24  ;;  %v175_v31 = vld [vmem:[#allocation5 + $0x50] sm:$0xff] }
 0x1c5   :  { %5040 = vmatprep.subr.bf16.mxu0 %v7225_v32  ;;  %5286 = vmatprep.subr.bf16.mxu1 %v7227_v34  ;;  %v179_v32 = vld [vmem:[#allocation5 + $0x70] sm:$0xff]  ;;  %v7938_v34 = vpack.c.bf16 %v7922_v54, %v7922_v54 }
 0x1c6   :  { %v6516_v54 = vcombine.low %v175_v31, %v179_v32 }
 0x1c8   :  { %5041 = vmatpush1.bf16.msra.mxu0 %v7224_v40  ;;  %5287 = vmatpush1.bf16.msra.mxu1 %v7226_v41  ;;  %v6517_v40 = vcombine.high %v175_v31, %v179_v32  ;;  %v6519_v41 = vcombine.high %v176_v35, %v180_v63 }
 0x1c9   :  { %5042 = vmatprep.subr.bf16.mxu0 %v7233_v55  ;;  %5288 = vmatprep.subr.bf16.mxu1 %v7235_v42  ;;  %v183_v55 = vld [vmem:[#allocation5 + $0x90] sm:$0xff] }
 0x1ca   :  { %v187_v42 = vld [vmem:[#allocation5 + $0xb0] sm:$0xff] }
 0x1cb   :  { %v6525_v48 = vcombine.high %v183_v55, %v187_v42  ;;  %v6524_v57 = vcombine.low %v183_v55, %v187_v42 }
 0x1cc   :  { %5043 = vmatpush1.bf16.msra.mxu0 %v7232_v49  ;;  %5289 = vmatpush1.bf16.msra.mxu1 %v7234_v50  ;;  %v6527_v49 = vcombine.high %v184_v45, %v188_v46  ;;  %v191_v50 = vld [vmem:[#allocation5 + $0xd0] sm:$0xff] }
 0x1cd   :  { %5044 = vmatprep.subr.bf16.mxu0 %v7241_v52  ;;  %5290 = vmatprep.subr.bf16.mxu1 %v7243_v16  ;;  %v195_v52 = vld [vmem:[#allocation5 + $0xf0] sm:$0xff]  ;;  %v192_v16 = vld [vmem:[#allocation5 + $0xd8] sm:$0xff] }
 0x1ce   :  { %v6533_v58 = vcombine.high %v191_v50, %v195_v52  ;;  %v6532_v1 = vcombine.low %v191_v50, %v195_v52  ;;  %v6534_v3 = vcombine.low %v192_v16, %v196_v56 }
 0x1d0   :  { %5045 = vmatpush1.bf16.msra.mxu0 %v7240_v23  ;;  %5291 = vmatpush1.bf16.msra.mxu1 %v7242_v60  ;;  %v6535_v23 = vcombine.high %v192_v16, %v196_v56  ;;  %v199_v60 = vld [vmem:[#allocation5 + $0x110] sm:$0xff] }
 0x1d1   :  { %5046 = vmatprep.subr.bf16.mxu0 %v7249_v61  ;;  %5292 = vmatprep.subr.bf16.mxu1 %v7251_v62  ;;  %v203_v61 = vld [vmem:[#allocation5 + $0x130] sm:$0xff]  ;;  %v200_v62 = vld [vmem:[#allocation5 + $0x118] sm:$0xff] }
 0x1d2   :  { %v6541_v4 = vcombine.high %v199_v60, %v203_v61  ;;  %v6540_v13 = vcombine.low %v199_v60, %v203_v61  ;;  %v6542_v14 = vcombine.low %v200_v62, %v204_v53 }
 0x1d4   :  { %5047 = vmatpush1.bf16.msra.mxu0 %v7248_v5  ;;  %5293 = vmatpush1.bf16.msra.mxu1 %v7250_v6  ;;  %v207_v5 = vld [vmem:[#allocation5 + $0x150] sm:$0xff] }
 0x1d5   :  { %5048 = vmatprep.subr.bf16.mxu0 %v7257_v7  ;;  %5294 = vmatprep.subr.bf16.mxu1 %v7259_v8  ;;  %v211_v6 = vld [vmem:[#allocation5 + $0x170] sm:$0xff]  ;;  %v208_v7 = vld [vmem:[#allocation5 + $0x158] sm:$0xff] }
 0x1d6   :  { %v212_v8 = vld [vmem:[#allocation5 + $0x178] sm:$0xff]  ;;  %v6549_v18 = vcombine.high %v207_v5, %v211_v6  ;;  %v6548_v20 = vcombine.low %v207_v5, %v211_v6 }
 0x1d7   :  { %v6551_v33 = vcombine.high %v208_v7, %v212_v8  ;;  %v6550_v21 = vcombine.low %v208_v7, %v212_v8 }
 0x1d8   :  { %5049 = vmatpush1.bf16.msra.mxu0 %v7256_v15  ;;  %5295 = vmatpush1.bf16.msra.mxu1 %v7258_v17  ;;  %v215_v15 = vld [vmem:[#allocation5 + $0x190] sm:$0xff] }
 0x1d9   :  { %5050 = vmatprep.subr.bf16.mxu0 %v7265_v19  ;;  %5296 = vmatprep.subr.bf16.mxu1 %v7267_v59  ;;  %v219_v17 = vld [vmem:[#allocation5 + $0x1b0] sm:$0xff]  ;;  %v216_v19 = vld [vmem:[#allocation5 + $0x198] sm:$0xff] }
 0x1da   :  { %v220_v59 = vld [vmem:[#allocation5 + $0x1b8] sm:$0xff]  ;;  %v6557_v22 = vcombine.high %v215_v15, %v219_v17  ;;  %v6556_v31 = vcombine.low %v215_v15, %v219_v17 }
 0x1db   :  { %v6559_v24 = vcombine.high %v216_v19, %v220_v59  ;;  %v6558_v32 = vcombine.low %v216_v19, %v220_v59 }
 0x1dc   :  { %5051 = vmatpush1.bf16.msra.mxu0 %v7264_v26  ;;  %5297 = vmatpush1.bf16.msra.mxu1 %v7266_v27  ;;  %v223_v26 = vld [vmem:[#allocation5 + $0x1d0] sm:$0xff] }
 0x1dd   :  { %5307 = vmatprep.subr.bf16.mxu0 %v6509_v28  ;;  %5553 = vmatprep.subr.bf16.mxu1 %v6511_v30  ;;  %v227_v27 = vld [vmem:[#allocation5 + $0x1f0] sm:$0xff]  ;;  %v224_v28 = vld [vmem:[#allocation5 + $0x1d8] sm:$0xff] }
 0x1de   :  { %v228_v30 = vld [vmem:[#allocation5 + $0x1f8] sm:$0xff]  ;;  %v6565_v35 = vcombine.high %v223_v26, %v227_v27  ;;  %v6564_v55 = vcombine.low %v223_v26, %v227_v27 }
 0x1df   :  { %5053 = vmatmul.mubr.bf16.vlgmr.msra.gmra.mrb[0].mxu0 %v7938_v34  ;;  %5299 = vmatmul.mubr.bf16.vlgmr.msra.gmra.mrb[0].mxu1 %v7938_v34  ;;  %v6567_v63 = vcombine.high %v224_v28, %v228_v30  ;;  %v6566_v42 = vcombine.low %v224_v28, %v228_v30 }
 0x1e0   :  { %5308 = vmatpush1.bf16.msra.mxu0 %v6508_v37  ;;  %5554 = vmatpush1.bf16.msra.mxu1 %v6510_v38  ;;  %v231_v37 = vld [vmem:[#allocation5 + $0x210] sm:$0xff] }
 0x1e1   :  { %5309 = vmatprep.subr.bf16.mxu0 %v6517_v40  ;;  %5555 = vmatprep.subr.bf16.mxu1 %v6519_v41  ;;  %v235_v38 = vld [vmem:[#allocation5 + $0x230] sm:$0xff]  ;;  %v232_v40 = vld [vmem:[#allocation5 + $0x218] sm:$0xff] }
 0x1e2   :  { %5339 = vmatprep.mubr.bf16.mxu0 %v7845_v9  ;;  %5585 = vmatprep.mubr.bf16.mxu1 %v7845_v9  ;;  %v6543_v9 = vcombine.high %v200_v62, %v204_v53  ;;  %v236_v41 = vld [vmem:[#allocation5 + $0x238] sm:$0xff]  ;;  %v6573_v45 = vcombine.high %v231_v37, %v235_v38  ;;  %v6572_v50 = vcombine.low %v231_v37, %v235_v38 }
 0x1e3   :  { %v6575_v46 = vcombine.high %v232_v40, %v236_v41  ;;  %v6574_v52 = vcombine.low %v232_v40, %v236_v41 }
 0x1e4   :  { %5310 = vmatpush1.bf16.msra.mxu0 %v6516_v54  ;;  %5556 = vmatpush1.bf16.msra.mxu1 %v6518_v47  ;;  %v239_v54 = vld [vmem:[#allocation5 + $0x250] sm:$0xff] }
 0x1e5   :  { %5311 = vmatprep.subr.bf16.mxu0 %v6525_v48  ;;  %5557 = vmatprep.subr.bf16.mxu1 %v6527_v49  ;;  %v243_v47 = vld [vmem:[#allocation5 + $0x270] sm:$0xff]  ;;  %v240_v48 = vld [vmem:[#allocation5 + $0x258] sm:$0xff] }
 0x1e6   :  { %v244_v49 = vld [vmem:[#allocation5 + $0x278] sm:$0xff]  ;;  %v6581_v16 = vcombine.high %v239_v54, %v243_v47  ;;  %v6580_v60 = vcombine.low %v239_v54, %v243_v47 }
 0x1e7   :  { %v6583_v56 = vcombine.high %v240_v48, %v244_v49  ;;  %v6582_v61 = vcombine.low %v240_v48, %v244_v49 }
 0x1e8   :  { %5312 = vmatpush1.bf16.msra.mxu0 %v6524_v57  ;;  %5558 = vmatpush1.bf16.msra.mxu1 %v6526_v10  ;;  %v247_v57 = vld [vmem:[#allocation5 + $0x290] sm:$0xff] }
 0x1e9   :  { %5313 = vmatprep.subr.bf16.mxu0 %v6533_v58  ;;  %5559 = vmatprep.subr.bf16.mxu1 %v6535_v23  ;;  %v251_v10 = vld [vmem:[#allocation5 + $0x2b0] sm:$0xff]  ;;  %v248_v58 = vld [vmem:[#allocation5 + $0x298] sm:$0xff] }
 0x1ea   :  { %v252_v23 = vld [vmem:[#allocation5 + $0x2b8] sm:$0xff]  ;;  %v6589_v62 = vcombine.high %v247_v57, %v251_v10  ;;  %v6588_v5 = vcombine.low %v247_v57, %v251_v10 }
 0x1eb   :  { %v6591_v53 = vcombine.high %v248_v58, %v252_v23  ;;  %v6590_v6 = vcombine.low %v248_v58, %v252_v23 }
 0x1ec   :  { %5314 = vmatpush1.bf16.msra.mxu0 %v6532_v1  ;;  %5560 = vmatpush1.bf16.msra.mxu1 %v6534_v3  ;;  %v255_v1 = vld [vmem:[#allocation5 + $0x2d0] sm:$0xff] }
 0x1ed   :  { %5315 = vmatprep.subr.bf16.mxu0 %v6541_v4  ;;  %5561 = vmatprep.subr.bf16.mxu1 %v6543_v9  ;;  %v259_v3 = vld [vmem:[#allocation5 + $0x2f0] sm:$0xff]  ;;  %v256_v4 = vld [vmem:[#allocation5 + $0x2d8] sm:$0xff] }
 0x1ee   :  { %v260_v9 = vld [vmem:[#allocation5 + $0x2f8] sm:$0xff]  ;;  %v6597_v7 = vcombine.high %v255_v1, %v259_v3  ;;  %v6596_v15 = vcombine.low %v255_v1, %v259_v3 }
 0x1ef   :  { %v6599_v8 = vcombine.high %v256_v4, %v260_v9  ;;  %v6598_v17 = vcombine.low %v256_v4, %v260_v9 }
 0x1f0   :  { %5316 = vmatpush1.bf16.msra.mxu0 %v6540_v13  ;;  %5562 = vmatpush1.bf16.msra.mxu1 %v6542_v14  ;;  %v263_v13 = vld [vmem:[#allocation5 + $0x310] sm:$0xff] }
 0x1f1   :  { %5317 = vmatprep.subr.bf16.mxu0 %v6549_v18  ;;  %5563 = vmatprep.subr.bf16.mxu1 %v6551_v33  ;;  %v267_v14 = vld [vmem:[#allocation5 + $0x330] sm:$0xff]  ;;  %v264_v18 = vld [vmem:[#allocation5 + $0x318] sm:$0xff] }
 0x1f2   :  { %v268_v33 = vld [vmem:[#allocation5 + $0x338] sm:$0xff]  ;;  %v6605_v19 = vcombine.high %v263_v13, %v267_v14  ;;  %v6604_v26 = vcombine.low %v263_v13, %v267_v14 }
 0x1f3   :  { %v6607_v59 = vcombine.high %v264_v18, %v268_v33  ;;  %v6606_v27 = vcombine.low %v264_v18, %v268_v33 }
 0x1f4   :  { %5318 = vmatpush1.bf16.msra.mxu0 %v6548_v20  ;;  %5564 = vmatpush1.bf16.msra.mxu1 %v6550_v21  ;;  %v271_v20 = vld [vmem:[#allocation5 + $0x350] sm:$0xff] }
 0x1f5   :  { %5319 = vmatprep.subr.bf16.mxu0 %v6557_v22  ;;  %5565 = vmatprep.subr.bf16.mxu1 %v6559_v24  ;;  %v275_v21 = vld [vmem:[#allocation5 + $0x370] sm:$0xff]  ;;  %v272_v22 = vld [vmem:[#allocation5 + $0x358] sm:$0xff] }
 0x1f6   :  { %v276_v24 = vld [vmem:[#allocation5 + $0x378] sm:$0xff]  ;;  %v6613_v28 = vcombine.high %v271_v20, %v275_v21  ;;  %v6612_v37 = vcombine.low %v271_v20, %v275_v21 }
 0x1f7   :  { %v6615_v30 = vcombine.high %v272_v22, %v276_v24  ;;  %v6614_v38 = vcombine.low %v272_v22, %v276_v24  ;;  %v327_v24 = vld [vmem:[#allocation5 + $0x510] sm:$0xff] }
 0x1f8   :  { %5320 = vmatpush1.bf16.msra.mxu0 %v6556_v31  ;;  %5566 = vmatpush1.bf16.msra.mxu1 %v6558_v32  ;;  %v279_v31 = vld [vmem:[#allocation5 + $0x390] sm:$0xff] }
 0x1f9   :  { %5321 = vmatprep.subr.bf16.mxu0 %v6565_v35  ;;  %5567 = vmatprep.subr.bf16.mxu1 %v6567_v63  ;;  %v283_v32 = vld [vmem:[#allocation5 + $0x3b0] sm:$0xff]  ;;  %v280_v35 = vld [vmem:[#allocation5 + $0x398] sm:$0xff] }
 0x1fa   :  { %v284_v63 = vld [vmem:[#allocation5 + $0x3b8] sm:$0xff]  ;;  %v6621_v40 = vcombine.high %v279_v31, %v283_v32  ;;  %v6620_v54 = vcombine.low %v279_v31, %v283_v32 }
 0x1fb   :  { %v6623_v41 = vcombine.high %v280_v35, %v284_v63  ;;  %v6622_v47 = vcombine.low %v280_v35, %v284_v63  ;;  %v335_v35 = vld [vmem:[#allocation5 + $0x550] sm:$0xff] }
 0x1fc   :  { %5322 = vmatpush1.bf16.msra.mxu0 %v6564_v55  ;;  %5568 = vmatpush1.bf16.msra.mxu1 %v6566_v42  ;;  %v287_v55 = vld [vmem:[#allocation5 + $0x3d0] sm:$0xff] }
 0x1fd   :  { %5323 = vmatprep.subr.bf16.mxu0 %v6573_v45  ;;  %5569 = vmatprep.subr.bf16.mxu1 %v6575_v46  ;;  %v291_v42 = vld [vmem:[#allocation5 + $0x3f0] sm:$0xff]  ;;  %v288_v45 = vld [vmem:[#allocation5 + $0x3d8] sm:$0xff] }
 0x1fe   :  { %v292_v46 = vld [vmem:[#allocation5 + $0x3f8] sm:$0xff]  ;;  %v6629_v48 = vcombine.high %v287_v55, %v291_v42  ;;  %v6628_v57 = vcombine.low %v287_v55, %v291_v42  ;;  %v339_v63 = vld [vmem:[#allocation5 + $0x570] sm:$0xff] }
 0x1ff   :  { %v6631_v49 = vcombine.high %v288_v45, %v292_v46  ;;  %v6630_v10 = vcombine.low %v288_v45, %v292_v46  ;;  %v6677_v55 = vcombine.high %v335_v35, %v339_v63  ;;  %v343_v45 = vld [vmem:[#allocation5 + $0x590] sm:$0xff] }
 0x200   :  { %5324 = vmatpush1.bf16.msra.mxu0 %v6572_v50  ;;  %5570 = vmatpush1.bf16.msra.mxu1 %v6574_v52  ;;  %v295_v50 = vld [vmem:[#allocation5 + $0x410] sm:$0xff] }
 0x201   :  { %5325 = vmatprep.subr.bf16.mxu0 %v6581_v16  ;;  %5571 = vmatprep.subr.bf16.mxu1 %v6583_v56  ;;  %v299_v52 = vld [vmem:[#allocation5 + $0x430] sm:$0xff]  ;;  %v296_v16 = vld [vmem:[#allocation5 + $0x418] sm:$0xff] }
 0x202   :  { %v300_v56 = vld [vmem:[#allocation5 + $0x438] sm:$0xff]  ;;  %v6637_v58 = vcombine.high %v295_v50, %v299_v52  ;;  %v6636_v1 = vcombine.low %v295_v50, %v299_v52  ;;  %v347_v46 = vld [vmem:[#allocation5 + $0x5b0] sm:$0xff] }
 0x203   :  { %v6639_v23 = vcombine.high %v296_v16, %v300_v56  ;;  %v6638_v3 = vcombine.low %v296_v16, %v300_v56  ;;  %v6685_v50 = vcombine.high %v343_v45, %v347_v46  ;;  %v351_v16 = vld [vmem:[#allocation5 + $0x5d0] sm:$0xff] }
 0x204   :  { %5326 = vmatpush1.bf16.msra.mxu0 %v6580_v60  ;;  %5572 = vmatpush1.bf16.msra.mxu1 %v6582_v61  ;;  %v303_v60 = vld [vmem:[#allocation5 + $0x450] sm:$0xff] }
 0x205   :  { %5327 = vmatprep.subr.bf16.mxu0 %v6589_v62  ;;  %5573 = vmatprep.subr.bf16.mxu1 %v6591_v53  ;;  %v307_v61 = vld [vmem:[#allocation5 + $0x470] sm:$0xff]  ;;  %v304_v62 = vld [vmem:[#allocation5 + $0x458] sm:$0xff] }
 0x206   :  { %v308_v53 = vld [vmem:[#allocation5 + $0x478] sm:$0xff]  ;;  %v6645_v4 = vcombine.high %v303_v60, %v307_v61  ;;  %v6644_v13 = vcombine.low %v303_v60, %v307_v61  ;;  %v355_v56 = vld [vmem:[#allocation5 + $0x5f0] sm:$0xff] }
 0x207   :  { %v6647_v9 = vcombine.high %v304_v62, %v308_v53  ;;  %v6646_v14 = vcombine.low %v304_v62, %v308_v53  ;;  %v6693_v60 = vcombine.high %v351_v16, %v355_v56  ;;  %v359_v62 = vld [vmem:[#allocation5 + $0x610] sm:$0xff] }
 0x208   :  { %5328 = vmatpush1.bf16.msra.mxu0 %v6588_v5  ;;  %5574 = vmatpush1.bf16.msra.mxu1 %v6590_v6  ;;  %v311_v5 = vld [vmem:[#allocation5 + $0x490] sm:$0xff] }
 0x209   :  { %5329 = vmatprep.subr.bf16.mxu0 %v6597_v7  ;;  %5575 = vmatprep.subr.bf16.mxu1 %v6599_v8  ;;  %v315_v6 = vld [vmem:[#allocation5 + $0x4b0] sm:$0xff]  ;;  %v312_v7 = vld [vmem:[#allocation5 + $0x498] sm:$0xff] }
 0x20a   :  { %v316_v8 = vld [vmem:[#allocation5 + $0x4b8] sm:$0xff]  ;;  %v6653_v18 = vcombine.high %v311_v5, %v315_v6  ;;  %v6652_v20 = vcombine.low %v311_v5, %v315_v6  ;;  %v363_v53 = vld [vmem:[#allocation5 + $0x630] sm:$0xff] }
 0x20b   :  { %v6655_v33 = vcombine.high %v312_v7, %v316_v8  ;;  %v6701_v5 = vcombine.high %v359_v62, %v363_v53 }
 0x20c   :  { %5330 = vmatpush1.bf16.msra.mxu0 %v6596_v15  ;;  %5576 = vmatpush1.bf16.msra.mxu1 %v6598_v17  ;;  %v319_v15 = vld [vmem:[#allocation5 + $0x4d0] sm:$0xff] }
 0x20d   :  { %5331 = vmatprep.subr.bf16.mxu0 %v6605_v19  ;;  %5577 = vmatprep.subr.bf16.mxu1 %v6607_v59  ;;  %v323_v17 = vld [vmem:[#allocation5 + $0x4f0] sm:$0xff]  ;;  %v320_v19 = vld [vmem:[#allocation5 + $0x4d8] sm:$0xff] }
 0x20e   :  { %v324_v59 = vld [vmem:[#allocation5 + $0x4f8] sm:$0xff]  ;;  %v6661_v21 = vcombine.high %v319_v15, %v323_v17 }
 0x20f   :  { %v6663_v22 = vcombine.high %v320_v19, %v324_v59  ;;  %v6662_v31 = vcombine.low %v320_v19, %v324_v59  ;;  %v375_v19 = vld [vmem:[#allocation5 + $0x690] sm:$0xff] }
 0x210   :  { %5332 = vmatpush1.bf16.msra.mxu0 %v6604_v26  ;;  %5578 = vmatpush1.bf16.msra.mxu1 %v6606_v27  ;;  %v331_v26 = vld [vmem:[#allocation5 + $0x530] sm:$0xff]  ;;  %v328_v27 = vld [vmem:[#allocation5 + $0x518] sm:$0xff] }
 0x211   :  { %5333 = vmatprep.subr.bf16.mxu0 %v6613_v28  ;;  %5579 = vmatprep.subr.bf16.mxu1 %v6615_v30  ;;  %v332_v28 = vld [vmem:[#allocation5 + $0x538] sm:$0xff]  ;;  %v6660_v30 = vcombine.low %v319_v15, %v323_v17  ;;  %v6669_v32 = vcombine.high %v327_v24, %v331_v26  ;;  %v379_v59 = vld [vmem:[#allocation5 + $0x6b0] sm:$0xff] }
 0x214   :  { %5334 = vmatpush1.bf16.msra.mxu0 %v6612_v37  ;;  %5580 = vmatpush1.bf16.msra.mxu1 %v6614_v38  ;;  %v336_v37 = vld [vmem:[#allocation5 + $0x558] sm:$0xff] }
 0x215   :  { %5335 = vmatprep.subr.bf16.mxu0 %v6621_v40  ;;  %5581 = vmatprep.subr.bf16.mxu1 %v6623_v41  ;;  %v340_v38 = vld [vmem:[#allocation5 + $0x578] sm:$0xff]  ;;  %v6668_v40 = vcombine.low %v327_v24, %v331_v26  ;;  %v6670_v41 = vcombine.low %v328_v27, %v332_v28  ;;  %v6717_v24 = vcombine.high %v375_v19, %v379_v59 }
 0x216   :  { %v6679_v42 = vcombine.high %v336_v37, %v340_v38 }
 0x218   :  { %5336 = vmatpush1.bf16.msra.mxu0 %v6620_v54  ;;  %5582 = vmatpush1.bf16.msra.mxu1 %v6622_v47  ;;  %v344_v54 = vld [vmem:[#allocation5 + $0x598] sm:$0xff] }
 0x219   :  { %5337 = vmatprep.subr.bf16.mxu0 %v6629_v48  ;;  %5583 = vmatprep.subr.bf16.mxu1 %v6631_v49  ;;  %v348_v47 = vld [vmem:[#allocation5 + $0x5b8] sm:$0xff]  ;;  %v6676_v48 = vcombine.low %v335_v35, %v339_v63  ;;  %v6678_v49 = vcombine.low %v336_v37, %v340_v38  ;;  %v391_v37 = vld [vmem:[#allocation5 + $0x710] sm:$0xff] }
 0x21a   :  { %v6687_v52 = vcombine.high %v344_v54, %v348_v47  ;;  %v395_v38 = vld [vmem:[#allocation5 + $0x730] sm:$0xff] }
 0x21c   :  { %5338 = vmatpush1.bf16.msra.mxu0 %v6628_v57  ;;  %5584 = vmatpush1.bf16.msra.mxu1 %v6630_v10  ;;  %v352_v57 = vld [vmem:[#allocation5 + $0x5d8] sm:$0xff] }
 0x21d   :  { %5348 = vmatprep.subr.bf16.mxu0 %v6637_v58  ;;  %5594 = vmatprep.subr.bf16.mxu1 %v6639_v23  ;;  %v356_v10 = vld [vmem:[#allocation5 + $0x5f8] sm:$0xff]  ;;  %v6684_v58 = vcombine.low %v343_v45, %v347_v46  ;;  %v6686_v23 = vcombine.low %v344_v54, %v348_v47  ;;  %v6733_v45 = vcombine.high %v391_v37, %v395_v38  ;;  %v399_v54 = vld [vmem:[#allocation5 + $0x750] sm:$0xff] }
 0x21e   :  { %v6695_v61 = vcombine.high %v352_v57, %v356_v10  ;;  %v403_v47 = vld [vmem:[#allocation5 + $0x770] sm:$0xff] }
 0x21f   :  { %5340 = vmatmul.mubr.bf16.vlgmr.msra.gmra.mrb[4].mxu0 %v7858_v25  ;;  %5586 = vmatmul.mubr.bf16.vlgmr.msra.gmra.mrb[4].mxu1 %v7858_v25  ;;  %v6654_v25 = vcombine.low %v312_v7, %v316_v8  ;;  %v367_v7 = vld [vmem:[#allocation5 + $0x650] sm:$0xff] }
 0x220   :  { %5349 = vmatpush1.bf16.msra.mxu0 %v6636_v1  ;;  %5595 = vmatpush1.bf16.msra.mxu1 %v6638_v3  ;;  %v360_v1 = vld [vmem:[#allocation5 + $0x618] sm:$0xff]  ;;  %v371_v8 = vld [vmem:[#allocation5 + $0x670] sm:$0xff] }
 0x221   :  { %5350 = vmatprep.subr.bf16.mxu0 %v6645_v4  ;;  %5596 = vmatprep.subr.bf16.mxu1 %v6647_v9  ;;  %v364_v3 = vld [vmem:[#allocation5 + $0x638] sm:$0xff]  ;;  %v6692_v4 = vcombine.low %v351_v16, %v355_v56  ;;  %v6694_v9 = vcombine.low %v352_v57, %v356_v10  ;;  %v6709_v15 = vcombine.high %v367_v7, %v371_v8  ;;  %v407_v57 = vld [vmem:[#allocation5 + $0x790] sm:$0xff] }
 0x222   :  { %5380 = vmatprep.mubr.bf16.mxu0 %v7860_v36  ;;  %5626 = vmatprep.mubr.bf16.mxu1 %v7860_v36  ;;  %v6671_v36 = vcombine.high %v328_v27, %v332_v28  ;;  %v6703_v6 = vcombine.high %v360_v1, %v364_v3  ;;  %v383_v27 = vld [vmem:[#allocation5 + $0x6d0] sm:$0xff]  ;;  %v6741_v16 = vcombine.high %v399_v54, %v403_v47 }
 0x223   :  { %v387_v28 = vld [vmem:[#allocation5 + $0x6f0] sm:$0xff] }
 0x224   :  { %5351 = vmatpush1.bf16.msra.mxu0 %v6644_v13  ;;  %5597 = vmatpush1.bf16.msra.mxu1 %v6646_v14  ;;  %v368_v13 = vld [vmem:[#allocation5 + $0x658] sm:$0xff]  ;;  %v6725_v35 = vcombine.high %v383_v27, %v387_v28  ;;  %v411_v10 = vld [vmem:[#allocation5 + $0x7b0] sm:$0xff] }
 0x225   :  { %5352 = vmatprep.subr.bf16.mxu0 %v6653_v18  ;;  %5598 = vmatprep.subr.bf16.mxu1 %v6655_v33  ;;  %v372_v14 = vld [vmem:[#allocation5 + $0x678] sm:$0xff]  ;;  %v6700_v18 = vcombine.low %v359_v62, %v363_v53  ;;  %v6702_v33 = vcombine.low %v360_v1, %v364_v3  ;;  %v6749_v62 = vcombine.high %v407_v57, %v411_v10  ;;  %v415_v1 = vld [vmem:[#allocation5 + $0x7d0] sm:$0xff] }
 0x226   :  { %v6711_v17 = vcombine.high %v368_v13, %v372_v14  ;;  %v419_v3 = vld [vmem:[#allocation5 + $0x7f0] sm:$0xff] }
 0x228   :  { %5353 = vmatpush1.bf16.msra.mxu0 %v6652_v20  ;;  %5599 = vmatpush1.bf16.msra.mxu1 %v6654_v25  ;;  %v376_v20 = vld [vmem:[#allocation5 + $0x698] sm:$0xff] }
 0x229   :  { %5354 = vmatprep.subr.bf16.mxu0 %v6661_v21  ;;  %5600 = vmatprep.subr.bf16.mxu1 %v6663_v22  ;;  %v380_v25 = vld [vmem:[#allocation5 + $0x6b8] sm:$0xff]  ;;  %v6708_v21 = vcombine.low %v367_v7, %v371_v8  ;;  %v6710_v22 = vcombine.low %v368_v13, %v372_v14  ;;  %v6757_v7 = vcombine.high %v415_v1, %v419_v3  ;;  %v423_v13 = vld [vmem:[#allocation5 + $0x810] sm:$0xff] }
 0x22a   :  { %v6719_v26 = vcombine.high %v376_v20, %v380_v25  ;;  %v427_v14 = vld [vmem:[#allocation5 + $0x830] sm:$0xff] }
 0x22c   :  { %5355 = vmatpush1.bf16.msra.mxu0 %v6660_v30  ;;  %5601 = vmatpush1.bf16.msra.mxu1 %v6662_v31  ;;  %v384_v30 = vld [vmem:[#allocation5 + $0x6d8] sm:$0xff] }
 0x22d   :  { %5356 = vmatprep.subr.bf16.mxu0 %v6669_v32  ;;  %5602 = vmatprep.subr.bf16.mxu1 %v6671_v36  ;;  %v388_v31 = vld [vmem:[#allocation5 + $0x6f8] sm:$0xff]  ;;  %v6716_v32 = vcombine.low %v375_v19, %v379_v59  ;;  %v6718_v36 = vcombine.low %v376_v20, %v380_v25  ;;  %v6765_v19 = vcombine.high %v423_v13, %v427_v14  ;;  %v431_v20 = vld [vmem:[#allocation5 + $0x850] sm:$0xff] }
 0x22e   :  { %v6727_v63 = vcombine.high %v384_v30, %v388_v31  ;;  %v435_v25 = vld [vmem:[#allocation5 + $0x870] sm:$0xff] }
 0x230   :  { %5357 = vmatpush1.bf16.msra.mxu0 %v6668_v40  ;;  %5603 = vmatpush1.bf16.msra.mxu1 %v6670_v41  ;;  %v392_v40 = vld [vmem:[#allocation5 + $0x718] sm:$0xff] }
 0x231   :  { %5358 = vmatprep.subr.bf16.mxu0 %v6677_v55  ;;  %5604 = vmatprep.subr.bf16.mxu1 %v6679_v42  ;;  %v396_v41 = vld [vmem:[#allocation5 + $0x738] sm:$0xff]  ;;  %v6724_v55 = vcombine.low %v383_v27, %v387_v28  ;;  %v6726_v42 = vcombine.low %v384_v30, %v388_v31  ;;  %v6773_v27 = vcombine.high %v431_v20, %v435_v25  ;;  %v439_v30 = vld [vmem:[#allocation5 + $0x890] sm:$0xff] }
 0x232   :  { %v6735_v46 = vcombine.high %v392_v40, %v396_v41  ;;  %v443_v31 = vld [vmem:[#allocation5 + $0x8b0] sm:$0xff] }
 0x234   :  { %5359 = vmatpush1.bf16.msra.mxu0 %v6676_v48  ;;  %5605 = vmatpush1.bf16.msra.mxu1 %v6678_v49  ;;  %v400_v48 = vld [vmem:[#allocation5 + $0x758] sm:$0xff] }
 0x235   :  { %5360 = vmatprep.subr.bf16.mxu0 %v6685_v50  ;;  %5606 = vmatprep.subr.bf16.mxu1 %v6687_v52  ;;  %v404_v49 = vld [vmem:[#allocation5 + $0x778] sm:$0xff]  ;;  %v6732_v50 = vcombine.low %v391_v37, %v395_v38  ;;  %v6734_v52 = vcombine.low %v392_v40, %v396_v41  ;;  %v6781_v37 = vcombine.high %v439_v30, %v443_v31  ;;  %v447_v40 = vld [vmem:[#allocation5 + $0x8d0] sm:$0xff] }
 0x236   :  { %v6743_v56 = vcombine.high %v400_v48, %v404_v49  ;;  %v451_v41 = vld [vmem:[#allocation5 + $0x8f0] sm:$0xff] }
 0x238   :  { %5361 = vmatpush1.bf16.msra.mxu0 %v6684_v58  ;;  %5607 = vmatpush1.bf16.msra.mxu1 %v6686_v23  ;;  %v408_v58 = vld [vmem:[#allocation5 + $0x798] sm:$0xff] }
 0x239   :  { %5362 = vmatprep.subr.bf16.mxu0 %v6693_v60  ;;  %5608 = vmatprep.subr.bf16.mxu1 %v6695_v61  ;;  %v412_v23 = vld [vmem:[#allocation5 + $0x7b8] sm:$0xff]  ;;  %v6740_v60 = vcombine.low %v399_v54, %v403_v47  ;;  %v6742_v61 = vcombine.low %v400_v48, %v404_v49  ;;  %v455_v47 = vld [vmem:[#allocation5 + $0x910] sm:$0xff] }
 0x23a   :  { %v6751_v53 = vcombine.high %v408_v58, %v412_v23  ;;  %v459_v48 = vld [vmem:[#allocation5 + $0x930] sm:$0xff]  ;;  %v456_v49 = vld [vmem:[#allocation5 + $0x918] sm:$0xff] }
 0x23c   :  { %5363 = vmatpush1.bf16.msra.mxu0 %v6692_v4  ;;  %5609 = vmatpush1.bf16.msra.mxu1 %v6694_v9  ;;  %v416_v4 = vld [vmem:[#allocation5 + $0x7d8] sm:$0xff] }
 0x23d   :  { %5364 = vmatprep.subr.bf16.mxu0 %v6701_v5  ;;  %5610 = vmatprep.subr.bf16.mxu1 %v6703_v6  ;;  %v420_v9 = vld [vmem:[#allocation5 + $0x7f8] sm:$0xff]  ;;  %v6748_v5 = vcombine.low %v407_v57, %v411_v10  ;;  %v6750_v6 = vcombine.low %v408_v58, %v412_v23  ;;  %v463_v57 = vld [vmem:[#allocation5 + $0x950] sm:$0xff] }
 0x23e   :  { %v6759_v8 = vcombine.high %v416_v4, %v420_v9  ;;  %v467_v10 = vld [vmem:[#allocation5 + $0x970] sm:$0xff]  ;;  %v464_v58 = vld [vmem:[#allocation5 + $0x958] sm:$0xff] }
 0x23f   :  { %v468_v23 = vld [vmem:[#allocation5 + $0x978] sm:$0xff] }
 0x240   :  { %5365 = vmatpush1.bf16.msra.mxu0 %v6700_v18  ;;  %5611 = vmatpush1.bf16.msra.mxu1 %v6702_v33  ;;  %v424_v18 = vld [vmem:[#allocation5 + $0x818] sm:$0xff] }
 0x241   :  { %5366 = vmatprep.subr.bf16.mxu0 %v6709_v15  ;;  %5612 = vmatprep.subr.bf16.mxu1 %v6711_v17  ;;  %v428_v33 = vld [vmem:[#allocation5 + $0x838] sm:$0xff]  ;;  %v6756_v15 = vcombine.low %v415_v1, %v419_v3  ;;  %v6758_v17 = vcombine.low %v416_v4, %v420_v9  ;;  %v471_v1 = vld [vmem:[#allocation5 + $0x990] sm:$0xff] }
 0x242   :  { %v6767_v59 = vcombine.high %v424_v18, %v428_v33  ;;  %v475_v3 = vld [vmem:[#allocation5 + $0x9b0] sm:$0xff]  ;;  %v472_v4 = vld [vmem:[#allocation5 + $0x998] sm:$0xff] }
 0x243   :  { %v476_v9 = vld [vmem:[#allocation5 + $0x9b8] sm:$0xff] }
 0x244   :  { %5367 = vmatpush1.bf16.msra.mxu0 %v6708_v21  ;;  %5613 = vmatpush1.bf16.msra.mxu1 %v6710_v22  ;;  %v432_v21 = vld [vmem:[#allocation5 + $0x858] sm:$0xff] }
 0x245   :  { %5368 = vmatprep.subr.bf16.mxu0 %v6717_v24  ;;  %5614 = vmatprep.subr.bf16.mxu1 %v6719_v26  ;;  %v436_v22 = vld [vmem:[#allocation5 + $0x878] sm:$0xff]  ;;  %v6764_v24 = vcombine.low %v423_v13, %v427_v14  ;;  %v6766_v26 = vcombine.low %v424_v18, %v428_v33  ;;  %v479_v13 = vld [vmem:[#allocation5 + $0x9d0] sm:$0xff] }
 0x246   :  { %v6775_v28 = vcombine.high %v432_v21, %v436_v22  ;;  %v483_v14 = vld [vmem:[#allocation5 + $0x9f0] sm:$0xff]  ;;  %v480_v18 = vld [vmem:[#allocation5 + $0x9d8] sm:$0xff] }
 0x247   :  { %v484_v33 = vld [vmem:[#allocation5 + $0x9f8] sm:$0xff] }
 0x248   :  { %5369 = vmatpush1.bf16.msra.mxu0 %v6716_v32  ;;  %5615 = vmatpush1.bf16.msra.mxu1 %v6718_v36  ;;  %v440_v32 = vld [vmem:[#allocation5 + $0x898] sm:$0xff] }
 0x249   :  { %5370 = vmatprep.subr.bf16.mxu0 %v6725_v35  ;;  %5616 = vmatprep.subr.bf16.mxu1 %v6727_v63  ;;  %v444_v36 = vld [vmem:[#allocation5 + $0x8b8] sm:$0xff]  ;;  %v6772_v35 = vcombine.low %v431_v20, %v435_v25  ;;  %v6774_v63 = vcombine.low %v432_v21, %v436_v22  ;;  %v487_v20 = vld [vmem:[#allocation5 + $0xa10] sm:$0xff] }
 0x24a   :  { %v6783_v38 = vcombine.high %v440_v32, %v444_v36  ;;  %v491_v25 = vld [vmem:[#allocation5 + $0xa30] sm:$0xff]  ;;  %v488_v21 = vld [vmem:[#allocation5 + $0xa18] sm:$0xff] }
 0x24b   :  { %v492_v22 = vld [vmem:[#allocation5 + $0xa38] sm:$0xff] }
 0x24c   :  { %5371 = vmatpush1.bf16.msra.mxu0 %v6724_v55  ;;  %5617 = vmatpush1.bf16.msra.mxu1 %v6726_v42  ;;  %v448_v55 = vld [vmem:[#allocation5 + $0x8d8] sm:$0xff] }
 0x24d   :  { %5372 = vmatprep.subr.bf16.mxu0 %v6733_v45  ;;  %5618 = vmatprep.subr.bf16.mxu1 %v6735_v46  ;;  %v452_v42 = vld [vmem:[#allocation5 + $0x8f8] sm:$0xff]  ;;  %v6780_v45 = vcombine.low %v439_v30, %v443_v31  ;;  %v6789_v46 = vcombine.high %v447_v40, %v451_v41  ;;  %v495_v30 = vld [vmem:[#allocation5 + $0xa50] sm:$0xff] }
 0x24e   :  { %v6791_v54 = vcombine.high %v448_v55, %v452_v42  ;;  %v499_v31 = vld [vmem:[#allocation5 + $0xa70] sm:$0xff] }
 0x250   :  { %5373 = vmatpush1.bf16.msra.mxu0 %v6732_v50  ;;  %5619 = vmatpush1.bf16.msra.mxu1 %v6734_v52  ;;  %v460_v50 = vld [vmem:[#allocation5 + $0x938] sm:$0xff]  ;;  %v6788_v52 = vcombine.low %v447_v40, %v451_v41  ;;  %v503_v40 = vld [vmem:[#allocation5 + $0xa90] sm:$0xff] }
 0x251   :  { %5374 = vmatprep.subr.bf16.mxu0 %v6741_v16  ;;  %5620 = vmatprep.subr.bf16.mxu1 %v6743_v56  ;;  %v6790_v16 = vcombine.low %v448_v55, %v452_v42  ;;  %v6797_v56 = vcombine.high %v455_v47, %v459_v48  ;;  %v507_v41 = vld [vmem:[#allocation5 + $0xab0] sm:$0xff]  ;;  %v504_v55 = vld [vmem:[#allocation5 + $0xa98] sm:$0xff] }
 0x252   :  { %v508_v42 = vld [vmem:[#allocation5 + $0xab8] sm:$0xff] }
 0x254   :  { %5375 = vmatpush1.bf16.msra.mxu0 %v6740_v60  ;;  %5621 = vmatpush1.bf16.msra.mxu1 %v6742_v61  ;;  %v6796_v60 = vcombine.low %v455_v47, %v459_v48  ;;  %v6798_v61 = vcombine.low %v456_v49, %v460_v50  ;;  %v511_v47 = vld [vmem:[#allocation5 + $0xad0] sm:$0xff] }
 0x255   :  { %5376 = vmatprep.subr.bf16.mxu0 %v6749_v62  ;;  %5622 = vmatprep.subr.bf16.mxu1 %v6751_v53  ;;  %v6805_v62 = vcombine.high %v463_v57, %v467_v10  ;;  %v6807_v53 = vcombine.high %v464_v58, %v468_v23  ;;  %v515_v48 = vld [vmem:[#allocation5 + $0xaf0] sm:$0xff] }
 0x258   :  { %5377 = vmatpush1.bf16.msra.mxu0 %v6748_v5  ;;  %5623 = vmatpush1.bf16.msra.mxu1 %v6750_v6  ;;  %v6804_v5 = vcombine.low %v463_v57, %v467_v10  ;;  %v6806_v6 = vcombine.low %v464_v58, %v468_v23  ;;  %v519_v57 = vld [vmem:[#allocation5 + $0xb10] sm:$0xff]  ;;  %v520_v58 = vld [vmem:[#allocation5 + $0xb18] sm:$0xff] }
 0x259   :  { %5378 = vmatprep.subr.bf16.mxu0 %v6757_v7  ;;  %5624 = vmatprep.subr.bf16.mxu1 %v6759_v8  ;;  %v6813_v7 = vcombine.high %v471_v1, %v475_v3  ;;  %v6815_v8 = vcombine.high %v472_v4, %v476_v9  ;;  %v523_v10 = vld [vmem:[#allocation5 + $0xb30] sm:$0xff]  ;;  %v524_v23 = vld [vmem:[#allocation5 + $0xb38] sm:$0xff] }
 0x25c   :  { %5379 = vmatpush1.bf16.msra.mxu0 %v6756_v15  ;;  %5625 = vmatpush1.bf16.msra.mxu1 %v6758_v17  ;;  %v6812_v15 = vcombine.low %v471_v1, %v475_v3  ;;  %v6814_v17 = vcombine.low %v472_v4, %v476_v9  ;;  %v527_v1 = vld [vmem:[#allocation5 + $0xb50] sm:$0xff]  ;;  %v528_v4 = vld [vmem:[#allocation5 + $0xb58] sm:$0xff] }
 0x25d   :  { %5389 = vmatprep.subr.bf16.mxu0 %v6765_v19  ;;  %5635 = vmatprep.subr.bf16.mxu1 %v6767_v59  ;;  %v6821_v19 = vcombine.high %v479_v13, %v483_v14  ;;  %v6823_v59 = vcombine.high %v480_v18, %v484_v33  ;;  %v531_v3 = vld [vmem:[#allocation5 + $0xb70] sm:$0xff]  ;;  %v532_v9 = vld [vmem:[#allocation5 + $0xb78] sm:$0xff] }
 0x25f   :  { %5381 = vmatmul.mubr.bf16.vlgmr.msra.gmra.mrb[4].mxu0 %v7876_v43  ;;  %5627 = vmatmul.mubr.bf16.vlgmr.msra.gmra.mrb[4].mxu1 %v7876_v43  ;;  %v6782_v43 = vcombine.low %v440_v32, %v444_v36  ;;  %v496_v32 = vld [vmem:[#allocation5 + $0xa58] sm:$0xff] }
 0x260   :  { %5390 = vmatpush1.bf16.msra.mxu0 %v6764_v24  ;;  %5636 = vmatpush1.bf16.msra.mxu1 %v6766_v26  ;;  %v6820_v24 = vcombine.low %v479_v13, %v483_v14  ;;  %v6822_v26 = vcombine.low %v480_v18, %v484_v33  ;;  %v500_v36 = vld [vmem:[#allocation5 + $0xa78] sm:$0xff]  ;;  %v535_v13 = vld [vmem:[#allocation5 + $0xb90] sm:$0xff] }
 0x261   :  { %5391 = vmatprep.subr.bf16.mxu0 %v6773_v27  ;;  %5637 = vmatprep.subr.bf16.mxu1 %v6775_v28  ;;  %v6829_v27 = vcombine.high %v487_v20, %v491_v25  ;;  %v6831_v28 = vcombine.high %v488_v21, %v492_v22  ;;  %v539_v14 = vld [vmem:[#allocation5 + $0xbb0] sm:$0xff]  ;;  %v536_v18 = vld [vmem:[#allocation5 + $0xb98] sm:$0xff] }
 0x262   :  { %5421 = vmatprep.mubr.bf16.mxu0 %v7878_v51  ;;  %5667 = vmatprep.mubr.bf16.mxu1 %v7878_v51  ;;  %v6799_v51 = vcombine.high %v456_v49, %v460_v50  ;;  %v512_v49 = vld [vmem:[#allocation5 + $0xad8] sm:$0xff] }
 0x263   :  { %v516_v50 = vld [vmem:[#allocation5 + $0xaf8] sm:$0xff] }
 0x264   :  { %5392 = vmatpush1.bf16.msra.mxu0 %v6772_v35  ;;  %5638 = vmatpush1.bf16.msra.mxu1 %v6774_v63  ;;  %v6828_v35 = vcombine.low %v487_v20, %v491_v25  ;;  %v6830_v63 = vcombine.low %v488_v21, %v492_v22  ;;  %v540_v33 = vld [vmem:[#allocation5 + $0xbb8] sm:$0xff]  ;;  %v543_v20 = vld [vmem:[#allocation5 + $0xbd0] sm:$0xff] }
 0x265   :  { %5393 = vmatprep.subr.bf16.mxu0 %v6781_v37  ;;  %5639 = vmatprep.subr.bf16.mxu1 %v6783_v38  ;;  %v6837_v37 = vcombine.high %v495_v30, %v499_v31  ;;  %v6839_v38 = vcombine.high %v496_v32, %v500_v36  ;;  %v547_v25 = vld [vmem:[#allocation5 + $0xbf0] sm:$0xff]  ;;  %v544_v21 = vld [vmem:[#allocation5 + $0xbd8] sm:$0xff] }
 0x266   :  { %v548_v22 = vld [vmem:[#allocation5 + $0xbf8] sm:$0xff] }
 0x268   :  { %5394 = vmatpush1.bf16.msra.mxu0 %v6780_v45  ;;  %5640 = vmatpush1.bf16.msra.mxu1 %v6782_v43  ;;  %v6836_v45 = vcombine.low %v495_v30, %v499_v31  ;;  %v6838_v43 = vcombine.low %v496_v32, %v500_v36  ;;  %v551_v30 = vld [vmem:[#allocation5 + $0xc10] sm:$0xff]  ;;  %v552_v32 = vld [vmem:[#allocation5 + $0xc18] sm:$0xff] }
 0x269   :  { %5395 = vmatprep.subr.bf16.mxu0 %v6789_v46  ;;  %5641 = vmatprep.subr.bf16.mxu1 %v6791_v54  ;;  %v6845_v46 = vcombine.high %v503_v40, %v507_v41  ;;  %v6847_v54 = vcombine.high %v504_v55, %v508_v42  ;;  %v555_v31 = vld [vmem:[#allocation5 + $0xc30] sm:$0xff]  ;;  %v556_v36 = vld [vmem:[#allocation5 + $0xc38] sm:$0xff] }
 0x26c   :  { %5396 = vmatpush1.bf16.msra.mxu0 %v6788_v52  ;;  %5642 = vmatpush1.bf16.msra.mxu1 %v6790_v16  ;;  %v6844_v52 = vcombine.low %v503_v40, %v507_v41  ;;  %v6846_v16 = vcombine.low %v504_v55, %v508_v42  ;;  %v559_v40 = vld [vmem:[#allocation5 + $0xc50] sm:$0xff]  ;;  %v560_v55 = vld [vmem:[#allocation5 + $0xc58] sm:$0xff] }
 0x26d   :  { %5397 = vmatprep.subr.bf16.mxu0 %v6797_v56  ;;  %5643 = vmatprep.subr.bf16.mxu1 %v6799_v51  ;;  %v6853_v56 = vcombine.high %v511_v47, %v515_v48  ;;  %v6855_v51 = vcombine.high %v512_v49, %v516_v50  ;;  %v563_v41 = vld [vmem:[#allocation5 + $0xc70] sm:$0xff]  ;;  %v564_v42 = vld [vmem:[#allocation5 + $0xc78] sm:$0xff] }
 0x270   :  { %5398 = vmatpush1.bf16.msra.mxu0 %v6796_v60  ;;  %5644 = vmatpush1.bf16.msra.mxu1 %v6798_v61  ;;  %v6852_v60 = vcombine.low %v511_v47, %v515_v48  ;;  %v6854_v61 = vcombine.low %v512_v49, %v516_v50  ;;  %v567_v47 = vld [vmem:[#allocation5 + $0xc90] sm:$0xff]  ;;  %v568_v49 = vld [vmem:[#allocation5 + $0xc98] sm:$0xff] }
 0x271   :  { %5399 = vmatprep.subr.bf16.mxu0 %v6805_v62  ;;  %5645 = vmatprep.subr.bf16.mxu1 %v6807_v53  ;;  %v6861_v62 = vcombine.high %v519_v57, %v523_v10  ;;  %v6863_v53 = vcombine.high %v520_v58, %v524_v23  ;;  %v571_v48 = vld [vmem:[#allocation5 + $0xcb0] sm:$0xff]  ;;  %v572_v50 = vld [vmem:[#allocation5 + $0xcb8] sm:$0xff] }
 0x274   :  { %5400 = vmatpush1.bf16.msra.mxu0 %v6804_v5  ;;  %5646 = vmatpush1.bf16.msra.mxu1 %v6806_v6  ;;  %v6860_v5 = vcombine.low %v519_v57, %v523_v10  ;;  %v6862_v6 = vcombine.low %v520_v58, %v524_v23  ;;  %v575_v57 = vld [vmem:[#allocation5 + $0xcd0] sm:$0xff]  ;;  %v576_v58 = vld [vmem:[#allocation5 + $0xcd8] sm:$0xff] }
 0x275   :  { %5401 = vmatprep.subr.bf16.mxu0 %v6813_v7  ;;  %5647 = vmatprep.subr.bf16.mxu1 %v6815_v8  ;;  %v6869_v7 = vcombine.high %v527_v1, %v531_v3  ;;  %v6871_v8 = vcombine.high %v528_v4, %v532_v9  ;;  %v579_v10 = vld [vmem:[#allocation5 + $0xcf0] sm:$0xff]  ;;  %v580_v23 = vld [vmem:[#allocation5 + $0xcf8] sm:$0xff] }
 0x278   :  { %5402 = vmatpush1.bf16.msra.mxu0 %v6812_v15  ;;  %5648 = vmatpush1.bf16.msra.mxu1 %v6814_v17  ;;  %v6868_v15 = vcombine.low %v527_v1, %v531_v3  ;;  %v6870_v17 = vcombine.low %v528_v4, %v532_v9  ;;  %v587_v1 = vld [vmem:[#allocation5 + $0xd30] sm:$0xff]  ;;  %v584_v3 = vld [vmem:[#allocation5 + $0xd18] sm:$0xff]  ;;  %v6916_v9 = vcombine.low %v575_v57, %v579_v10 }
 0x279   :  { %5403 = vmatprep.subr.bf16.mxu0 %v6821_v19  ;;  %5649 = vmatprep.subr.bf16.mxu1 %v6823_v59  ;;  %v6877_v19 = vcombine.high %v535_v13, %v539_v14  ;;  %v6879_v59 = vcombine.high %v536_v18, %v540_v33  ;;  %v588_v4 = vld [vmem:[#allocation5 + $0xd38] sm:$0xff] }
 0x27c   :  { %5404 = vmatpush1.bf16.msra.mxu0 %v6820_v24  ;;  %5650 = vmatpush1.bf16.msra.mxu1 %v6822_v26  ;;  %v6876_v24 = vcombine.low %v535_v13, %v539_v14  ;;  %v6878_v26 = vcombine.low %v536_v18, %v540_v33  ;;  %v592_v13 = vld [vmem:[#allocation5 + $0xd58] sm:$0xff]  ;;  %v6926_v33 = vcombine.low %v584_v3, %v588_v4 }
 0x27d   :  { %5405 = vmatprep.subr.bf16.mxu0 %v6829_v27  ;;  %5651 = vmatprep.subr.bf16.mxu1 %v6831_v28  ;;  %v6885_v27 = vcombine.high %v543_v20, %v547_v25  ;;  %v6887_v28 = vcombine.high %v544_v21, %v548_v22  ;;  %v596_v14 = vld [vmem:[#allocation5 + $0xd78] sm:$0xff] }
 0x280   :  { %5406 = vmatpush1.bf16.msra.mxu0 %v6828_v35  ;;  %5652 = vmatpush1.bf16.msra.mxu1 %v6830_v63  ;;  %v6884_v35 = vcombine.low %v543_v20, %v547_v25  ;;  %v6886_v63 = vcombine.low %v544_v21, %v548_v22  ;;  %v600_v20 = vld [vmem:[#allocation5 + $0xd98] sm:$0xff]  ;;  %v6934_v22 = vcombine.low %v592_v13, %v596_v14 }
 0x281   :  { %5407 = vmatprep.subr.bf16.mxu0 %v6837_v37  ;;  %5653 = vmatprep.subr.bf16.mxu1 %v6839_v38  ;;  %v6893_v37 = vcombine.high %v551_v30, %v555_v31  ;;  %v6895_v38 = vcombine.high %v552_v32, %v556_v36  ;;  %v604_v25 = vld [vmem:[#allocation5 + $0xdb8] sm:$0xff] }
 0x284   :  { %5408 = vmatpush1.bf16.msra.mxu0 %v6836_v45  ;;  %5654 = vmatpush1.bf16.msra.mxu1 %v6838_v43  ;;  %v6892_v45 = vcombine.low %v551_v30, %v555_v31  ;;  %v6894_v43 = vcombine.low %v552_v32, %v556_v36  ;;  %v611_v30 = vld [vmem:[#allocation5 + $0xdf0] sm:$0xff]  ;;  %v608_v36 = vld [vmem:[#allocation5 + $0xdd8] sm:$0xff] }
 0x285   :  { %5409 = vmatprep.subr.bf16.mxu0 %v6845_v46  ;;  %5655 = vmatprep.subr.bf16.mxu1 %v6847_v54  ;;  %v6901_v46 = vcombine.high %v559_v40, %v563_v41  ;;  %v6903_v54 = vcombine.high %v560_v55, %v564_v42 }
 0x288   :  { %5410 = vmatpush1.bf16.msra.mxu0 %v6844_v52  ;;  %5656 = vmatpush1.bf16.msra.mxu1 %v6846_v16  ;;  %v6900_v52 = vcombine.low %v559_v40, %v563_v41  ;;  %v6902_v16 = vcombine.low %v560_v55, %v564_v42  ;;  %v6942_v55 = vcombine.low %v600_v20, %v604_v25 }
 0x289   :  { %5411 = vmatprep.subr.bf16.mxu0 %v6853_v56  ;;  %5657 = vmatprep.subr.bf16.mxu1 %v6855_v51  ;;  %v6909_v56 = vcombine.high %v567_v47, %v571_v48  ;;  %v6911_v51 = vcombine.high %v568_v49, %v572_v50 }
 0x28c   :  { %5412 = vmatpush1.bf16.msra.mxu0 %v6852_v60  ;;  %5658 = vmatpush1.bf16.msra.mxu1 %v6854_v61  ;;  %v6908_v60 = vcombine.low %v567_v47, %v571_v48  ;;  %v6917_v61 = vcombine.high %v575_v57, %v579_v10  ;;  %v616_v47 = vld [vmem:[#allocation5 + $0xe18] sm:$0xff] }
 0x28d   :  { %5413 = vmatprep.subr.bf16.mxu0 %v6861_v62  ;;  %5659 = vmatprep.subr.bf16.mxu1 %v6863_v53  ;;  %v6919_v62 = vcombine.high %v576_v58, %v580_v23  ;;  %v583_v53 = vld [vmem:[#allocation5 + $0xd10] sm:$0xff]  ;;  %v620_v48 = vld [vmem:[#allocation5 + $0xe38] sm:$0xff] }
 0x28e   :  { %v6924_v18 = vcombine.low %v583_v53, %v587_v1  ;;  %v624_v57 = vld [vmem:[#allocation5 + $0xe58] sm:$0xff] }
 0x28f   :  { %v628_v10 = vld [vmem:[#allocation5 + $0xe78] sm:$0xff] }
 0x290   :  { %5414 = vmatpush1.bf16.msra.mxu0 %v6860_v5  ;;  %5660 = vmatpush1.bf16.msra.mxu1 %v6862_v6  ;;  %v6918_v5 = vcombine.low %v576_v58, %v580_v23  ;;  %v6925_v6 = vcombine.high %v583_v53, %v587_v1  ;;  %v6958_v23 = vcombine.low %v616_v47, %v620_v48  ;;  %v632_v53 = vld [vmem:[#allocation5 + $0xe98] sm:$0xff] }
 0x291   :  { %5415 = vmatprep.subr.bf16.mxu0 %v6869_v7  ;;  %5661 = vmatprep.subr.bf16.mxu1 %v6871_v8  ;;  %v591_v7 = vld [vmem:[#allocation5 + $0xd50] sm:$0xff]  ;;  %v636_v1 = vld [vmem:[#allocation5 + $0xeb8] sm:$0xff] }
 0x292   :  { %v595_v8 = vld [vmem:[#allocation5 + $0xd70] sm:$0xff] }
 0x293   :  { %v6932_v21 = vcombine.low %v591_v7, %v595_v8 }
 0x294   :  { %5416 = vmatpush1.bf16.msra.mxu0 %v6868_v15  ;;  %5662 = vmatpush1.bf16.msra.mxu1 %v6870_v17  ;;  %v6933_v15 = vcombine.high %v591_v7, %v595_v8  ;;  %v6935_v17 = vcombine.high %v592_v13, %v596_v14  ;;  %v640_v7 = vld [vmem:[#allocation5 + $0xed8] sm:$0xff]  ;;  %v6974_v14 = vcombine.low %v632_v53, %v636_v1 }
 0x295   :  { %5417 = vmatprep.subr.bf16.mxu0 %v6877_v19  ;;  %5663 = vmatprep.subr.bf16.mxu1 %v6879_v59  ;;  %v599_v19 = vld [vmem:[#allocation5 + $0xd90] sm:$0xff]  ;;  %v644_v8 = vld [vmem:[#allocation5 + $0xef8] sm:$0xff] }
 0x296   :  { %v603_v59 = vld [vmem:[#allocation5 + $0xdb0] sm:$0xff] }
 0x298   :  { %5418 = vmatpush1.bf16.msra.mxu0 %v6876_v24  ;;  %5664 = vmatpush1.bf16.msra.mxu1 %v6878_v26  ;;  %v6941_v24 = vcombine.high %v599_v19, %v603_v59 }
 0x299   :  { %5419 = vmatprep.subr.bf16.mxu0 %v6885_v27  ;;  %5665 = vmatprep.subr.bf16.mxu1 %v6887_v28  ;;  %v6943_v27 = vcombine.high %v600_v20, %v604_v25  ;;  %v607_v28 = vld [vmem:[#allocation5 + $0xdd0] sm:$0xff]  ;;  %v6982_v25 = vcombine.low %v640_v7, %v644_v8 }
 0x29a   :  { %v6949_v42 = vcombine.high %v607_v28, %v611_v30 }
 0x29c   :  { %5420 = vmatpush1.bf16.msra.mxu0 %v6884_v35  ;;  %5666 = vmatpush1.bf16.msra.mxu1 %v6886_v63  ;;  %v612_v35 = vld [vmem:[#allocation5 + $0xdf8] sm:$0xff] }
 0x29d   :  { %5430 = vmatprep.subr.bf16.mxu0 %v6893_v37  ;;  %5676 = vmatprep.subr.bf16.mxu1 %v6895_v38  ;;  %v6940_v38 = vcombine.low %v599_v19, %v603_v59  ;;  %v648_v19 = vld [vmem:[#allocation5 + $0xf18] sm:$0xff] }
 0x29e   :  { %v652_v59 = vld [vmem:[#allocation5 + $0xf38] sm:$0xff] }
 0x29f   :  { %5422 = vmatmul.mubr.bf16.vlgmr.msra.gmra.mrb[4].mxu0 %v7893_v2  ;;  %5668 = vmatmul.mubr.bf16.vlgmr.msra.gmra.mrb[4].mxu1 %v7893_v2  ;;  %v6910_v2 = vcombine.low %v568_v49, %v572_v50  ;;  %v6948_v49 = vcombine.low %v607_v28, %v611_v30  ;;  %v6950_v50 = vcombine.low %v608_v36, %v612_v35  ;;  %v656_v28 = vld [vmem:[#allocation5 + $0xf58] sm:$0xff] }
 0x2a0   :  { %5431 = vmatpush1.bf16.msra.mxu0 %v6892_v45  ;;  %5677 = vmatpush1.bf16.msra.mxu1 %v6894_v43  ;;  %v6951_v43 = vcombine.high %v608_v36, %v612_v35  ;;  %v660_v30 = vld [vmem:[#allocation5 + $0xf78] sm:$0xff]  ;;  %v6990_v35 = vcombine.low %v648_v19, %v652_v59 }
 0x2a1   :  { %5432 = vmatprep.subr.bf16.mxu0 %v6901_v46  ;;  %5678 = vmatprep.subr.bf16.mxu1 %v6903_v54  ;;  %v615_v46 = vld [vmem:[#allocation5 + $0xe10] sm:$0xff] }
 0x2a2   :  { %5462 = vmatprep.mubr.bf16.mxu0 %v7895_v12  ;;  %5708 = vmatprep.mubr.bf16.mxu1 %v7895_v12  ;;  %v6927_v12 = vcombine.high %v584_v3, %v588_v4  ;;  %v619_v54 = vld [vmem:[#allocation5 + $0xe30] sm:$0xff]  ;;  %v6966_v4 = vcombine.low %v624_v57, %v628_v10 }
 0x2a3   :  { %v6956_v58 = vcombine.low %v615_v46, %v619_v54 }
 0x2a4   :  { %5433 = vmatpush1.bf16.msra.mxu0 %v6900_v52  ;;  %5679 = vmatpush1.bf16.msra.mxu1 %v6902_v16  ;;  %v6957_v52 = vcombine.high %v615_v46, %v619_v54  ;;  %v6959_v16 = vcombine.high %v616_v47, %v620_v48  ;;  %v671_v47 = vld [vmem:[#allocation5 + $0xfd0] sm:$0xff] }
 0x2a5   :  { %5434 = vmatprep.subr.bf16.mxu0 %v6909_v56  ;;  %5680 = vmatprep.subr.bf16.mxu1 %v6911_v51  ;;  %v623_v56 = vld [vmem:[#allocation5 + $0xe50] sm:$0xff] }
 0x2a6   :  { %v627_v51 = vld [vmem:[#allocation5 + $0xe70] sm:$0xff] }
 0x2a7   :  { %v6964_v3 = vcombine.low %v623_v56, %v627_v51  ;;  %v675_v48 = vld [vmem:[#allocation5 + $0xff0] sm:$0xff] }
 0x2a8   :  { %5435 = vmatpush1.bf16.msra.mxu0 %v6908_v60  ;;  %5681 = vmatpush1.bf16.msra.mxu1 %v6910_v2  ;;  %v6965_v60 = vcombine.high %v623_v56, %v627_v51  ;;  %v6967_v2 = vcombine.high %v624_v57, %v628_v10  ;;  %v7013_v56 = vcombine.high %v671_v47, %v675_v48  ;;  %v679_v57 = vld [vmem:[#allocation5 + $0x1010] sm:$0xff] }
 0x2a9   :  { %5436 = vmatprep.subr.bf16.mxu0 %v6917_v61  ;;  %5682 = vmatprep.subr.bf16.mxu1 %v6919_v62  ;;  %v631_v61 = vld [vmem:[#allocation5 + $0xe90] sm:$0xff] }
 0x2aa   :  { %v635_v62 = vld [vmem:[#allocation5 + $0xeb0] sm:$0xff] }
 0x2ab   :  { %v6972_v13 = vcombine.low %v631_v61, %v635_v62  ;;  %v683_v10 = vld [vmem:[#allocation5 + $0x1030] sm:$0xff] }
 0x2ac   :  { %5437 = vmatpush1.bf16.msra.mxu0 %v6916_v9  ;;  %5683 = vmatpush1.bf16.msra.mxu1 %v6918_v5  ;;  %v6973_v9 = vcombine.high %v631_v61, %v635_v62  ;;  %v6975_v5 = vcombine.high %v632_v53, %v636_v1  ;;  %v7021_v61 = vcombine.high %v679_v57, %v683_v10  ;;  %v687_v53 = vld [vmem:[#allocation5 + $0x1050] sm:$0xff] }
 0x2ad   :  { %5438 = vmatprep.subr.bf16.mxu0 %v6925_v6  ;;  %5684 = vmatprep.subr.bf16.mxu1 %v6927_v12  ;;  %v639_v6 = vld [vmem:[#allocation5 + $0xed0] sm:$0xff] }
 0x2ae   :  { %v643_v12 = vld [vmem:[#allocation5 + $0xef0] sm:$0xff] }
 0x2af   :  { %v6980_v20 = vcombine.low %v639_v6, %v643_v12  ;;  %v691_v1 = vld [vmem:[#allocation5 + $0x1070] sm:$0xff] }
 0x2b0   :  { %5439 = vmatpush1.bf16.msra.mxu0 %v6924_v18  ;;  %5685 = vmatpush1.bf16.msra.mxu1 %v6926_v33  ;;  %v6981_v18 = vcombine.high %v639_v6, %v643_v12  ;;  %v6983_v33 = vcombine.high %v640_v7, %v644_v8  ;;  %v7029_v6 = vcombine.high %v687_v53, %v691_v1  ;;  %v695_v7 = vld [vmem:[#allocation5 + $0x1090] sm:$0xff] }
 0x2b1   :  { %5440 = vmatprep.subr.bf16.mxu0 %v6933_v15  ;;  %5686 = vmatprep.subr.bf16.mxu1 %v6935_v17  ;;  %v647_v15 = vld [vmem:[#allocation5 + $0xf10] sm:$0xff] }
 0x2b2   :  { %v7956_v26 = vpop.f32.mrb[0].mxu0  ;;  %v7958_v31 = vpop.f32.mrb[0].mxu1  ;;  %v651_v17 = vld [vmem:[#allocation5 + $0xf30] sm:$0xff] }
 0x2b3   :  { %v7960_v32 = vpop.f32.mrb[1].mxu0  ;;  %v7962_v63 = vpop.f32.mrb[1].mxu1  ;;  %v6988_v36 = vcombine.low %v647_v15, %v651_v17  ;;  %v699_v8 = vld [vmem:[#allocation5 + $0x10b0] sm:$0xff] }
 0x2b4   :  { %v5058_v37 = vpop.f32.mrb[2].mxu0  ;;  %5441 = vmatpush1.bf16.msra.mxu0 %v6932_v21  ;;  %v5304_v40 = vpop.f32.mrb[2].mxu1  ;;  %5687 = vmatpush1.bf16.msra.mxu1 %v6934_v22  ;;  %v6989_v21 = vcombine.high %v647_v15, %v651_v17  ;;  %v6991_v22 = vcombine.high %v648_v19, %v652_v59  ;;  %v7037_v15 = vcombine.high %v695_v7, %v699_v8  ;;  %v703_v19 = vld [vmem:[#allocation5 + $0x10d0] sm:$0xff] }
 0x2b5   :  { %v5059_v41 = vpop.f32.mrb[3].mxu0  ;;  %5442 = vmatprep.subr.bf16.mxu0 %v6941_v24  ;;  %v5305_v45 = vpop.f32.mrb[3].mxu1  ;;  %5688 = vmatprep.subr.bf16.mxu1 %v6943_v27  ;;  %v655_v24 = vld [vmem:[#allocation5 + $0xf50] sm:$0xff] }
 0x2b6   :  { %v659_v27 = vld [vmem:[#allocation5 + $0xf70] sm:$0xff] }
 0x2b7   :  { %v6997_v37 = vcombine.high %v655_v24, %v659_v27  ;;  %v663_v40 = vld [vmem:[#allocation5 + $0xf90] sm:$0xff]  ;;  %v6996_v45 = vcombine.low %v655_v24, %v659_v27 }
 0x2b8   :  { %5443 = vmatpush1.bf16.msra.mxu0 %v6940_v38  ;;  %5689 = vmatpush1.bf16.msra.mxu1 %v6942_v55  ;;  %v6999_v38 = vcombine.high %v656_v28, %v660_v30  ;;  %v667_v41 = vld [vmem:[#allocation5 + $0xfb0] sm:$0xff]  ;;  %v664_v55 = vld [vmem:[#allocation5 + $0xf98] sm:$0xff] }
 0x2b9   :  { %5444 = vmatprep.subr.bf16.mxu0 %v6949_v42  ;;  %5690 = vmatprep.subr.bf16.mxu1 %v6951_v43  ;;  %v668_v42 = vld [vmem:[#allocation5 + $0xfb8] sm:$0xff]  ;;  %v6998_v43 = vcombine.low %v656_v28, %v660_v30  ;;  %v7005_v46 = vcombine.high %v663_v40, %v667_v41  ;;  %v707_v59 = vld [vmem:[#allocation5 + $0x10f0] sm:$0xff] }
 0x2ba   :  { %v7007_v54 = vcombine.high %v664_v55, %v668_v42  ;;  %v711_v27 = vld [vmem:[#allocation5 + $0x1110] sm:$0xff]  ;;  %v712_v30 = vld [vmem:[#allocation5 + $0x1118] sm:$0xff] }
 0x2bb   :  { %v715_v28 = vld [vmem:[#allocation5 + $0x1130] sm:$0xff] }
 0x2bc   :  { %5445 = vmatpush1.bf16.msra.mxu0 %v6948_v49  ;;  %5691 = vmatpush1.bf16.msra.mxu1 %v6950_v50  ;;  %v672_v49 = vld [vmem:[#allocation5 + $0xfd8] sm:$0xff] }
 0x2bd   :  { %5446 = vmatprep.subr.bf16.mxu0 %v6957_v52  ;;  %5692 = vmatprep.subr.bf16.mxu1 %v6959_v16  ;;  %v676_v50 = vld [vmem:[#allocation5 + $0xff8] sm:$0xff]  ;;  %v7004_v52 = vcombine.low %v663_v40, %v667_v41  ;;  %v7006_v16 = vcombine.low %v664_v55, %v668_v42  ;;  %v719_v40 = vld [vmem:[#allocation5 + $0x1150] sm:$0xff] }
 0x2be   :  { %v7015_v51 = vcombine.high %v672_v49, %v676_v50  ;;  %v723_v41 = vld [vmem:[#allocation5 + $0x1170] sm:$0xff]  ;;  %v720_v55 = vld [vmem:[#allocation5 + $0x1158] sm:$0xff] }
 0x2bf   :  { %v724_v42 = vld [vmem:[#allocation5 + $0x1178] sm:$0xff] }
 0x2c0   :  { %5447 = vmatpush1.bf16.msra.mxu0 %v6956_v58  ;;  %5693 = vmatpush1.bf16.msra.mxu1 %v6958_v23  ;;  %v680_v58 = vld [vmem:[#allocation5 + $0x1018] sm:$0xff] }
 0x2c1   :  { %5448 = vmatprep.subr.bf16.mxu0 %v6965_v60  ;;  %5694 = vmatprep.subr.bf16.mxu1 %v6967_v2  ;;  %v684_v23 = vld [vmem:[#allocation5 + $0x1038] sm:$0xff]  ;;  %v7012_v60 = vcombine.low %v671_v47, %v675_v48  ;;  %v7014_v2 = vcombine.low %v672_v49, %v676_v50  ;;  %v727_v47 = vld [vmem:[#allocation5 + $0x1190] sm:$0xff] }
 0x2c2   :  { %v7023_v62 = vcombine.high %v680_v58, %v684_v23  ;;  %v731_v48 = vld [vmem:[#allocation5 + $0x11b0] sm:$0xff]  ;;  %v728_v49 = vld [vmem:[#allocation5 + $0x1198] sm:$0xff] }
 0x2c3   :  { %v732_v50 = vld [vmem:[#allocation5 + $0x11b8] sm:$0xff] }
 0x2c4   :  { %5449 = vmatpush1.bf16.msra.mxu0 %v6964_v3  ;;  %5695 = vmatpush1.bf16.msra.mxu1 %v6966_v4  ;;  %v688_v3 = vld [vmem:[#allocation5 + $0x1058] sm:$0xff] }
 0x2c5   :  { %5450 = vmatprep.subr.bf16.mxu0 %v6973_v9  ;;  %5696 = vmatprep.subr.bf16.mxu1 %v6975_v5  ;;  %v692_v4 = vld [vmem:[#allocation5 + $0x1078] sm:$0xff]  ;;  %v7020_v9 = vcombine.low %v679_v57, %v683_v10  ;;  %v7022_v5 = vcombine.low %v680_v58, %v684_v23  ;;  %v735_v57 = vld [vmem:[#allocation5 + $0x11d0] sm:$0xff] }
 0x2c6   :  { %v7031_v12 = vcombine.high %v688_v3, %v692_v4  ;;  %v739_v10 = vld [vmem:[#allocation5 + $0x11f0] sm:$0xff]  ;;  %v736_v58 = vld [vmem:[#allocation5 + $0x11d8] sm:$0xff] }
 0x2c7   :  { %v740_v23 = vld [vmem:[#allocation5 + $0x11f8] sm:$0xff] }
 0x2c8   :  { %5451 = vmatpush1.bf16.msra.mxu0 %v6972_v13  ;;  %5697 = vmatpush1.bf16.msra.mxu1 %v6974_v14  ;;  %v696_v13 = vld [vmem:[#allocation5 + $0x1098] sm:$0xff] }
 0x2c9   :  { %5452 = vmatprep.subr.bf16.mxu0 %v6981_v18  ;;  %5698 = vmatprep.subr.bf16.mxu1 %v6983_v33  ;;  %v700_v14 = vld [vmem:[#allocation5 + $0x10b8] sm:$0xff]  ;;  %v7028_v18 = vcombine.low %v687_v53, %v691_v1  ;;  %v7030_v33 = vcombine.low %v688_v3, %v692_v4  ;;  %v743_v53 = vld [vmem:[#allocation5 + $0x1210] sm:$0xff] }
 0x2ca   :  { %v7039_v17 = vcombine.high %v696_v13, %v700_v14  ;;  %v747_v1 = vld [vmem:[#allocation5 + $0x1230] sm:$0xff]  ;;  %v744_v3 = vld [vmem:[#allocation5 + $0x1218] sm:$0xff] }
 0x2cb   :  { %v748_v4 = vld [vmem:[#allocation5 + $0x1238] sm:$0xff] }
 0x2cc   :  { %5453 = vmatpush1.bf16.msra.mxu0 %v6980_v20  ;;  %5699 = vmatpush1.bf16.msra.mxu1 %v6982_v25  ;;  %v704_v20 = vld [vmem:[#allocation5 + $0x10d8] sm:$0xff] }
 0x2cd   :  { %5454 = vmatprep.subr.bf16.mxu0 %v6989_v21  ;;  %5700 = vmatprep.subr.bf16.mxu1 %v6991_v22  ;;  %v708_v25 = vld [vmem:[#allocation5 + $0x10f8] sm:$0xff]  ;;  %v7036_v21 = vcombine.low %v695_v7, %v699_v8  ;;  %v7045_v22 = vcombine.high %v703_v19, %v707_v59  ;;  %v751_v7 = vld [vmem:[#allocation5 + $0x1250] sm:$0xff] }
 0x2ce   :  { %v7047_v24 = vcombine.high %v704_v20, %v708_v25  ;;  %v755_v8 = vld [vmem:[#allocation5 + $0x1270] sm:$0xff] }
 0x2d0   :  { %5455 = vmatpush1.bf16.msra.mxu0 %v6988_v36  ;;  %5701 = vmatpush1.bf16.msra.mxu1 %v6990_v35  ;;  %v716_v36 = vld [vmem:[#allocation5 + $0x1138] sm:$0xff]  ;;  %v7044_v35 = vcombine.low %v703_v19, %v707_v59  ;;  %v759_v19 = vld [vmem:[#allocation5 + $0x1290] sm:$0xff] }
 0x2d1   :  { %5456 = vmatprep.subr.bf16.mxu0 %v6997_v37  ;;  %5702 = vmatprep.subr.bf16.mxu1 %v6999_v38  ;;  %v7046_v37 = vcombine.low %v704_v20, %v708_v25  ;;  %v7053_v38 = vcombine.high %v711_v27, %v715_v28  ;;  %v763_v59 = vld [vmem:[#allocation5 + $0x12b0] sm:$0xff]  ;;  %v760_v20 = vld [vmem:[#allocation5 + $0x1298] sm:$0xff] }
 0x2d2   :  { %v764_v25 = vld [vmem:[#allocation5 + $0x12b8] sm:$0xff] }
 0x2d4   :  { %5457 = vmatpush1.bf16.msra.mxu0 %v6996_v45  ;;  %5703 = vmatpush1.bf16.msra.mxu1 %v6998_v43  ;;  %v7052_v45 = vcombine.low %v711_v27, %v715_v28  ;;  %v7054_v43 = vcombine.low %v712_v30, %v716_v36  ;;  %v767_v27 = vld [vmem:[#allocation5 + $0x12d0] sm:$0xff] }
 0x2d5   :  { %5458 = vmatprep.subr.bf16.mxu0 %v7005_v46  ;;  %5704 = vmatprep.subr.bf16.mxu1 %v7007_v54  ;;  %v7061_v46 = vcombine.high %v719_v40, %v723_v41  ;;  %v7063_v54 = vcombine.high %v720_v55, %v724_v42  ;;  %v771_v28 = vld [vmem:[#allocation5 + $0x12f0] sm:$0xff] }
 0x2d8   :  { %5459 = vmatpush1.bf16.msra.mxu0 %v7004_v52  ;;  %5705 = vmatpush1.bf16.msra.mxu1 %v7006_v16  ;;  %v7060_v52 = vcombine.low %v719_v40, %v723_v41  ;;  %v7062_v16 = vcombine.low %v720_v55, %v724_v42  ;;  %v775_v40 = vld [vmem:[#allocation5 + $0x1310] sm:$0xff]  ;;  %v776_v55 = vld [vmem:[#allocation5 + $0x1318] sm:$0xff] }
 0x2d9   :  { %5460 = vmatprep.subr.bf16.mxu0 %v7013_v56  ;;  %5706 = vmatprep.subr.bf16.mxu1 %v7015_v51  ;;  %v7069_v56 = vcombine.high %v727_v47, %v731_v48  ;;  %v7071_v51 = vcombine.high %v728_v49, %v732_v50  ;;  %v779_v41 = vld [vmem:[#allocation5 + $0x1330] sm:$0xff]  ;;  %v780_v42 = vld [vmem:[#allocation5 + $0x1338] sm:$0xff] }
 0x2dc   :  { %5461 = vmatpush1.bf16.msra.mxu0 %v7012_v60  ;;  %5707 = vmatpush1.bf16.msra.mxu1 %v7014_v2  ;;  %v7068_v60 = vcombine.low %v727_v47, %v731_v48  ;;  %v7070_v2 = vcombine.low %v728_v49, %v732_v50  ;;  %v783_v47 = vld [vmem:[#allocation5 + $0x1350] sm:$0xff]  ;;  %v784_v49 = vld [vmem:[#allocation5 + $0x1358] sm:$0xff] }
 0x2dd   :  { %5471 = vmatprep.subr.bf16.mxu0 %v7021_v61  ;;  %5717 = vmatprep.subr.bf16.mxu1 %v7023_v62  ;;  %v7077_v61 = vcombine.high %v735_v57, %v739_v10  ;;  %v7079_v62 = vcombine.high %v736_v58, %v740_v23  ;;  %v787_v48 = vld [vmem:[#allocation5 + $0x1370] sm:$0xff]  ;;  %v788_v50 = vld [vmem:[#allocation5 + $0x1378] sm:$0xff] }
 0x2df   :  { %5463 = vmatmul.mubr.bf16.vlgmr.msra.gmra.mrb[4].mxu0 %v7911_v29  ;;  %5709 = vmatmul.mubr.bf16.vlgmr.msra.gmra.mrb[4].mxu1 %v7911_v29  ;;  %v7038_v29 = vcombine.low %v696_v13, %v700_v14  ;;  %v752_v13 = vld [vmem:[#allocation5 + $0x1258] sm:$0xff] }
 0x2e0   :  { %5472 = vmatpush1.bf16.msra.mxu0 %v7020_v9  ;;  %5718 = vmatpush1.bf16.msra.mxu1 %v7022_v5  ;;  %v7076_v9 = vcombine.low %v735_v57, %v739_v10  ;;  %v7078_v5 = vcombine.low %v736_v58, %v740_v23  ;;  %v756_v14 = vld [vmem:[#allocation5 + $0x1278] sm:$0xff]  ;;  %v791_v57 = vld [vmem:[#allocation5 + $0x1390] sm:$0xff] }
 0x2e1   :  { %5473 = vmatprep.subr.bf16.mxu0 %v7029_v6  ;;  %5719 = vmatprep.subr.bf16.mxu1 %v7031_v12  ;;  %v7085_v6 = vcombine.high %v743_v53, %v747_v1  ;;  %v7087_v12 = vcombine.high %v744_v3, %v748_v4  ;;  %v795_v10 = vld [vmem:[#allocation5 + $0x13b0] sm:$0xff]  ;;  %v792_v58 = vld [vmem:[#allocation5 + $0x1398] sm:$0xff] }
 0x2e2   :  { %5503 = vmatprep.mubr.bf16.mxu0 %v7913_v39  ;;  %5749 = vmatprep.mubr.bf16.mxu1 %v7913_v39  ;;  %v7055_v39 = vcombine.high %v712_v30, %v716_v36  ;;  %v768_v30 = vld [vmem:[#allocation5 + $0x12d8] sm:$0xff] }
 0x2e3   :  { %v772_v36 = vld [vmem:[#allocation5 + $0x12f8] sm:$0xff] }
 0x2e4   :  { %5474 = vmatpush1.bf16.msra.mxu0 %v7028_v18  ;;  %5720 = vmatpush1.bf16.msra.mxu1 %v7030_v33  ;;  %v7084_v18 = vcombine.low %v743_v53, %v747_v1  ;;  %v7086_v33 = vcombine.low %v744_v3, %v748_v4  ;;  %v796_v23 = vld [vmem:[#allocation5 + $0x13b8] sm:$0xff]  ;;  %v799_v53 = vld [vmem:[#allocation5 + $0x13d0] sm:$0xff] }
 0x2e5   :  { %5475 = vmatprep.subr.bf16.mxu0 %v7037_v15  ;;  %5721 = vmatprep.subr.bf16.mxu1 %v7039_v17  ;;  %v7093_v15 = vcombine.high %v751_v7, %v755_v8  ;;  %v7095_v17 = vcombine.high %v752_v13, %v756_v14  ;;  %v803_v1 = vld [vmem:[#allocation5 + $0x13f0] sm:$0xff]  ;;  %v800_v3 = vld [vmem:[#allocation5 + $0x13d8] sm:$0xff] }
 0x2e6   :  { %v804_v4 = vld [vmem:[#allocation5 + $0x13f8] sm:$0xff] }
 0x2e8   :  { %5476 = vmatpush1.bf16.msra.mxu0 %v7036_v21  ;;  %5722 = vmatpush1.bf16.msra.mxu1 %v7038_v29  ;;  %v7092_v21 = vcombine.low %v751_v7, %v755_v8  ;;  %v7094_v29 = vcombine.low %v752_v13, %v756_v14  ;;  %v807_v7 = vld [vmem:[#allocation5 + $0x1410] sm:$0xff]  ;;  %v808_v13 = vld [vmem:[#allocation5 + $0x1418] sm:$0xff] }
 0x2e9   :  { %5477 = vmatprep.subr.bf16.mxu0 %v7045_v22  ;;  %5723 = vmatprep.subr.bf16.mxu1 %v7047_v24  ;;  %v7101_v22 = vcombine.high %v759_v19, %v763_v59  ;;  %v7103_v24 = vcombine.high %v760_v20, %v764_v25  ;;  %v811_v8 = vld [vmem:[#allocation5 + $0x1430] sm:$0xff]  ;;  %v812_v14 = vld [vmem:[#allocation5 + $0x1438] sm:$0xff] }
 0x2ec   :  { %5478 = vmatpush1.bf16.msra.mxu0 %v7044_v35  ;;  %5724 = vmatpush1.bf16.msra.mxu1 %v7046_v37  ;;  %v7100_v35 = vcombine.low %v759_v19, %v763_v59  ;;  %v7102_v37 = vcombine.low %v760_v20, %v764_v25  ;;  %v815_v19 = vld [vmem:[#allocation5 + $0x1450] sm:$0xff]  ;;  %v816_v20 = vld [vmem:[#allocation5 + $0x1458] sm:$0xff] }
 0x2ed   :  { %5479 = vmatprep.subr.bf16.mxu0 %v7053_v38  ;;  %5725 = vmatprep.subr.bf16.mxu1 %v7055_v39  ;;  %v7109_v38 = vcombine.high %v767_v27, %v771_v28  ;;  %v7111_v39 = vcombine.high %v768_v30, %v772_v36  ;;  %v819_v59 = vld [vmem:[#allocation5 + $0x1470] sm:$0xff]  ;;  %v820_v25 = vld [vmem:[#allocation5 + $0x1478] sm:$0xff] }
 0x2f0   :  { %5480 = vmatpush1.bf16.msra.mxu0 %v7052_v45  ;;  %5726 = vmatpush1.bf16.msra.mxu1 %v7054_v43  ;;  %v7108_v45 = vcombine.low %v767_v27, %v771_v28  ;;  %v7110_v43 = vcombine.low %v768_v30, %v772_v36  ;;  %v823_v27 = vld [vmem:[#allocation5 + $0x1490] sm:$0xff]  ;;  %v824_v30 = vld [vmem:[#allocation5 + $0x1498] sm:$0xff] }
 0x2f1   :  { %5481 = vmatprep.subr.bf16.mxu0 %v7061_v46  ;;  %5727 = vmatprep.subr.bf16.mxu1 %v7063_v54  ;;  %v7117_v46 = vcombine.high %v775_v40, %v779_v41  ;;  %v7119_v54 = vcombine.high %v776_v55, %v780_v42  ;;  %v827_v28 = vld [vmem:[#allocation5 + $0x14b0] sm:$0xff]  ;;  %v828_v36 = vld [vmem:[#allocation5 + $0x14b8] sm:$0xff] }
 0x2f4   :  { %5482 = vmatpush1.bf16.msra.mxu0 %v7060_v52  ;;  %5728 = vmatpush1.bf16.msra.mxu1 %v7062_v16  ;;  %v7116_v52 = vcombine.low %v775_v40, %v779_v41  ;;  %v7118_v16 = vcombine.low %v776_v55, %v780_v42  ;;  %v831_v40 = vld [vmem:[#allocation5 + $0x14d0] sm:$0xff]  ;;  %v832_v55 = vld [vmem:[#allocation5 + $0x14d8] sm:$0xff] }
 0x2f5   :  { %5483 = vmatprep.subr.bf16.mxu0 %v7069_v56  ;;  %5729 = vmatprep.subr.bf16.mxu1 %v7071_v51  ;;  %v7125_v56 = vcombine.high %v783_v47, %v787_v48  ;;  %v7127_v51 = vcombine.high %v784_v49, %v788_v50  ;;  %v835_v41 = vld [vmem:[#allocation5 + $0x14f0] sm:$0xff]  ;;  %v836_v42 = vld [vmem:[#allocation5 + $0x14f8] sm:$0xff] }
 0x2f8   :  { %5484 = vmatpush1.bf16.msra.mxu0 %v7068_v60  ;;  %5730 = vmatpush1.bf16.msra.mxu1 %v7070_v2  ;;  %v7124_v60 = vcombine.low %v783_v47, %v787_v48  ;;  %v7126_v2 = vcombine.low %v784_v49, %v788_v50  ;;  %v843_v47 = vld [vmem:[#allocation5 + $0x1530] sm:$0xff]  ;;  %v840_v48 = vld [vmem:[#allocation5 + $0x1518] sm:$0xff]  ;;  %v7172_v50 = vcombine.low %v831_v40, %v835_v41 }
 0x2f9   :  { %5485 = vmatprep.subr.bf16.mxu0 %v7077_v61  ;;  %5731 = vmatprep.subr.bf16.mxu1 %v7079_v62  ;;  %v7133_v61 = vcombine.high %v791_v57, %v795_v10  ;;  %v7135_v62 = vcombine.high %v792_v58, %v796_v23  ;;  %v844_v49 = vld [vmem:[#allocation5 + $0x1538] sm:$0xff] }
 0x2fc   :  { %5486 = vmatpush1.bf16.msra.mxu0 %v7076_v9  ;;  %5732 = vmatpush1.bf16.msra.mxu1 %v7078_v5  ;;  %v7132_v9 = vcombine.low %v791_v57, %v795_v10  ;;  %v7134_v5 = vcombine.low %v792_v58, %v796_v23  ;;  %v848_v57 = vld [vmem:[#allocation5 + $0x1558] sm:$0xff]  ;;  %v7182_v23 = vcombine.low %v840_v48, %v844_v49 }
 0x2fd   :  { %5487 = vmatprep.subr.bf16.mxu0 %v7085_v6  ;;  %5733 = vmatprep.subr.bf16.mxu1 %v7087_v12  ;;  %v7141_v6 = vcombine.high %v799_v53, %v803_v1  ;;  %v7143_v12 = vcombine.high %v800_v3, %v804_v4  ;;  %v852_v10 = vld [vmem:[#allocation5 + $0x1578] sm:$0xff] }
 0x300   :  { %5488 = vmatpush1.bf16.msra.mxu0 %v7084_v18  ;;  %5734 = vmatpush1.bf16.msra.mxu1 %v7086_v33  ;;  %v7140_v18 = vcombine.low %v799_v53, %v803_v1  ;;  %v7142_v33 = vcombine.low %v800_v3, %v804_v4  ;;  %v856_v53 = vld [vmem:[#allocation5 + $0x1598] sm:$0xff]  ;;  %v7190_v4 = vcombine.low %v848_v57, %v852_v10 }
 0x301   :  { %5489 = vmatprep.subr.bf16.mxu0 %v7093_v15  ;;  %5735 = vmatprep.subr.bf16.mxu1 %v7095_v17  ;;  %v7149_v15 = vcombine.high %v807_v7, %v811_v8  ;;  %v7151_v17 = vcombine.high %v808_v13, %v812_v14  ;;  %v860_v1 = vld [vmem:[#allocation5 + $0x15b8] sm:$0xff] }
 0x304   :  { %5490 = vmatpush1.bf16.msra.mxu0 %v7092_v21  ;;  %5736 = vmatpush1.bf16.msra.mxu1 %v7094_v29  ;;  %v7148_v21 = vcombine.low %v807_v7, %v811_v8  ;;  %v7150_v29 = vcombine.low %v808_v13, %v812_v14  ;;  %v864_v7 = vld [vmem:[#allocation5 + $0x15d8] sm:$0xff]  ;;  %v7198_v14 = vcombine.low %v856_v53, %v860_v1 }
 0x305   :  { %5491 = vmatprep.subr.bf16.mxu0 %v7101_v22  ;;  %5737 = vmatprep.subr.bf16.mxu1 %v7103_v24  ;;  %v7157_v22 = vcombine.high %v815_v19, %v819_v59  ;;  %v7159_v24 = vcombine.high %v816_v20, %v820_v25  ;;  %v868_v8 = vld [vmem:[#allocation5 + $0x15f8] sm:$0xff] }
 0x308   :  { %5492 = vmatpush1.bf16.msra.mxu0 %v7100_v35  ;;  %5738 = vmatpush1.bf16.msra.mxu1 %v7102_v37  ;;  %v7156_v35 = vcombine.low %v815_v19, %v819_v59  ;;  %v7158_v37 = vcombine.low %v816_v20, %v820_v25  ;;  %v872_v19 = vld [vmem:[#allocation5 + $0x1618] sm:$0xff]  ;;  %v7206_v25 = vcombine.low %v864_v7, %v868_v8 }
 0x309   :  { %5493 = vmatprep.subr.bf16.mxu0 %v7109_v38  ;;  %5739 = vmatprep.subr.bf16.mxu1 %v7111_v39  ;;  %v7165_v38 = vcombine.high %v823_v27, %v827_v28  ;;  %v7167_v39 = vcombine.high %v824_v30, %v828_v36  ;;  %v876_v59 = vld [vmem:[#allocation5 + $0x1638] sm:$0xff] }
 0x30c   :  { %5494 = vmatpush1.bf16.msra.mxu0 %v7108_v45  ;;  %5740 = vmatpush1.bf16.msra.mxu1 %v7110_v43  ;;  %v7164_v45 = vcombine.low %v823_v27, %v827_v28  ;;  %v7173_v43 = vcombine.high %v831_v40, %v835_v41  ;;  %v880_v27 = vld [vmem:[#allocation5 + $0x1658] sm:$0xff] }
 0x30d   :  { %5495 = vmatprep.subr.bf16.mxu0 %v7117_v46  ;;  %5741 = vmatprep.subr.bf16.mxu1 %v7119_v54  ;;  %v7175_v46 = vcombine.high %v832_v55, %v836_v42  ;;  %v839_v54 = vld [vmem:[#allocation5 + $0x1510] sm:$0xff]  ;;  %v884_v28 = vld [vmem:[#allocation5 + $0x1678] sm:$0xff] }
 0x30e   :  { %v7180_v58 = vcombine.low %v839_v54, %v843_v47  ;;  %v888_v40 = vld [vmem:[#allocation5 + $0x1698] sm:$0xff] }
 0x30f   :  { %v892_v41 = vld [vmem:[#allocation5 + $0x16b8] sm:$0xff] }
 0x310   :  { %5496 = vmatpush1.bf16.msra.mxu0 %v7116_v52  ;;  %5742 = vmatpush1.bf16.msra.mxu1 %v7118_v16  ;;  %v7174_v52 = vcombine.low %v832_v55, %v836_v42  ;;  %v7181_v16 = vcombine.high %v839_v54, %v843_v47  ;;  %v7222_v42 = vcombine.low %v880_v27, %v884_v28  ;;  %v896_v54 = vld [vmem:[#allocation5 + $0x16d8] sm:$0xff] }
 0x311   :  { %5497 = vmatprep.subr.bf16.mxu0 %v7125_v56  ;;  %5743 = vmatprep.subr.bf16.mxu1 %v7127_v51  ;;  %v847_v56 = vld [vmem:[#allocation5 + $0x1550] sm:$0xff]  ;;  %v900_v47 = vld [vmem:[#allocation5 + $0x16f8] sm:$0xff] }
 0x312   :  { %v851_v51 = vld [vmem:[#allocation5 + $0x1570] sm:$0xff] }
 0x313   :  { %v7188_v3 = vcombine.low %v847_v56, %v851_v51 }
 0x314   :  { %5498 = vmatpush1.bf16.msra.mxu0 %v7124_v60  ;;  %5744 = vmatpush1.bf16.msra.mxu1 %v7126_v2  ;;  %v7189_v60 = vcombine.high %v847_v56, %v851_v51  ;;  %v7191_v2 = vcombine.high %v848_v57, %v852_v10  ;;  %v904_v56 = vld [vmem:[#allocation5 + $0x1718] sm:$0xff]  ;;  %v7238_v10 = vcombine.low %v896_v54, %v900_v47 }
 0x315   :  { %5499 = vmatprep.subr.bf16.mxu0 %v7133_v61  ;;  %5745 = vmatprep.subr.bf16.mxu1 %v7135_v62  ;;  %v855_v61 = vld [vmem:[#allocation5 + $0x1590] sm:$0xff]  ;;  %v908_v51 = vld [vmem:[#allocation5 + $0x1738] sm:$0xff] }
 0x316   :  { %v859_v62 = vld [vmem:[#allocation5 + $0x15b0] sm:$0xff] }
 0x317   :  { %v7196_v13 = vcombine.low %v855_v61, %v859_v62 }
 0x318   :  { %5500 = vmatpush1.bf16.msra.mxu0 %v7132_v9  ;;  %5746 = vmatpush1.bf16.msra.mxu1 %v7134_v5  ;;  %v7197_v9 = vcombine.high %v855_v61, %v859_v62  ;;  %v7199_v5 = vcombine.high %v856_v53, %v860_v1  ;;  %v912_v61 = vld [vmem:[#allocation5 + $0x1758] sm:$0xff]  ;;  %v7246_v1 = vcombine.low %v904_v56, %v908_v51 }
 0x319   :  { %5501 = vmatprep.subr.bf16.mxu0 %v7141_v6  ;;  %5747 = vmatprep.subr.bf16.mxu1 %v7143_v12  ;;  %v863_v6 = vld [vmem:[#allocation5 + $0x15d0] sm:$0xff]  ;;  %v916_v62 = vld [vmem:[#allocation5 + $0x1778] sm:$0xff] }
 0x31a   :  { %v867_v12 = vld [vmem:[#allocation5 + $0x15f0] sm:$0xff] }
 0x31b   :  { %v7204_v20 = vcombine.low %v863_v6, %v867_v12 }
 0x31c   :  { %5502 = vmatpush1.bf16.msra.mxu0 %v7140_v18  ;;  %5748 = vmatpush1.bf16.msra.mxu1 %v7142_v33  ;;  %v7205_v18 = vcombine.high %v863_v6, %v867_v12  ;;  %v7207_v33 = vcombine.high %v864_v7, %v868_v8  ;;  %v920_v6 = vld [vmem:[#allocation5 + $0x1798] sm:$0xff]  ;;  %v7254_v8 = vcombine.low %v912_v61, %v916_v62 }
 0x31d   :  { %5512 = vmatprep.subr.bf16.mxu0 %v7149_v15  ;;  %5758 = vmatprep.subr.bf16.mxu1 %v7151_v17  ;;  %v871_v15 = vld [vmem:[#allocation5 + $0x1610] sm:$0xff]  ;;  %v924_v12 = vld [vmem:[#allocation5 + $0x17b8] sm:$0xff] }
 0x31e   :  { %v875_v17 = vld [vmem:[#allocation5 + $0x1630] sm:$0xff] }
 0x31f   :  { %5504 = vmatmul.mubr.bf16.vlgmr.msra.gmra.mrb[4].mxu0 %v7928_v0  ;;  %5750 = vmatmul.mubr.bf16.vlgmr.msra.gmra.mrb[4].mxu1 %v7928_v0  ;;  %v7166_v0 = vcombine.low %v824_v30, %v828_v36  ;;  %v7212_v30 = vcombine.low %v871_v15, %v875_v17  ;;  %v7214_v36 = vcombine.low %v872_v19, %v876_v59 }
 0x320   :  { %5513 = vmatpush1.bf16.msra.mxu0 %v7148_v21  ;;  %5759 = vmatpush1.bf16.msra.mxu1 %v7150_v29  ;;  %v7213_v21 = vcombine.high %v871_v15, %v875_v17  ;;  %v7215_v29 = vcombine.high %v872_v19, %v876_v59  ;;  %v941_v15 = vsub.s32 1, %v7832_v44  ;;  %v928_v17 = vld [vmem:[#allocation5 + $0x17d8] sm:$0xff]  ;;  %v7973_v59 = vld [vmem:[#allocation7] sm:$0xff] }
 0x321   :  { %5514 = vmatprep.subr.bf16.mxu0 %v7157_v22  ;;  %5760 = vmatprep.subr.bf16.mxu1 %v7159_v24  ;;  %v879_v22 = vld [vmem:[#allocation5 + $0x1650] sm:$0xff]  ;;  %v932_v19 = vld [vmem:[#allocation5 + $0x17f8] sm:$0xff] }
 0x322   :  { %5544 = vmatprep.mubr.bf16.mxu0 %v7930_v11  ;;  %5790 = vmatprep.mubr.bf16.mxu1 %v7930_v11  ;;  %v7183_v11 = vcombine.high %v840_v48, %v844_v49  ;;  %v883_v24 = vld [vmem:[#allocation5 + $0x1670] sm:$0xff]  ;;  %v7230_v49 = vcombine.low %v888_v40, %v892_v41 }
 0x323   :  { %v7220_v55 = vcombine.low %v879_v22, %v883_v24 }
 0x324   :  { %5515 = vmatpush1.bf16.msra.mxu0 %v7156_v35  ;;  %5761 = vmatpush1.bf16.msra.mxu1 %v7158_v37  ;;  %v7221_v35 = vcombine.high %v879_v22, %v883_v24  ;;  %v7223_v37 = vcombine.high %v880_v27, %v884_v28  ;;  %v7271_v22 = vcombine.high %v928_v17, %v932_v19 }
 0x325   :  { %5516 = vmatprep.subr.bf16.mxu0 %v7165_v38  ;;  %5762 = vmatprep.subr.bf16.mxu1 %v7167_v39  ;;  %v887_v38 = vld [vmem:[#allocation5 + $0x1690] sm:$0xff]  ;;  %v942_v24 = vrot.slane %v7973_v59, %v941_v15 }
 0x326   :  { %v891_v39 = vld [vmem:[#allocation5 + $0x16b0] sm:$0xff] }
 0x327   :  { %v7228_v48 = vcombine.low %v887_v38, %v891_v39 }
 0x328   :  { %5517 = vmatpush1.bf16.msra.mxu0 %v7164_v45  ;;  %5763 = vmatpush1.bf16.msra.mxu1 %v7166_v0  ;;  %v7229_v45 = vcombine.high %v887_v38, %v891_v39  ;;  %v7231_v0 = vcombine.high %v888_v40, %v892_v41  ;;  %v7529_v39 = vld [vmem:[#allocation8] sm:$0xff]   ;;  %v7531_v41 = vld [vmem:[#allocation8 + $0x48] sm:$0xff]  }
 0x329   :  { %5518 = vmatprep.subr.bf16.mxu0 %v7173_v43  ;;  %5764 = vmatprep.subr.bf16.mxu1 %v7175_v46  ;;  %v895_v43 = vld [vmem:[#allocation5 + $0x16d0] sm:$0xff]  ;;  %v7530_v40 = vld [vmem:[#allocation8 + $0x80] sm:$0xff]  }
 0x32a   :  { %v899_v46 = vld [vmem:[#allocation5 + $0x16f0] sm:$0xff] }
 0x32b   :  { %v7236_v57 = vcombine.low %v895_v43, %v899_v46 }
 0x32c   :  { %5519 = vmatpush1.bf16.msra.mxu0 %v7172_v50  ;;  %5765 = vmatpush1.bf16.msra.mxu1 %v7174_v52  ;;  %v7237_v50 = vcombine.high %v895_v43, %v899_v46  ;;  %v7239_v52 = vcombine.high %v896_v54, %v900_v47  ;;  %v7536_v43 = vld [vmem:[#allocation8 + $0xd0] sm:$0xff]   ;;  %v7539_v47 = vld [vmem:[#allocation8 + $0x58] sm:$0xff]  }
 0x32d   :  { %5520 = vmatprep.subr.bf16.mxu0 %v7181_v16  ;;  %5766 = vmatprep.subr.bf16.mxu1 %v7183_v11  ;;  %v903_v16 = vld [vmem:[#allocation5 + $0x1710] sm:$0xff]  ;;  %v7537_v46 = vld [vmem:[#allocation8 + $0x10] sm:$0xff]  }
 0x32e   :  { %v907_v11 = vld [vmem:[#allocation5 + $0x1730] sm:$0xff]  ;;  %v7538_v54 = vld [vmem:[#allocation8 + $0x90] sm:$0xff]  }
 0x32f   :  { %v7244_v53 = vcombine.low %v903_v16, %v907_v11 }
 0x330   :  { %5521 = vmatpush1.bf16.msra.mxu0 %v7180_v58  ;;  %5767 = vmatpush1.bf16.msra.mxu1 %v7182_v23  ;;  %v7245_v58 = vcombine.high %v903_v16, %v907_v11  ;;  %v7247_v23 = vcombine.high %v904_v56, %v908_v51  ;;  %v7545_v16 = vld [vmem:[#allocation8 + $0x20] sm:$0xff]   ;;  %v7547_v56 = vld [vmem:[#allocation8 + $0x68] sm:$0xff]  }
 0x331   :  { %5522 = vmatprep.subr.bf16.mxu0 %v7189_v60  ;;  %5768 = vmatprep.subr.bf16.mxu1 %v7191_v2  ;;  %v911_v60 = vld [vmem:[#allocation5 + $0x1750] sm:$0xff]  ;;  %v7546_v11 = vld [vmem:[#allocation8 + $0xa0] sm:$0xff]  }
 0x332   :  { %v915_v2 = vld [vmem:[#allocation5 + $0x1770] sm:$0xff] }
 0x333   :  { %v7252_v7 = vcombine.low %v911_v60, %v915_v2  ;;  %v7548_v51 = vld [vmem:[#allocation8 + $0xe8] sm:$0xff]  }
 0x334   :  { %5523 = vmatpush1.bf16.msra.mxu0 %v7188_v3  ;;  %5769 = vmatpush1.bf16.msra.mxu1 %v7190_v4  ;;  %v7253_v3 = vcombine.high %v911_v60, %v915_v2  ;;  %v7255_v4 = vcombine.high %v912_v61, %v916_v62  ;;  %v945_v60 = vsub.s32 2, %v7832_v44  ;;  %v7552_v2 = vld [vmem:[#allocation8 + $0xf0] sm:$0xff]  }
 0x335   :  { %5524 = vmatprep.subr.bf16.mxu0 %v7197_v9  ;;  %5770 = vmatprep.subr.bf16.mxu1 %v7199_v5  ;;  %v919_v9 = vld [vmem:[#allocation5 + $0x1790] sm:$0xff]  ;;  %v7553_v61 = vld [vmem:[#allocation8 + $0x30] sm:$0xff]  }
 0x336   :  { %v923_v5 = vld [vmem:[#allocation5 + $0x17b0] sm:$0xff] }
 0x338   :  { %5525 = vmatpush1.bf16.msra.mxu0 %v7196_v13  ;;  %5771 = vmatpush1.bf16.msra.mxu1 %v7198_v14  ;;  %v7261_v13 = vcombine.high %v919_v9, %v923_v5  ;;  %v7263_v14 = vcombine.high %v920_v6, %v924_v12 }
 0x339   :  { %5526 = vmatprep.subr.bf16.mxu0 %v7205_v18  ;;  %5772 = vmatprep.subr.bf16.mxu1 %v7207_v33  ;;  %v927_v18 = vld [vmem:[#allocation5 + $0x17d0] sm:$0xff] }
 0x33a   :  { %v931_v33 = vld [vmem:[#allocation5 + $0x17f0] sm:$0xff] }
 0x33b   :  { %v7268_v28 = vcombine.low %v927_v18, %v931_v33 }
 0x33c   :  { %5527 = vmatpush1.bf16.msra.mxu0 %v7204_v20  ;;  %5773 = vmatpush1.bf16.msra.mxu1 %v7206_v25  ;;  %v949_v20 = vsub.s32 3, %v7832_v44  ;;  %v7260_v25 = vcombine.low %v919_v9, %v923_v5  ;;  %v7557_v9 = vld [vmem:[#allocation8 + $0x38] sm:$0xff]  }
 0x33d   :  { %5528 = vmatprep.subr.bf16.mxu0 %v7213_v21  ;;  %5774 = vmatprep.subr.bf16.mxu1 %v7215_v29  ;;  %v7262_v21 = vcombine.low %v920_v6, %v924_v12  ;;  %v7269_v29 = vcombine.high %v927_v18, %v931_v33  ;;  %v7558_v6 = vld [vmem:[#allocation8 + $0xb8] sm:$0xff]   ;;  %v7559_v12 = vld [vmem:[#allocation8 + $0x140] sm:$0xff]   ;;  %v7563_v33 = vld [vmem:[#allocation8 + $0x148] sm:$0xff]  }
 0x33e   :  { %v950_v27 = vrot.slane %v7973_v59, %v949_v20  ;;  %v7562_v18 = vld [vmem:[#allocation8 + $0x180] sm:$0xff]   ;;  %v7568_v20 = vld [vmem:[#allocation8 + $0x1d0] sm:$0xff]  }
 0x340   :  { %5529 = vmatpush1.bf16.msra.mxu0 %v7212_v30  ;;  %5775 = vmatpush1.bf16.msra.mxu1 %v7214_v36  ;;  %v7270_v30 = vcombine.low %v928_v17, %v932_v19  ;;  %v7527_v36 = vld [vmem:[#allocation8 + $0x40] sm:$0xff]   ;;  %v7428_v38 = vadd.f32 %v7962_v63, %v950_v27  ;;  %v7535_v63 = vld [vmem:[#allocation8 + $0x50] sm:$0xff]   ;;  %v7564_v17 = vld [vmem:[#allocation8 + $0x1c8] sm:$0xff]  }
 0x341   :  { %5530 = vmatprep.subr.bf16.mxu0 %v7221_v35  ;;  %5776 = vmatprep.subr.bf16.mxu1 %v7223_v37  ;;  %v7528_v35 = vld [vmem:[#allocation8 + $0xc0] sm:$0xff]   ;;  %v7426_v37 = vadd.f32 %v7960_v32, %v942_v24  ;;  %v7534_v32 = vld [vmem:[#allocation8 + $0x88] sm:$0xff]   ;;  %v7573_v24 = vld [vmem:[#allocation8 + $0x118] sm:$0xff]  }
 0x342   :  { %v7566_v19 = vld [vmem:[#allocation8 + $0x188] sm:$0xff]   ;;  %v7574_v27 = vld [vmem:[#allocation8 + $0x198] sm:$0xff]  }
 0x344   :  { %5531 = vmatpush1.bf16.msra.mxu0 %v7220_v55  ;;  %5777 = vmatpush1.bf16.msra.mxu1 %v7222_v42  ;;  %v5800_v55 = vpack.c.bf16 %v7426_v37, %v7426_v37  ;;  %v7532_v42 = vld [vmem:[#allocation8 + $0xc8] sm:$0xff]  }
 0x345   :  { %5532 = vmatprep.subr.bf16.mxu0 %v7229_v45  ;;  %5778 = vmatprep.subr.bf16.mxu1 %v7231_v0  ;;  %v5802_v45 = vpack.c.bf16 %v7428_v38, %v7428_v38  ;;  %v7533_v0 = vld [vmem:[#allocation8 + $0x8] sm:$0xff]  }
 0x346   :  { %v7579_v37 = vld [vmem:[#allocation8 + $0x168] sm:$0xff]  }
 0x347   :  { %v7580_v38 = vld [vmem:[#allocation8 + $0x1e8] sm:$0xff]  }
 0x348   :  { %5533 = vmatpush1.bf16.msra.mxu0 %v7228_v48  ;;  %5779 = vmatpush1.bf16.msra.mxu1 %v7230_v49  ;;  %v7540_v48 = vld [vmem:[#allocation8 + $0xd8] sm:$0xff]  }
 0x349   :  { %5534 = vmatprep.subr.bf16.mxu0 %v7237_v50  ;;  %5780 = vmatprep.subr.bf16.mxu1 %v7239_v52  ;;  %v7542_v49 = vld [vmem:[#allocation8 + $0x98] sm:$0xff]   ;;  %v7543_v50 = vld [vmem:[#allocation8 + $0x60] sm:$0xff]  }
 0x34a   :  { %v7544_v52 = vld [vmem:[#allocation8 + $0xe0] sm:$0xff]  }
 0x34c   :  { %5535 = vmatpush1.bf16.msra.mxu0 %v7236_v57  ;;  %5781 = vmatpush1.bf16.msra.mxu1 %v7238_v10  ;;  %v7549_v57 = vld [vmem:[#allocation8 + $0x28] sm:$0xff]   ;;  %v937_v10 = vsub.s32 0, %v7832_v44 }
 0x34d   :  { %5536 = vmatprep.subr.bf16.mxu0 %v7245_v58  ;;  %5782 = vmatprep.subr.bf16.mxu1 %v7247_v23  ;;  %v7550_v58 = vld [vmem:[#allocation8 + $0xa8] sm:$0xff]   ;;  %v7551_v23 = vld [vmem:[#allocation8 + $0x70] sm:$0xff]  }
 0x34e   :  { %v938_v62 = vrot.slane %v7973_v59, %v937_v10 }
 0x350   :  { %5537 = vmatpush1.bf16.msra.mxu0 %v7244_v53  ;;  %5783 = vmatpush1.bf16.msra.mxu1 %v7246_v1  ;;  %v7554_v53 = vld [vmem:[#allocation8 + $0xb0] sm:$0xff]   ;;  %v7555_v1 = vld [vmem:[#allocation8 + $0x78] sm:$0xff]   ;;  %v7425_v5 = vadd.f32 %v7956_v26, %v938_v62  ;;  %v7565_v26 = vld [vmem:[#allocation8 + $0x108] sm:$0xff]  }
 0x351   :  { %5538 = vmatprep.subr.bf16.mxu0 %v7253_v3  ;;  %5784 = vmatprep.subr.bf16.mxu1 %v7255_v4  ;;  %v946_v3 = vrot.slane %v7973_v59, %v945_v60  ;;  %v7556_v4 = vld [vmem:[#allocation8 + $0xf8] sm:$0xff]  }
 0x354   :  { %5539 = vmatpush1.bf16.msra.mxu0 %v7252_v7  ;;  %5785 = vmatpush1.bf16.msra.mxu1 %v7254_v8  ;;  %v7427_v7 = vadd.f32 %v7958_v31, %v946_v3  ;;  %v7560_v8 = vld [vmem:[#allocation8 + $0x1c0] sm:$0xff]   ;;  %v7567_v31 = vld [vmem:[#allocation8 + $0x150] sm:$0xff]  }
 0x355   :  { %5540 = vmatprep.subr.bf16.mxu0 %v7261_v13  ;;  %5786 = vmatprep.subr.bf16.mxu1 %v7263_v14  ;;  %v7561_v13 = vld [vmem:[#allocation8 + $0x100] sm:$0xff]   ;;  %v5799_v14 = vpack.c.bf16 %v7425_v5, %v7425_v5 }
 0x356   :  { %v5801_v15 = vpack.c.bf16 %v7427_v7, %v7427_v7 }
 0x358   :  { %5541 = vmatpush1.bf16.msra.mxu0 %v7260_v25  ;;  %5787 = vmatpush1.bf16.msra.mxu1 %v7262_v21  ;;  %v7569_v25 = vld [vmem:[#allocation8 + $0x110] sm:$0xff]  }
 0x359   :  { %5542 = vmatprep.subr.bf16.mxu0 %v7269_v29  ;;  %5788 = vmatprep.subr.bf16.mxu1 %v7271_v22  ;;  %v7570_v21 = vld [vmem:[#allocation8 + $0x190] sm:$0xff]   ;;  %v7571_v29 = vld [vmem:[#allocation8 + $0x158] sm:$0xff]  }
 0x35a   :  { %v7572_v22 = vld [vmem:[#allocation8 + $0x1d8] sm:$0xff]  }
 0x35c   :  { %5543 = vmatpush1.bf16.msra.mxu0 %v7268_v28  ;;  %5789 = vmatpush1.bf16.msra.mxu1 %v7270_v30  ;;  %v7575_v28 = vld [vmem:[#allocation8 + $0x160] sm:$0xff]  }
 0x35d   :  { %7337 = vmatprep.subr.bf16.mxu0 %v7527_v36  ;;  %7359 = vmatprep.subr.bf16.mxu1 %v7528_v35  ;;  %v7576_v30 = vld [vmem:[#allocation8 + $0x1e0] sm:$0xff]  }
 0x35e   :  { %v7577_v36 = vld [vmem:[#allocation8 + $0x120] sm:$0xff]  }
 0x35f   :  { %5545 = vmatmul.mubr.bf16.vlgmr.msra.gmra.mrb[4].mxu0 %v7938_v34  ;;  %5791 = vmatmul.mubr.bf16.vlgmr.msra.gmra.mrb[4].mxu1 %v7938_v34  ;;  %v7541_v34 = vld [vmem:[#allocation8 + $0x18] sm:$0xff]   ;;  %v7578_v35 = vld [vmem:[#allocation8 + $0x1a0] sm:$0xff]  }
 0x360   :  { %7338 = vmatpush3.bf16.msra.mxu0 %v7529_v39  ;;  %6358 = vmatprep.mubr.bf16.mxu0 %v5800_v55  ;;  %v7581_v39 = vld [vmem:[#allocation8 + $0x128] sm:$0xff]   ;;  %v7584_v55 = vld [vmem:[#allocation8 + $0x1f0] sm:$0xff]  }
 0x361   :  { %7360 = vmatpush3.bf16.msra.mxu1 %v7530_v40  ;;  %6398 = vmatprep.mubr.bf16.mxu1 %v5802_v45  ;;  %v7582_v40 = vld [vmem:[#allocation8 + $0x1a8] sm:$0xff]   ;;  %v7586_v45 = vld [vmem:[#allocation8 + $0x1b0] sm:$0xff]  }
 0x362   :  { %7339 = vmatprep.subr.bf16.mxu0 %v7531_v41  ;;  %7361 = vmatprep.subr.bf16.mxu1 %v7532_v42  ;;  %v7583_v41 = vld [vmem:[#allocation8 + $0x170] sm:$0xff]  }
 0x363   :  { %v7585_v42 = vld [vmem:[#allocation8 + $0x130] sm:$0xff]  }
 0x364   :  { %7340 = vmatpush3.bf16.msra.mxu0 %v7533_v0  ;;  %v7587_v0 = vld [vmem:[#allocation8 + $0x178] sm:$0xff]  }
 0x365   :  { %7362 = vmatpush3.bf16.msra.mxu1 %v7534_v32  ;;  %7341 = vmatprep.subr.bf16.mxu0 %v7535_v63  ;;  %v7588_v32 = vld [vmem:[#allocation8 + $0x1f8] sm:$0xff]  }
 0x366   :  { %7363 = vmatprep.subr.bf16.mxu1 %v7536_v43  ;;  %v7589_v63 = vld [vmem:[#allocation8 + $0x138] sm:$0xff]  }
 0x367   :  { %v7590_v43 = vld [vmem:[#allocation8 + $0x1b8] sm:$0xff]  }
 0x368   :  { %7342 = vmatpush3.bf16.msra.mxu0 %v7537_v46  ;;  %v953_v46 = vsub.s32 4, %v7832_v44 }
 0x369   :  { %7364 = vmatpush3.bf16.msra.mxu1 %v7538_v54  ;;  %7343 = vmatprep.subr.bf16.mxu0 %v7539_v47  ;;  %v961_v54 = vsub.s32 6, %v7832_v44  ;;  %v957_v47 = vsub.s32 5, %v7832_v44 }
 0x36a   :  { %7365 = vmatprep.subr.bf16.mxu1 %v7540_v48  ;;  %v965_v48 = vsub.s32 7, %v7832_v44 }
 0x36c   :  { %7344 = vmatpush3.bf16.msra.mxu0 %v7541_v34  ;;  %v954_v34 = vrot.slane %v7973_v59, %v953_v46 }
 0x36d   :  { %7366 = vmatpush3.bf16.msra.mxu1 %v7542_v49  ;;  %7345 = vmatprep.subr.bf16.mxu0 %v7543_v50  ;;  %v962_v49 = vrot.slane %v7973_v59, %v961_v54  ;;  %v958_v50 = vrot.slane %v7973_v59, %v957_v47 }
 0x36e   :  { %7367 = vmatprep.subr.bf16.mxu1 %v7544_v52  ;;  %v966_v52 = vrot.slane %v7973_v59, %v965_v48 }
 0x370   :  { %7346 = vmatpush3.bf16.msra.mxu0 %v7545_v16 }
 0x371   :  { %7368 = vmatpush3.bf16.msra.mxu1 %v7546_v11  ;;  %7347 = vmatprep.subr.bf16.mxu0 %v7547_v56 }
 0x372   :  { %7369 = vmatprep.subr.bf16.mxu1 %v7548_v51 }
 0x374   :  { %7348 = vmatpush3.bf16.msra.mxu0 %v7549_v57 }
 0x375   :  { %7370 = vmatpush3.bf16.msra.mxu1 %v7550_v58  ;;  %7349 = vmatprep.subr.bf16.mxu0 %v7551_v23 }
 0x376   :  { %7371 = vmatprep.subr.bf16.mxu1 %v7552_v2 }
 0x378   :  { %7350 = vmatpush3.bf16.msra.mxu0 %v7553_v61 }
 0x379   :  { %7372 = vmatpush3.bf16.msra.mxu1 %v7554_v53  ;;  %7351 = vmatprep.subr.bf16.mxu0 %v7555_v1 }
 0x37a   :  { %7373 = vmatprep.subr.bf16.mxu1 %v7556_v4 }
 0x37c   :  { %7352 = vmatpush3.bf16.msra.mxu0 %v7557_v9  ;;  %v7272_v9 = vld [vmem:[#allocation10] ss:$0 sm:$0xff] }
 0x37d   :  { %7374 = vmatpush3.bf16.msra.mxu1 %v7558_v6  ;;  %7381 = vmatprep.subr.bf16.mxu0 %v7559_v12 }
 0x37e   :  { %7403 = vmatprep.subr.bf16.mxu1 %v7560_v8 }
 0x37f   :  { %6359 = vmatmul.mubr.bf16.vlgmr.msra.gmra.mrb[8].mxu0 %v5799_v14 }
 0x380   :  { %6399 = vmatmul.mubr.bf16.vlgmr.msra.gmra.mrb[8].mxu1 %v5801_v15  ;;  %7382 = vmatpush3.bf16.msra.mxu0 %v7561_v13 }
 0x381   :  { %7404 = vmatpush3.bf16.msra.mxu1 %v7562_v18  ;;  %7383 = vmatprep.subr.bf16.mxu0 %v7563_v33 }
 0x382   :  { %7405 = vmatprep.subr.bf16.mxu1 %v7564_v17 }
 0x384   :  { %7384 = vmatpush3.bf16.msra.mxu0 %v7565_v26 }
 0x385   :  { %7406 = vmatpush3.bf16.msra.mxu1 %v7566_v19  ;;  %7385 = vmatprep.subr.bf16.mxu0 %v7567_v31 }
 0x386   :  { %7407 = vmatprep.subr.bf16.mxu1 %v7568_v20 }
 0x388   :  { %7386 = vmatpush3.bf16.msra.mxu0 %v7569_v25 }
 0x389   :  { %7408 = vmatpush3.bf16.msra.mxu1 %v7570_v21  ;;  %7387 = vmatprep.subr.bf16.mxu0 %v7571_v29 }
 0x38a   :  { %7409 = vmatprep.subr.bf16.mxu1 %v7572_v22 }
 0x38c   :  { %7388 = vmatpush3.bf16.msra.mxu0 %v7573_v24 }
 0x38d   :  { %7410 = vmatpush3.bf16.msra.mxu1 %v7574_v27  ;;  %7389 = vmatprep.subr.bf16.mxu0 %v7575_v28 }
 0x38e   :  { %7411 = vmatprep.subr.bf16.mxu1 %v7576_v30 }
 0x390   :  { %7390 = vmatpush3.bf16.msra.mxu0 %v7577_v36 }
 0x391   :  { %7412 = vmatpush3.bf16.msra.mxu1 %v7578_v35  ;;  %7391 = vmatprep.subr.bf16.mxu0 %v7579_v37 }
 0x392   :  { %7413 = vmatprep.subr.bf16.mxu1 %v7580_v38 }
 0x394   :  { %7392 = vmatpush3.bf16.msra.mxu0 %v7581_v39 }
 0x395   :  { %7414 = vmatpush3.bf16.msra.mxu1 %v7582_v40  ;;  %7393 = vmatprep.subr.bf16.mxu0 %v7583_v41 }
 0x396   :  { %7415 = vmatprep.subr.bf16.mxu1 %v7584_v55 }
 0x398   :  { %7394 = vmatpush3.bf16.msra.mxu0 %v7585_v42 }
 0x399   :  { %7416 = vmatpush3.bf16.msra.mxu1 %v7586_v45  ;;  %7395 = vmatprep.subr.bf16.mxu0 %v7587_v0 }
 0x39a   :  { %7417 = vmatprep.subr.bf16.mxu1 %v7588_v32 }
 0x39c   :  { %7396 = vmatpush3.bf16.msra.mxu0 %v7589_v63 }
 0x39d   :  { %7418 = vmatpush3.bf16.msra.mxu1 %v7590_v43 }
 0x432   :  { %v5546_v16 = vpop.f32.mrb[4].mxu0  ;;  %v5792_v56 = vpop.f32.mrb[4].mxu1 }
 0x433   :  { %v7429_v11 = vadd.f32 %v5546_v16, %v954_v34  ;;  %v5548_v51 = vpop.f32.mrb[5].mxu0  ;;  %v7431_v57 = vadd.f32 %v5792_v56, %v962_v49  ;;  %v5794_v58 = vpop.f32.mrb[5].mxu1 }
 0x434   :  { %v7430_v10 = vadd.f32 %v5548_v51, %v958_v50  ;;  %v5550_v23 = vpop.f32.mrb[6].mxu0  ;;  %v7432_v60 = vadd.f32 %v5794_v58, %v966_v52  ;;  %v5796_v2 = vpop.f32.mrb[6].mxu1 }
 0x435   :  { %v5551_v61 = vpop.f32.mrb[7].mxu0  ;;  %v5797_v62 = vpop.f32.mrb[7].mxu1  ;;  %v5803_v53 = vpack.c.bf16 %v7429_v11, %v7429_v11  ;;  %v5805_v3 = vpack.c.bf16 %v7431_v57, %v7431_v57 }
 0x436   :  { %v5804_v44 = vpack.c.bf16 %v7430_v10, %v7430_v10  ;;  %v5806_v1 = vpack.c.bf16 %v7432_v60, %v7432_v60 }
 0x438   :  { %6438 = vmatprep.mubr.bf16.mxu0 %v5804_v44  ;;  %6478 = vmatprep.mubr.bf16.mxu1 %v5806_v1 }
 0x439   :  { %6439 = vmatmul.mubr.bf16.vlgmr.msra.gmra.mrb[12].mxu0 %v5803_v53  ;;  %6479 = vmatmul.mubr.bf16.vlgmr.msra.gmra.mrb[12].mxu1 %v5805_v3 }
 0x452   :  { %v7353_v59 = vpop.f32.mrb[8].mxu0 }
 0x453   :  { %v7375_v4 = vpop.f32.mrb[8].mxu1  ;;  %v7354_v5 = vpop.f32.mrb[9].mxu0 }
 0x454   :  { %v7355_v6 = vadd.f32 %v7354_v5, %v7353_v59  ;;  %v7376_v12 = vpop.f32.mrb[9].mxu1  ;;  %v7356_v7 = vpop.f32.mrb[10].mxu0 }
 0x455   :  { %v7377_v8 = vadd.f32 %v7376_v12, %v7375_v4  ;;  %v7378_v13 = vpop.f32.mrb[10].mxu1  ;;  %v7357_v14 = vpop.f32.mrb[11].mxu0 }
 0x456   :  { %v6361_v18 = vadd.f32 %v7355_v6, %v7272_v9  ;;  %v7379_v33 = vpop.f32.mrb[11].mxu1 }
 0x458   :  { %v6401_v15 = vadd.f32 %v7377_v8, %v6361_v18 }
 0x50c   :  { %v7397_v17 = vpop.f32.mrb[12].mxu0  ;;  %v7419_v26 = vpop.f32.mrb[12].mxu1 }
 0x50d   :  { %v7398_v19 = vpop.f32.mrb[13].mxu0  ;;  %v7420_v20 = vpop.f32.mrb[13].mxu1 }
 0x50e   :  { %v7399_v31 = vadd.f32 %v7398_v19, %v7397_v17  ;;  %v7400_v25 = vpop.f32.mrb[14].mxu0  ;;  %v7421_v21 = vadd.f32 %v7420_v20, %v7419_v26  ;;  %v7422_v29 = vpop.f32.mrb[14].mxu1 }
 0x50f   :  { %v7401_v22 = vpop.f32.mrb[15].mxu0  ;;  %v7423_v27 = vpop.f32.mrb[15].mxu1 }
 0x510   :  { %v6441_v24 = vadd.f32 %v7399_v31, %v6401_v15 }
 0x512   :  { %v6481_v28 = vadd.f32 %v7421_v21, %v6441_v24 }
 0x514   :  { %6486 = vst [vmem:[#allocation11] sm:$0x3] %v6481_v28 }
 0x515   :  { %7712 = shalt.err (!%p7709_p2)
}
 0x516   :  { %s7713_s6 = scalar_lea.hbm %s8013_s5, 32 }
 0x517   :  { %p7714_p3 = scmp.ne.s32.totalorder %s8013_s5, %s7713_s6  ;;  %p7717_p4 = scmp.lt.u32.totalorder %s7713_s6, %s8013_s5 }
 0x519   :  { %p7719_p5 = pnand %p7717_p4, %p7714_p3 }
 0x51b   :  { %7722 = shalt.err (!%p7719_p5)
}
 0x51c   :  { %6496 = dma.vmem_to_hbm [thread:$0]  %s6494_s28, 32, %s8013_s5, [#allocation4]  }
 0x51d   :  { %7729 = dma.done.wait [#allocation4], 32  }
 0x51e   :  { %7730 = vsyncadd [#allocation4], 4294967264 }
 0x51f   :  { %6500 = vsyncpa [#allocation3], 1 }
 0x520   :  { %6501 = vsyncpa [#allocation6], 1 }
 0x521   :  { %6502 = vsyncpa [#allocation9], 1 }
 0x522   :  { %6503 = vsyncpa [#allocation4], 1 }

</bundles_post_ra>
